<compile_context>
chip_gen: v6e
topology: v6e:2x2x1
jax: 0.10.0
libtpu: 0.0.40
codegen_flags: <defaults>
</compile_context>

<pallas_src>
import jax
import jax.numpy as jnp
from jax import lax
from jax.experimental import pallas as pl
from jax.experimental.pallas import tpu as pltpu

EXPAND_RATIO = 4
BN_EPS = 1e-5


# ---------------------------------------------------------------------------
# In-kernel building blocks (values in (time, channels) layout)
# ---------------------------------------------------------------------------
def _ir_block(x, w1_ref, b1_ref, wd_ref, b2_ref, w2_ref, b3_ref, hpad_ref,
              valid_rows):
    """Fused InvertedResidual: pw-expand -> ReLU6 -> depthwise(K) -> ReLU6 ->
    pw-linear + residual.

    x          : (T, C) value (rows >= valid_rows may hold junk and are
                 treated as zero padding by the depthwise conv).
    w1_ref     : (C, H)   b1_ref : (1, H)   wd_ref : (K, H)
    b2_ref     : (1, H)   w2_ref : (H, C)   b3_ref : (1, C)
    hpad_ref   : VMEM scratch, width == H, rows >= hi + T - 1.
    """
    T, _ = x.shape
    K = wd_ref.shape[0]
    H = hpad_ref.shape[1]
    pad = (K - 1) // 2

    # pointwise expand + folded BN + ReLU6  (MXU)
    h = jnp.dot(x, w1_ref[...], preferred_element_type=jnp.float32) + b1_ref[...]
    h = jnp.clip(h, 0.0, 6.0)

    # depthwise conv ("same" padding).  Only taps that can touch a valid row
    # are evaluated; only the halo rows those taps actually read are zeroed.
    lo = max(0, pad - (T - 1))
    hi = min(K, pad + T)
    if pad - lo > 0:                                   # head halo actually read
        hpad_ref[pl.ds(lo, pad - lo), :] = jnp.zeros((pad - lo, H), jnp.float32)
    tail = hi - 1 - pad                                # tail halo actually read
    if tail > 0:
        hpad_ref[pl.ds(pad + T, tail), :] = jnp.zeros((tail, H), jnp.float32)
    hpad_ref[pl.ds(pad, T), :] = h
    if valid_rows < T:                                 # junk rows -> zero padding
        hpad_ref[pl.ds(pad + valid_rows, T - valid_rows), :] = (
            jnp.zeros((T - valid_rows, H), jnp.float32))

    acc = jnp.zeros((T, H), jnp.float32)
    # static unroll with static slice offsets (trimmed range: <= min(K, 2T-1))
    for k in range(lo, hi):
        acc = acc + hpad_ref[pl.ds(k, T), :] * wd_ref[pl.ds(k, 1), :]
    acc = jnp.clip(acc + b2_ref[...], 0.0, 6.0)

    # pointwise linear projection + folded BN + residual
    out = jnp.dot(acc, w2_ref[...], preferred_element_type=jnp.float32) + b3_ref[...]
    return x + out


def _conv_transpose_block(x, w_ref, b_ref, xp_ref):
    """ConvTranspose1d(k=5, stride=2, padding=2) producing 2T rows; rows
    0..2T-2 are the true output of length 2T-1, row 2T-1 is junk (never read
    as data downstream: the IR blocks treat it as zero padding and the final
    head slices it away).

    x: (T, Cin)  w_ref: (5, Cin, Cout)  b_ref: (1, Cout)  xp_ref: (T+2, Cin).
    """
    T, C = x.shape
    xp_ref[pl.ds(0, 1), :] = jnp.zeros((1, C), jnp.float32)
    xp_ref[pl.ds(T + 1, 1), :] = jnp.zeros((1, C), jnp.float32)
    xp_ref[pl.ds(1, T), :] = x
    x0 = xp_ref[pl.ds(0, T), :]
    x1 = xp_ref[pl.ds(1, T), :]
    x2 = xp_ref[pl.ds(2, T), :]
    b = b_ref[...]
    even = (jnp.dot(x0, w_ref[4], preferred_element_type=jnp.float32)
            + jnp.dot(x1, w_ref[2], preferred_element_type=jnp.float32)
            + jnp.dot(x2, w_ref[0], preferred_element_type=jnp.float32) + b)
    odd = (jnp.dot(x2, w_ref[1], preferred_element_type=jnp.float32)
           + jnp.dot(x1, w_ref[3], preferred_element_type=jnp.float32) + b)
    # interleave even/odd along time with two small permutation matmuls (MXU);
    # avoids in-kernel stack/reshape relayouts and any XLA glue.
    row = lax.broadcasted_iota(jnp.int32, (2 * T, T), 0)
    col = lax.broadcasted_iota(jnp.int32, (2 * T, T), 1)
    pe = (row == 2 * col).astype(jnp.float32)
    po = (row == 2 * col + 1).astype(jnp.float32)
    return (jnp.dot(pe, even, preferred_element_type=jnp.float32)
            + jnp.dot(po, odd, preferred_element_type=jnp.float32))


def _make_decoder_kernel(n_l1, n_l2):
    n_weights = 6 * n_l1 + 2 + 2 + 6 * n_l2 + 2

    def kernel(x_ref, *refs):
        w = refs[:n_weights]
        out_x_ref = refs[n_weights]          # (1, O, 2T-1)
        out_y_ref = refs[n_weights + 1]      # (1, S, T)
        hpad1_ref = refs[n_weights + 2]      # layer1 depthwise scratch
        xp_ref = refs[n_weights + 3]         # conv-transpose padding scratch
        hpad2_ref = refs[n_weights + 4]      # layer2 depthwise scratch

        T = x_ref.shape[1]
        x = x_ref[0]                                           # (T, C)

        i = 0
        for _ in range(n_l1):                                  # layer1
            x = _ir_block(x, w[i], w[i + 1], w[i + 2], w[i + 3], w[i + 4],
                          w[i + 5], hpad1_ref, valid_rows=T)
            i += 6

        # layer3: secondary head, emitted directly in (channels, time) = NCL
        w_sec_t, b_sec = w[i], w[i + 1]
        i += 2
        out_y_ref[0] = lax.dot_general(
            w_sec_t[...], x, (((1,), (1,)), ((), ())),
            preferred_element_type=jnp.float32) + b_sec[...]

        # layer2: ConvTranspose x2 -> IR blocks -> pointwise out head
        w_ct, b_ct = w[i], w[i + 1]
        i += 2
        h = _conv_transpose_block(x, w_ct, b_ct, xp_ref)       # (2T, C2)
        for _ in range(n_l2):
            h = _ir_block(h, w[i], w[i + 1], w[i + 2], w[i + 3], w[i + 4],
                          w[i + 5], hpad2_ref, valid_rows=2 * T - 1)
            i += 6
        w_out_t, b_out = w[i], w[i + 1]
        out_t = lax.dot_general(
            w_out_t[...], h, (((1,), (1,)), ((), ())),
            preferred_element_type=jnp.float32) + b_out[...]   # (O, 2T)
        out_x_ref[0] = out_t[:, : 2 * T - 1]

    return kernel


# ---------------------------------------------------------------------------
# Wrapper: one fused pallas_call for the whole decoder
# ---------------------------------------------------------------------------
def voice_multitask_decoder_fwd(x_ncl, params):
    """x_ncl: (N, hidden, T)  ->  ((N, out_ch, 2T-1), (N, sec_ch, T)) in NCL."""
    x_nlc = jnp.transpose(x_ncl, (0, 2, 1))   # single tiny boundary transpose
    B, T, C = x_nlc.shape

    l1 = params["layer1"]
    l2 = params["layer2_ir"]
    n_l1, n_l2 = len(l1), len(l2)
    S = params["layer3"]["w"].shape[0]
    O = params["layer2_out"]["w"].shape[0]
    H1 = l1[0]["w1"].shape[1]
    H2 = l2[0]["w1"].shape[1]
    K1 = max(p["wd"].shape[0] for p in l1)
    K2 = max(p["wd"].shape[0] for p in l2)

    weights = []
    for p in l1:
        weights += [p["w1"], p["b1"], p["wd"], p["b2"], p["w2"], p["b3"]]
    weights += [params["layer3"]["w"], params["layer3"]["b"]]
    weights += [params["layer2_ct"]["w"], params["layer2_ct"]["b"]]
    for p in l2:
        weights += [p["w1"], p["b1"], p["wd"], p["b2"], p["w2"], p["b3"]]
    weights += [params["layer2_out"]["w"], params["layer2_out"]["b"]]

    def _const(nd):
        return lambda b: (0,) * nd

    in_specs = [pl.BlockSpec((1, T, C), lambda b: (b, 0, 0))]
    in_specs += [pl.BlockSpec(w.shape, _const(w.ndim)) for w in weights]
    out_specs = [pl.BlockSpec((1, O, 2 * T - 1), lambda b: (b, 0, 0)),
                 pl.BlockSpec((1, S, T), lambda b: (b, 0, 0))]
    scratch = [pltpu.VMEM((T + K1 - 1, H1), jnp.float32),
               pltpu.VMEM((T + 2, C), jnp.float32),
               pltpu.VMEM((2 * T + K2 - 1, H2), jnp.float32)]

    out_x, out_y = pl.pallas_call(
        _make_decoder_kernel(n_l1, n_l2),
        out_shape=(jax.ShapeDtypeStruct((B, O, 2 * T - 1), x_ncl.dtype),
                   jax.ShapeDtypeStruct((B, S, T), x_ncl.dtype)),
        grid_spec=pltpu.PrefetchScalarGridSpec(
            num_scalar_prefetch=0, grid=(B,),
            in_specs=in_specs, out_specs=out_specs, scratch_shapes=scratch),
        compiler_params=pltpu.CompilerParams(
            dimension_semantics=("parallel",)),   # batch across TCs on v7x
    )(x_nlc, *weights)
    return out_x, out_y


# ---------------------------------------------------------------------------
# Deterministic parameter initialization (PyTorch layouts) + BN folding
# ---------------------------------------------------------------------------
def _conv_w(key, cout, cin, k):
    return 0.1 * jax.random.normal(key, (cout, cin, k), jnp.float32)


def _bn(key, c):
    k1, k2, k3, k4 = jax.random.split(key, 4)
    gamma = 1.0 + 0.1 * jax.random.normal(k1, (c,), jnp.float32)
    beta = 0.1 * jax.random.normal(k2, (c,), jnp.float32)
    mean = 0.1 * jax.random.normal(k3, (c,), jnp.float32)
    var = jax.random.uniform(k4, (c,), jnp.float32, minval=0.5, maxval=1.5)
    return gamma, beta, mean, var


def _fold(bn):
    gamma, beta, mean, var = bn
    s = gamma / jnp.sqrt(var + BN_EPS)
    return s, beta - mean * s


def init_inverted_residual(key, c, k):
    h = c * EXPAND_RATIO
    keys = jax.random.split(key, 6)
    w_pw1 = _conv_w(keys[0], h, c, 1)        # (H, C, 1)
    bn1 = _bn(keys[1], h)
    w_dw = _conv_w(keys[2], h, 1, k)         # (H, 1, K)
    bn2 = _bn(keys[3], h)
    w_pw2 = _conv_w(keys[4], c, h, 1)        # (C, H, 1)
    bn3 = _bn(keys[5], c)
    raw = dict(w_pw1=w_pw1, bn1=bn1, w_dw=w_dw, bn2=bn2, w_pw2=w_pw2, bn3=bn3)
    s1, b1 = _fold(bn1)
    s2, b2 = _fold(bn2)
    s3, b3 = _fold(bn3)
    folded = dict(
        w1=jnp.transpose(w_pw1[:, :, 0]) * s1[None, :],   # (C, H)
        b1=b1[None, :],
        wd=jnp.transpose(w_dw[:, 0, :]) * s2[None, :],    # (K, H)
        b2=b2[None, :],
        w2=jnp.transpose(w_pw2[:, :, 0]) * s3[None, :],   # (H, C)
        b3=b3[None, :],
    )
    return raw, folded


def init_params(key, hidden_size, out_channels, secondary_channels):
    half = hidden_size // 2
    keys = jax.random.split(key, 11)
    raw1, folded1 = [], []
    for i, k in enumerate([65, 47, 33, 17, 11, 7]):
        r, f = init_inverted_residual(keys[i], hidden_size, k)
        raw1.append(r)
        folded1.append(f)
    k1, k2 = jax.random.split(keys[6])
    w_ct = 0.1 * jax.random.normal(k1, (hidden_size, half, 5), jnp.float32)  # (Cin, Cout, K)
    b_ct = 0.1 * jax.random.normal(k2, (half,), jnp.float32)
    raw2, folded2 = [], []
    for i, k in enumerate([11, 7]):
        r, f = init_inverted_residual(keys[7 + i], half, k)
        raw2.append(r)
        folded2.append(f)
    k1, k2 = jax.random.split(keys[9])
    w_out = _conv_w(k1, out_channels, half, 1)
    b_out = 0.1 * jax.random.normal(k2, (out_channels,), jnp.float32)
    k1, k2 = jax.random.split(keys[10])
    w_sec = _conv_w(k1, secondary_channels, hidden_size, 1)
    b_sec = 0.1 * jax.random.normal(k2, (secondary_channels,), jnp.float32)

    raw = {"layer1": raw1,
           "layer2_ct": {"w": w_ct, "b": b_ct},
           "layer2_ir": raw2,
           "layer2_out": {"w": w_out, "b": b_out},
           "layer3": {"w": w_sec, "b": b_sec}}
    folded = {"layer1": folded1,
              "layer2_ct": {"w": jnp.transpose(w_ct, (2, 0, 1)),   # (K, Cin, Cout)
                            "b": b_ct[None, :]},
              "layer2_ir": folded2,
              # head weights stored transposed so the kernel emits NCL directly
              "layer2_out": {"w": w_out[:, :, 0], "b": b_out[:, None]},   # (O,C2),(O,1)
              "layer3": {"w": w_sec[:, :, 0], "b": b_sec[:, None]}}       # (S,C),(S,1)
    return raw, folded


# ---------------------------------------------------------------------------
# Pure-JAX (XLA conv) reference for verification
# ---------------------------------------------------------------------------
def _conv1d_ref(x, w, bias=None, padding=0, groups=1, lhs_dilation=1):
    out = lax.conv_general_dilated(
        x, w, window_strides=(1,), padding=[(padding, padding)],
        lhs_dilation=(lhs_dilation,), feature_group_count=groups,
        dimension_numbers=("NCH", "OIH", "NCH"))
    if bias is not None:
        out = out + bias[None, :, None]
    return out


def _bn_ref(x, bn):
    gamma, beta, mean, var = bn
    return ((x - mean[None, :, None]) / jnp.sqrt(var[None, :, None] + BN_EPS)
            * gamma[None, :, None] + beta[None, :, None])


def _ir_ref(x, p):
    h = jnp.clip(_bn_ref(_conv1d_ref(x, p["w_pw1"]), p["bn1"]), 0.0, 6.0)
    K = p["w_dw"].shape[2]
    h = _conv1d_ref(h, p["w_dw"], padding=(K - 1) // 2, groups=h.shape[1])
    h = jnp.clip(_bn_ref(h, p["bn2"]), 0.0, 6.0)
    h = _bn_ref(_conv1d_ref(h, p["w_pw2"]), p["bn3"])
    return x + h


def _convtranspose_ref(x, w_pt, bias, stride=2, padding=2):
    K = w_pt.shape[2]
    w_conv = jnp.transpose(w_pt, (1, 0, 2))[:, :, ::-1]   # (Cout, Cin, K), flipped
    return _conv1d_ref(x, w_conv, bias=bias, padding=K - 1 - padding,
                       lhs_dilation=stride)


def reference_fwd(x_ncl, raw):
    x = x_ncl
    for p in raw["layer1"]:
        x = _ir_ref(x, p)
    y = _conv1d_ref(x, raw["layer3"]["w"], bias=raw["layer3"]["b"])
    h = _convtranspose_ref(x, raw["layer2_ct"]["w"], raw["layer2_ct"]["b"])
    for p in raw["layer2_ir"]:
        h = _ir_ref(h, p)
    out = _conv1d_ref(h, raw["layer2_out"]["w"], bias=raw["layer2_out"]["b"])
    return out, y


# ---------------------------------------------------------------------------
if __name__ == "__main__":
    hidden_size, out_channels, secondary_channels = 32, 8, 4
    B, T = 2, 16

    key = jax.random.PRNGKey(0)
    kx, kp = jax.random.split(key)
    x = jax.random.normal(kx, (B, hidden_size, T), jnp.float32)   # NCL like PyTorch
    raw_params, folded_params = init_params(kp, hidden_size, out_channels,
                                            secondary_channels)

    fwd = jax.jit(voice_multitask_decoder_fwd)
    out_x, out_y = fwd(x, folded_params)
    jax.block_until_ready((out_x, out_y))

    assert out_x.shape == (B, out_channels, 2 * T - 1), out_x.shape
    assert out_y.shape == (B, secondary_channels, T), out_y.shape

    ref_x, ref_y = reference_fwd(x, raw_params)
    err_x = float(jnp.max(jnp.abs(out_x - ref_x)))
    err_y = float(jnp.max(jnp.abs(out_y - ref_y)))
    if err_x > 1e-2 or err_y > 1e-2:
        raise AssertionError(f"mismatch vs reference: err_x={err_x}, err_y={err_y}")

    print("KERNEL_OK")
</pallas_src>

<mosaic_0001>
module attributes {stable_mosaic.version = 11 : i64} {
  func.func @kernel(%arg0: i32, %arg1: memref<1x16x32xf32, #tpu.memory_space<vmem>>, %arg2: memref<32x128xf32, #tpu.memory_space<vmem>>, %arg3: memref<1x128xf32, #tpu.memory_space<vmem>>, %arg4: memref<65x128xf32, #tpu.memory_space<vmem>>, %arg5: memref<1x128xf32, #tpu.memory_space<vmem>>, %arg6: memref<128x32xf32, #tpu.memory_space<vmem>>, %arg7: memref<1x32xf32, #tpu.memory_space<vmem>>, %arg8: memref<32x128xf32, #tpu.memory_space<vmem>>, %arg9: memref<1x128xf32, #tpu.memory_space<vmem>>, %arg10: memref<47x128xf32, #tpu.memory_space<vmem>>, %arg11: memref<1x128xf32, #tpu.memory_space<vmem>>, %arg12: memref<128x32xf32, #tpu.memory_space<vmem>>, %arg13: memref<1x32xf32, #tpu.memory_space<vmem>>, %arg14: memref<32x128xf32, #tpu.memory_space<vmem>>, %arg15: memref<1x128xf32, #tpu.memory_space<vmem>>, %arg16: memref<33x128xf32, #tpu.memory_space<vmem>>, %arg17: memref<1x128xf32, #tpu.memory_space<vmem>>, %arg18: memref<128x32xf32, #tpu.memory_space<vmem>>, %arg19: memref<1x32xf32, #tpu.memory_space<vmem>>, %arg20: memref<32x128xf32, #tpu.memory_space<vmem>>, %arg21: memref<1x128xf32, #tpu.memory_space<vmem>>, %arg22: memref<17x128xf32, #tpu.memory_space<vmem>>, %arg23: memref<1x128xf32, #tpu.memory_space<vmem>>, %arg24: memref<128x32xf32, #tpu.memory_space<vmem>>, %arg25: memref<1x32xf32, #tpu.memory_space<vmem>>, %arg26: memref<32x128xf32, #tpu.memory_space<vmem>>, %arg27: memref<1x128xf32, #tpu.memory_space<vmem>>, %arg28: memref<11x128xf32, #tpu.memory_space<vmem>>, %arg29: memref<1x128xf32, #tpu.memory_space<vmem>>, %arg30: memref<128x32xf32, #tpu.memory_space<vmem>>, %arg31: memref<1x32xf32, #tpu.memory_space<vmem>>, %arg32: memref<32x128xf32, #tpu.memory_space<vmem>>, %arg33: memref<1x128xf32, #tpu.memory_space<vmem>>, %arg34: memref<7x128xf32, #tpu.memory_space<vmem>>, %arg35: memref<1x128xf32, #tpu.memory_space<vmem>>, %arg36: memref<128x32xf32, #tpu.memory_space<vmem>>, %arg37: memref<1x32xf32, #tpu.memory_space<vmem>>, %arg38: memref<4x32xf32, #tpu.memory_space<vmem>>, %arg39: memref<4x1xf32, #tpu.memory_space<vmem>>, %arg40: memref<5x32x16xf32, #tpu.memory_space<vmem>>, %arg41: memref<1x16xf32, #tpu.memory_space<vmem>>, %arg42: memref<16x64xf32, #tpu.memory_space<vmem>>, %arg43: memref<1x64xf32, #tpu.memory_space<vmem>>, %arg44: memref<11x64xf32, #tpu.memory_space<vmem>>, %arg45: memref<1x64xf32, #tpu.memory_space<vmem>>, %arg46: memref<64x16xf32, #tpu.memory_space<vmem>>, %arg47: memref<1x16xf32, #tpu.memory_space<vmem>>, %arg48: memref<16x64xf32, #tpu.memory_space<vmem>>, %arg49: memref<1x64xf32, #tpu.memory_space<vmem>>, %arg50: memref<7x64xf32, #tpu.memory_space<vmem>>, %arg51: memref<1x64xf32, #tpu.memory_space<vmem>>, %arg52: memref<64x16xf32, #tpu.memory_space<vmem>>, %arg53: memref<1x16xf32, #tpu.memory_space<vmem>>, %arg54: memref<8x16xf32, #tpu.memory_space<vmem>>, %arg55: memref<8x1xf32, #tpu.memory_space<vmem>>, %arg56: memref<1x8x31xf32, #tpu.memory_space<vmem>>, %arg57: memref<1x4x16xf32, #tpu.memory_space<vmem>>, %arg58: memref<80x128xf32, #tpu.memory_space<vmem>>, %arg59: memref<18x32xf32, #tpu.memory_space<vmem>>, %arg60: memref<42x64xf32, #tpu.memory_space<vmem>>) attributes {dimension_semantics = [#tpu.dimension_semantics<parallel>], iteration_bounds = array<i64: 2>, scalar_prefetch = 0 : i64, scratch_operands = 3 : i64, tpu.core_type = #tpu.core_type<tc>, window_params = [{transform_indices = @transform_0, window_bounds = array<i64: 1, 16, 32>}, {pipeline_mode = #tpu.pipeline_mode<synchronous>, transform_indices = @transform_1, window_bounds = array<i64: 32, 128>}, {pipeline_mode = #tpu.pipeline_mode<synchronous>, transform_indices = @transform_2, window_bounds = array<i64: 1, 128>}, {pipeline_mode = #tpu.pipeline_mode<synchronous>, transform_indices = @transform_3, window_bounds = array<i64: 65, 128>}, {pipeline_mode = #tpu.pipeline_mode<synchronous>, transform_indices = @transform_4, window_bounds = array<i64: 1, 128>}, {pipeline_mode = #tpu.pipeline_mode<synchronous>, transform_indices = @transform_5, window_bounds = array<i64: 128, 32>}, {pipeline_mode = #tpu.pipeline_mode<synchronous>, transform_indices = @transform_6, window_bounds = array<i64: 1, 32>}, {pipeline_mode = #tpu.pipeline_mode<synchronous>, transform_indices = @transform_7, window_bounds = array<i64: 32, 128>}, {pipeline_mode = #tpu.pipeline_mode<synchronous>, transform_indices = @transform_8, window_bounds = array<i64: 1, 128>}, {pipeline_mode = #tpu.pipeline_mode<synchronous>, transform_indices = @transform_9, window_bounds = array<i64: 47, 128>}, {pipeline_mode = #tpu.pipeline_mode<synchronous>, transform_indices = @transform_10, window_bounds = array<i64: 1, 128>}, {pipeline_mode = #tpu.pipeline_mode<synchronous>, transform_indices = @transform_11, window_bounds = array<i64: 128, 32>}, {pipeline_mode = #tpu.pipeline_mode<synchronous>, transform_indices = @transform_12, window_bounds = array<i64: 1, 32>}, {pipeline_mode = #tpu.pipeline_mode<synchronous>, transform_indices = @transform_13, window_bounds = array<i64: 32, 128>}, {pipeline_mode = #tpu.pipeline_mode<synchronous>, transform_indices = @transform_14, window_bounds = array<i64: 1, 128>}, {pipeline_mode = #tpu.pipeline_mode<synchronous>, transform_indices = @transform_15, window_bounds = array<i64: 33, 128>}, {pipeline_mode = #tpu.pipeline_mode<synchronous>, transform_indices = @transform_16, window_bounds = array<i64: 1, 128>}, {pipeline_mode = #tpu.pipeline_mode<synchronous>, transform_indices = @transform_17, window_bounds = array<i64: 128, 32>}, {pipeline_mode = #tpu.pipeline_mode<synchronous>, transform_indices = @transform_18, window_bounds = array<i64: 1, 32>}, {pipeline_mode = #tpu.pipeline_mode<synchronous>, transform_indices = @transform_19, window_bounds = array<i64: 32, 128>}, {pipeline_mode = #tpu.pipeline_mode<synchronous>, transform_indices = @transform_20, window_bounds = array<i64: 1, 128>}, {pipeline_mode = #tpu.pipeline_mode<synchronous>, transform_indices = @transform_21, window_bounds = array<i64: 17, 128>}, {pipeline_mode = #tpu.pipeline_mode<synchronous>, transform_indices = @transform_22, window_bounds = array<i64: 1, 128>}, {pipeline_mode = #tpu.pipeline_mode<synchronous>, transform_indices = @transform_23, window_bounds = array<i64: 128, 32>}, {pipeline_mode = #tpu.pipeline_mode<synchronous>, transform_indices = @transform_24, window_bounds = array<i64: 1, 32>}, {pipeline_mode = #tpu.pipeline_mode<synchronous>, transform_indices = @transform_25, window_bounds = array<i64: 32, 128>}, {pipeline_mode = #tpu.pipeline_mode<synchronous>, transform_indices = @transform_26, window_bounds = array<i64: 1, 128>}, {pipeline_mode = #tpu.pipeline_mode<synchronous>, transform_indices = @transform_27, window_bounds = array<i64: 11, 128>}, {pipeline_mode = #tpu.pipeline_mode<synchronous>, transform_indices = @transform_28, window_bounds = array<i64: 1, 128>}, {pipeline_mode = #tpu.pipeline_mode<synchronous>, transform_indices = @transform_29, window_bounds = array<i64: 128, 32>}, {pipeline_mode = #tpu.pipeline_mode<synchronous>, transform_indices = @transform_30, window_bounds = array<i64: 1, 32>}, {pipeline_mode = #tpu.pipeline_mode<synchronous>, transform_indices = @transform_31, window_bounds = array<i64: 32, 128>}, {pipeline_mode = #tpu.pipeline_mode<synchronous>, transform_indices = @transform_32, window_bounds = array<i64: 1, 128>}, {pipeline_mode = #tpu.pipeline_mode<synchronous>, transform_indices = @transform_33, window_bounds = array<i64: 7, 128>}, {pipeline_mode = #tpu.pipeline_mode<synchronous>, transform_indices = @transform_34, window_bounds = array<i64: 1, 128>}, {pipeline_mode = #tpu.pipeline_mode<synchronous>, transform_indices = @transform_35, window_bounds = array<i64: 128, 32>}, {pipeline_mode = #tpu.pipeline_mode<synchronous>, transform_indices = @transform_36, window_bounds = array<i64: 1, 32>}, {pipeline_mode = #tpu.pipeline_mode<synchronous>, transform_indices = @transform_37, window_bounds = array<i64: 4, 32>}, {pipeline_mode = #tpu.pipeline_mode<synchronous>, transform_indices = @transform_38, window_bounds = array<i64: 4, 1>}, {pipeline_mode = #tpu.pipeline_mode<synchronous>, transform_indices = @transform_39, window_bounds = array<i64: 5, 32, 16>}, {pipeline_mode = #tpu.pipeline_mode<synchronous>, transform_indices = @transform_40, window_bounds = array<i64: 1, 16>}, {pipeline_mode = #tpu.pipeline_mode<synchronous>, transform_indices = @transform_41, window_bounds = array<i64: 16, 64>}, {pipeline_mode = #tpu.pipeline_mode<synchronous>, transform_indices = @transform_42, window_bounds = array<i64: 1, 64>}, {pipeline_mode = #tpu.pipeline_mode<synchronous>, transform_indices = @transform_43, window_bounds = array<i64: 11, 64>}, {pipeline_mode = #tpu.pipeline_mode<synchronous>, transform_indices = @transform_44, window_bounds = array<i64: 1, 64>}, {pipeline_mode = #tpu.pipeline_mode<synchronous>, transform_indices = @transform_45, window_bounds = array<i64: 64, 16>}, {pipeline_mode = #tpu.pipeline_mode<synchronous>, transform_indices = @transform_46, window_bounds = array<i64: 1, 16>}, {pipeline_mode = #tpu.pipeline_mode<synchronous>, transform_indices = @transform_47, window_bounds = array<i64: 16, 64>}, {pipeline_mode = #tpu.pipeline_mode<synchronous>, transform_indices = @transform_48, window_bounds = array<i64: 1, 64>}, {pipeline_mode = #tpu.pipeline_mode<synchronous>, transform_indices = @transform_49, window_bounds = array<i64: 7, 64>}, {pipeline_mode = #tpu.pipeline_mode<synchronous>, transform_indices = @transform_50, window_bounds = array<i64: 1, 64>}, {pipeline_mode = #tpu.pipeline_mode<synchronous>, transform_indices = @transform_51, window_bounds = array<i64: 64, 16>}, {pipeline_mode = #tpu.pipeline_mode<synchronous>, transform_indices = @transform_52, window_bounds = array<i64: 1, 16>}, {pipeline_mode = #tpu.pipeline_mode<synchronous>, transform_indices = @transform_53, window_bounds = array<i64: 8, 16>}, {pipeline_mode = #tpu.pipeline_mode<synchronous>, transform_indices = @transform_54, window_bounds = array<i64: 8, 1>}, {transform_indices = @transform_55, window_bounds = array<i64: 1, 8, 31>}, {transform_indices = @transform_56, window_bounds = array<i64: 1, 4, 16>}]} {
    %c0 = arith.constant 0 : index
    %c0_0 = arith.constant 0 : index
    %c0_1 = arith.constant 0 : index
    %0 = vector.load %arg1[%c0, %c0_0, %c0_1] : memref<1x16x32xf32, #tpu.memory_space<vmem>>, vector<1x16x32xf32>
    %1 = vector.shape_cast %0 : vector<1x16x32xf32> to vector<16x32xf32>
    %c0_2 = arith.constant 0 : index
    %c0_3 = arith.constant 0 : index
    %2 = vector.load %arg2[%c0_2, %c0_3] : memref<32x128xf32, #tpu.memory_space<vmem>>, vector<32x128xf32>
    %cst = arith.constant dense<0.000000e+00> : vector<16x128xf32>
    %3 = tpu.matmul %1, %2, %cst {dimension_numbers = #tpu.dot_dimension_numbers<[1], [0], [0], [1], [0, 0, 1, 1], [], []>} : vector<16x32xf32>, vector<32x128xf32>, vector<16x128xf32> -> vector<16x128xf32>
    %c0_4 = arith.constant 0 : index
    %c0_5 = arith.constant 0 : index
    %4 = vector.load %arg3[%c0_4, %c0_5] : memref<1x128xf32, #tpu.memory_space<vmem>>, vector<1x128xf32>
    %5 = vector.broadcast %4 : vector<1x128xf32> to vector<16x128xf32>
    %6 = arith.addf %3, %5 : vector<16x128xf32>
    %cst_6 = arith.constant 0.000000e+00 : f32
    %cst_7 = arith.constant 6.000000e+00 : f32
    %7 = vector.broadcast %cst_6 : f32 to vector<16x128xf32>
    %8 = arith.maximumf %7, %6 : vector<16x128xf32>
    %9 = vector.broadcast %cst_7 : f32 to vector<16x128xf32>
    %10 = arith.minimumf %9, %8 : vector<16x128xf32>
    %cst_8 = arith.constant 0.000000e+00 : f32
    %11 = vector.broadcast %cst_8 : f32 to vector<15x128xf32>
    %c17 = arith.constant 17 : index
    %c0_9 = arith.constant 0 : index
    %12 = vector.load %arg58[%c17, %c0_9] : memref<80x128xf32, #tpu.memory_space<vmem>>, vector<15x128xf32>
    tpu.vector_store %arg58[%c17, %c0_9], %11 {strides = array<i32>} : memref<80x128xf32, #tpu.memory_space<vmem>>, vector<15x128xf32>,
    %cst_10 = arith.constant 0.000000e+00 : f32
    %13 = vector.broadcast %cst_10 : f32 to vector<15x128xf32>
    %c48 = arith.constant 48 : index
    %c0_11 = arith.constant 0 : index
    %14 = vector.load %arg58[%c48, %c0_11] : memref<80x128xf32, #tpu.memory_space<vmem>>, vector<15x128xf32>
    tpu.vector_store %arg58[%c48, %c0_11], %13 {strides = array<i32>} : memref<80x128xf32, #tpu.memory_space<vmem>>, vector<15x128xf32>,
    %c32 = arith.constant 32 : index
    %c0_12 = arith.constant 0 : index
    %15 = vector.load %arg58[%c32, %c0_12] : memref<80x128xf32, #tpu.memory_space<vmem>>, vector<16x128xf32>
    tpu.vector_store %arg58[%c32, %c0_12], %10 {strides = array<i32>} : memref<80x128xf32, #tpu.memory_space<vmem>>, vector<16x128xf32>,
    %cst_13 = arith.constant 0.000000e+00 : f32
    %16 = vector.broadcast %cst_13 : f32 to vector<16x128xf32>
    %c17_14 = arith.constant 17 : index
    %c0_15 = arith.constant 0 : index
    %17 = vector.load %arg58[%c17_14, %c0_15] : memref<80x128xf32, #tpu.memory_space<vmem>>, vector<16x128xf32>
    %c17_16 = arith.constant 17 : index
    %c0_17 = arith.constant 0 : index
    %18 = vector.load %arg4[%c17_16, %c0_17] : memref<65x128xf32, #tpu.memory_space<vmem>>, vector<1x128xf32>
    %19 = vector.broadcast %18 : vector<1x128xf32> to vector<16x128xf32>
    %20 = arith.mulf %17, %19 : vector<16x128xf32>
    %21 = arith.addf %16, %20 : vector<16x128xf32>
    %c18 = arith.constant 18 : index
    %c0_18 = arith.constant 0 : index
    %22 = vector.load %arg58[%c18, %c0_18] : memref<80x128xf32, #tpu.memory_space<vmem>>, vector<16x128xf32>
    %c18_19 = arith.constant 18 : index
    %c0_20 = arith.constant 0 : index
    %23 = vector.load %arg4[%c18_19, %c0_20] : memref<65x128xf32, #tpu.memory_space<vmem>>, vector<1x128xf32>
    %24 = vector.broadcast %23 : vector<1x128xf32> to vector<16x128xf32>
    %25 = arith.mulf %22, %24 : vector<16x128xf32>
    %26 = arith.addf %21, %25 : vector<16x128xf32>
    %c19 = arith.constant 19 : index
    %c0_21 = arith.constant 0 : index
    %27 = vector.load %arg58[%c19, %c0_21] : memref<80x128xf32, #tpu.memory_space<vmem>>, vector<16x128xf32>
    %c19_22 = arith.constant 19 : index
    %c0_23 = arith.constant 0 : index
    %28 = vector.load %arg4[%c19_22, %c0_23] : memref<65x128xf32, #tpu.memory_space<vmem>>, vector<1x128xf32>
    %29 = vector.broadcast %28 : vector<1x128xf32> to vector<16x128xf32>
    %30 = arith.mulf %27, %29 : vector<16x128xf32>
    %31 = arith.addf %26, %30 : vector<16x128xf32>
    %c20 = arith.constant 20 : index
    %c0_24 = arith.constant 0 : index
    %32 = vector.load %arg58[%c20, %c0_24] : memref<80x128xf32, #tpu.memory_space<vmem>>, vector<16x128xf32>
    %c20_25 = arith.constant 20 : index
    %c0_26 = arith.constant 0 : index
    %33 = vector.load %arg4[%c20_25, %c0_26] : memref<65x128xf32, #tpu.memory_space<vmem>>, vector<1x128xf32>
    %34 = vector.broadcast %33 : vector<1x128xf32> to vector<16x128xf32>
    %35 = arith.mulf %32, %34 : vector<16x128xf32>
    %36 = arith.addf %31, %35 : vector<16x128xf32>
    %c21 = arith.constant 21 : index
    %c0_27 = arith.constant 0 : index
    %37 = vector.load %arg58[%c21, %c0_27] : memref<80x128xf32, #tpu.memory_space<vmem>>, vector<16x128xf32>
    %c21_28 = arith.constant 21 : index
    %c0_29 = arith.constant 0 : index
    %38 = vector.load %arg4[%c21_28, %c0_29] : memref<65x128xf32, #tpu.memory_space<vmem>>, vector<1x128xf32>
    %39 = vector.broadcast %38 : vector<1x128xf32> to vector<16x128xf32>
    %40 = arith.mulf %37, %39 : vector<16x128xf32>
    %41 = arith.addf %36, %40 : vector<16x128xf32>
    %c22 = arith.constant 22 : index
    %c0_30 = arith.constant 0 : index
    %42 = vector.load %arg58[%c22, %c0_30] : memref<80x128xf32, #tpu.memory_space<vmem>>, vector<16x128xf32>
    %c22_31 = arith.constant 22 : index
    %c0_32 = arith.constant 0 : index
    %43 = vector.load %arg4[%c22_31, %c0_32] : memref<65x128xf32, #tpu.memory_space<vmem>>, vector<1x128xf32>
    %44 = vector.broadcast %43 : vector<1x128xf32> to vector<16x128xf32>
    %45 = arith.mulf %42, %44 : vector<16x128xf32>
    %46 = arith.addf %41, %45 : vector<16x128xf32>
    %c23 = arith.constant 23 : index
    %c0_33 = arith.constant 0 : index
    %47 = vector.load %arg58[%c23, %c0_33] : memref<80x128xf32, #tpu.memory_space<vmem>>, vector<16x128xf32>
    %c23_34 = arith.constant 23 : index
    %c0_35 = arith.constant 0 : index
    %48 = vector.load %arg4[%c23_34, %c0_35] : memref<65x128xf32, #tpu.memory_space<vmem>>, vector<1x128xf32>
    %49 = vector.broadcast %48 : vector<1x128xf32> to vector<16x128xf32>
    %50 = arith.mulf %47, %49 : vector<16x128xf32>
    %51 = arith.addf %46, %50 : vector<16x128xf32>
    %c24 = arith.constant 24 : index
    %c0_36 = arith.constant 0 : index
    %52 = vector.load %arg58[%c24, %c0_36] : memref<80x128xf32, #tpu.memory_space<vmem>>, vector<16x128xf32>
    %c24_37 = arith.constant 24 : index
    %c0_38 = arith.constant 0 : index
    %53 = vector.load %arg4[%c24_37, %c0_38] : memref<65x128xf32, #tpu.memory_space<vmem>>, vector<1x128xf32>
    %54 = vector.broadcast %53 : vector<1x128xf32> to vector<16x128xf32>
    %55 = arith.mulf %52, %54 : vector<16x128xf32>
    %56 = arith.addf %51, %55 : vector<16x128xf32>
    %c25 = arith.constant 25 : index
    %c0_39 = arith.constant 0 : index
    %57 = vector.load %arg58[%c25, %c0_39] : memref<80x128xf32, #tpu.memory_space<vmem>>, vector<16x128xf32>
    %c25_40 = arith.constant 25 : index
    %c0_41 = arith.constant 0 : index
    %58 = vector.load %arg4[%c25_40, %c0_41] : memref<65x128xf32, #tpu.memory_space<vmem>>, vector<1x128xf32>
    %59 = vector.broadcast %58 : vector<1x128xf32> to vector<16x128xf32>
    %60 = arith.mulf %57, %59 : vector<16x128xf32>
    %61 = arith.addf %56, %60 : vector<16x128xf32>
    %c26 = arith.constant 26 : index
    %c0_42 = arith.constant 0 : index
    %62 = vector.load %arg58[%c26, %c0_42] : memref<80x128xf32, #tpu.memory_space<vmem>>, vector<16x128xf32>
    %c26_43 = arith.constant 26 : index
    %c0_44 = arith.constant 0 : index
    %63 = vector.load %arg4[%c26_43, %c0_44] : memref<65x128xf32, #tpu.memory_space<vmem>>, vector<1x128xf32>
    %64 = vector.broadcast %63 : vector<1x128xf32> to vector<16x128xf32>
    %65 = arith.mulf %62, %64 : vector<16x128xf32>
    %66 = arith.addf %61, %65 : vector<16x128xf32>
    %c27 = arith.constant 27 : index
    %c0_45 = arith.constant 0 : index
    %67 = vector.load %arg58[%c27, %c0_45] : memref<80x128xf32, #tpu.memory_space<vmem>>, vector<16x128xf32>
    %c27_46 = arith.constant 27 : index
    %c0_47 = arith.constant 0 : index
    %68 = vector.load %arg4[%c27_46, %c0_47] : memref<65x128xf32, #tpu.memory_space<vmem>>, vector<1x128xf32>
    %69 = vector.broadcast %68 : vector<1x128xf32> to vector<16x128xf32>
    %70 = arith.mulf %67, %69 : vector<16x128xf32>
    %71 = arith.addf %66, %70 : vector<16x128xf32>
    %c28 = arith.constant 28 : index
    %c0_48 = arith.constant 0 : index
    %72 = vector.load %arg58[%c28, %c0_48] : memref<80x128xf32, #tpu.memory_space<vmem>>, vector<16x128xf32>
    %c28_49 = arith.constant 28 : index
    %c0_50 = arith.constant 0 : index
    %73 = vector.load %arg4[%c28_49, %c0_50] : memref<65x128xf32, #tpu.memory_space<vmem>>, vector<1x128xf32>
    %74 = vector.broadcast %73 : vector<1x128xf32> to vector<16x128xf32>
    %75 = arith.mulf %72, %74 : vector<16x128xf32>
    %76 = arith.addf %71, %75 : vector<16x128xf32>
    %c29 = arith.constant 29 : index
    %c0_51 = arith.constant 0 : index
    %77 = vector.load %arg58[%c29, %c0_51] : memref<80x128xf32, #tpu.memory_space<vmem>>, vector<16x128xf32>
    %c29_52 = arith.constant 29 : index
    %c0_53 = arith.constant 0 : index
    %78 = vector.load %arg4[%c29_52, %c0_53] : memref<65x128xf32, #tpu.memory_space<vmem>>, vector<1x128xf32>
    %79 = vector.broadcast %78 : vector<1x128xf32> to vector<16x128xf32>
    %80 = arith.mulf %77, %79 : vector<16x128xf32>
    %81 = arith.addf %76, %80 : vector<16x128xf32>
    %c30 = arith.constant 30 : index
    %c0_54 = arith.constant 0 : index
    %82 = vector.load %arg58[%c30, %c0_54] : memref<80x128xf32, #tpu.memory_space<vmem>>, vector<16x128xf32>
    %c30_55 = arith.constant 30 : index
    %c0_56 = arith.constant 0 : index
    %83 = vector.load %arg4[%c30_55, %c0_56] : memref<65x128xf32, #tpu.memory_space<vmem>>, vector<1x128xf32>
    %84 = vector.broadcast %83 : vector<1x128xf32> to vector<16x128xf32>
    %85 = arith.mulf %82, %84 : vector<16x128xf32>
    %86 = arith.addf %81, %85 : vector<16x128xf32>
    %c31 = arith.constant 31 : index
    %c0_57 = arith.constant 0 : index
    %87 = vector.load %arg58[%c31, %c0_57] : memref<80x128xf32, #tpu.memory_space<vmem>>, vector<16x128xf32>
    %c31_58 = arith.constant 31 : index
    %c0_59 = arith.constant 0 : index
    %88 = vector.load %arg4[%c31_58, %c0_59] : memref<65x128xf32, #tpu.memory_space<vmem>>, vector<1x128xf32>
    %89 = vector.broadcast %88 : vector<1x128xf32> to vector<16x128xf32>
    %90 = arith.mulf %87, %89 : vector<16x128xf32>
    %91 = arith.addf %86, %90 : vector<16x128xf32>
    %c32_60 = arith.constant 32 : index
    %c0_61 = arith.constant 0 : index
    %92 = vector.load %arg58[%c32_60, %c0_61] : memref<80x128xf32, #tpu.memory_space<vmem>>, vector<16x128xf32>
    %c32_62 = arith.constant 32 : index
    %c0_63 = arith.constant 0 : index
    %93 = vector.load %arg4[%c32_62, %c0_63] : memref<65x128xf32, #tpu.memory_space<vmem>>, vector<1x128xf32>
    %94 = vector.broadcast %93 : vector<1x128xf32> to vector<16x128xf32>
    %95 = arith.mulf %92, %94 : vector<16x128xf32>
    %96 = arith.addf %91, %95 : vector<16x128xf32>
    %c33 = arith.constant 33 : index
    %c0_64 = arith.constant 0 : index
    %97 = vector.load %arg58[%c33, %c0_64] : memref<80x128xf32, #tpu.memory_space<vmem>>, vector<16x128xf32>
    %c33_65 = arith.constant 33 : index
    %c0_66 = arith.constant 0 : index
    %98 = vector.load %arg4[%c33_65, %c0_66] : memref<65x128xf32, #tpu.memory_space<vmem>>, vector<1x128xf32>
    %99 = vector.broadcast %98 : vector<1x128xf32> to vector<16x128xf32>
    %100 = arith.mulf %97, %99 : vector<16x128xf32>
    %101 = arith.addf %96, %100 : vector<16x128xf32>
    %c34 = arith.constant 34 : index
    %c0_67 = arith.constant 0 : index
    %102 = vector.load %arg58[%c34, %c0_67] : memref<80x128xf32, #tpu.memory_space<vmem>>, vector<16x128xf32>
    %c34_68 = arith.constant 34 : index
    %c0_69 = arith.constant 0 : index
    %103 = vector.load %arg4[%c34_68, %c0_69] : memref<65x128xf32, #tpu.memory_space<vmem>>, vector<1x128xf32>
    %104 = vector.broadcast %103 : vector<1x128xf32> to vector<16x128xf32>
    %105 = arith.mulf %102, %104 : vector<16x128xf32>
    %106 = arith.addf %101, %105 : vector<16x128xf32>
    %c35 = arith.constant 35 : index
    %c0_70 = arith.constant 0 : index
    %107 = vector.load %arg58[%c35, %c0_70] : memref<80x128xf32, #tpu.memory_space<vmem>>, vector<16x128xf32>
    %c35_71 = arith.constant 35 : index
    %c0_72 = arith.constant 0 : index
    %108 = vector.load %arg4[%c35_71, %c0_72] : memref<65x128xf32, #tpu.memory_space<vmem>>, vector<1x128xf32>
    %109 = vector.broadcast %108 : vector<1x128xf32> to vector<16x128xf32>
    %110 = arith.mulf %107, %109 : vector<16x128xf32>
    %111 = arith.addf %106, %110 : vector<16x128xf32>
    %c36 = arith.constant 36 : index
    %c0_73 = arith.constant 0 : index
    %112 = vector.load %arg58[%c36, %c0_73] : memref<80x128xf32, #tpu.memory_space<vmem>>, vector<16x128xf32>
    %c36_74 = arith.constant 36 : index
    %c0_75 = arith.constant 0 : index
    %113 = vector.load %arg4[%c36_74, %c0_75] : memref<65x128xf32, #tpu.memory_space<vmem>>, vector<1x128xf32>
    %114 = vector.broadcast %113 : vector<1x128xf32> to vector<16x128xf32>
    %115 = arith.mulf %112, %114 : vector<16x128xf32>
    %116 = arith.addf %111, %115 : vector<16x128xf32>
    %c37 = arith.constant 37 : index
    %c0_76 = arith.constant 0 : index
    %117 = vector.load %arg58[%c37, %c0_76] : memref<80x128xf32, #tpu.memory_space<vmem>>, vector<16x128xf32>
    %c37_77 = arith.constant 37 : index
    %c0_78 = arith.constant 0 : index
    %118 = vector.load %arg4[%c37_77, %c0_78] : memref<65x128xf32, #tpu.memory_space<vmem>>, vector<1x128xf32>
    %119 = vector.broadcast %118 : vector<1x128xf32> to vector<16x128xf32>
    %120 = arith.mulf %117, %119 : vector<16x128xf32>
    %121 = arith.addf %116, %120 : vector<16x128xf32>
    %c38 = arith.constant 38 : index
    %c0_79 = arith.constant 0 : index
    %122 = vector.load %arg58[%c38, %c0_79] : memref<80x128xf32, #tpu.memory_space<vmem>>, vector<16x128xf32>
    %c38_80 = arith.constant 38 : index
    %c0_81 = arith.constant 0 : index
    %123 = vector.load %arg4[%c38_80, %c0_81] : memref<65x128xf32, #tpu.memory_space<vmem>>, vector<1x128xf32>
    %124 = vector.broadcast %123 : vector<1x128xf32> to vector<16x128xf32>
    %125 = arith.mulf %122, %124 : vector<16x128xf32>
    %126 = arith.addf %121, %125 : vector<16x128xf32>
    %c39 = arith.constant 39 : index
    %c0_82 = arith.constant 0 : index
    %127 = vector.load %arg58[%c39, %c0_82] : memref<80x128xf32, #tpu.memory_space<vmem>>, vector<16x128xf32>
    %c39_83 = arith.constant 39 : index
    %c0_84 = arith.constant 0 : index
    %128 = vector.load %arg4[%c39_83, %c0_84] : memref<65x128xf32, #tpu.memory_space<vmem>>, vector<1x128xf32>
    %129 = vector.broadcast %128 : vector<1x128xf32> to vector<16x128xf32>
    %130 = arith.mulf %127, %129 : vector<16x128xf32>
    %131 = arith.addf %126, %130 : vector<16x128xf32>
    %c40 = arith.constant 40 : index
    %c0_85 = arith.constant 0 : index
    %132 = vector.load %arg58[%c40, %c0_85] : memref<80x128xf32, #tpu.memory_space<vmem>>, vector<16x128xf32>
    %c40_86 = arith.constant 40 : index
    %c0_87 = arith.constant 0 : index
    %133 = vector.load %arg4[%c40_86, %c0_87] : memref<65x128xf32, #tpu.memory_space<vmem>>, vector<1x128xf32>
    %134 = vector.broadcast %133 : vector<1x128xf32> to vector<16x128xf32>
    %135 = arith.mulf %132, %134 : vector<16x128xf32>
    %136 = arith.addf %131, %135 : vector<16x128xf32>
    %c41 = arith.constant 41 : index
    %c0_88 = arith.constant 0 : index
    %137 = vector.load %arg58[%c41, %c0_88] : memref<80x128xf32, #tpu.memory_space<vmem>>, vector<16x128xf32>
    %c41_89 = arith.constant 41 : index
    %c0_90 = arith.constant 0 : index
    %138 = vector.load %arg4[%c41_89, %c0_90] : memref<65x128xf32, #tpu.memory_space<vmem>>, vector<1x128xf32>
    %139 = vector.broadcast %138 : vector<1x128xf32> to vector<16x128xf32>
    %140 = arith.mulf %137, %139 : vector<16x128xf32>
    %141 = arith.addf %136, %140 : vector<16x128xf32>
    %c42 = arith.constant 42 : index
    %c0_91 = arith.constant 0 : index
    %142 = vector.load %arg58[%c42, %c0_91] : memref<80x128xf32, #tpu.memory_space<vmem>>, vector<16x128xf32>
    %c42_92 = arith.constant 42 : index
    %c0_93 = arith.constant 0 : index
    %143 = vector.load %arg4[%c42_92, %c0_93] : memref<65x128xf32, #tpu.memory_space<vmem>>, vector<1x128xf32>
    %144 = vector.broadcast %143 : vector<1x128xf32> to vector<16x128xf32>
    %145 = arith.mulf %142, %144 : vector<16x128xf32>
    %146 = arith.addf %141, %145 : vector<16x128xf32>
    %c43 = arith.constant 43 : index
    %c0_94 = arith.constant 0 : index
    %147 = vector.load %arg58[%c43, %c0_94] : memref<80x128xf32, #tpu.memory_space<vmem>>, vector<16x128xf32>
    %c43_95 = arith.constant 43 : index
    %c0_96 = arith.constant 0 : index
    %148 = vector.load %arg4[%c43_95, %c0_96] : memref<65x128xf32, #tpu.memory_space<vmem>>, vector<1x128xf32>
    %149 = vector.broadcast %148 : vector<1x128xf32> to vector<16x128xf32>
    %150 = arith.mulf %147, %149 : vector<16x128xf32>
    %151 = arith.addf %146, %150 : vector<16x128xf32>
    %c44 = arith.constant 44 : index
    %c0_97 = arith.constant 0 : index
    %152 = vector.load %arg58[%c44, %c0_97] : memref<80x128xf32, #tpu.memory_space<vmem>>, vector<16x128xf32>
    %c44_98 = arith.constant 44 : index
    %c0_99 = arith.constant 0 : index
    %153 = vector.load %arg4[%c44_98, %c0_99] : memref<65x128xf32, #tpu.memory_space<vmem>>, vector<1x128xf32>
    %154 = vector.broadcast %153 : vector<1x128xf32> to vector<16x128xf32>
    %155 = arith.mulf %152, %154 : vector<16x128xf32>
    %156 = arith.addf %151, %155 : vector<16x128xf32>
    %c45 = arith.constant 45 : index
    %c0_100 = arith.constant 0 : index
    %157 = vector.load %arg58[%c45, %c0_100] : memref<80x128xf32, #tpu.memory_space<vmem>>, vector<16x128xf32>
    %c45_101 = arith.constant 45 : index
    %c0_102 = arith.constant 0 : index
    %158 = vector.load %arg4[%c45_101, %c0_102] : memref<65x128xf32, #tpu.memory_space<vmem>>, vector<1x128xf32>
    %159 = vector.broadcast %158 : vector<1x128xf32> to vector<16x128xf32>
    %160 = arith.mulf %157, %159 : vector<16x128xf32>
    %161 = arith.addf %156, %160 : vector<16x128xf32>
    %c46 = arith.constant 46 : index
    %c0_103 = arith.constant 0 : index
    %162 = vector.load %arg58[%c46, %c0_103] : memref<80x128xf32, #tpu.memory_space<vmem>>, vector<16x128xf32>
    %c46_104 = arith.constant 46 : index
    %c0_105 = arith.constant 0 : index
    %163 = vector.load %arg4[%c46_104, %c0_105] : memref<65x128xf32, #tpu.memory_space<vmem>>, vector<1x128xf32>
    %164 = vector.broadcast %163 : vector<1x128xf32> to vector<16x128xf32>
    %165 = arith.mulf %162, %164 : vector<16x128xf32>
    %166 = arith.addf %161, %165 : vector<16x128xf32>
    %c47 = arith.constant 47 : index
    %c0_106 = arith.constant 0 : index
    %167 = vector.load %arg58[%c47, %c0_106] : memref<80x128xf32, #tpu.memory_space<vmem>>, vector<16x128xf32>
    %c47_107 = arith.constant 47 : index
    %c0_108 = arith.constant 0 : index
    %168 = vector.load %arg4[%c47_107, %c0_108] : memref<65x128xf32, #tpu.memory_space<vmem>>, vector<1x128xf32>
    %169 = vector.broadcast %168 : vector<1x128xf32> to vector<16x128xf32>
    %170 = arith.mulf %167, %169 : vector<16x128xf32>
    %171 = arith.addf %166, %170 : vector<16x128xf32>
    %c0_109 = arith.constant 0 : index
    %c0_110 = arith.constant 0 : index
    %172 = vector.load %arg5[%c0_109, %c0_110] : memref<1x128xf32, #tpu.memory_space<vmem>>, vector<1x128xf32>
    %173 = vector.broadcast %172 : vector<1x128xf32> to vector<16x128xf32>
    %174 = arith.addf %171, %173 : vector<16x128xf32>
    %cst_111 = arith.constant 0.000000e+00 : f32
    %cst_112 = arith.constant 6.000000e+00 : f32
    %175 = vector.broadcast %cst_111 : f32 to vector<16x128xf32>
    %176 = arith.maximumf %175, %174 : vector<16x128xf32>
    %177 = vector.broadcast %cst_112 : f32 to vector<16x128xf32>
    %178 = arith.minimumf %177, %176 : vector<16x128xf32>
    %c0_113 = arith.constant 0 : index
    %c0_114 = arith.constant 0 : index
    %179 = vector.load %arg6[%c0_113, %c0_114] : memref<128x32xf32, #tpu.memory_space<vmem>>, vector<128x32xf32>
    %cst_115 = arith.constant dense<0.000000e+00> : vector<16x32xf32>
    %180 = tpu.matmul %178, %179, %cst_115 {dimension_numbers = #tpu.dot_dimension_numbers<[1], [0], [0], [1], [0, 0, 1, 1], [], []>} : vector<16x128xf32>, vector<128x32xf32>, vector<16x32xf32> -> vector<16x32xf32>
    %c0_116 = arith.constant 0 : index
    %c0_117 = arith.constant 0 : index
    %181 = vector.load %arg7[%c0_116, %c0_117] : memref<1x32xf32, #tpu.memory_space<vmem>>, vector<1x32xf32>
    %182 = vector.broadcast %181 : vector<1x32xf32> to vector<16x32xf32>
    %183 = arith.addf %180, %182 : vector<16x32xf32>
    %184 = arith.addf %1, %183 : vector<16x32xf32>
    %c0_118 = arith.constant 0 : index
    %c0_119 = arith.constant 0 : index
    %185 = vector.load %arg8[%c0_118, %c0_119] : memref<32x128xf32, #tpu.memory_space<vmem>>, vector<32x128xf32>
    %cst_120 = arith.constant dense<0.000000e+00> : vector<16x128xf32>
    %186 = tpu.matmul %184, %185, %cst_120 {dimension_numbers = #tpu.dot_dimension_numbers<[1], [0], [0], [1], [0, 0, 1, 1], [], []>} : vector<16x32xf32>, vector<32x128xf32>, vector<16x128xf32> -> vector<16x128xf32>
    %c0_121 = arith.constant 0 : index
    %c0_122 = arith.constant 0 : index
    %187 = vector.load %arg9[%c0_121, %c0_122] : memref<1x128xf32, #tpu.memory_space<vmem>>, vector<1x128xf32>
    %188 = vector.broadcast %187 : vector<1x128xf32> to vector<16x128xf32>
    %189 = arith.addf %186, %188 : vector<16x128xf32>
    %cst_123 = arith.constant 0.000000e+00 : f32
    %cst_124 = arith.constant 6.000000e+00 : f32
    %190 = vector.broadcast %cst_123 : f32 to vector<16x128xf32>
    %191 = arith.maximumf %190, %189 : vector<16x128xf32>
    %192 = vector.broadcast %cst_124 : f32 to vector<16x128xf32>
    %193 = arith.minimumf %192, %191 : vector<16x128xf32>
    %cst_125 = arith.constant 0.000000e+00 : f32
    %194 = vector.broadcast %cst_125 : f32 to vector<15x128xf32>
    %c8 = arith.constant 8 : index
    %c0_126 = arith.constant 0 : index
    %195 = vector.load %arg58[%c8, %c0_126] : memref<80x128xf32, #tpu.memory_space<vmem>>, vector<15x128xf32>
    tpu.vector_store %arg58[%c8, %c0_126], %194 {strides = array<i32>} : memref<80x128xf32, #tpu.memory_space<vmem>>, vector<15x128xf32>,
    %cst_127 = arith.constant 0.000000e+00 : f32
    %196 = vector.broadcast %cst_127 : f32 to vector<15x128xf32>
    %c39_128 = arith.constant 39 : index
    %c0_129 = arith.constant 0 : index
    %197 = vector.load %arg58[%c39_128, %c0_129] : memref<80x128xf32, #tpu.memory_space<vmem>>, vector<15x128xf32>
    tpu.vector_store %arg58[%c39_128, %c0_129], %196 {strides = array<i32>} : memref<80x128xf32, #tpu.memory_space<vmem>>, vector<15x128xf32>,
    %c23_130 = arith.constant 23 : index
    %c0_131 = arith.constant 0 : index
    %198 = vector.load %arg58[%c23_130, %c0_131] : memref<80x128xf32, #tpu.memory_space<vmem>>, vector<16x128xf32>
    tpu.vector_store %arg58[%c23_130, %c0_131], %193 {strides = array<i32>} : memref<80x128xf32, #tpu.memory_space<vmem>>, vector<16x128xf32>,
    %cst_132 = arith.constant 0.000000e+00 : f32
    %199 = vector.broadcast %cst_132 : f32 to vector<16x128xf32>
    %c8_133 = arith.constant 8 : index
    %c0_134 = arith.constant 0 : index
    %200 = vector.load %arg58[%c8_133, %c0_134] : memref<80x128xf32, #tpu.memory_space<vmem>>, vector<16x128xf32>
    %c8_135 = arith.constant 8 : index
    %c0_136 = arith.constant 0 : index
    %201 = vector.load %arg10[%c8_135, %c0_136] : memref<47x128xf32, #tpu.memory_space<vmem>>, vector<1x128xf32>
    %202 = vector.broadcast %201 : vector<1x128xf32> to vector<16x128xf32>
    %203 = arith.mulf %200, %202 : vector<16x128xf32>
    %204 = arith.addf %199, %203 : vector<16x128xf32>
    %c9 = arith.constant 9 : index
    %c0_137 = arith.constant 0 : index
    %205 = vector.load %arg58[%c9, %c0_137] : memref<80x128xf32, #tpu.memory_space<vmem>>, vector<16x128xf32>
    %c9_138 = arith.constant 9 : index
    %c0_139 = arith.constant 0 : index
    %206 = vector.load %arg10[%c9_138, %c0_139] : memref<47x128xf32, #tpu.memory_space<vmem>>, vector<1x128xf32>
    %207 = vector.broadcast %206 : vector<1x128xf32> to vector<16x128xf32>
    %208 = arith.mulf %205, %207 : vector<16x128xf32>
    %209 = arith.addf %204, %208 : vector<16x128xf32>
    %c10 = arith.constant 10 : index
    %c0_140 = arith.constant 0 : index
    %210 = vector.load %arg58[%c10, %c0_140] : memref<80x128xf32, #tpu.memory_space<vmem>>, vector<16x128xf32>
    %c10_141 = arith.constant 10 : index
    %c0_142 = arith.constant 0 : index
    %211 = vector.load %arg10[%c10_141, %c0_142] : memref<47x128xf32, #tpu.memory_space<vmem>>, vector<1x128xf32>
    %212 = vector.broadcast %211 : vector<1x128xf32> to vector<16x128xf32>
    %213 = arith.mulf %210, %212 : vector<16x128xf32>
    %214 = arith.addf %209, %213 : vector<16x128xf32>
    %c11 = arith.constant 11 : index
    %c0_143 = arith.constant 0 : index
    %215 = vector.load %arg58[%c11, %c0_143] : memref<80x128xf32, #tpu.memory_space<vmem>>, vector<16x128xf32>
    %c11_144 = arith.constant 11 : index
    %c0_145 = arith.constant 0 : index
    %216 = vector.load %arg10[%c11_144, %c0_145] : memref<47x128xf32, #tpu.memory_space<vmem>>, vector<1x128xf32>
    %217 = vector.broadcast %216 : vector<1x128xf32> to vector<16x128xf32>
    %218 = arith.mulf %215, %217 : vector<16x128xf32>
    %219 = arith.addf %214, %218 : vector<16x128xf32>
    %c12 = arith.constant 12 : index
    %c0_146 = arith.constant 0 : index
    %220 = vector.load %arg58[%c12, %c0_146] : memref<80x128xf32, #tpu.memory_space<vmem>>, vector<16x128xf32>
    %c12_147 = arith.constant 12 : index
    %c0_148 = arith.constant 0 : index
    %221 = vector.load %arg10[%c12_147, %c0_148] : memref<47x128xf32, #tpu.memory_space<vmem>>, vector<1x128xf32>
    %222 = vector.broadcast %221 : vector<1x128xf32> to vector<16x128xf32>
    %223 = arith.mulf %220, %222 : vector<16x128xf32>
    %224 = arith.addf %219, %223 : vector<16x128xf32>
    %c13 = arith.constant 13 : index
    %c0_149 = arith.constant 0 : index
    %225 = vector.load %arg58[%c13, %c0_149] : memref<80x128xf32, #tpu.memory_space<vmem>>, vector<16x128xf32>
    %c13_150 = arith.constant 13 : index
    %c0_151 = arith.constant 0 : index
    %226 = vector.load %arg10[%c13_150, %c0_151] : memref<47x128xf32, #tpu.memory_space<vmem>>, vector<1x128xf32>
    %227 = vector.broadcast %226 : vector<1x128xf32> to vector<16x128xf32>
    %228 = arith.mulf %225, %227 : vector<16x128xf32>
    %229 = arith.addf %224, %228 : vector<16x128xf32>
    %c14 = arith.constant 14 : index
    %c0_152 = arith.constant 0 : index
    %230 = vector.load %arg58[%c14, %c0_152] : memref<80x128xf32, #tpu.memory_space<vmem>>, vector<16x128xf32>
    %c14_153 = arith.constant 14 : index
    %c0_154 = arith.constant 0 : index
    %231 = vector.load %arg10[%c14_153, %c0_154] : memref<47x128xf32, #tpu.memory_space<vmem>>, vector<1x128xf32>
    %232 = vector.broadcast %231 : vector<1x128xf32> to vector<16x128xf32>
    %233 = arith.mulf %230, %232 : vector<16x128xf32>
    %234 = arith.addf %229, %233 : vector<16x128xf32>
    %c15 = arith.constant 15 : index
    %c0_155 = arith.constant 0 : index
    %235 = vector.load %arg58[%c15, %c0_155] : memref<80x128xf32, #tpu.memory_space<vmem>>, vector<16x128xf32>
    %c15_156 = arith.constant 15 : index
    %c0_157 = arith.constant 0 : index
    %236 = vector.load %arg10[%c15_156, %c0_157] : memref<47x128xf32, #tpu.memory_space<vmem>>, vector<1x128xf32>
    %237 = vector.broadcast %236 : vector<1x128xf32> to vector<16x128xf32>
    %238 = arith.mulf %235, %237 : vector<16x128xf32>
    %239 = arith.addf %234, %238 : vector<16x128xf32>
    %c16 = arith.constant 16 : index
    %c0_158 = arith.constant 0 : index
    %240 = vector.load %arg58[%c16, %c0_158] : memref<80x128xf32, #tpu.memory_space<vmem>>, vector<16x128xf32>
    %c16_159 = arith.constant 16 : index
    %c0_160 = arith.constant 0 : index
    %241 = vector.load %arg10[%c16_159, %c0_160] : memref<47x128xf32, #tpu.memory_space<vmem>>, vector<1x128xf32>
    %242 = vector.broadcast %241 : vector<1x128xf32> to vector<16x128xf32>
    %243 = arith.mulf %240, %242 : vector<16x128xf32>
    %244 = arith.addf %239, %243 : vector<16x128xf32>
    %c17_161 = arith.constant 17 : index
    %c0_162 = arith.constant 0 : index
    %245 = vector.load %arg58[%c17_161, %c0_162] : memref<80x128xf32, #tpu.memory_space<vmem>>, vector<16x128xf32>
    %c17_163 = arith.constant 17 : index
    %c0_164 = arith.constant 0 : index
    %246 = vector.load %arg10[%c17_163, %c0_164] : memref<47x128xf32, #tpu.memory_space<vmem>>, vector<1x128xf32>
    %247 = vector.broadcast %246 : vector<1x128xf32> to vector<16x128xf32>
    %248 = arith.mulf %245, %247 : vector<16x128xf32>
    %249 = arith.addf %244, %248 : vector<16x128xf32>
    %c18_165 = arith.constant 18 : index
    %c0_166 = arith.constant 0 : index
    %250 = vector.load %arg58[%c18_165, %c0_166] : memref<80x128xf32, #tpu.memory_space<vmem>>, vector<16x128xf32>
    %c18_167 = arith.constant 18 : index
    %c0_168 = arith.constant 0 : index
    %251 = vector.load %arg10[%c18_167, %c0_168] : memref<47x128xf32, #tpu.memory_space<vmem>>, vector<1x128xf32>
    %252 = vector.broadcast %251 : vector<1x128xf32> to vector<16x128xf32>
    %253 = arith.mulf %250, %252 : vector<16x128xf32>
    %254 = arith.addf %249, %253 : vector<16x128xf32>
    %c19_169 = arith.constant 19 : index
    %c0_170 = arith.constant 0 : index
    %255 = vector.load %arg58[%c19_169, %c0_170] : memref<80x128xf32, #tpu.memory_space<vmem>>, vector<16x128xf32>
    %c19_171 = arith.constant 19 : index
    %c0_172 = arith.constant 0 : index
    %256 = vector.load %arg10[%c19_171, %c0_172] : memref<47x128xf32, #tpu.memory_space<vmem>>, vector<1x128xf32>
    %257 = vector.broadcast %256 : vector<1x128xf32> to vector<16x128xf32>
    %258 = arith.mulf %255, %257 : vector<16x128xf32>
    %259 = arith.addf %254, %258 : vector<16x128xf32>
    %c20_173 = arith.constant 20 : index
    %c0_174 = arith.constant 0 : index
    %260 = vector.load %arg58[%c20_173, %c0_174] : memref<80x128xf32, #tpu.memory_space<vmem>>, vector<16x128xf32>
    %c20_175 = arith.constant 20 : index
    %c0_176 = arith.constant 0 : index
    %261 = vector.load %arg10[%c20_175, %c0_176] : memref<47x128xf32, #tpu.memory_space<vmem>>, vector<1x128xf32>
    %262 = vector.broadcast %261 : vector<1x128xf32> to vector<16x128xf32>
    %263 = arith.mulf %260, %262 : vector<16x128xf32>
    %264 = arith.addf %259, %263 : vector<16x128xf32>
    %c21_177 = arith.constant 21 : index
    %c0_178 = arith.constant 0 : index
    %265 = vector.load %arg58[%c21_177, %c0_178] : memref<80x128xf32, #tpu.memory_space<vmem>>, vector<16x128xf32>
    %c21_179 = arith.constant 21 : index
    %c0_180 = arith.constant 0 : index
    %266 = vector.load %arg10[%c21_179, %c0_180] : memref<47x128xf32, #tpu.memory_space<vmem>>, vector<1x128xf32>
    %267 = vector.broadcast %266 : vector<1x128xf32> to vector<16x128xf32>
    %268 = arith.mulf %265, %267 : vector<16x128xf32>
    %269 = arith.addf %264, %268 : vector<16x128xf32>
    %c22_181 = arith.constant 22 : index
    %c0_182 = arith.constant 0 : index
    %270 = vector.load %arg58[%c22_181, %c0_182] : memref<80x128xf32, #tpu.memory_space<vmem>>, vector<16x128xf32>
    %c22_183 = arith.constant 22 : index
    %c0_184 = arith.constant 0 : index
    %271 = vector.load %arg10[%c22_183, %c0_184] : memref<47x128xf32, #tpu.memory_space<vmem>>, vector<1x128xf32>
    %272 = vector.broadcast %271 : vector<1x128xf32> to vector<16x128xf32>
    %273 = arith.mulf %270, %272 : vector<16x128xf32>
    %274 = arith.addf %269, %273 : vector<16x128xf32>
    %c23_185 = arith.constant 23 : index
    %c0_186 = arith.constant 0 : index
    %275 = vector.load %arg58[%c23_185, %c0_186] : memref<80x128xf32, #tpu.memory_space<vmem>>, vector<16x128xf32>
    %c23_187 = arith.constant 23 : index
    %c0_188 = arith.constant 0 : index
    %276 = vector.load %arg10[%c23_187, %c0_188] : memref<47x128xf32, #tpu.memory_space<vmem>>, vector<1x128xf32>
    %277 = vector.broadcast %276 : vector<1x128xf32> to vector<16x128xf32>
    %278 = arith.mulf %275, %277 : vector<16x128xf32>
    %279 = arith.addf %274, %278 : vector<16x128xf32>
    %c24_189 = arith.constant 24 : index
    %c0_190 = arith.constant 0 : index
    %280 = vector.load %arg58[%c24_189, %c0_190] : memref<80x128xf32, #tpu.memory_space<vmem>>, vector<16x128xf32>
    %c24_191 = arith.constant 24 : index
    %c0_192 = arith.constant 0 : index
    %281 = vector.load %arg10[%c24_191, %c0_192] : memref<47x128xf32, #tpu.memory_space<vmem>>, vector<1x128xf32>
    %282 = vector.broadcast %281 : vector<1x128xf32> to vector<16x128xf32>
    %283 = arith.mulf %280, %282 : vector<16x128xf32>
    %284 = arith.addf %279, %283 : vector<16x128xf32>
    %c25_193 = arith.constant 25 : index
    %c0_194 = arith.constant 0 : index
    %285 = vector.load %arg58[%c25_193, %c0_194] : memref<80x128xf32, #tpu.memory_space<vmem>>, vector<16x128xf32>
    %c25_195 = arith.constant 25 : index
    %c0_196 = arith.constant 0 : index
    %286 = vector.load %arg10[%c25_195, %c0_196] : memref<47x128xf32, #tpu.memory_space<vmem>>, vector<1x128xf32>
    %287 = vector.broadcast %286 : vector<1x128xf32> to vector<16x128xf32>
    %288 = arith.mulf %285, %287 : vector<16x128xf32>
    %289 = arith.addf %284, %288 : vector<16x128xf32>
    %c26_197 = arith.constant 26 : index
    %c0_198 = arith.constant 0 : index
    %290 = vector.load %arg58[%c26_197, %c0_198] : memref<80x128xf32, #tpu.memory_space<vmem>>, vector<16x128xf32>
    %c26_199 = arith.constant 26 : index
    %c0_200 = arith.constant 0 : index
    %291 = vector.load %arg10[%c26_199, %c0_200] : memref<47x128xf32, #tpu.memory_space<vmem>>, vector<1x128xf32>
    %292 = vector.broadcast %291 : vector<1x128xf32> to vector<16x128xf32>
    %293 = arith.mulf %290, %292 : vector<16x128xf32>
    %294 = arith.addf %289, %293 : vector<16x128xf32>
    %c27_201 = arith.constant 27 : index
    %c0_202 = arith.constant 0 : index
    %295 = vector.load %arg58[%c27_201, %c0_202] : memref<80x128xf32, #tpu.memory_space<vmem>>, vector<16x128xf32>
    %c27_203 = arith.constant 27 : index
    %c0_204 = arith.constant 0 : index
    %296 = vector.load %arg10[%c27_203, %c0_204] : memref<47x128xf32, #tpu.memory_space<vmem>>, vector<1x128xf32>
    %297 = vector.broadcast %296 : vector<1x128xf32> to vector<16x128xf32>
    %298 = arith.mulf %295, %297 : vector<16x128xf32>
    %299 = arith.addf %294, %298 : vector<16x128xf32>
    %c28_205 = arith.constant 28 : index
    %c0_206 = arith.constant 0 : index
    %300 = vector.load %arg58[%c28_205, %c0_206] : memref<80x128xf32, #tpu.memory_space<vmem>>, vector<16x128xf32>
    %c28_207 = arith.constant 28 : index
    %c0_208 = arith.constant 0 : index
    %301 = vector.load %arg10[%c28_207, %c0_208] : memref<47x128xf32, #tpu.memory_space<vmem>>, vector<1x128xf32>
    %302 = vector.broadcast %301 : vector<1x128xf32> to vector<16x128xf32>
    %303 = arith.mulf %300, %302 : vector<16x128xf32>
    %304 = arith.addf %299, %303 : vector<16x128xf32>
    %c29_209 = arith.constant 29 : index
    %c0_210 = arith.constant 0 : index
    %305 = vector.load %arg58[%c29_209, %c0_210] : memref<80x128xf32, #tpu.memory_space<vmem>>, vector<16x128xf32>
    %c29_211 = arith.constant 29 : index
    %c0_212 = arith.constant 0 : index
    %306 = vector.load %arg10[%c29_211, %c0_212] : memref<47x128xf32, #tpu.memory_space<vmem>>, vector<1x128xf32>
    %307 = vector.broadcast %306 : vector<1x128xf32> to vector<16x128xf32>
    %308 = arith.mulf %305, %307 : vector<16x128xf32>
    %309 = arith.addf %304, %308 : vector<16x128xf32>
    %c30_213 = arith.constant 30 : index
    %c0_214 = arith.constant 0 : index
    %310 = vector.load %arg58[%c30_213, %c0_214] : memref<80x128xf32, #tpu.memory_space<vmem>>, vector<16x128xf32>
    %c30_215 = arith.constant 30 : index
    %c0_216 = arith.constant 0 : index
    %311 = vector.load %arg10[%c30_215, %c0_216] : memref<47x128xf32, #tpu.memory_space<vmem>>, vector<1x128xf32>
    %312 = vector.broadcast %311 : vector<1x128xf32> to vector<16x128xf32>
    %313 = arith.mulf %310, %312 : vector<16x128xf32>
    %314 = arith.addf %309, %313 : vector<16x128xf32>
    %c31_217 = arith.constant 31 : index
    %c0_218 = arith.constant 0 : index
    %315 = vector.load %arg58[%c31_217, %c0_218] : memref<80x128xf32, #tpu.memory_space<vmem>>, vector<16x128xf32>
    %c31_219 = arith.constant 31 : index
    %c0_220 = arith.constant 0 : index
    %316 = vector.load %arg10[%c31_219, %c0_220] : memref<47x128xf32, #tpu.memory_space<vmem>>, vector<1x128xf32>
    %317 = vector.broadcast %316 : vector<1x128xf32> to vector<16x128xf32>
    %318 = arith.mulf %315, %317 : vector<16x128xf32>
    %319 = arith.addf %314, %318 : vector<16x128xf32>
    %c32_221 = arith.constant 32 : index
    %c0_222 = arith.constant 0 : index
    %320 = vector.load %arg58[%c32_221, %c0_222] : memref<80x128xf32, #tpu.memory_space<vmem>>, vector<16x128xf32>
    %c32_223 = arith.constant 32 : index
    %c0_224 = arith.constant 0 : index
    %321 = vector.load %arg10[%c32_223, %c0_224] : memref<47x128xf32, #tpu.memory_space<vmem>>, vector<1x128xf32>
    %322 = vector.broadcast %321 : vector<1x128xf32> to vector<16x128xf32>
    %323 = arith.mulf %320, %322 : vector<16x128xf32>
    %324 = arith.addf %319, %323 : vector<16x128xf32>
    %c33_225 = arith.constant 33 : index
    %c0_226 = arith.constant 0 : index
    %325 = vector.load %arg58[%c33_225, %c0_226] : memref<80x128xf32, #tpu.memory_space<vmem>>, vector<16x128xf32>
    %c33_227 = arith.constant 33 : index
    %c0_228 = arith.constant 0 : index
    %326 = vector.load %arg10[%c33_227, %c0_228] : memref<47x128xf32, #tpu.memory_space<vmem>>, vector<1x128xf32>
    %327 = vector.broadcast %326 : vector<1x128xf32> to vector<16x128xf32>
    %328 = arith.mulf %325, %327 : vector<16x128xf32>
    %329 = arith.addf %324, %328 : vector<16x128xf32>
    %c34_229 = arith.constant 34 : index
    %c0_230 = arith.constant 0 : index
    %330 = vector.load %arg58[%c34_229, %c0_230] : memref<80x128xf32, #tpu.memory_space<vmem>>, vector<16x128xf32>
    %c34_231 = arith.constant 34 : index
    %c0_232 = arith.constant 0 : index
    %331 = vector.load %arg10[%c34_231, %c0_232] : memref<47x128xf32, #tpu.memory_space<vmem>>, vector<1x128xf32>
    %332 = vector.broadcast %331 : vector<1x128xf32> to vector<16x128xf32>
    %333 = arith.mulf %330, %332 : vector<16x128xf32>
    %334 = arith.addf %329, %333 : vector<16x128xf32>
    %c35_233 = arith.constant 35 : index
    %c0_234 = arith.constant 0 : index
    %335 = vector.load %arg58[%c35_233, %c0_234] : memref<80x128xf32, #tpu.memory_space<vmem>>, vector<16x128xf32>
    %c35_235 = arith.constant 35 : index
    %c0_236 = arith.constant 0 : index
    %336 = vector.load %arg10[%c35_235, %c0_236] : memref<47x128xf32, #tpu.memory_space<vmem>>, vector<1x128xf32>
    %337 = vector.broadcast %336 : vector<1x128xf32> to vector<16x128xf32>
    %338 = arith.mulf %335, %337 : vector<16x128xf32>
    %339 = arith.addf %334, %338 : vector<16x128xf32>
    %c36_237 = arith.constant 36 : index
    %c0_238 = arith.constant 0 : index
    %340 = vector.load %arg58[%c36_237, %c0_238] : memref<80x128xf32, #tpu.memory_space<vmem>>, vector<16x128xf32>
    %c36_239 = arith.constant 36 : index
    %c0_240 = arith.constant 0 : index
    %341 = vector.load %arg10[%c36_239, %c0_240] : memref<47x128xf32, #tpu.memory_space<vmem>>, vector<1x128xf32>
    %342 = vector.broadcast %341 : vector<1x128xf32> to vector<16x128xf32>
    %343 = arith.mulf %340, %342 : vector<16x128xf32>
    %344 = arith.addf %339, %343 : vector<16x128xf32>
    %c37_241 = arith.constant 37 : index
    %c0_242 = arith.constant 0 : index
    %345 = vector.load %arg58[%c37_241, %c0_242] : memref<80x128xf32, #tpu.memory_space<vmem>>, vector<16x128xf32>
    %c37_243 = arith.constant 37 : index
    %c0_244 = arith.constant 0 : index
    %346 = vector.load %arg10[%c37_243, %c0_244] : memref<47x128xf32, #tpu.memory_space<vmem>>, vector<1x128xf32>
    %347 = vector.broadcast %346 : vector<1x128xf32> to vector<16x128xf32>
    %348 = arith.mulf %345, %347 : vector<16x128xf32>
    %349 = arith.addf %344, %348 : vector<16x128xf32>
    %c38_245 = arith.constant 38 : index
    %c0_246 = arith.constant 0 : index
    %350 = vector.load %arg58[%c38_245, %c0_246] : memref<80x128xf32, #tpu.memory_space<vmem>>, vector<16x128xf32>
    %c38_247 = arith.constant 38 : index
    %c0_248 = arith.constant 0 : index
    %351 = vector.load %arg10[%c38_247, %c0_248] : memref<47x128xf32, #tpu.memory_space<vmem>>, vector<1x128xf32>
    %352 = vector.broadcast %351 : vector<1x128xf32> to vector<16x128xf32>
    %353 = arith.mulf %350, %352 : vector<16x128xf32>
    %354 = arith.addf %349, %353 : vector<16x128xf32>
    %c0_249 = arith.constant 0 : index
    %c0_250 = arith.constant 0 : index
    %355 = vector.load %arg11[%c0_249, %c0_250] : memref<1x128xf32, #tpu.memory_space<vmem>>, vector<1x128xf32>
    %356 = vector.broadcast %355 : vector<1x128xf32> to vector<16x128xf32>
    %357 = arith.addf %354, %356 : vector<16x128xf32>
    %cst_251 = arith.constant 0.000000e+00 : f32
    %cst_252 = arith.constant 6.000000e+00 : f32
    %358 = vector.broadcast %cst_251 : f32 to vector<16x128xf32>
    %359 = arith.maximumf %358, %357 : vector<16x128xf32>
    %360 = vector.broadcast %cst_252 : f32 to vector<16x128xf32>
    %361 = arith.minimumf %360, %359 : vector<16x128xf32>
    %c0_253 = arith.constant 0 : index
    %c0_254 = arith.constant 0 : index
    %362 = vector.load %arg12[%c0_253, %c0_254] : memref<128x32xf32, #tpu.memory_space<vmem>>, vector<128x32xf32>
    %cst_255 = arith.constant dense<0.000000e+00> : vector<16x32xf32>
    %363 = tpu.matmul %361, %362, %cst_255 {dimension_numbers = #tpu.dot_dimension_numbers<[1], [0], [0], [1], [0, 0, 1, 1], [], []>} : vector<16x128xf32>, vector<128x32xf32>, vector<16x32xf32> -> vector<16x32xf32>
    %c0_256 = arith.constant 0 : index
    %c0_257 = arith.constant 0 : index
    %364 = vector.load %arg13[%c0_256, %c0_257] : memref<1x32xf32, #tpu.memory_space<vmem>>, vector<1x32xf32>
    %365 = vector.broadcast %364 : vector<1x32xf32> to vector<16x32xf32>
    %366 = arith.addf %363, %365 : vector<16x32xf32>
    %367 = arith.addf %184, %366 : vector<16x32xf32>
    %c0_258 = arith.constant 0 : index
    %c0_259 = arith.constant 0 : index
    %368 = vector.load %arg14[%c0_258, %c0_259] : memref<32x128xf32, #tpu.memory_space<vmem>>, vector<32x128xf32>
    %cst_260 = arith.constant dense<0.000000e+00> : vector<16x128xf32>
    %369 = tpu.matmul %367, %368, %cst_260 {dimension_numbers = #tpu.dot_dimension_numbers<[1], [0], [0], [1], [0, 0, 1, 1], [], []>} : vector<16x32xf32>, vector<32x128xf32>, vector<16x128xf32> -> vector<16x128xf32>
    %c0_261 = arith.constant 0 : index
    %c0_262 = arith.constant 0 : index
    %370 = vector.load %arg15[%c0_261, %c0_262] : memref<1x128xf32, #tpu.memory_space<vmem>>, vector<1x128xf32>
    %371 = vector.broadcast %370 : vector<1x128xf32> to vector<16x128xf32>
    %372 = arith.addf %369, %371 : vector<16x128xf32>
    %cst_263 = arith.constant 0.000000e+00 : f32
    %cst_264 = arith.constant 6.000000e+00 : f32
    %373 = vector.broadcast %cst_263 : f32 to vector<16x128xf32>
    %374 = arith.maximumf %373, %372 : vector<16x128xf32>
    %375 = vector.broadcast %cst_264 : f32 to vector<16x128xf32>
    %376 = arith.minimumf %375, %374 : vector<16x128xf32>
    %cst_265 = arith.constant 0.000000e+00 : f32
    %377 = vector.broadcast %cst_265 : f32 to vector<15x128xf32>
    %c1 = arith.constant 1 : index
    %c0_266 = arith.constant 0 : index
    %378 = vector.load %arg58[%c1, %c0_266] : memref<80x128xf32, #tpu.memory_space<vmem>>, vector<15x128xf32>
    tpu.vector_store %arg58[%c1, %c0_266], %377 {strides = array<i32>} : memref<80x128xf32, #tpu.memory_space<vmem>>, vector<15x128xf32>,
    %cst_267 = arith.constant 0.000000e+00 : f32
    %379 = vector.broadcast %cst_267 : f32 to vector<15x128xf32>
    %c32_268 = arith.constant 32 : index
    %c0_269 = arith.constant 0 : index
    %380 = vector.load %arg58[%c32_268, %c0_269] : memref<80x128xf32, #tpu.memory_space<vmem>>, vector<15x128xf32>
    tpu.vector_store %arg58[%c32_268, %c0_269], %379 {strides = array<i32>} : memref<80x128xf32, #tpu.memory_space<vmem>>, vector<15x128xf32>,
    %c16_270 = arith.constant 16 : index
    %c0_271 = arith.constant 0 : index
    %381 = vector.load %arg58[%c16_270, %c0_271] : memref<80x128xf32, #tpu.memory_space<vmem>>, vector<16x128xf32>
    tpu.vector_store %arg58[%c16_270, %c0_271], %376 {strides = array<i32>} : memref<80x128xf32, #tpu.memory_space<vmem>>, vector<16x128xf32>,
    %cst_272 = arith.constant 0.000000e+00 : f32
    %382 = vector.broadcast %cst_272 : f32 to vector<16x128xf32>
    %c1_273 = arith.constant 1 : index
    %c0_274 = arith.constant 0 : index
    %383 = vector.load %arg58[%c1_273, %c0_274] : memref<80x128xf32, #tpu.memory_space<vmem>>, vector<16x128xf32>
    %c1_275 = arith.constant 1 : index
    %c0_276 = arith.constant 0 : index
    %384 = vector.load %arg16[%c1_275, %c0_276] : memref<33x128xf32, #tpu.memory_space<vmem>>, vector<1x128xf32>
    %385 = vector.broadcast %384 : vector<1x128xf32> to vector<16x128xf32>
    %386 = arith.mulf %383, %385 : vector<16x128xf32>
    %387 = arith.addf %382, %386 : vector<16x128xf32>
    %c2 = arith.constant 2 : index
    %c0_277 = arith.constant 0 : index
    %388 = vector.load %arg58[%c2, %c0_277] : memref<80x128xf32, #tpu.memory_space<vmem>>, vector<16x128xf32>
    %c2_278 = arith.constant 2 : index
    %c0_279 = arith.constant 0 : index
    %389 = vector.load %arg16[%c2_278, %c0_279] : memref<33x128xf32, #tpu.memory_space<vmem>>, vector<1x128xf32>
    %390 = vector.broadcast %389 : vector<1x128xf32> to vector<16x128xf32>
    %391 = arith.mulf %388, %390 : vector<16x128xf32>
    %392 = arith.addf %387, %391 : vector<16x128xf32>
    %c3 = arith.constant 3 : index
    %c0_280 = arith.constant 0 : index
    %393 = vector.load %arg58[%c3, %c0_280] : memref<80x128xf32, #tpu.memory_space<vmem>>, vector<16x128xf32>
    %c3_281 = arith.constant 3 : index
    %c0_282 = arith.constant 0 : index
    %394 = vector.load %arg16[%c3_281, %c0_282] : memref<33x128xf32, #tpu.memory_space<vmem>>, vector<1x128xf32>
    %395 = vector.broadcast %394 : vector<1x128xf32> to vector<16x128xf32>
    %396 = arith.mulf %393, %395 : vector<16x128xf32>
    %397 = arith.addf %392, %396 : vector<16x128xf32>
    %c4 = arith.constant 4 : index
    %c0_283 = arith.constant 0 : index
    %398 = vector.load %arg58[%c4, %c0_283] : memref<80x128xf32, #tpu.memory_space<vmem>>, vector<16x128xf32>
    %c4_284 = arith.constant 4 : index
    %c0_285 = arith.constant 0 : index
    %399 = vector.load %arg16[%c4_284, %c0_285] : memref<33x128xf32, #tpu.memory_space<vmem>>, vector<1x128xf32>
    %400 = vector.broadcast %399 : vector<1x128xf32> to vector<16x128xf32>
    %401 = arith.mulf %398, %400 : vector<16x128xf32>
    %402 = arith.addf %397, %401 : vector<16x128xf32>
    %c5 = arith.constant 5 : index
    %c0_286 = arith.constant 0 : index
    %403 = vector.load %arg58[%c5, %c0_286] : memref<80x128xf32, #tpu.memory_space<vmem>>, vector<16x128xf32>
    %c5_287 = arith.constant 5 : index
    %c0_288 = arith.constant 0 : index
    %404 = vector.load %arg16[%c5_287, %c0_288] : memref<33x128xf32, #tpu.memory_space<vmem>>, vector<1x128xf32>
    %405 = vector.broadcast %404 : vector<1x128xf32> to vector<16x128xf32>
    %406 = arith.mulf %403, %405 : vector<16x128xf32>
    %407 = arith.addf %402, %406 : vector<16x128xf32>
    %c6 = arith.constant 6 : index
    %c0_289 = arith.constant 0 : index
    %408 = vector.load %arg58[%c6, %c0_289] : memref<80x128xf32, #tpu.memory_space<vmem>>, vector<16x128xf32>
    %c6_290 = arith.constant 6 : index
    %c0_291 = arith.constant 0 : index
    %409 = vector.load %arg16[%c6_290, %c0_291] : memref<33x128xf32, #tpu.memory_space<vmem>>, vector<1x128xf32>
    %410 = vector.broadcast %409 : vector<1x128xf32> to vector<16x128xf32>
    %411 = arith.mulf %408, %410 : vector<16x128xf32>
    %412 = arith.addf %407, %411 : vector<16x128xf32>
    %c7 = arith.constant 7 : index
    %c0_292 = arith.constant 0 : index
    %413 = vector.load %arg58[%c7, %c0_292] : memref<80x128xf32, #tpu.memory_space<vmem>>, vector<16x128xf32>
    %c7_293 = arith.constant 7 : index
    %c0_294 = arith.constant 0 : index
    %414 = vector.load %arg16[%c7_293, %c0_294] : memref<33x128xf32, #tpu.memory_space<vmem>>, vector<1x128xf32>
    %415 = vector.broadcast %414 : vector<1x128xf32> to vector<16x128xf32>
    %416 = arith.mulf %413, %415 : vector<16x128xf32>
    %417 = arith.addf %412, %416 : vector<16x128xf32>
    %c8_295 = arith.constant 8 : index
    %c0_296 = arith.constant 0 : index
    %418 = vector.load %arg58[%c8_295, %c0_296] : memref<80x128xf32, #tpu.memory_space<vmem>>, vector<16x128xf32>
    %c8_297 = arith.constant 8 : index
    %c0_298 = arith.constant 0 : index
    %419 = vector.load %arg16[%c8_297, %c0_298] : memref<33x128xf32, #tpu.memory_space<vmem>>, vector<1x128xf32>
    %420 = vector.broadcast %419 : vector<1x128xf32> to vector<16x128xf32>
    %421 = arith.mulf %418, %420 : vector<16x128xf32>
    %422 = arith.addf %417, %421 : vector<16x128xf32>
    %c9_299 = arith.constant 9 : index
    %c0_300 = arith.constant 0 : index
    %423 = vector.load %arg58[%c9_299, %c0_300] : memref<80x128xf32, #tpu.memory_space<vmem>>, vector<16x128xf32>
    %c9_301 = arith.constant 9 : index
    %c0_302 = arith.constant 0 : index
    %424 = vector.load %arg16[%c9_301, %c0_302] : memref<33x128xf32, #tpu.memory_space<vmem>>, vector<1x128xf32>
    %425 = vector.broadcast %424 : vector<1x128xf32> to vector<16x128xf32>
    %426 = arith.mulf %423, %425 : vector<16x128xf32>
    %427 = arith.addf %422, %426 : vector<16x128xf32>
    %c10_303 = arith.constant 10 : index
    %c0_304 = arith.constant 0 : index
    %428 = vector.load %arg58[%c10_303, %c0_304] : memref<80x128xf32, #tpu.memory_space<vmem>>, vector<16x128xf32>
    %c10_305 = arith.constant 10 : index
    %c0_306 = arith.constant 0 : index
    %429 = vector.load %arg16[%c10_305, %c0_306] : memref<33x128xf32, #tpu.memory_space<vmem>>, vector<1x128xf32>
    %430 = vector.broadcast %429 : vector<1x128xf32> to vector<16x128xf32>
    %431 = arith.mulf %428, %430 : vector<16x128xf32>
    %432 = arith.addf %427, %431 : vector<16x128xf32>
    %c11_307 = arith.constant 11 : index
    %c0_308 = arith.constant 0 : index
    %433 = vector.load %arg58[%c11_307, %c0_308] : memref<80x128xf32, #tpu.memory_space<vmem>>, vector<16x128xf32>
    %c11_309 = arith.constant 11 : index
    %c0_310 = arith.constant 0 : index
    %434 = vector.load %arg16[%c11_309, %c0_310] : memref<33x128xf32, #tpu.memory_space<vmem>>, vector<1x128xf32>
    %435 = vector.broadcast %434 : vector<1x128xf32> to vector<16x128xf32>
    %436 = arith.mulf %433, %435 : vector<16x128xf32>
    %437 = arith.addf %432, %436 : vector<16x128xf32>
    %c12_311 = arith.constant 12 : index
    %c0_312 = arith.constant 0 : index
    %438 = vector.load %arg58[%c12_311, %c0_312] : memref<80x128xf32, #tpu.memory_space<vmem>>, vector<16x128xf32>
    %c12_313 = arith.constant 12 : index
    %c0_314 = arith.constant 0 : index
    %439 = vector.load %arg16[%c12_313, %c0_314] : memref<33x128xf32, #tpu.memory_space<vmem>>, vector<1x128xf32>
    %440 = vector.broadcast %439 : vector<1x128xf32> to vector<16x128xf32>
    %441 = arith.mulf %438, %440 : vector<16x128xf32>
    %442 = arith.addf %437, %441 : vector<16x128xf32>
    %c13_315 = arith.constant 13 : index
    %c0_316 = arith.constant 0 : index
    %443 = vector.load %arg58[%c13_315, %c0_316] : memref<80x128xf32, #tpu.memory_space<vmem>>, vector<16x128xf32>
    %c13_317 = arith.constant 13 : index
    %c0_318 = arith.constant 0 : index
    %444 = vector.load %arg16[%c13_317, %c0_318] : memref<33x128xf32, #tpu.memory_space<vmem>>, vector<1x128xf32>
    %445 = vector.broadcast %444 : vector<1x128xf32> to vector<16x128xf32>
    %446 = arith.mulf %443, %445 : vector<16x128xf32>
    %447 = arith.addf %442, %446 : vector<16x128xf32>
    %c14_319 = arith.constant 14 : index
    %c0_320 = arith.constant 0 : index
    %448 = vector.load %arg58[%c14_319, %c0_320] : memref<80x128xf32, #tpu.memory_space<vmem>>, vector<16x128xf32>
    %c14_321 = arith.constant 14 : index
    %c0_322 = arith.constant 0 : index
    %449 = vector.load %arg16[%c14_321, %c0_322] : memref<33x128xf32, #tpu.memory_space<vmem>>, vector<1x128xf32>
    %450 = vector.broadcast %449 : vector<1x128xf32> to vector<16x128xf32>
    %451 = arith.mulf %448, %450 : vector<16x128xf32>
    %452 = arith.addf %447, %451 : vector<16x128xf32>
    %c15_323 = arith.constant 15 : index
    %c0_324 = arith.constant 0 : index
    %453 = vector.load %arg58[%c15_323, %c0_324] : memref<80x128xf32, #tpu.memory_space<vmem>>, vector<16x128xf32>
    %c15_325 = arith.constant 15 : index
    %c0_326 = arith.constant 0 : index
    %454 = vector.load %arg16[%c15_325, %c0_326] : memref<33x128xf32, #tpu.memory_space<vmem>>, vector<1x128xf32>
    %455 = vector.broadcast %454 : vector<1x128xf32> to vector<16x128xf32>
    %456 = arith.mulf %453, %455 : vector<16x128xf32>
    %457 = arith.addf %452, %456 : vector<16x128xf32>
    %c16_327 = arith.constant 16 : index
    %c0_328 = arith.constant 0 : index
    %458 = vector.load %arg58[%c16_327, %c0_328] : memref<80x128xf32, #tpu.memory_space<vmem>>, vector<16x128xf32>
    %c16_329 = arith.constant 16 : index
    %c0_330 = arith.constant 0 : index
    %459 = vector.load %arg16[%c16_329, %c0_330] : memref<33x128xf32, #tpu.memory_space<vmem>>, vector<1x128xf32>
    %460 = vector.broadcast %459 : vector<1x128xf32> to vector<16x128xf32>
    %461 = arith.mulf %458, %460 : vector<16x128xf32>
    %462 = arith.addf %457, %461 : vector<16x128xf32>
    %c17_331 = arith.constant 17 : index
    %c0_332 = arith.constant 0 : index
    %463 = vector.load %arg58[%c17_331, %c0_332] : memref<80x128xf32, #tpu.memory_space<vmem>>, vector<16x128xf32>
    %c17_333 = arith.constant 17 : index
    %c0_334 = arith.constant 0 : index
    %464 = vector.load %arg16[%c17_333, %c0_334] : memref<33x128xf32, #tpu.memory_space<vmem>>, vector<1x128xf32>
    %465 = vector.broadcast %464 : vector<1x128xf32> to vector<16x128xf32>
    %466 = arith.mulf %463, %465 : vector<16x128xf32>
    %467 = arith.addf %462, %466 : vector<16x128xf32>
    %c18_335 = arith.constant 18 : index
    %c0_336 = arith.constant 0 : index
    %468 = vector.load %arg58[%c18_335, %c0_336] : memref<80x128xf32, #tpu.memory_space<vmem>>, vector<16x128xf32>
    %c18_337 = arith.constant 18 : index
    %c0_338 = arith.constant 0 : index
    %469 = vector.load %arg16[%c18_337, %c0_338] : memref<33x128xf32, #tpu.memory_space<vmem>>, vector<1x128xf32>
    %470 = vector.broadcast %469 : vector<1x128xf32> to vector<16x128xf32>
    %471 = arith.mulf %468, %470 : vector<16x128xf32>
    %472 = arith.addf %467, %471 : vector<16x128xf32>
    %c19_339 = arith.constant 19 : index
    %c0_340 = arith.constant 0 : index
    %473 = vector.load %arg58[%c19_339, %c0_340] : memref<80x128xf32, #tpu.memory_space<vmem>>, vector<16x128xf32>
    %c19_341 = arith.constant 19 : index
    %c0_342 = arith.constant 0 : index
    %474 = vector.load %arg16[%c19_341, %c0_342] : memref<33x128xf32, #tpu.memory_space<vmem>>, vector<1x128xf32>
    %475 = vector.broadcast %474 : vector<1x128xf32> to vector<16x128xf32>
    %476 = arith.mulf %473, %475 : vector<16x128xf32>
    %477 = arith.addf %472, %476 : vector<16x128xf32>
    %c20_343 = arith.constant 20 : index
    %c0_344 = arith.constant 0 : index
    %478 = vector.load %arg58[%c20_343, %c0_344] : memref<80x128xf32, #tpu.memory_space<vmem>>, vector<16x128xf32>
    %c20_345 = arith.constant 20 : index
    %c0_346 = arith.constant 0 : index
    %479 = vector.load %arg16[%c20_345, %c0_346] : memref<33x128xf32, #tpu.memory_space<vmem>>, vector<1x128xf32>
    %480 = vector.broadcast %479 : vector<1x128xf32> to vector<16x128xf32>
    %481 = arith.mulf %478, %480 : vector<16x128xf32>
    %482 = arith.addf %477, %481 : vector<16x128xf32>
    %c21_347 = arith.constant 21 : index
    %c0_348 = arith.constant 0 : index
    %483 = vector.load %arg58[%c21_347, %c0_348] : memref<80x128xf32, #tpu.memory_space<vmem>>, vector<16x128xf32>
    %c21_349 = arith.constant 21 : index
    %c0_350 = arith.constant 0 : index
    %484 = vector.load %arg16[%c21_349, %c0_350] : memref<33x128xf32, #tpu.memory_space<vmem>>, vector<1x128xf32>
    %485 = vector.broadcast %484 : vector<1x128xf32> to vector<16x128xf32>
    %486 = arith.mulf %483, %485 : vector<16x128xf32>
    %487 = arith.addf %482, %486 : vector<16x128xf32>
    %c22_351 = arith.constant 22 : index
    %c0_352 = arith.constant 0 : index
    %488 = vector.load %arg58[%c22_351, %c0_352] : memref<80x128xf32, #tpu.memory_space<vmem>>, vector<16x128xf32>
    %c22_353 = arith.constant 22 : index
    %c0_354 = arith.constant 0 : index
    %489 = vector.load %arg16[%c22_353, %c0_354] : memref<33x128xf32, #tpu.memory_space<vmem>>, vector<1x128xf32>
    %490 = vector.broadcast %489 : vector<1x128xf32> to vector<16x128xf32>
    %491 = arith.mulf %488, %490 : vector<16x128xf32>
    %492 = arith.addf %487, %491 : vector<16x128xf32>
    %c23_355 = arith.constant 23 : index
    %c0_356 = arith.constant 0 : index
    %493 = vector.load %arg58[%c23_355, %c0_356] : memref<80x128xf32, #tpu.memory_space<vmem>>, vector<16x128xf32>
    %c23_357 = arith.constant 23 : index
    %c0_358 = arith.constant 0 : index
    %494 = vector.load %arg16[%c23_357, %c0_358] : memref<33x128xf32, #tpu.memory_space<vmem>>, vector<1x128xf32>
    %495 = vector.broadcast %494 : vector<1x128xf32> to vector<16x128xf32>
    %496 = arith.mulf %493, %495 : vector<16x128xf32>
    %497 = arith.addf %492, %496 : vector<16x128xf32>
    %c24_359 = arith.constant 24 : index
    %c0_360 = arith.constant 0 : index
    %498 = vector.load %arg58[%c24_359, %c0_360] : memref<80x128xf32, #tpu.memory_space<vmem>>, vector<16x128xf32>
    %c24_361 = arith.constant 24 : index
    %c0_362 = arith.constant 0 : index
    %499 = vector.load %arg16[%c24_361, %c0_362] : memref<33x128xf32, #tpu.memory_space<vmem>>, vector<1x128xf32>
    %500 = vector.broadcast %499 : vector<1x128xf32> to vector<16x128xf32>
    %501 = arith.mulf %498, %500 : vector<16x128xf32>
    %502 = arith.addf %497, %501 : vector<16x128xf32>
    %c25_363 = arith.constant 25 : index
    %c0_364 = arith.constant 0 : index
    %503 = vector.load %arg58[%c25_363, %c0_364] : memref<80x128xf32, #tpu.memory_space<vmem>>, vector<16x128xf32>
    %c25_365 = arith.constant 25 : index
    %c0_366 = arith.constant 0 : index
    %504 = vector.load %arg16[%c25_365, %c0_366] : memref<33x128xf32, #tpu.memory_space<vmem>>, vector<1x128xf32>
    %505 = vector.broadcast %504 : vector<1x128xf32> to vector<16x128xf32>
    %506 = arith.mulf %503, %505 : vector<16x128xf32>
    %507 = arith.addf %502, %506 : vector<16x128xf32>
    %c26_367 = arith.constant 26 : index
    %c0_368 = arith.constant 0 : index
    %508 = vector.load %arg58[%c26_367, %c0_368] : memref<80x128xf32, #tpu.memory_space<vmem>>, vector<16x128xf32>
    %c26_369 = arith.constant 26 : index
    %c0_370 = arith.constant 0 : index
    %509 = vector.load %arg16[%c26_369, %c0_370] : memref<33x128xf32, #tpu.memory_space<vmem>>, vector<1x128xf32>
    %510 = vector.broadcast %509 : vector<1x128xf32> to vector<16x128xf32>
    %511 = arith.mulf %508, %510 : vector<16x128xf32>
    %512 = arith.addf %507, %511 : vector<16x128xf32>
    %c27_371 = arith.constant 27 : index
    %c0_372 = arith.constant 0 : index
    %513 = vector.load %arg58[%c27_371, %c0_372] : memref<80x128xf32, #tpu.memory_space<vmem>>, vector<16x128xf32>
    %c27_373 = arith.constant 27 : index
    %c0_374 = arith.constant 0 : index
    %514 = vector.load %arg16[%c27_373, %c0_374] : memref<33x128xf32, #tpu.memory_space<vmem>>, vector<1x128xf32>
    %515 = vector.broadcast %514 : vector<1x128xf32> to vector<16x128xf32>
    %516 = arith.mulf %513, %515 : vector<16x128xf32>
    %517 = arith.addf %512, %516 : vector<16x128xf32>
    %c28_375 = arith.constant 28 : index
    %c0_376 = arith.constant 0 : index
    %518 = vector.load %arg58[%c28_375, %c0_376] : memref<80x128xf32, #tpu.memory_space<vmem>>, vector<16x128xf32>
    %c28_377 = arith.constant 28 : index
    %c0_378 = arith.constant 0 : index
    %519 = vector.load %arg16[%c28_377, %c0_378] : memref<33x128xf32, #tpu.memory_space<vmem>>, vector<1x128xf32>
    %520 = vector.broadcast %519 : vector<1x128xf32> to vector<16x128xf32>
    %521 = arith.mulf %518, %520 : vector<16x128xf32>
    %522 = arith.addf %517, %521 : vector<16x128xf32>
    %c29_379 = arith.constant 29 : index
    %c0_380 = arith.constant 0 : index
    %523 = vector.load %arg58[%c29_379, %c0_380] : memref<80x128xf32, #tpu.memory_space<vmem>>, vector<16x128xf32>
    %c29_381 = arith.constant 29 : index
    %c0_382 = arith.constant 0 : index
    %524 = vector.load %arg16[%c29_381, %c0_382] : memref<33x128xf32, #tpu.memory_space<vmem>>, vector<1x128xf32>
    %525 = vector.broadcast %524 : vector<1x128xf32> to vector<16x128xf32>
    %526 = arith.mulf %523, %525 : vector<16x128xf32>
    %527 = arith.addf %522, %526 : vector<16x128xf32>
    %c30_383 = arith.constant 30 : index
    %c0_384 = arith.constant 0 : index
    %528 = vector.load %arg58[%c30_383, %c0_384] : memref<80x128xf32, #tpu.memory_space<vmem>>, vector<16x128xf32>
    %c30_385 = arith.constant 30 : index
    %c0_386 = arith.constant 0 : index
    %529 = vector.load %arg16[%c30_385, %c0_386] : memref<33x128xf32, #tpu.memory_space<vmem>>, vector<1x128xf32>
    %530 = vector.broadcast %529 : vector<1x128xf32> to vector<16x128xf32>
    %531 = arith.mulf %528, %530 : vector<16x128xf32>
    %532 = arith.addf %527, %531 : vector<16x128xf32>
    %c31_387 = arith.constant 31 : index
    %c0_388 = arith.constant 0 : index
    %533 = vector.load %arg58[%c31_387, %c0_388] : memref<80x128xf32, #tpu.memory_space<vmem>>, vector<16x128xf32>
    %c31_389 = arith.constant 31 : index
    %c0_390 = arith.constant 0 : index
    %534 = vector.load %arg16[%c31_389, %c0_390] : memref<33x128xf32, #tpu.memory_space<vmem>>, vector<1x128xf32>
    %535 = vector.broadcast %534 : vector<1x128xf32> to vector<16x128xf32>
    %536 = arith.mulf %533, %535 : vector<16x128xf32>
    %537 = arith.addf %532, %536 : vector<16x128xf32>
    %c0_391 = arith.constant 0 : index
    %c0_392 = arith.constant 0 : index
    %538 = vector.load %arg17[%c0_391, %c0_392] : memref<1x128xf32, #tpu.memory_space<vmem>>, vector<1x128xf32>
    %539 = vector.broadcast %538 : vector<1x128xf32> to vector<16x128xf32>
    %540 = arith.addf %537, %539 : vector<16x128xf32>
    %cst_393 = arith.constant 0.000000e+00 : f32
    %cst_394 = arith.constant 6.000000e+00 : f32
    %541 = vector.broadcast %cst_393 : f32 to vector<16x128xf32>
    %542 = arith.maximumf %541, %540 : vector<16x128xf32>
    %543 = vector.broadcast %cst_394 : f32 to vector<16x128xf32>
    %544 = arith.minimumf %543, %542 : vector<16x128xf32>
    %c0_395 = arith.constant 0 : index
    %c0_396 = arith.constant 0 : index
    %545 = vector.load %arg18[%c0_395, %c0_396] : memref<128x32xf32, #tpu.memory_space<vmem>>, vector<128x32xf32>
    %cst_397 = arith.constant dense<0.000000e+00> : vector<16x32xf32>
    %546 = tpu.matmul %544, %545, %cst_397 {dimension_numbers = #tpu.dot_dimension_numbers<[1], [0], [0], [1], [0, 0, 1, 1], [], []>} : vector<16x128xf32>, vector<128x32xf32>, vector<16x32xf32> -> vector<16x32xf32>
    %c0_398 = arith.constant 0 : index
    %c0_399 = arith.constant 0 : index
    %547 = vector.load %arg19[%c0_398, %c0_399] : memref<1x32xf32, #tpu.memory_space<vmem>>, vector<1x32xf32>
    %548 = vector.broadcast %547 : vector<1x32xf32> to vector<16x32xf32>
    %549 = arith.addf %546, %548 : vector<16x32xf32>
    %550 = arith.addf %367, %549 : vector<16x32xf32>
    %c0_400 = arith.constant 0 : index
    %c0_401 = arith.constant 0 : index
    %551 = vector.load %arg20[%c0_400, %c0_401] : memref<32x128xf32, #tpu.memory_space<vmem>>, vector<32x128xf32>
    %cst_402 = arith.constant dense<0.000000e+00> : vector<16x128xf32>
    %552 = tpu.matmul %550, %551, %cst_402 {dimension_numbers = #tpu.dot_dimension_numbers<[1], [0], [0], [1], [0, 0, 1, 1], [], []>} : vector<16x32xf32>, vector<32x128xf32>, vector<16x128xf32> -> vector<16x128xf32>
    %c0_403 = arith.constant 0 : index
    %c0_404 = arith.constant 0 : index
    %553 = vector.load %arg21[%c0_403, %c0_404] : memref<1x128xf32, #tpu.memory_space<vmem>>, vector<1x128xf32>
    %554 = vector.broadcast %553 : vector<1x128xf32> to vector<16x128xf32>
    %555 = arith.addf %552, %554 : vector<16x128xf32>
    %cst_405 = arith.constant 0.000000e+00 : f32
    %cst_406 = arith.constant 6.000000e+00 : f32
    %556 = vector.broadcast %cst_405 : f32 to vector<16x128xf32>
    %557 = arith.maximumf %556, %555 : vector<16x128xf32>
    %558 = vector.broadcast %cst_406 : f32 to vector<16x128xf32>
    %559 = arith.minimumf %558, %557 : vector<16x128xf32>
    %cst_407 = arith.constant 0.000000e+00 : f32
    %560 = vector.broadcast %cst_407 : f32 to vector<8x128xf32>
    %c0_408 = arith.constant 0 : index
    %c0_409 = arith.constant 0 : index
    %561 = vector.load %arg58[%c0_408, %c0_409] : memref<80x128xf32, #tpu.memory_space<vmem>>, vector<8x128xf32>
    tpu.vector_store %arg58[%c0_408, %c0_409], %560 {strides = array<i32>} : memref<80x128xf32, #tpu.memory_space<vmem>>, vector<8x128xf32>,
    %cst_410 = arith.constant 0.000000e+00 : f32
    %562 = vector.broadcast %cst_410 : f32 to vector<8x128xf32>
    %c24_411 = arith.constant 24 : index
    %c0_412 = arith.constant 0 : index
    %563 = vector.load %arg58[%c24_411, %c0_412] : memref<80x128xf32, #tpu.memory_space<vmem>>, vector<8x128xf32>
    tpu.vector_store %arg58[%c24_411, %c0_412], %562 {strides = array<i32>} : memref<80x128xf32, #tpu.memory_space<vmem>>, vector<8x128xf32>,
    %c8_413 = arith.constant 8 : index
    %c0_414 = arith.constant 0 : index
    %564 = vector.load %arg58[%c8_413, %c0_414] : memref<80x128xf32, #tpu.memory_space<vmem>>, vector<16x128xf32>
    tpu.vector_store %arg58[%c8_413, %c0_414], %559 {strides = array<i32>} : memref<80x128xf32, #tpu.memory_space<vmem>>, vector<16x128xf32>,
    %cst_415 = arith.constant 0.000000e+00 : f32
    %565 = vector.broadcast %cst_415 : f32 to vector<16x128xf32>
    %c0_416 = arith.constant 0 : index
    %c0_417 = arith.constant 0 : index
    %566 = vector.load %arg58[%c0_416, %c0_417] : memref<80x128xf32, #tpu.memory_space<vmem>>, vector<16x128xf32>
    %c0_418 = arith.constant 0 : index
    %c0_419 = arith.constant 0 : index
    %567 = vector.load %arg22[%c0_418, %c0_419] : memref<17x128xf32, #tpu.memory_space<vmem>>, vector<1x128xf32>
    %568 = vector.broadcast %567 : vector<1x128xf32> to vector<16x128xf32>
    %569 = arith.mulf %566, %568 : vector<16x128xf32>
    %570 = arith.addf %565, %569 : vector<16x128xf32>
    %c1_420 = arith.constant 1 : index
    %c0_421 = arith.constant 0 : index
    %571 = vector.load %arg58[%c1_420, %c0_421] : memref<80x128xf32, #tpu.memory_space<vmem>>, vector<16x128xf32>
    %c1_422 = arith.constant 1 : index
    %c0_423 = arith.constant 0 : index
    %572 = vector.load %arg22[%c1_422, %c0_423] : memref<17x128xf32, #tpu.memory_space<vmem>>, vector<1x128xf32>
    %573 = vector.broadcast %572 : vector<1x128xf32> to vector<16x128xf32>
    %574 = arith.mulf %571, %573 : vector<16x128xf32>
    %575 = arith.addf %570, %574 : vector<16x128xf32>
    %c2_424 = arith.constant 2 : index
    %c0_425 = arith.constant 0 : index
    %576 = vector.load %arg58[%c2_424, %c0_425] : memref<80x128xf32, #tpu.memory_space<vmem>>, vector<16x128xf32>
    %c2_426 = arith.constant 2 : index
    %c0_427 = arith.constant 0 : index
    %577 = vector.load %arg22[%c2_426, %c0_427] : memref<17x128xf32, #tpu.memory_space<vmem>>, vector<1x128xf32>
    %578 = vector.broadcast %577 : vector<1x128xf32> to vector<16x128xf32>
    %579 = arith.mulf %576, %578 : vector<16x128xf32>
    %580 = arith.addf %575, %579 : vector<16x128xf32>
    %c3_428 = arith.constant 3 : index
    %c0_429 = arith.constant 0 : index
    %581 = vector.load %arg58[%c3_428, %c0_429] : memref<80x128xf32, #tpu.memory_space<vmem>>, vector<16x128xf32>
    %c3_430 = arith.constant 3 : index
    %c0_431 = arith.constant 0 : index
    %582 = vector.load %arg22[%c3_430, %c0_431] : memref<17x128xf32, #tpu.memory_space<vmem>>, vector<1x128xf32>
    %583 = vector.broadcast %582 : vector<1x128xf32> to vector<16x128xf32>
    %584 = arith.mulf %581, %583 : vector<16x128xf32>
    %585 = arith.addf %580, %584 : vector<16x128xf32>
    %c4_432 = arith.constant 4 : index
    %c0_433 = arith.constant 0 : index
    %586 = vector.load %arg58[%c4_432, %c0_433] : memref<80x128xf32, #tpu.memory_space<vmem>>, vector<16x128xf32>
    %c4_434 = arith.constant 4 : index
    %c0_435 = arith.constant 0 : index
    %587 = vector.load %arg22[%c4_434, %c0_435] : memref<17x128xf32, #tpu.memory_space<vmem>>, vector<1x128xf32>
    %588 = vector.broadcast %587 : vector<1x128xf32> to vector<16x128xf32>
    %589 = arith.mulf %586, %588 : vector<16x128xf32>
    %590 = arith.addf %585, %589 : vector<16x128xf32>
    %c5_436 = arith.constant 5 : index
    %c0_437 = arith.constant 0 : index
    %591 = vector.load %arg58[%c5_436, %c0_437] : memref<80x128xf32, #tpu.memory_space<vmem>>, vector<16x128xf32>
    %c5_438 = arith.constant 5 : index
    %c0_439 = arith.constant 0 : index
    %592 = vector.load %arg22[%c5_438, %c0_439] : memref<17x128xf32, #tpu.memory_space<vmem>>, vector<1x128xf32>
    %593 = vector.broadcast %592 : vector<1x128xf32> to vector<16x128xf32>
    %594 = arith.mulf %591, %593 : vector<16x128xf32>
    %595 = arith.addf %590, %594 : vector<16x128xf32>
    %c6_440 = arith.constant 6 : index
    %c0_441 = arith.constant 0 : index
    %596 = vector.load %arg58[%c6_440, %c0_441] : memref<80x128xf32, #tpu.memory_space<vmem>>, vector<16x128xf32>
    %c6_442 = arith.constant 6 : index
    %c0_443 = arith.constant 0 : index
    %597 = vector.load %arg22[%c6_442, %c0_443] : memref<17x128xf32, #tpu.memory_space<vmem>>, vector<1x128xf32>
    %598 = vector.broadcast %597 : vector<1x128xf32> to vector<16x128xf32>
    %599 = arith.mulf %596, %598 : vector<16x128xf32>
    %600 = arith.addf %595, %599 : vector<16x128xf32>
    %c7_444 = arith.constant 7 : index
    %c0_445 = arith.constant 0 : index
    %601 = vector.load %arg58[%c7_444, %c0_445] : memref<80x128xf32, #tpu.memory_space<vmem>>, vector<16x128xf32>
    %c7_446 = arith.constant 7 : index
    %c0_447 = arith.constant 0 : index
    %602 = vector.load %arg22[%c7_446, %c0_447] : memref<17x128xf32, #tpu.memory_space<vmem>>, vector<1x128xf32>
    %603 = vector.broadcast %602 : vector<1x128xf32> to vector<16x128xf32>
    %604 = arith.mulf %601, %603 : vector<16x128xf32>
    %605 = arith.addf %600, %604 : vector<16x128xf32>
    %c8_448 = arith.constant 8 : index
    %c0_449 = arith.constant 0 : index
    %606 = vector.load %arg58[%c8_448, %c0_449] : memref<80x128xf32, #tpu.memory_space<vmem>>, vector<16x128xf32>
    %c8_450 = arith.constant 8 : index
    %c0_451 = arith.constant 0 : index
    %607 = vector.load %arg22[%c8_450, %c0_451] : memref<17x128xf32, #tpu.memory_space<vmem>>, vector<1x128xf32>
    %608 = vector.broadcast %607 : vector<1x128xf32> to vector<16x128xf32>
    %609 = arith.mulf %606, %608 : vector<16x128xf32>
    %610 = arith.addf %605, %609 : vector<16x128xf32>
    %c9_452 = arith.constant 9 : index
    %c0_453 = arith.constant 0 : index
    %611 = vector.load %arg58[%c9_452, %c0_453] : memref<80x128xf32, #tpu.memory_space<vmem>>, vector<16x128xf32>
    %c9_454 = arith.constant 9 : index
    %c0_455 = arith.constant 0 : index
    %612 = vector.load %arg22[%c9_454, %c0_455] : memref<17x128xf32, #tpu.memory_space<vmem>>, vector<1x128xf32>
    %613 = vector.broadcast %612 : vector<1x128xf32> to vector<16x128xf32>
    %614 = arith.mulf %611, %613 : vector<16x128xf32>
    %615 = arith.addf %610, %614 : vector<16x128xf32>
    %c10_456 = arith.constant 10 : index
    %c0_457 = arith.constant 0 : index
    %616 = vector.load %arg58[%c10_456, %c0_457] : memref<80x128xf32, #tpu.memory_space<vmem>>, vector<16x128xf32>
    %c10_458 = arith.constant 10 : index
    %c0_459 = arith.constant 0 : index
    %617 = vector.load %arg22[%c10_458, %c0_459] : memref<17x128xf32, #tpu.memory_space<vmem>>, vector<1x128xf32>
    %618 = vector.broadcast %617 : vector<1x128xf32> to vector<16x128xf32>
    %619 = arith.mulf %616, %618 : vector<16x128xf32>
    %620 = arith.addf %615, %619 : vector<16x128xf32>
    %c11_460 = arith.constant 11 : index
    %c0_461 = arith.constant 0 : index
    %621 = vector.load %arg58[%c11_460, %c0_461] : memref<80x128xf32, #tpu.memory_space<vmem>>, vector<16x128xf32>
    %c11_462 = arith.constant 11 : index
    %c0_463 = arith.constant 0 : index
    %622 = vector.load %arg22[%c11_462, %c0_463] : memref<17x128xf32, #tpu.memory_space<vmem>>, vector<1x128xf32>
    %623 = vector.broadcast %622 : vector<1x128xf32> to vector<16x128xf32>
    %624 = arith.mulf %621, %623 : vector<16x128xf32>
    %625 = arith.addf %620, %624 : vector<16x128xf32>
    %c12_464 = arith.constant 12 : index
    %c0_465 = arith.constant 0 : index
    %626 = vector.load %arg58[%c12_464, %c0_465] : memref<80x128xf32, #tpu.memory_space<vmem>>, vector<16x128xf32>
    %c12_466 = arith.constant 12 : index
    %c0_467 = arith.constant 0 : index
    %627 = vector.load %arg22[%c12_466, %c0_467] : memref<17x128xf32, #tpu.memory_space<vmem>>, vector<1x128xf32>
    %628 = vector.broadcast %627 : vector<1x128xf32> to vector<16x128xf32>
    %629 = arith.mulf %626, %628 : vector<16x128xf32>
    %630 = arith.addf %625, %629 : vector<16x128xf32>
    %c13_468 = arith.constant 13 : index
    %c0_469 = arith.constant 0 : index
    %631 = vector.load %arg58[%c13_468, %c0_469] : memref<80x128xf32, #tpu.memory_space<vmem>>, vector<16x128xf32>
    %c13_470 = arith.constant 13 : index
    %c0_471 = arith.constant 0 : index
    %632 = vector.load %arg22[%c13_470, %c0_471] : memref<17x128xf32, #tpu.memory_space<vmem>>, vector<1x128xf32>
    %633 = vector.broadcast %632 : vector<1x128xf32> to vector<16x128xf32>
    %634 = arith.mulf %631, %633 : vector<16x128xf32>
    %635 = arith.addf %630, %634 : vector<16x128xf32>
    %c14_472 = arith.constant 14 : index
    %c0_473 = arith.constant 0 : index
    %636 = vector.load %arg58[%c14_472, %c0_473] : memref<80x128xf32, #tpu.memory_space<vmem>>, vector<16x128xf32>
    %c14_474 = arith.constant 14 : index
    %c0_475 = arith.constant 0 : index
    %637 = vector.load %arg22[%c14_474, %c0_475] : memref<17x128xf32, #tpu.memory_space<vmem>>, vector<1x128xf32>
    %638 = vector.broadcast %637 : vector<1x128xf32> to vector<16x128xf32>
    %639 = arith.mulf %636, %638 : vector<16x128xf32>
    %640 = arith.addf %635, %639 : vector<16x128xf32>
    %c15_476 = arith.constant 15 : index
    %c0_477 = arith.constant 0 : index
    %641 = vector.load %arg58[%c15_476, %c0_477] : memref<80x128xf32, #tpu.memory_space<vmem>>, vector<16x128xf32>
    %c15_478 = arith.constant 15 : index
    %c0_479 = arith.constant 0 : index
    %642 = vector.load %arg22[%c15_478, %c0_479] : memref<17x128xf32, #tpu.memory_space<vmem>>, vector<1x128xf32>
    %643 = vector.broadcast %642 : vector<1x128xf32> to vector<16x128xf32>
    %644 = arith.mulf %641, %643 : vector<16x128xf32>
    %645 = arith.addf %640, %644 : vector<16x128xf32>
    %c16_480 = arith.constant 16 : index
    %c0_481 = arith.constant 0 : index
    %646 = vector.load %arg58[%c16_480, %c0_481] : memref<80x128xf32, #tpu.memory_space<vmem>>, vector<16x128xf32>
    %c16_482 = arith.constant 16 : index
    %c0_483 = arith.constant 0 : index
    %647 = vector.load %arg22[%c16_482, %c0_483] : memref<17x128xf32, #tpu.memory_space<vmem>>, vector<1x128xf32>
    %648 = vector.broadcast %647 : vector<1x128xf32> to vector<16x128xf32>
    %649 = arith.mulf %646, %648 : vector<16x128xf32>
    %650 = arith.addf %645, %649 : vector<16x128xf32>
    %c0_484 = arith.constant 0 : index
    %c0_485 = arith.constant 0 : index
    %651 = vector.load %arg23[%c0_484, %c0_485] : memref<1x128xf32, #tpu.memory_space<vmem>>, vector<1x128xf32>
    %652 = vector.broadcast %651 : vector<1x128xf32> to vector<16x128xf32>
    %653 = arith.addf %650, %652 : vector<16x128xf32>
    %cst_486 = arith.constant 0.000000e+00 : f32
    %cst_487 = arith.constant 6.000000e+00 : f32
    %654 = vector.broadcast %cst_486 : f32 to vector<16x128xf32>
    %655 = arith.maximumf %654, %653 : vector<16x128xf32>
    %656 = vector.broadcast %cst_487 : f32 to vector<16x128xf32>
    %657 = arith.minimumf %656, %655 : vector<16x128xf32>
    %c0_488 = arith.constant 0 : index
    %c0_489 = arith.constant 0 : index
    %658 = vector.load %arg24[%c0_488, %c0_489] : memref<128x32xf32, #tpu.memory_space<vmem>>, vector<128x32xf32>
    %cst_490 = arith.constant dense<0.000000e+00> : vector<16x32xf32>
    %659 = tpu.matmul %657, %658, %cst_490 {dimension_numbers = #tpu.dot_dimension_numbers<[1], [0], [0], [1], [0, 0, 1, 1], [], []>} : vector<16x128xf32>, vector<128x32xf32>, vector<16x32xf32> -> vector<16x32xf32>
    %c0_491 = arith.constant 0 : index
    %c0_492 = arith.constant 0 : index
    %660 = vector.load %arg25[%c0_491, %c0_492] : memref<1x32xf32, #tpu.memory_space<vmem>>, vector<1x32xf32>
    %661 = vector.broadcast %660 : vector<1x32xf32> to vector<16x32xf32>
    %662 = arith.addf %659, %661 : vector<16x32xf32>
    %663 = arith.addf %550, %662 : vector<16x32xf32>
    %c0_493 = arith.constant 0 : index
    %c0_494 = arith.constant 0 : index
    %664 = vector.load %arg26[%c0_493, %c0_494] : memref<32x128xf32, #tpu.memory_space<vmem>>, vector<32x128xf32>
    %cst_495 = arith.constant dense<0.000000e+00> : vector<16x128xf32>
    %665 = tpu.matmul %663, %664, %cst_495 {dimension_numbers = #tpu.dot_dimension_numbers<[1], [0], [0], [1], [0, 0, 1, 1], [], []>} : vector<16x32xf32>, vector<32x128xf32>, vector<16x128xf32> -> vector<16x128xf32>
    %c0_496 = arith.constant 0 : index
    %c0_497 = arith.constant 0 : index
    %666 = vector.load %arg27[%c0_496, %c0_497] : memref<1x128xf32, #tpu.memory_space<vmem>>, vector<1x128xf32>
    %667 = vector.broadcast %666 : vector<1x128xf32> to vector<16x128xf32>
    %668 = arith.addf %665, %667 : vector<16x128xf32>
    %cst_498 = arith.constant 0.000000e+00 : f32
    %cst_499 = arith.constant 6.000000e+00 : f32
    %669 = vector.broadcast %cst_498 : f32 to vector<16x128xf32>
    %670 = arith.maximumf %669, %668 : vector<16x128xf32>
    %671 = vector.broadcast %cst_499 : f32 to vector<16x128xf32>
    %672 = arith.minimumf %671, %670 : vector<16x128xf32>
    %cst_500 = arith.constant 0.000000e+00 : f32
    %673 = vector.broadcast %cst_500 : f32 to vector<5x128xf32>
    %c0_501 = arith.constant 0 : index
    %c0_502 = arith.constant 0 : index
    %674 = vector.load %arg58[%c0_501, %c0_502] : memref<80x128xf32, #tpu.memory_space<vmem>>, vector<5x128xf32>
    tpu.vector_store %arg58[%c0_501, %c0_502], %673 {strides = array<i32>} : memref<80x128xf32, #tpu.memory_space<vmem>>, vector<5x128xf32>,
    %cst_503 = arith.constant 0.000000e+00 : f32
    %675 = vector.broadcast %cst_503 : f32 to vector<5x128xf32>
    %c21_504 = arith.constant 21 : index
    %c0_505 = arith.constant 0 : index
    %676 = vector.load %arg58[%c21_504, %c0_505] : memref<80x128xf32, #tpu.memory_space<vmem>>, vector<5x128xf32>
    tpu.vector_store %arg58[%c21_504, %c0_505], %675 {strides = array<i32>} : memref<80x128xf32, #tpu.memory_space<vmem>>, vector<5x128xf32>,
    %c5_506 = arith.constant 5 : index
    %c0_507 = arith.constant 0 : index
    %677 = vector.load %arg58[%c5_506, %c0_507] : memref<80x128xf32, #tpu.memory_space<vmem>>, vector<16x128xf32>
    tpu.vector_store %arg58[%c5_506, %c0_507], %672 {strides = array<i32>} : memref<80x128xf32, #tpu.memory_space<vmem>>, vector<16x128xf32>,
    %cst_508 = arith.constant 0.000000e+00 : f32
    %678 = vector.broadcast %cst_508 : f32 to vector<16x128xf32>
    %c0_509 = arith.constant 0 : index
    %c0_510 = arith.constant 0 : index
    %679 = vector.load %arg58[%c0_509, %c0_510] : memref<80x128xf32, #tpu.memory_space<vmem>>, vector<16x128xf32>
    %c0_511 = arith.constant 0 : index
    %c0_512 = arith.constant 0 : index
    %680 = vector.load %arg28[%c0_511, %c0_512] : memref<11x128xf32, #tpu.memory_space<vmem>>, vector<1x128xf32>
    %681 = vector.broadcast %680 : vector<1x128xf32> to vector<16x128xf32>
    %682 = arith.mulf %679, %681 : vector<16x128xf32>
    %683 = arith.addf %678, %682 : vector<16x128xf32>
    %c1_513 = arith.constant 1 : index
    %c0_514 = arith.constant 0 : index
    %684 = vector.load %arg58[%c1_513, %c0_514] : memref<80x128xf32, #tpu.memory_space<vmem>>, vector<16x128xf32>
    %c1_515 = arith.constant 1 : index
    %c0_516 = arith.constant 0 : index
    %685 = vector.load %arg28[%c1_515, %c0_516] : memref<11x128xf32, #tpu.memory_space<vmem>>, vector<1x128xf32>
    %686 = vector.broadcast %685 : vector<1x128xf32> to vector<16x128xf32>
    %687 = arith.mulf %684, %686 : vector<16x128xf32>
    %688 = arith.addf %683, %687 : vector<16x128xf32>
    %c2_517 = arith.constant 2 : index
    %c0_518 = arith.constant 0 : index
    %689 = vector.load %arg58[%c2_517, %c0_518] : memref<80x128xf32, #tpu.memory_space<vmem>>, vector<16x128xf32>
    %c2_519 = arith.constant 2 : index
    %c0_520 = arith.constant 0 : index
    %690 = vector.load %arg28[%c2_519, %c0_520] : memref<11x128xf32, #tpu.memory_space<vmem>>, vector<1x128xf32>
    %691 = vector.broadcast %690 : vector<1x128xf32> to vector<16x128xf32>
    %692 = arith.mulf %689, %691 : vector<16x128xf32>
    %693 = arith.addf %688, %692 : vector<16x128xf32>
    %c3_521 = arith.constant 3 : index
    %c0_522 = arith.constant 0 : index
    %694 = vector.load %arg58[%c3_521, %c0_522] : memref<80x128xf32, #tpu.memory_space<vmem>>, vector<16x128xf32>
    %c3_523 = arith.constant 3 : index
    %c0_524 = arith.constant 0 : index
    %695 = vector.load %arg28[%c3_523, %c0_524] : memref<11x128xf32, #tpu.memory_space<vmem>>, vector<1x128xf32>
    %696 = vector.broadcast %695 : vector<1x128xf32> to vector<16x128xf32>
    %697 = arith.mulf %694, %696 : vector<16x128xf32>
    %698 = arith.addf %693, %697 : vector<16x128xf32>
    %c4_525 = arith.constant 4 : index
    %c0_526 = arith.constant 0 : index
    %699 = vector.load %arg58[%c4_525, %c0_526] : memref<80x128xf32, #tpu.memory_space<vmem>>, vector<16x128xf32>
    %c4_527 = arith.constant 4 : index
    %c0_528 = arith.constant 0 : index
    %700 = vector.load %arg28[%c4_527, %c0_528] : memref<11x128xf32, #tpu.memory_space<vmem>>, vector<1x128xf32>
    %701 = vector.broadcast %700 : vector<1x128xf32> to vector<16x128xf32>
    %702 = arith.mulf %699, %701 : vector<16x128xf32>
    %703 = arith.addf %698, %702 : vector<16x128xf32>
    %c5_529 = arith.constant 5 : index
    %c0_530 = arith.constant 0 : index
    %704 = vector.load %arg58[%c5_529, %c0_530] : memref<80x128xf32, #tpu.memory_space<vmem>>, vector<16x128xf32>
    %c5_531 = arith.constant 5 : index
    %c0_532 = arith.constant 0 : index
    %705 = vector.load %arg28[%c5_531, %c0_532] : memref<11x128xf32, #tpu.memory_space<vmem>>, vector<1x128xf32>
    %706 = vector.broadcast %705 : vector<1x128xf32> to vector<16x128xf32>
    %707 = arith.mulf %704, %706 : vector<16x128xf32>
    %708 = arith.addf %703, %707 : vector<16x128xf32>
    %c6_533 = arith.constant 6 : index
    %c0_534 = arith.constant 0 : index
    %709 = vector.load %arg58[%c6_533, %c0_534] : memref<80x128xf32, #tpu.memory_space<vmem>>, vector<16x128xf32>
    %c6_535 = arith.constant 6 : index
    %c0_536 = arith.constant 0 : index
    %710 = vector.load %arg28[%c6_535, %c0_536] : memref<11x128xf32, #tpu.memory_space<vmem>>, vector<1x128xf32>
    %711 = vector.broadcast %710 : vector<1x128xf32> to vector<16x128xf32>
    %712 = arith.mulf %709, %711 : vector<16x128xf32>
    %713 = arith.addf %708, %712 : vector<16x128xf32>
    %c7_537 = arith.constant 7 : index
    %c0_538 = arith.constant 0 : index
    %714 = vector.load %arg58[%c7_537, %c0_538] : memref<80x128xf32, #tpu.memory_space<vmem>>, vector<16x128xf32>
    %c7_539 = arith.constant 7 : index
    %c0_540 = arith.constant 0 : index
    %715 = vector.load %arg28[%c7_539, %c0_540] : memref<11x128xf32, #tpu.memory_space<vmem>>, vector<1x128xf32>
    %716 = vector.broadcast %715 : vector<1x128xf32> to vector<16x128xf32>
    %717 = arith.mulf %714, %716 : vector<16x128xf32>
    %718 = arith.addf %713, %717 : vector<16x128xf32>
    %c8_541 = arith.constant 8 : index
    %c0_542 = arith.constant 0 : index
    %719 = vector.load %arg58[%c8_541, %c0_542] : memref<80x128xf32, #tpu.memory_space<vmem>>, vector<16x128xf32>
    %c8_543 = arith.constant 8 : index
    %c0_544 = arith.constant 0 : index
    %720 = vector.load %arg28[%c8_543, %c0_544] : memref<11x128xf32, #tpu.memory_space<vmem>>, vector<1x128xf32>
    %721 = vector.broadcast %720 : vector<1x128xf32> to vector<16x128xf32>
    %722 = arith.mulf %719, %721 : vector<16x128xf32>
    %723 = arith.addf %718, %722 : vector<16x128xf32>
    %c9_545 = arith.constant 9 : index
    %c0_546 = arith.constant 0 : index
    %724 = vector.load %arg58[%c9_545, %c0_546] : memref<80x128xf32, #tpu.memory_space<vmem>>, vector<16x128xf32>
    %c9_547 = arith.constant 9 : index
    %c0_548 = arith.constant 0 : index
    %725 = vector.load %arg28[%c9_547, %c0_548] : memref<11x128xf32, #tpu.memory_space<vmem>>, vector<1x128xf32>
    %726 = vector.broadcast %725 : vector<1x128xf32> to vector<16x128xf32>
    %727 = arith.mulf %724, %726 : vector<16x128xf32>
    %728 = arith.addf %723, %727 : vector<16x128xf32>
    %c10_549 = arith.constant 10 : index
    %c0_550 = arith.constant 0 : index
    %729 = vector.load %arg58[%c10_549, %c0_550] : memref<80x128xf32, #tpu.memory_space<vmem>>, vector<16x128xf32>
    %c10_551 = arith.constant 10 : index
    %c0_552 = arith.constant 0 : index
    %730 = vector.load %arg28[%c10_551, %c0_552] : memref<11x128xf32, #tpu.memory_space<vmem>>, vector<1x128xf32>
    %731 = vector.broadcast %730 : vector<1x128xf32> to vector<16x128xf32>
    %732 = arith.mulf %729, %731 : vector<16x128xf32>
    %733 = arith.addf %728, %732 : vector<16x128xf32>
    %c0_553 = arith.constant 0 : index
    %c0_554 = arith.constant 0 : index
    %734 = vector.load %arg29[%c0_553, %c0_554] : memref<1x128xf32, #tpu.memory_space<vmem>>, vector<1x128xf32>
    %735 = vector.broadcast %734 : vector<1x128xf32> to vector<16x128xf32>
    %736 = arith.addf %733, %735 : vector<16x128xf32>
    %cst_555 = arith.constant 0.000000e+00 : f32
    %cst_556 = arith.constant 6.000000e+00 : f32
    %737 = vector.broadcast %cst_555 : f32 to vector<16x128xf32>
    %738 = arith.maximumf %737, %736 : vector<16x128xf32>
    %739 = vector.broadcast %cst_556 : f32 to vector<16x128xf32>
    %740 = arith.minimumf %739, %738 : vector<16x128xf32>
    %c0_557 = arith.constant 0 : index
    %c0_558 = arith.constant 0 : index
    %741 = vector.load %arg30[%c0_557, %c0_558] : memref<128x32xf32, #tpu.memory_space<vmem>>, vector<128x32xf32>
    %cst_559 = arith.constant dense<0.000000e+00> : vector<16x32xf32>
    %742 = tpu.matmul %740, %741, %cst_559 {dimension_numbers = #tpu.dot_dimension_numbers<[1], [0], [0], [1], [0, 0, 1, 1], [], []>} : vector<16x128xf32>, vector<128x32xf32>, vector<16x32xf32> -> vector<16x32xf32>
    %c0_560 = arith.constant 0 : index
    %c0_561 = arith.constant 0 : index
    %743 = vector.load %arg31[%c0_560, %c0_561] : memref<1x32xf32, #tpu.memory_space<vmem>>, vector<1x32xf32>
    %744 = vector.broadcast %743 : vector<1x32xf32> to vector<16x32xf32>
    %745 = arith.addf %742, %744 : vector<16x32xf32>
    %746 = arith.addf %663, %745 : vector<16x32xf32>
    %c0_562 = arith.constant 0 : index
    %c0_563 = arith.constant 0 : index
    %747 = vector.load %arg32[%c0_562, %c0_563] : memref<32x128xf32, #tpu.memory_space<vmem>>, vector<32x128xf32>
    %cst_564 = arith.constant dense<0.000000e+00> : vector<16x128xf32>
    %748 = tpu.matmul %746, %747, %cst_564 {dimension_numbers = #tpu.dot_dimension_numbers<[1], [0], [0], [1], [0, 0, 1, 1], [], []>} : vector<16x32xf32>, vector<32x128xf32>, vector<16x128xf32> -> vector<16x128xf32>
    %c0_565 = arith.constant 0 : index
    %c0_566 = arith.constant 0 : index
    %749 = vector.load %arg33[%c0_565, %c0_566] : memref<1x128xf32, #tpu.memory_space<vmem>>, vector<1x128xf32>
    %750 = vector.broadcast %749 : vector<1x128xf32> to vector<16x128xf32>
    %751 = arith.addf %748, %750 : vector<16x128xf32>
    %cst_567 = arith.constant 0.000000e+00 : f32
    %cst_568 = arith.constant 6.000000e+00 : f32
    %752 = vector.broadcast %cst_567 : f32 to vector<16x128xf32>
    %753 = arith.maximumf %752, %751 : vector<16x128xf32>
    %754 = vector.broadcast %cst_568 : f32 to vector<16x128xf32>
    %755 = arith.minimumf %754, %753 : vector<16x128xf32>
    %cst_569 = arith.constant 0.000000e+00 : f32
    %756 = vector.broadcast %cst_569 : f32 to vector<3x128xf32>
    %c0_570 = arith.constant 0 : index
    %c0_571 = arith.constant 0 : index
    %757 = vector.load %arg58[%c0_570, %c0_571] : memref<80x128xf32, #tpu.memory_space<vmem>>, vector<3x128xf32>
    tpu.vector_store %arg58[%c0_570, %c0_571], %756 {strides = array<i32>} : memref<80x128xf32, #tpu.memory_space<vmem>>, vector<3x128xf32>,
    %cst_572 = arith.constant 0.000000e+00 : f32
    %758 = vector.broadcast %cst_572 : f32 to vector<3x128xf32>
    %c19_573 = arith.constant 19 : index
    %c0_574 = arith.constant 0 : index
    %759 = vector.load %arg58[%c19_573, %c0_574] : memref<80x128xf32, #tpu.memory_space<vmem>>, vector<3x128xf32>
    tpu.vector_store %arg58[%c19_573, %c0_574], %758 {strides = array<i32>} : memref<80x128xf32, #tpu.memory_space<vmem>>, vector<3x128xf32>,
    %c3_575 = arith.constant 3 : index
    %c0_576 = arith.constant 0 : index
    %760 = vector.load %arg58[%c3_575, %c0_576] : memref<80x128xf32, #tpu.memory_space<vmem>>, vector<16x128xf32>
    tpu.vector_store %arg58[%c3_575, %c0_576], %755 {strides = array<i32>} : memref<80x128xf32, #tpu.memory_space<vmem>>, vector<16x128xf32>,
    %cst_577 = arith.constant 0.000000e+00 : f32
    %761 = vector.broadcast %cst_577 : f32 to vector<16x128xf32>
    %c0_578 = arith.constant 0 : index
    %c0_579 = arith.constant 0 : index
    %762 = vector.load %arg58[%c0_578, %c0_579] : memref<80x128xf32, #tpu.memory_space<vmem>>, vector<16x128xf32>
    %c0_580 = arith.constant 0 : index
    %c0_581 = arith.constant 0 : index
    %763 = vector.load %arg34[%c0_580, %c0_581] : memref<7x128xf32, #tpu.memory_space<vmem>>, vector<1x128xf32>
    %764 = vector.broadcast %763 : vector<1x128xf32> to vector<16x128xf32>
    %765 = arith.mulf %762, %764 : vector<16x128xf32>
    %766 = arith.addf %761, %765 : vector<16x128xf32>
    %c1_582 = arith.constant 1 : index
    %c0_583 = arith.constant 0 : index
    %767 = vector.load %arg58[%c1_582, %c0_583] : memref<80x128xf32, #tpu.memory_space<vmem>>, vector<16x128xf32>
    %c1_584 = arith.constant 1 : index
    %c0_585 = arith.constant 0 : index
    %768 = vector.load %arg34[%c1_584, %c0_585] : memref<7x128xf32, #tpu.memory_space<vmem>>, vector<1x128xf32>
    %769 = vector.broadcast %768 : vector<1x128xf32> to vector<16x128xf32>
    %770 = arith.mulf %767, %769 : vector<16x128xf32>
    %771 = arith.addf %766, %770 : vector<16x128xf32>
    %c2_586 = arith.constant 2 : index
    %c0_587 = arith.constant 0 : index
    %772 = vector.load %arg58[%c2_586, %c0_587] : memref<80x128xf32, #tpu.memory_space<vmem>>, vector<16x128xf32>
    %c2_588 = arith.constant 2 : index
    %c0_589 = arith.constant 0 : index
    %773 = vector.load %arg34[%c2_588, %c0_589] : memref<7x128xf32, #tpu.memory_space<vmem>>, vector<1x128xf32>
    %774 = vector.broadcast %773 : vector<1x128xf32> to vector<16x128xf32>
    %775 = arith.mulf %772, %774 : vector<16x128xf32>
    %776 = arith.addf %771, %775 : vector<16x128xf32>
    %c3_590 = arith.constant 3 : index
    %c0_591 = arith.constant 0 : index
    %777 = vector.load %arg58[%c3_590, %c0_591] : memref<80x128xf32, #tpu.memory_space<vmem>>, vector<16x128xf32>
    %c3_592 = arith.constant 3 : index
    %c0_593 = arith.constant 0 : index
    %778 = vector.load %arg34[%c3_592, %c0_593] : memref<7x128xf32, #tpu.memory_space<vmem>>, vector<1x128xf32>
    %779 = vector.broadcast %778 : vector<1x128xf32> to vector<16x128xf32>
    %780 = arith.mulf %777, %779 : vector<16x128xf32>
    %781 = arith.addf %776, %780 : vector<16x128xf32>
    %c4_594 = arith.constant 4 : index
    %c0_595 = arith.constant 0 : index
    %782 = vector.load %arg58[%c4_594, %c0_595] : memref<80x128xf32, #tpu.memory_space<vmem>>, vector<16x128xf32>
    %c4_596 = arith.constant 4 : index
    %c0_597 = arith.constant 0 : index
    %783 = vector.load %arg34[%c4_596, %c0_597] : memref<7x128xf32, #tpu.memory_space<vmem>>, vector<1x128xf32>
    %784 = vector.broadcast %783 : vector<1x128xf32> to vector<16x128xf32>
    %785 = arith.mulf %782, %784 : vector<16x128xf32>
    %786 = arith.addf %781, %785 : vector<16x128xf32>
    %c5_598 = arith.constant 5 : index
    %c0_599 = arith.constant 0 : index
    %787 = vector.load %arg58[%c5_598, %c0_599] : memref<80x128xf32, #tpu.memory_space<vmem>>, vector<16x128xf32>
    %c5_600 = arith.constant 5 : index
    %c0_601 = arith.constant 0 : index
    %788 = vector.load %arg34[%c5_600, %c0_601] : memref<7x128xf32, #tpu.memory_space<vmem>>, vector<1x128xf32>
    %789 = vector.broadcast %788 : vector<1x128xf32> to vector<16x128xf32>
    %790 = arith.mulf %787, %789 : vector<16x128xf32>
    %791 = arith.addf %786, %790 : vector<16x128xf32>
    %c6_602 = arith.constant 6 : index
    %c0_603 = arith.constant 0 : index
    %792 = vector.load %arg58[%c6_602, %c0_603] : memref<80x128xf32, #tpu.memory_space<vmem>>, vector<16x128xf32>
    %c6_604 = arith.constant 6 : index
    %c0_605 = arith.constant 0 : index
    %793 = vector.load %arg34[%c6_604, %c0_605] : memref<7x128xf32, #tpu.memory_space<vmem>>, vector<1x128xf32>
    %794 = vector.broadcast %793 : vector<1x128xf32> to vector<16x128xf32>
    %795 = arith.mulf %792, %794 : vector<16x128xf32>
    %796 = arith.addf %791, %795 : vector<16x128xf32>
    %c0_606 = arith.constant 0 : index
    %c0_607 = arith.constant 0 : index
    %797 = vector.load %arg35[%c0_606, %c0_607] : memref<1x128xf32, #tpu.memory_space<vmem>>, vector<1x128xf32>
    %798 = vector.broadcast %797 : vector<1x128xf32> to vector<16x128xf32>
    %799 = arith.addf %796, %798 : vector<16x128xf32>
    %cst_608 = arith.constant 0.000000e+00 : f32
    %cst_609 = arith.constant 6.000000e+00 : f32
    %800 = vector.broadcast %cst_608 : f32 to vector<16x128xf32>
    %801 = arith.maximumf %800, %799 : vector<16x128xf32>
    %802 = vector.broadcast %cst_609 : f32 to vector<16x128xf32>
    %803 = arith.minimumf %802, %801 : vector<16x128xf32>
    %c0_610 = arith.constant 0 : index
    %c0_611 = arith.constant 0 : index
    %804 = vector.load %arg36[%c0_610, %c0_611] : memref<128x32xf32, #tpu.memory_space<vmem>>, vector<128x32xf32>
    %cst_612 = arith.constant dense<0.000000e+00> : vector<16x32xf32>
    %805 = tpu.matmul %803, %804, %cst_612 {dimension_numbers = #tpu.dot_dimension_numbers<[1], [0], [0], [1], [0, 0, 1, 1], [], []>} : vector<16x128xf32>, vector<128x32xf32>, vector<16x32xf32> -> vector<16x32xf32>
    %c0_613 = arith.constant 0 : index
    %c0_614 = arith.constant 0 : index
    %806 = vector.load %arg37[%c0_613, %c0_614] : memref<1x32xf32, #tpu.memory_space<vmem>>, vector<1x32xf32>
    %807 = vector.broadcast %806 : vector<1x32xf32> to vector<16x32xf32>
    %808 = arith.addf %805, %807 : vector<16x32xf32>
    %809 = arith.addf %746, %808 : vector<16x32xf32>
    %c0_615 = arith.constant 0 : index
    %c0_616 = arith.constant 0 : index
    %810 = vector.load %arg38[%c0_615, %c0_616] : memref<4x32xf32, #tpu.memory_space<vmem>>, vector<4x32xf32>
    %cst_617 = arith.constant dense<0.000000e+00> : vector<4x16xf32>
    %811 = tpu.matmul %810, %809, %cst_617 {dimension_numbers = #tpu.dot_dimension_numbers<[1], [1], [0], [0], [0, 0, 1, 0], [], []>} : vector<4x32xf32>, vector<16x32xf32>, vector<4x16xf32> -> vector<4x16xf32>
    %c0_618 = arith.constant 0 : index
    %c0_619 = arith.constant 0 : index
    %812 = vector.load %arg39[%c0_618, %c0_619] : memref<4x1xf32, #tpu.memory_space<vmem>>, vector<4x1xf32>
    %813 = vector.broadcast %812 : vector<4x1xf32> to vector<4x16xf32>
    %814 = arith.addf %811, %813 : vector<4x16xf32>
    %c0_620 = arith.constant 0 : index
    %c0_621 = arith.constant 0 : index
    %c0_622 = arith.constant 0 : index
    %815 = vector.load %arg57[%c0_620, %c0_621, %c0_622] : memref<1x4x16xf32, #tpu.memory_space<vmem>>, vector<1x4x16xf32>
    %816 = vector.shape_cast %815 : vector<1x4x16xf32> to vector<4x16xf32>
    %817 = vector.shape_cast %814 : vector<4x16xf32> to vector<1x4x16xf32>
    tpu.vector_store %arg57[%c0_620, %c0_621, %c0_622], %817 {strides = array<i32>} : memref<1x4x16xf32, #tpu.memory_space<vmem>>, vector<1x4x16xf32>,
    %cst_623 = arith.constant 0.000000e+00 : f32
    %818 = vector.broadcast %cst_623 : f32 to vector<1x32xf32>
    %c0_624 = arith.constant 0 : index
    %c0_625 = arith.constant 0 : index
    %819 = vector.load %arg59[%c0_624, %c0_625] : memref<18x32xf32, #tpu.memory_space<vmem>>, vector<1x32xf32>
    tpu.vector_store %arg59[%c0_624, %c0_625], %818 {strides = array<i32>} : memref<18x32xf32, #tpu.memory_space<vmem>>, vector<1x32xf32>,
    %cst_626 = arith.constant 0.000000e+00 : f32
    %820 = vector.broadcast %cst_626 : f32 to vector<1x32xf32>
    %c17_627 = arith.constant 17 : index
    %c0_628 = arith.constant 0 : index
    %821 = vector.load %arg59[%c17_627, %c0_628] : memref<18x32xf32, #tpu.memory_space<vmem>>, vector<1x32xf32>
    tpu.vector_store %arg59[%c17_627, %c0_628], %820 {strides = array<i32>} : memref<18x32xf32, #tpu.memory_space<vmem>>, vector<1x32xf32>,
    %c1_629 = arith.constant 1 : index
    %c0_630 = arith.constant 0 : index
    %822 = vector.load %arg59[%c1_629, %c0_630] : memref<18x32xf32, #tpu.memory_space<vmem>>, vector<16x32xf32>
    tpu.vector_store %arg59[%c1_629, %c0_630], %809 {strides = array<i32>} : memref<18x32xf32, #tpu.memory_space<vmem>>, vector<16x32xf32>,
    %c0_631 = arith.constant 0 : index
    %c0_632 = arith.constant 0 : index
    %823 = vector.load %arg59[%c0_631, %c0_632] : memref<18x32xf32, #tpu.memory_space<vmem>>, vector<16x32xf32>
    %c1_633 = arith.constant 1 : index
    %c0_634 = arith.constant 0 : index
    %824 = vector.load %arg59[%c1_633, %c0_634] : memref<18x32xf32, #tpu.memory_space<vmem>>, vector<16x32xf32>
    %c2_635 = arith.constant 2 : index
    %c0_636 = arith.constant 0 : index
    %825 = vector.load %arg59[%c2_635, %c0_636] : memref<18x32xf32, #tpu.memory_space<vmem>>, vector<16x32xf32>
    %c0_637 = arith.constant 0 : index
    %c0_638 = arith.constant 0 : index
    %826 = vector.load %arg41[%c0_637, %c0_638] : memref<1x16xf32, #tpu.memory_space<vmem>>, vector<1x16xf32>
    %c4_639 = arith.constant 4 : index
    %c0_640 = arith.constant 0 : index
    %c0_641 = arith.constant 0 : index
    %827 = vector.load %arg40[%c4_639, %c0_640, %c0_641] : memref<5x32x16xf32, #tpu.memory_space<vmem>>, vector<1x32x16xf32>
    %828 = vector.shape_cast %827 : vector<1x32x16xf32> to vector<32x16xf32>
    %cst_642 = arith.constant dense<0.000000e+00> : vector<16x16xf32>
    %829 = tpu.matmul %823, %828, %cst_642 {dimension_numbers = #tpu.dot_dimension_numbers<[1], [0], [0], [1], [0, 0, 1, 1], [], []>} : vector<16x32xf32>, vector<32x16xf32>, vector<16x16xf32> -> vector<16x16xf32>
    %c2_643 = arith.constant 2 : index
    %c0_644 = arith.constant 0 : index
    %c0_645 = arith.constant 0 : index
    %830 = vector.load %arg40[%c2_643, %c0_644, %c0_645] : memref<5x32x16xf32, #tpu.memory_space<vmem>>, vector<1x32x16xf32>
    %831 = vector.shape_cast %830 : vector<1x32x16xf32> to vector<32x16xf32>
    %cst_646 = arith.constant dense<0.000000e+00> : vector<16x16xf32>
    %832 = tpu.matmul %824, %831, %cst_646 {dimension_numbers = #tpu.dot_dimension_numbers<[1], [0], [0], [1], [0, 0, 1, 1], [], []>} : vector<16x32xf32>, vector<32x16xf32>, vector<16x16xf32> -> vector<16x16xf32>
    %833 = arith.addf %829, %832 : vector<16x16xf32>
    %c0_647 = arith.constant 0 : index
    %c0_648 = arith.constant 0 : index
    %c0_649 = arith.constant 0 : index
    %834 = vector.load %arg40[%c0_647, %c0_648, %c0_649] : memref<5x32x16xf32, #tpu.memory_space<vmem>>, vector<1x32x16xf32>
    %835 = vector.shape_cast %834 : vector<1x32x16xf32> to vector<32x16xf32>
    %cst_650 = arith.constant dense<0.000000e+00> : vector<16x16xf32>
    %836 = tpu.matmul %825, %835, %cst_650 {dimension_numbers = #tpu.dot_dimension_numbers<[1], [0], [0], [1], [0, 0, 1, 1], [], []>} : vector<16x32xf32>, vector<32x16xf32>, vector<16x16xf32> -> vector<16x16xf32>
    %837 = arith.addf %833, %836 : vector<16x16xf32>
    %838 = vector.broadcast %826 : vector<1x16xf32> to vector<16x16xf32>
    %839 = arith.addf %837, %838 : vector<16x16xf32>
    %c1_651 = arith.constant 1 : index
    %c0_652 = arith.constant 0 : index
    %c0_653 = arith.constant 0 : index
    %840 = vector.load %arg40[%c1_651, %c0_652, %c0_653] : memref<5x32x16xf32, #tpu.memory_space<vmem>>, vector<1x32x16xf32>
    %841 = vector.shape_cast %840 : vector<1x32x16xf32> to vector<32x16xf32>
    %cst_654 = arith.constant dense<0.000000e+00> : vector<16x16xf32>
    %842 = tpu.matmul %825, %841, %cst_654 {dimension_numbers = #tpu.dot_dimension_numbers<[1], [0], [0], [1], [0, 0, 1, 1], [], []>} : vector<16x32xf32>, vector<32x16xf32>, vector<16x16xf32> -> vector<16x16xf32>
    %c3_655 = arith.constant 3 : index
    %c0_656 = arith.constant 0 : index
    %c0_657 = arith.constant 0 : index
    %843 = vector.load %arg40[%c3_655, %c0_656, %c0_657] : memref<5x32x16xf32, #tpu.memory_space<vmem>>, vector<1x32x16xf32>
    %844 = vector.shape_cast %843 : vector<1x32x16xf32> to vector<32x16xf32>
    %cst_658 = arith.constant dense<0.000000e+00> : vector<16x16xf32>
    %845 = tpu.matmul %824, %844, %cst_658 {dimension_numbers = #tpu.dot_dimension_numbers<[1], [0], [0], [1], [0, 0, 1, 1], [], []>} : vector<16x32xf32>, vector<32x16xf32>, vector<16x16xf32> -> vector<16x16xf32>
    %846 = arith.addf %842, %845 : vector<16x16xf32>
    %847 = vector.broadcast %826 : vector<1x16xf32> to vector<16x16xf32>
    %848 = arith.addf %846, %847 : vector<16x16xf32>
    %849 = tpu.iota {dimensions = array<i32: 0>} : vector<32x16xi32>
    %850 = tpu.iota {dimensions = array<i32: 1>} : vector<32x16xi32>
    %c2_i32 = arith.constant 2 : i32
    %851 = vector.broadcast %c2_i32 : i32 to vector<32x16xi32>
    %852 = arith.muli %851, %850 : vector<32x16xi32>
    %853 = arith.cmpi eq, %849, %852 : vector<32x16xi32>
    %854 = arith.extui %853 : vector<32x16xi1> to vector<32x16xi32>
    %855 = arith.sitofp %854 : vector<32x16xi32> to vector<32x16xf32>
    %c2_i32_659 = arith.constant 2 : i32
    %856 = vector.broadcast %c2_i32_659 : i32 to vector<32x16xi32>
    %857 = arith.muli %856, %850 : vector<32x16xi32>
    %c1_i32 = arith.constant 1 : i32
    %858 = vector.broadcast %c1_i32 : i32 to vector<32x16xi32>
    %859 = arith.addi %857, %858 : vector<32x16xi32>
    %860 = arith.cmpi eq, %849, %859 : vector<32x16xi32>
    %861 = arith.extui %860 : vector<32x16xi1> to vector<32x16xi32>
    %862 = arith.sitofp %861 : vector<32x16xi32> to vector<32x16xf32>
    %cst_660 = arith.constant dense<0.000000e+00> : vector<32x16xf32>
    %863 = tpu.matmul %855, %839, %cst_660 {dimension_numbers = #tpu.dot_dimension_numbers<[1], [0], [0], [1], [0, 0, 1, 1], [], []>} : vector<32x16xf32>, vector<16x16xf32>, vector<32x16xf32> -> vector<32x16xf32>
    %cst_661 = arith.constant dense<0.000000e+00> : vector<32x16xf32>
    %864 = tpu.matmul %862, %848, %cst_661 {dimension_numbers = #tpu.dot_dimension_numbers<[1], [0], [0], [1], [0, 0, 1, 1], [], []>} : vector<32x16xf32>, vector<16x16xf32>, vector<32x16xf32> -> vector<32x16xf32>
    %865 = arith.addf %863, %864 : vector<32x16xf32>
    %c0_662 = arith.constant 0 : index
    %c0_663 = arith.constant 0 : index
    %866 = vector.load %arg42[%c0_662, %c0_663] : memref<16x64xf32, #tpu.memory_space<vmem>>, vector<16x64xf32>
    %cst_664 = arith.constant dense<0.000000e+00> : vector<32x64xf32>
    %867 = tpu.matmul %865, %866, %cst_664 {dimension_numbers = #tpu.dot_dimension_numbers<[1], [0], [0], [1], [0, 0, 1, 1], [], []>} : vector<32x16xf32>, vector<16x64xf32>, vector<32x64xf32> -> vector<32x64xf32>
    %c0_665 = arith.constant 0 : index
    %c0_666 = arith.constant 0 : index
    %868 = vector.load %arg43[%c0_665, %c0_666] : memref<1x64xf32, #tpu.memory_space<vmem>>, vector<1x64xf32>
    %869 = vector.broadcast %868 : vector<1x64xf32> to vector<32x64xf32>
    %870 = arith.addf %867, %869 : vector<32x64xf32>
    %cst_667 = arith.constant 0.000000e+00 : f32
    %cst_668 = arith.constant 6.000000e+00 : f32
    %871 = vector.broadcast %cst_667 : f32 to vector<32x64xf32>
    %872 = arith.maximumf %871, %870 : vector<32x64xf32>
    %873 = vector.broadcast %cst_668 : f32 to vector<32x64xf32>
    %874 = arith.minimumf %873, %872 : vector<32x64xf32>
    %cst_669 = arith.constant 0.000000e+00 : f32
    %875 = vector.broadcast %cst_669 : f32 to vector<5x64xf32>
    %c0_670 = arith.constant 0 : index
    %c0_671 = arith.constant 0 : index
    %876 = vector.load %arg60[%c0_670, %c0_671] : memref<42x64xf32, #tpu.memory_space<vmem>>, vector<5x64xf32>
    tpu.vector_store %arg60[%c0_670, %c0_671], %875 {strides = array<i32>} : memref<42x64xf32, #tpu.memory_space<vmem>>, vector<5x64xf32>,
    %cst_672 = arith.constant 0.000000e+00 : f32
    %877 = vector.broadcast %cst_672 : f32 to vector<5x64xf32>
    %c37_673 = arith.constant 37 : index
    %c0_674 = arith.constant 0 : index
    %878 = vector.load %arg60[%c37_673, %c0_674] : memref<42x64xf32, #tpu.memory_space<vmem>>, vector<5x64xf32>
    tpu.vector_store %arg60[%c37_673, %c0_674], %877 {strides = array<i32>} : memref<42x64xf32, #tpu.memory_space<vmem>>, vector<5x64xf32>,
    %c5_675 = arith.constant 5 : index
    %c0_676 = arith.constant 0 : index
    %879 = vector.load %arg60[%c5_675, %c0_676] : memref<42x64xf32, #tpu.memory_space<vmem>>, vector<32x64xf32>
    tpu.vector_store %arg60[%c5_675, %c0_676], %874 {strides = array<i32>} : memref<42x64xf32, #tpu.memory_space<vmem>>, vector<32x64xf32>,
    %cst_677 = arith.constant 0.000000e+00 : f32
    %880 = vector.broadcast %cst_677 : f32 to vector<1x64xf32>
    %c36_678 = arith.constant 36 : index
    %c0_679 = arith.constant 0 : index
    %881 = vector.load %arg60[%c36_678, %c0_679] : memref<42x64xf32, #tpu.memory_space<vmem>>, vector<1x64xf32>
    tpu.vector_store %arg60[%c36_678, %c0_679], %880 {strides = array<i32>} : memref<42x64xf32, #tpu.memory_space<vmem>>, vector<1x64xf32>,
    %cst_680 = arith.constant 0.000000e+00 : f32
    %882 = vector.broadcast %cst_680 : f32 to vector<32x64xf32>
    %c0_681 = arith.constant 0 : index
    %c0_682 = arith.constant 0 : index
    %883 = vector.load %arg60[%c0_681, %c0_682] : memref<42x64xf32, #tpu.memory_space<vmem>>, vector<32x64xf32>
    %c0_683 = arith.constant 0 : index
    %c0_684 = arith.constant 0 : index
    %884 = vector.load %arg44[%c0_683, %c0_684] : memref<11x64xf32, #tpu.memory_space<vmem>>, vector<1x64xf32>
    %885 = vector.broadcast %884 : vector<1x64xf32> to vector<32x64xf32>
    %886 = arith.mulf %883, %885 : vector<32x64xf32>
    %887 = arith.addf %882, %886 : vector<32x64xf32>
    %c1_685 = arith.constant 1 : index
    %c0_686 = arith.constant 0 : index
    %888 = vector.load %arg60[%c1_685, %c0_686] : memref<42x64xf32, #tpu.memory_space<vmem>>, vector<32x64xf32>
    %c1_687 = arith.constant 1 : index
    %c0_688 = arith.constant 0 : index
    %889 = vector.load %arg44[%c1_687, %c0_688] : memref<11x64xf32, #tpu.memory_space<vmem>>, vector<1x64xf32>
    %890 = vector.broadcast %889 : vector<1x64xf32> to vector<32x64xf32>
    %891 = arith.mulf %888, %890 : vector<32x64xf32>
    %892 = arith.addf %887, %891 : vector<32x64xf32>
    %c2_689 = arith.constant 2 : index
    %c0_690 = arith.constant 0 : index
    %893 = vector.load %arg60[%c2_689, %c0_690] : memref<42x64xf32, #tpu.memory_space<vmem>>, vector<32x64xf32>
    %c2_691 = arith.constant 2 : index
    %c0_692 = arith.constant 0 : index
    %894 = vector.load %arg44[%c2_691, %c0_692] : memref<11x64xf32, #tpu.memory_space<vmem>>, vector<1x64xf32>
    %895 = vector.broadcast %894 : vector<1x64xf32> to vector<32x64xf32>
    %896 = arith.mulf %893, %895 : vector<32x64xf32>
    %897 = arith.addf %892, %896 : vector<32x64xf32>
    %c3_693 = arith.constant 3 : index
    %c0_694 = arith.constant 0 : index
    %898 = vector.load %arg60[%c3_693, %c0_694] : memref<42x64xf32, #tpu.memory_space<vmem>>, vector<32x64xf32>
    %c3_695 = arith.constant 3 : index
    %c0_696 = arith.constant 0 : index
    %899 = vector.load %arg44[%c3_695, %c0_696] : memref<11x64xf32, #tpu.memory_space<vmem>>, vector<1x64xf32>
    %900 = vector.broadcast %899 : vector<1x64xf32> to vector<32x64xf32>
    %901 = arith.mulf %898, %900 : vector<32x64xf32>
    %902 = arith.addf %897, %901 : vector<32x64xf32>
    %c4_697 = arith.constant 4 : index
    %c0_698 = arith.constant 0 : index
    %903 = vector.load %arg60[%c4_697, %c0_698] : memref<42x64xf32, #tpu.memory_space<vmem>>, vector<32x64xf32>
    %c4_699 = arith.constant 4 : index
    %c0_700 = arith.constant 0 : index
    %904 = vector.load %arg44[%c4_699, %c0_700] : memref<11x64xf32, #tpu.memory_space<vmem>>, vector<1x64xf32>
    %905 = vector.broadcast %904 : vector<1x64xf32> to vector<32x64xf32>
    %906 = arith.mulf %903, %905 : vector<32x64xf32>
    %907 = arith.addf %902, %906 : vector<32x64xf32>
    %c5_701 = arith.constant 5 : index
    %c0_702 = arith.constant 0 : index
    %908 = vector.load %arg60[%c5_701, %c0_702] : memref<42x64xf32, #tpu.memory_space<vmem>>, vector<32x64xf32>
    %c5_703 = arith.constant 5 : index
    %c0_704 = arith.constant 0 : index
    %909 = vector.load %arg44[%c5_703, %c0_704] : memref<11x64xf32, #tpu.memory_space<vmem>>, vector<1x64xf32>
    %910 = vector.broadcast %909 : vector<1x64xf32> to vector<32x64xf32>
    %911 = arith.mulf %908, %910 : vector<32x64xf32>
    %912 = arith.addf %907, %911 : vector<32x64xf32>
    %c6_705 = arith.constant 6 : index
    %c0_706 = arith.constant 0 : index
    %913 = vector.load %arg60[%c6_705, %c0_706] : memref<42x64xf32, #tpu.memory_space<vmem>>, vector<32x64xf32>
    %c6_707 = arith.constant 6 : index
    %c0_708 = arith.constant 0 : index
    %914 = vector.load %arg44[%c6_707, %c0_708] : memref<11x64xf32, #tpu.memory_space<vmem>>, vector<1x64xf32>
    %915 = vector.broadcast %914 : vector<1x64xf32> to vector<32x64xf32>
    %916 = arith.mulf %913, %915 : vector<32x64xf32>
    %917 = arith.addf %912, %916 : vector<32x64xf32>
    %c7_709 = arith.constant 7 : index
    %c0_710 = arith.constant 0 : index
    %918 = vector.load %arg60[%c7_709, %c0_710] : memref<42x64xf32, #tpu.memory_space<vmem>>, vector<32x64xf32>
    %c7_711 = arith.constant 7 : index
    %c0_712 = arith.constant 0 : index
    %919 = vector.load %arg44[%c7_711, %c0_712] : memref<11x64xf32, #tpu.memory_space<vmem>>, vector<1x64xf32>
    %920 = vector.broadcast %919 : vector<1x64xf32> to vector<32x64xf32>
    %921 = arith.mulf %918, %920 : vector<32x64xf32>
    %922 = arith.addf %917, %921 : vector<32x64xf32>
    %c8_713 = arith.constant 8 : index
    %c0_714 = arith.constant 0 : index
    %923 = vector.load %arg60[%c8_713, %c0_714] : memref<42x64xf32, #tpu.memory_space<vmem>>, vector<32x64xf32>
    %c8_715 = arith.constant 8 : index
    %c0_716 = arith.constant 0 : index
    %924 = vector.load %arg44[%c8_715, %c0_716] : memref<11x64xf32, #tpu.memory_space<vmem>>, vector<1x64xf32>
    %925 = vector.broadcast %924 : vector<1x64xf32> to vector<32x64xf32>
    %926 = arith.mulf %923, %925 : vector<32x64xf32>
    %927 = arith.addf %922, %926 : vector<32x64xf32>
    %c9_717 = arith.constant 9 : index
    %c0_718 = arith.constant 0 : index
    %928 = vector.load %arg60[%c9_717, %c0_718] : memref<42x64xf32, #tpu.memory_space<vmem>>, vector<32x64xf32>
    %c9_719 = arith.constant 9 : index
    %c0_720 = arith.constant 0 : index
    %929 = vector.load %arg44[%c9_719, %c0_720] : memref<11x64xf32, #tpu.memory_space<vmem>>, vector<1x64xf32>
    %930 = vector.broadcast %929 : vector<1x64xf32> to vector<32x64xf32>
    %931 = arith.mulf %928, %930 : vector<32x64xf32>
    %932 = arith.addf %927, %931 : vector<32x64xf32>
    %c10_721 = arith.constant 10 : index
    %c0_722 = arith.constant 0 : index
    %933 = vector.load %arg60[%c10_721, %c0_722] : memref<42x64xf32, #tpu.memory_space<vmem>>, vector<32x64xf32>
    %c10_723 = arith.constant 10 : index
    %c0_724 = arith.constant 0 : index
    %934 = vector.load %arg44[%c10_723, %c0_724] : memref<11x64xf32, #tpu.memory_space<vmem>>, vector<1x64xf32>
    %935 = vector.broadcast %934 : vector<1x64xf32> to vector<32x64xf32>
    %936 = arith.mulf %933, %935 : vector<32x64xf32>
    %937 = arith.addf %932, %936 : vector<32x64xf32>
    %c0_725 = arith.constant 0 : index
    %c0_726 = arith.constant 0 : index
    %938 = vector.load %arg45[%c0_725, %c0_726] : memref<1x64xf32, #tpu.memory_space<vmem>>, vector<1x64xf32>
    %939 = vector.broadcast %938 : vector<1x64xf32> to vector<32x64xf32>
    %940 = arith.addf %937, %939 : vector<32x64xf32>
    %cst_727 = arith.constant 0.000000e+00 : f32
    %cst_728 = arith.constant 6.000000e+00 : f32
    %941 = vector.broadcast %cst_727 : f32 to vector<32x64xf32>
    %942 = arith.maximumf %941, %940 : vector<32x64xf32>
    %943 = vector.broadcast %cst_728 : f32 to vector<32x64xf32>
    %944 = arith.minimumf %943, %942 : vector<32x64xf32>
    %c0_729 = arith.constant 0 : index
    %c0_730 = arith.constant 0 : index
    %945 = vector.load %arg46[%c0_729, %c0_730] : memref<64x16xf32, #tpu.memory_space<vmem>>, vector<64x16xf32>
    %cst_731 = arith.constant dense<0.000000e+00> : vector<32x16xf32>
    %946 = tpu.matmul %944, %945, %cst_731 {dimension_numbers = #tpu.dot_dimension_numbers<[1], [0], [0], [1], [0, 0, 1, 1], [], []>} : vector<32x64xf32>, vector<64x16xf32>, vector<32x16xf32> -> vector<32x16xf32>
    %c0_732 = arith.constant 0 : index
    %c0_733 = arith.constant 0 : index
    %947 = vector.load %arg47[%c0_732, %c0_733] : memref<1x16xf32, #tpu.memory_space<vmem>>, vector<1x16xf32>
    %948 = vector.broadcast %947 : vector<1x16xf32> to vector<32x16xf32>
    %949 = arith.addf %946, %948 : vector<32x16xf32>
    %950 = arith.addf %865, %949 : vector<32x16xf32>
    %c0_734 = arith.constant 0 : index
    %c0_735 = arith.constant 0 : index
    %951 = vector.load %arg48[%c0_734, %c0_735] : memref<16x64xf32, #tpu.memory_space<vmem>>, vector<16x64xf32>
    %cst_736 = arith.constant dense<0.000000e+00> : vector<32x64xf32>
    %952 = tpu.matmul %950, %951, %cst_736 {dimension_numbers = #tpu.dot_dimension_numbers<[1], [0], [0], [1], [0, 0, 1, 1], [], []>} : vector<32x16xf32>, vector<16x64xf32>, vector<32x64xf32> -> vector<32x64xf32>
    %c0_737 = arith.constant 0 : index
    %c0_738 = arith.constant 0 : index
    %953 = vector.load %arg49[%c0_737, %c0_738] : memref<1x64xf32, #tpu.memory_space<vmem>>, vector<1x64xf32>
    %954 = vector.broadcast %953 : vector<1x64xf32> to vector<32x64xf32>
    %955 = arith.addf %952, %954 : vector<32x64xf32>
    %cst_739 = arith.constant 0.000000e+00 : f32
    %cst_740 = arith.constant 6.000000e+00 : f32
    %956 = vector.broadcast %cst_739 : f32 to vector<32x64xf32>
    %957 = arith.maximumf %956, %955 : vector<32x64xf32>
    %958 = vector.broadcast %cst_740 : f32 to vector<32x64xf32>
    %959 = arith.minimumf %958, %957 : vector<32x64xf32>
    %cst_741 = arith.constant 0.000000e+00 : f32
    %960 = vector.broadcast %cst_741 : f32 to vector<3x64xf32>
    %c0_742 = arith.constant 0 : index
    %c0_743 = arith.constant 0 : index
    %961 = vector.load %arg60[%c0_742, %c0_743] : memref<42x64xf32, #tpu.memory_space<vmem>>, vector<3x64xf32>
    tpu.vector_store %arg60[%c0_742, %c0_743], %960 {strides = array<i32>} : memref<42x64xf32, #tpu.memory_space<vmem>>, vector<3x64xf32>,
    %cst_744 = arith.constant 0.000000e+00 : f32
    %962 = vector.broadcast %cst_744 : f32 to vector<3x64xf32>
    %c35_745 = arith.constant 35 : index
    %c0_746 = arith.constant 0 : index
    %963 = vector.load %arg60[%c35_745, %c0_746] : memref<42x64xf32, #tpu.memory_space<vmem>>, vector<3x64xf32>
    tpu.vector_store %arg60[%c35_745, %c0_746], %962 {strides = array<i32>} : memref<42x64xf32, #tpu.memory_space<vmem>>, vector<3x64xf32>,
    %c3_747 = arith.constant 3 : index
    %c0_748 = arith.constant 0 : index
    %964 = vector.load %arg60[%c3_747, %c0_748] : memref<42x64xf32, #tpu.memory_space<vmem>>, vector<32x64xf32>
    tpu.vector_store %arg60[%c3_747, %c0_748], %959 {strides = array<i32>} : memref<42x64xf32, #tpu.memory_space<vmem>>, vector<32x64xf32>,
    %cst_749 = arith.constant 0.000000e+00 : f32
    %965 = vector.broadcast %cst_749 : f32 to vector<1x64xf32>
    %c34_750 = arith.constant 34 : index
    %c0_751 = arith.constant 0 : index
    %966 = vector.load %arg60[%c34_750, %c0_751] : memref<42x64xf32, #tpu.memory_space<vmem>>, vector<1x64xf32>
    tpu.vector_store %arg60[%c34_750, %c0_751], %965 {strides = array<i32>} : memref<42x64xf32, #tpu.memory_space<vmem>>, vector<1x64xf32>,
    %cst_752 = arith.constant 0.000000e+00 : f32
    %967 = vector.broadcast %cst_752 : f32 to vector<32x64xf32>
    %c0_753 = arith.constant 0 : index
    %c0_754 = arith.constant 0 : index
    %968 = vector.load %arg60[%c0_753, %c0_754] : memref<42x64xf32, #tpu.memory_space<vmem>>, vector<32x64xf32>
    %c0_755 = arith.constant 0 : index
    %c0_756 = arith.constant 0 : index
    %969 = vector.load %arg50[%c0_755, %c0_756] : memref<7x64xf32, #tpu.memory_space<vmem>>, vector<1x64xf32>
    %970 = vector.broadcast %969 : vector<1x64xf32> to vector<32x64xf32>
    %971 = arith.mulf %968, %970 : vector<32x64xf32>
    %972 = arith.addf %967, %971 : vector<32x64xf32>
    %c1_757 = arith.constant 1 : index
    %c0_758 = arith.constant 0 : index
    %973 = vector.load %arg60[%c1_757, %c0_758] : memref<42x64xf32, #tpu.memory_space<vmem>>, vector<32x64xf32>
    %c1_759 = arith.constant 1 : index
    %c0_760 = arith.constant 0 : index
    %974 = vector.load %arg50[%c1_759, %c0_760] : memref<7x64xf32, #tpu.memory_space<vmem>>, vector<1x64xf32>
    %975 = vector.broadcast %974 : vector<1x64xf32> to vector<32x64xf32>
    %976 = arith.mulf %973, %975 : vector<32x64xf32>
    %977 = arith.addf %972, %976 : vector<32x64xf32>
    %c2_761 = arith.constant 2 : index
    %c0_762 = arith.constant 0 : index
    %978 = vector.load %arg60[%c2_761, %c0_762] : memref<42x64xf32, #tpu.memory_space<vmem>>, vector<32x64xf32>
    %c2_763 = arith.constant 2 : index
    %c0_764 = arith.constant 0 : index
    %979 = vector.load %arg50[%c2_763, %c0_764] : memref<7x64xf32, #tpu.memory_space<vmem>>, vector<1x64xf32>
    %980 = vector.broadcast %979 : vector<1x64xf32> to vector<32x64xf32>
    %981 = arith.mulf %978, %980 : vector<32x64xf32>
    %982 = arith.addf %977, %981 : vector<32x64xf32>
    %c3_765 = arith.constant 3 : index
    %c0_766 = arith.constant 0 : index
    %983 = vector.load %arg60[%c3_765, %c0_766] : memref<42x64xf32, #tpu.memory_space<vmem>>, vector<32x64xf32>
    %c3_767 = arith.constant 3 : index
    %c0_768 = arith.constant 0 : index
    %984 = vector.load %arg50[%c3_767, %c0_768] : memref<7x64xf32, #tpu.memory_space<vmem>>, vector<1x64xf32>
    %985 = vector.broadcast %984 : vector<1x64xf32> to vector<32x64xf32>
    %986 = arith.mulf %983, %985 : vector<32x64xf32>
    %987 = arith.addf %982, %986 : vector<32x64xf32>
    %c4_769 = arith.constant 4 : index
    %c0_770 = arith.constant 0 : index
    %988 = vector.load %arg60[%c4_769, %c0_770] : memref<42x64xf32, #tpu.memory_space<vmem>>, vector<32x64xf32>
    %c4_771 = arith.constant 4 : index
    %c0_772 = arith.constant 0 : index
    %989 = vector.load %arg50[%c4_771, %c0_772] : memref<7x64xf32, #tpu.memory_space<vmem>>, vector<1x64xf32>
    %990 = vector.broadcast %989 : vector<1x64xf32> to vector<32x64xf32>
    %991 = arith.mulf %988, %990 : vector<32x64xf32>
    %992 = arith.addf %987, %991 : vector<32x64xf32>
    %c5_773 = arith.constant 5 : index
    %c0_774 = arith.constant 0 : index
    %993 = vector.load %arg60[%c5_773, %c0_774] : memref<42x64xf32, #tpu.memory_space<vmem>>, vector<32x64xf32>
    %c5_775 = arith.constant 5 : index
    %c0_776 = arith.constant 0 : index
    %994 = vector.load %arg50[%c5_775, %c0_776] : memref<7x64xf32, #tpu.memory_space<vmem>>, vector<1x64xf32>
    %995 = vector.broadcast %994 : vector<1x64xf32> to vector<32x64xf32>
    %996 = arith.mulf %993, %995 : vector<32x64xf32>
    %997 = arith.addf %992, %996 : vector<32x64xf32>
    %c6_777 = arith.constant 6 : index
    %c0_778 = arith.constant 0 : index
    %998 = vector.load %arg60[%c6_777, %c0_778] : memref<42x64xf32, #tpu.memory_space<vmem>>, vector<32x64xf32>
    %c6_779 = arith.constant 6 : index
    %c0_780 = arith.constant 0 : index
    %999 = vector.load %arg50[%c6_779, %c0_780] : memref<7x64xf32, #tpu.memory_space<vmem>>, vector<1x64xf32>
    %1000 = vector.broadcast %999 : vector<1x64xf32> to vector<32x64xf32>
    %1001 = arith.mulf %998, %1000 : vector<32x64xf32>
    %1002 = arith.addf %997, %1001 : vector<32x64xf32>
    %c0_781 = arith.constant 0 : index
    %c0_782 = arith.constant 0 : index
    %1003 = vector.load %arg51[%c0_781, %c0_782] : memref<1x64xf32, #tpu.memory_space<vmem>>, vector<1x64xf32>
    %1004 = vector.broadcast %1003 : vector<1x64xf32> to vector<32x64xf32>
    %1005 = arith.addf %1002, %1004 : vector<32x64xf32>
    %cst_783 = arith.constant 0.000000e+00 : f32
    %cst_784 = arith.constant 6.000000e+00 : f32
    %1006 = vector.broadcast %cst_783 : f32 to vector<32x64xf32>
    %1007 = arith.maximumf %1006, %1005 : vector<32x64xf32>
    %1008 = vector.broadcast %cst_784 : f32 to vector<32x64xf32>
    %1009 = arith.minimumf %1008, %1007 : vector<32x64xf32>
    %c0_785 = arith.constant 0 : index
    %c0_786 = arith.constant 0 : index
    %1010 = vector.load %arg52[%c0_785, %c0_786] : memref<64x16xf32, #tpu.memory_space<vmem>>, vector<64x16xf32>
    %cst_787 = arith.constant dense<0.000000e+00> : vector<32x16xf32>
    %1011 = tpu.matmul %1009, %1010, %cst_787 {dimension_numbers = #tpu.dot_dimension_numbers<[1], [0], [0], [1], [0, 0, 1, 1], [], []>} : vector<32x64xf32>, vector<64x16xf32>, vector<32x16xf32> -> vector<32x16xf32>
    %c0_788 = arith.constant 0 : index
    %c0_789 = arith.constant 0 : index
    %1012 = vector.load %arg53[%c0_788, %c0_789] : memref<1x16xf32, #tpu.memory_space<vmem>>, vector<1x16xf32>
    %1013 = vector.broadcast %1012 : vector<1x16xf32> to vector<32x16xf32>
    %1014 = arith.addf %1011, %1013 : vector<32x16xf32>
    %1015 = arith.addf %950, %1014 : vector<32x16xf32>
    %c0_790 = arith.constant 0 : index
    %c0_791 = arith.constant 0 : index
    %1016 = vector.load %arg54[%c0_790, %c0_791] : memref<8x16xf32, #tpu.memory_space<vmem>>, vector<8x16xf32>
    %cst_792 = arith.constant dense<0.000000e+00> : vector<8x32xf32>
    %1017 = tpu.matmul %1016, %1015, %cst_792 {dimension_numbers = #tpu.dot_dimension_numbers<[1], [1], [0], [0], [0, 0, 1, 0], [], []>} : vector<8x16xf32>, vector<32x16xf32>, vector<8x32xf32> -> vector<8x32xf32>
    %c0_793 = arith.constant 0 : index
    %c0_794 = arith.constant 0 : index
    %1018 = vector.load %arg55[%c0_793, %c0_794] : memref<8x1xf32, #tpu.memory_space<vmem>>, vector<8x1xf32>
    %1019 = vector.broadcast %1018 : vector<8x1xf32> to vector<8x32xf32>
    %1020 = arith.addf %1017, %1019 : vector<8x32xf32>
    %1021 = vector.extract_strided_slice %1020 {offsets = [0, 0], sizes = [8, 31], strides = [1, 1]} : vector<8x32xf32> to vector<8x31xf32>
    %c0_795 = arith.constant 0 : index
    %c0_796 = arith.constant 0 : index
    %c0_797 = arith.constant 0 : index
    %1022 = vector.load %arg56[%c0_795, %c0_796, %c0_797] : memref<1x8x31xf32, #tpu.memory_space<vmem>>, vector<1x8x31xf32>
    %1023 = vector.shape_cast %1022 : vector<1x8x31xf32> to vector<8x31xf32>
    %1024 = vector.shape_cast %1021 : vector<8x31xf32> to vector<1x8x31xf32>
    tpu.vector_store %arg56[%c0_795, %c0_796, %c0_797], %1024 {strides = array<i32>} : memref<1x8x31xf32, #tpu.memory_space<vmem>>, vector<1x8x31xf32>,
    return
  }
  func.func @transform_0(%arg0: i32) -> (i32, i32, i32) {
    %c0_i32 = arith.constant 0 : i32
    %c0_i32_0 = arith.constant 0 : i32
    %c0_i32_1 = arith.constant 0 : i32
    return %arg0, %c0_i32, %c0_i32_0 : i32, i32, i32
  }
  func.func @transform_1(%arg0: i32) -> (i32, i32) {
    %c0_i32 = arith.constant 0 : i32
    %c0_i32_0 = arith.constant 0 : i32
    %c0_i32_1 = arith.constant 0 : i32
    return %c0_i32, %c0_i32_0 : i32, i32
  }
  func.func @transform_2(%arg0: i32) -> (i32, i32) {
    %c0_i32 = arith.constant 0 : i32
    %c0_i32_0 = arith.constant 0 : i32
    %c0_i32_1 = arith.constant 0 : i32
    return %c0_i32, %c0_i32_0 : i32, i32
  }
  func.func @transform_3(%arg0: i32) -> (i32, i32) {
    %c0_i32 = arith.constant 0 : i32
    %c0_i32_0 = arith.constant 0 : i32
    %c0_i32_1 = arith.constant 0 : i32
    return %c0_i32, %c0_i32_0 : i32, i32
  }
  func.func @transform_4(%arg0: i32) -> (i32, i32) {
    %c0_i32 = arith.constant 0 : i32
    %c0_i32_0 = arith.constant 0 : i32
    %c0_i32_1 = arith.constant 0 : i32
    return %c0_i32, %c0_i32_0 : i32, i32
  }
  func.func @transform_5(%arg0: i32) -> (i32, i32) {
    %c0_i32 = arith.constant 0 : i32
    %c0_i32_0 = arith.constant 0 : i32
    %c0_i32_1 = arith.constant 0 : i32
    return %c0_i32, %c0_i32_0 : i32, i32
  }
  func.func @transform_6(%arg0: i32) -> (i32, i32) {
    %c0_i32 = arith.constant 0 : i32
    %c0_i32_0 = arith.constant 0 : i32
    %c0_i32_1 = arith.constant 0 : i32
    return %c0_i32, %c0_i32_0 : i32, i32
  }
  func.func @transform_7(%arg0: i32) -> (i32, i32) {
    %c0_i32 = arith.constant 0 : i32
    %c0_i32_0 = arith.constant 0 : i32
    %c0_i32_1 = arith.constant 0 : i32
    return %c0_i32, %c0_i32_0 : i32, i32
  }
  func.func @transform_8(%arg0: i32) -> (i32, i32) {
    %c0_i32 = arith.constant 0 : i32
    %c0_i32_0 = arith.constant 0 : i32
    %c0_i32_1 = arith.constant 0 : i32
    return %c0_i32, %c0_i32_0 : i32, i32
  }
  func.func @transform_9(%arg0: i32) -> (i32, i32) {
    %c0_i32 = arith.constant 0 : i32
    %c0_i32_0 = arith.constant 0 : i32
    %c0_i32_1 = arith.constant 0 : i32
    return %c0_i32, %c0_i32_0 : i32, i32
  }
  func.func @transform_10(%arg0: i32) -> (i32, i32) {
    %c0_i32 = arith.constant 0 : i32
    %c0_i32_0 = arith.constant 0 : i32
    %c0_i32_1 = arith.constant 0 : i32
    return %c0_i32, %c0_i32_0 : i32, i32
  }
  func.func @transform_11(%arg0: i32) -> (i32, i32) {
    %c0_i32 = arith.constant 0 : i32
    %c0_i32_0 = arith.constant 0 : i32
    %c0_i32_1 = arith.constant 0 : i32
    return %c0_i32, %c0_i32_0 : i32, i32
  }
  func.func @transform_12(%arg0: i32) -> (i32, i32) {
    %c0_i32 = arith.constant 0 : i32
    %c0_i32_0 = arith.constant 0 : i32
    %c0_i32_1 = arith.constant 0 : i32
    return %c0_i32, %c0_i32_0 : i32, i32
  }
  func.func @transform_13(%arg0: i32) -> (i32, i32) {
    %c0_i32 = arith.constant 0 : i32
    %c0_i32_0 = arith.constant 0 : i32
    %c0_i32_1 = arith.constant 0 : i32
    return %c0_i32, %c0_i32_0 : i32, i32
  }
  func.func @transform_14(%arg0: i32) -> (i32, i32) {
    %c0_i32 = arith.constant 0 : i32
    %c0_i32_0 = arith.constant 0 : i32
    %c0_i32_1 = arith.constant 0 : i32
    return %c0_i32, %c0_i32_0 : i32, i32
  }
  func.func @transform_15(%arg0: i32) -> (i32, i32) {
    %c0_i32 = arith.constant 0 : i32
    %c0_i32_0 = arith.constant 0 : i32
    %c0_i32_1 = arith.constant 0 : i32
    return %c0_i32, %c0_i32_0 : i32, i32
  }
  func.func @transform_16(%arg0: i32) -> (i32, i32) {
    %c0_i32 = arith.constant 0 : i32
    %c0_i32_0 = arith.constant 0 : i32
    %c0_i32_1 = arith.constant 0 : i32
    return %c0_i32, %c0_i32_0 : i32, i32
  }
  func.func @transform_17(%arg0: i32) -> (i32, i32) {
    %c0_i32 = arith.constant 0 : i32
    %c0_i32_0 = arith.constant 0 : i32
    %c0_i32_1 = arith.constant 0 : i32
    return %c0_i32, %c0_i32_0 : i32, i32
  }
  func.func @transform_18(%arg0: i32) -> (i32, i32) {
    %c0_i32 = arith.constant 0 : i32
    %c0_i32_0 = arith.constant 0 : i32
    %c0_i32_1 = arith.constant 0 : i32
    return %c0_i32, %c0_i32_0 : i32, i32
  }
  func.func @transform_19(%arg0: i32) -> (i32, i32) {
    %c0_i32 = arith.constant 0 : i32
    %c0_i32_0 = arith.constant 0 : i32
    %c0_i32_1 = arith.constant 0 : i32
    return %c0_i32, %c0_i32_0 : i32, i32
  }
  func.func @transform_20(%arg0: i32) -> (i32, i32) {
    %c0_i32 = arith.constant 0 : i32
    %c0_i32_0 = arith.constant 0 : i32
    %c0_i32_1 = arith.constant 0 : i32
    return %c0_i32, %c0_i32_0 : i32, i32
  }
  func.func @transform_21(%arg0: i32) -> (i32, i32) {
    %c0_i32 = arith.constant 0 : i32
    %c0_i32_0 = arith.constant 0 : i32
    %c0_i32_1 = arith.constant 0 : i32
    return %c0_i32, %c0_i32_0 : i32, i32
  }
  func.func @transform_22(%arg0: i32) -> (i32, i32) {
    %c0_i32 = arith.constant 0 : i32
    %c0_i32_0 = arith.constant 0 : i32
    %c0_i32_1 = arith.constant 0 : i32
    return %c0_i32, %c0_i32_0 : i32, i32
  }
  func.func @transform_23(%arg0: i32) -> (i32, i32) {
    %c0_i32 = arith.constant 0 : i32
    %c0_i32_0 = arith.constant 0 : i32
    %c0_i32_1 = arith.constant 0 : i32
    return %c0_i32, %c0_i32_0 : i32, i32
  }
  func.func @transform_24(%arg0: i32) -> (i32, i32) {
    %c0_i32 = arith.constant 0 : i32
    %c0_i32_0 = arith.constant 0 : i32
    %c0_i32_1 = arith.constant 0 : i32
    return %c0_i32, %c0_i32_0 : i32, i32
  }
  func.func @transform_25(%arg0: i32) -> (i32, i32) {
    %c0_i32 = arith.constant 0 : i32
    %c0_i32_0 = arith.constant 0 : i32
    %c0_i32_1 = arith.constant 0 : i32
    return %c0_i32, %c0_i32_0 : i32, i32
  }
  func.func @transform_26(%arg0: i32) -> (i32, i32) {
    %c0_i32 = arith.constant 0 : i32
    %c0_i32_0 = arith.constant 0 : i32
    %c0_i32_1 = arith.constant 0 : i32
    return %c0_i32, %c0_i32_0 : i32, i32
  }
  func.func @transform_27(%arg0: i32) -> (i32, i32) {
    %c0_i32 = arith.constant 0 : i32
    %c0_i32_0 = arith.constant 0 : i32
    %c0_i32_1 = arith.constant 0 : i32
    return %c0_i32, %c0_i32_0 : i32, i32
  }
  func.func @transform_28(%arg0: i32) -> (i32, i32) {
    %c0_i32 = arith.constant 0 : i32
    %c0_i32_0 = arith.constant 0 : i32
    %c0_i32_1 = arith.constant 0 : i32
    return %c0_i32, %c0_i32_0 : i32, i32
  }
  func.func @transform_29(%arg0: i32) -> (i32, i32) {
    %c0_i32 = arith.constant 0 : i32
    %c0_i32_0 = arith.constant 0 : i32
    %c0_i32_1 = arith.constant 0 : i32
    return %c0_i32, %c0_i32_0 : i32, i32
  }
  func.func @transform_30(%arg0: i32) -> (i32, i32) {
    %c0_i32 = arith.constant 0 : i32
    %c0_i32_0 = arith.constant 0 : i32
    %c0_i32_1 = arith.constant 0 : i32
    return %c0_i32, %c0_i32_0 : i32, i32
  }
  func.func @transform_31(%arg0: i32) -> (i32, i32) {
    %c0_i32 = arith.constant 0 : i32
    %c0_i32_0 = arith.constant 0 : i32
    %c0_i32_1 = arith.constant 0 : i32
    return %c0_i32, %c0_i32_0 : i32, i32
  }
  func.func @transform_32(%arg0: i32) -> (i32, i32) {
    %c0_i32 = arith.constant 0 : i32
    %c0_i32_0 = arith.constant 0 : i32
    %c0_i32_1 = arith.constant 0 : i32
    return %c0_i32, %c0_i32_0 : i32, i32
  }
  func.func @transform_33(%arg0: i32) -> (i32, i32) {
    %c0_i32 = arith.constant 0 : i32
    %c0_i32_0 = arith.constant 0 : i32
    %c0_i32_1 = arith.constant 0 : i32
    return %c0_i32, %c0_i32_0 : i32, i32
  }
  func.func @transform_34(%arg0: i32) -> (i32, i32) {
    %c0_i32 = arith.constant 0 : i32
    %c0_i32_0 = arith.constant 0 : i32
    %c0_i32_1 = arith.constant 0 : i32
    return %c0_i32, %c0_i32_0 : i32, i32
  }
  func.func @transform_35(%arg0: i32) -> (i32, i32) {
    %c0_i32 = arith.constant 0 : i32
    %c0_i32_0 = arith.constant 0 : i32
    %c0_i32_1 = arith.constant 0 : i32
    return %c0_i32, %c0_i32_0 : i32, i32
  }
  func.func @transform_36(%arg0: i32) -> (i32, i32) {
    %c0_i32 = arith.constant 0 : i32
    %c0_i32_0 = arith.constant 0 : i32
    %c0_i32_1 = arith.constant 0 : i32
    return %c0_i32, %c0_i32_0 : i32, i32
  }
  func.func @transform_37(%arg0: i32) -> (i32, i32) {
    %c0_i32 = arith.constant 0 : i32
    %c0_i32_0 = arith.constant 0 : i32
    %c0_i32_1 = arith.constant 0 : i32
    return %c0_i32, %c0_i32_0 : i32, i32
  }
  func.func @transform_38(%arg0: i32) -> (i32, i32) {
    %c0_i32 = arith.constant 0 : i32
    %c0_i32_0 = arith.constant 0 : i32
    %c0_i32_1 = arith.constant 0 : i32
    return %c0_i32, %c0_i32_0 : i32, i32
  }
  func.func @transform_39(%arg0: i32) -> (i32, i32, i32) {
    %c0_i32 = arith.constant 0 : i32
    %c0_i32_0 = arith.constant 0 : i32
    %c0_i32_1 = arith.constant 0 : i32
    %c0_i32_2 = arith.constant 0 : i32
    return %c0_i32, %c0_i32_0, %c0_i32_1 : i32, i32, i32
  }
  func.func @transform_40(%arg0: i32) -> (i32, i32) {
    %c0_i32 = arith.constant 0 : i32
    %c0_i32_0 = arith.constant 0 : i32
    %c0_i32_1 = arith.constant 0 : i32
    return %c0_i32, %c0_i32_0 : i32, i32
  }
  func.func @transform_41(%arg0: i32) -> (i32, i32) {
    %c0_i32 = arith.constant 0 : i32
    %c0_i32_0 = arith.constant 0 : i32
    %c0_i32_1 = arith.constant 0 : i32
    return %c0_i32, %c0_i32_0 : i32, i32
  }
  func.func @transform_42(%arg0: i32) -> (i32, i32) {
    %c0_i32 = arith.constant 0 : i32
    %c0_i32_0 = arith.constant 0 : i32
    %c0_i32_1 = arith.constant 0 : i32
    return %c0_i32, %c0_i32_0 : i32, i32
  }
  func.func @transform_43(%arg0: i32) -> (i32, i32) {
    %c0_i32 = arith.constant 0 : i32
    %c0_i32_0 = arith.constant 0 : i32
    %c0_i32_1 = arith.constant 0 : i32
    return %c0_i32, %c0_i32_0 : i32, i32
  }
  func.func @transform_44(%arg0: i32) -> (i32, i32) {
    %c0_i32 = arith.constant 0 : i32
    %c0_i32_0 = arith.constant 0 : i32
    %c0_i32_1 = arith.constant 0 : i32
    return %c0_i32, %c0_i32_0 : i32, i32
  }
  func.func @transform_45(%arg0: i32) -> (i32, i32) {
    %c0_i32 = arith.constant 0 : i32
    %c0_i32_0 = arith.constant 0 : i32
    %c0_i32_1 = arith.constant 0 : i32
    return %c0_i32, %c0_i32_0 : i32, i32
  }
  func.func @transform_46(%arg0: i32) -> (i32, i32) {
    %c0_i32 = arith.constant 0 : i32
    %c0_i32_0 = arith.constant 0 : i32
    %c0_i32_1 = arith.constant 0 : i32
    return %c0_i32, %c0_i32_0 : i32, i32
  }
  func.func @transform_47(%arg0: i32) -> (i32, i32) {
    %c0_i32 = arith.constant 0 : i32
    %c0_i32_0 = arith.constant 0 : i32
    %c0_i32_1 = arith.constant 0 : i32
    return %c0_i32, %c0_i32_0 : i32, i32
  }
  func.func @transform_48(%arg0: i32) -> (i32, i32) {
    %c0_i32 = arith.constant 0 : i32
    %c0_i32_0 = arith.constant 0 : i32
    %c0_i32_1 = arith.constant 0 : i32
    return %c0_i32, %c0_i32_0 : i32, i32
  }
  func.func @transform_49(%arg0: i32) -> (i32, i32) {
    %c0_i32 = arith.constant 0 : i32
    %c0_i32_0 = arith.constant 0 : i32
    %c0_i32_1 = arith.constant 0 : i32
    return %c0_i32, %c0_i32_0 : i32, i32
  }
  func.func @transform_50(%arg0: i32) -> (i32, i32) {
    %c0_i32 = arith.constant 0 : i32
    %c0_i32_0 = arith.constant 0 : i32
    %c0_i32_1 = arith.constant 0 : i32
    return %c0_i32, %c0_i32_0 : i32, i32
  }
  func.func @transform_51(%arg0: i32) -> (i32, i32) {
    %c0_i32 = arith.constant 0 : i32
    %c0_i32_0 = arith.constant 0 : i32
    %c0_i32_1 = arith.constant 0 : i32
    return %c0_i32, %c0_i32_0 : i32, i32
  }
  func.func @transform_52(%arg0: i32) -> (i32, i32) {
    %c0_i32 = arith.constant 0 : i32
    %c0_i32_0 = arith.constant 0 : i32
    %c0_i32_1 = arith.constant 0 : i32
    return %c0_i32, %c0_i32_0 : i32, i32
  }
  func.func @transform_53(%arg0: i32) -> (i32, i32) {
    %c0_i32 = arith.constant 0 : i32
    %c0_i32_0 = arith.constant 0 : i32
    %c0_i32_1 = arith.constant 0 : i32
    return %c0_i32, %c0_i32_0 : i32, i32
  }
  func.func @transform_54(%arg0: i32) -> (i32, i32) {
    %c0_i32 = arith.constant 0 : i32
    %c0_i32_0 = arith.constant 0 : i32
    %c0_i32_1 = arith.constant 0 : i32
    return %c0_i32, %c0_i32_0 : i32, i32
  }
  func.func @transform_55(%arg0: i32) -> (i32, i32, i32) {
    %c0_i32 = arith.constant 0 : i32
    %c0_i32_0 = arith.constant 0 : i32
    %c0_i32_1 = arith.constant 0 : i32
    return %arg0, %c0_i32, %c0_i32_0 : i32, i32, i32
  }
  func.func @transform_56(%arg0: i32) -> (i32, i32, i32) {
    %c0_i32 = arith.constant 0 : i32
    %c0_i32_0 = arith.constant 0 : i32
    %c0_i32_1 = arith.constant 0 : i32
    return %arg0, %c0_i32, %c0_i32_0 : i32, i32, i32
  }
}

</mosaic_0001>

<bundles_post_ra>
// kernel: voice_multitask_decoder_fwd.1
= control target key start
LH: loop header
LB: loop body
LE: loop exit
PB: predicated region body
PF: predicated region fallthrough
CT: control target
= control target key end

     0   :  { %s7814_s6 = smov 1   ;;  %s7815_s10 = smov 2   ;;  %s9314_s0 = inlined_call_operand.smem [shape: u32[57], index: -1, kind: input, shape index: {}] }
   0x1   :  { %s7892_s5 = sld [smem:[%s9314_s0]]   ;;  %s7816_s14 = smov 3  }
   0x2   :  { %s7897_s9 = sld [smem:[%s9314_s0 + %s7814_s6]]   ;;  %s7817_s18 = smov 4  }
   0x3   :  { %s7902_s13 = sld [smem:[%s9314_s0 + %s7815_s10]]   ;;  %s7818_s22 = smov 5  }
   0x4   :  { %s7907_s17 = sld [smem:[%s9314_s0 + %s7816_s14]]   ;;  %s7819_s26 = smov 6  }
   0x5   :  { %s7912_s21 = sld [smem:[%s9314_s0 + %s7817_s18]]   ;;  %s7820_s30 = smov 7  }
   0x6   :  { %s7917_s25 = sld [smem:[%s9314_s0 + %s7818_s22]]   ;;  %s7821_s4 = smov 8  }
   0x7   :  { %9363 = sst [smem:[#allocation30_spill]] %s7892_s5  ;;  %s7822_s10 = smov 9  }
   0x8   :  { %9364 = sst [smem:[#allocation31_spill]] %s7897_s9  ;;  %s7823_s15 = smov 10  }
   0x9   :  { %s7922_s29 = sld [smem:[%s9314_s0 + %s7819_s26]]   ;;  %s7824_s20 = smov 11  }
   0xa   :  { %s7927_s3 = sld [smem:[%s9314_s0 + %s7820_s30]]   ;;  %s7825_s26 = smov 12  }
   0xb   :  { %9365 = sst [smem:[#allocation32_spill]] %s7912_s21  ;;  %s7826_s1 = smov 13  }
   0xc   :  { %s7932_s8 = sld [smem:[%s9314_s0 + %s7821_s4]]   ;;  %s7827_s7 = smov 14  }
   0xd   :  { %s7937_s14 = sld [smem:[%s9314_s0 + %s7822_s10]]   ;;  %s7829_s22 = smov 16  }
   0xe   :  { %s7942_s19 = sld [smem:[%s9314_s0 + %s7823_s15]]   ;;  %s7828_s15 = smov 15  }
   0xf   :  { %9366 = sst [smem:[#allocation33_spill]] %s7922_s29  ;;  %s7830_s28 = smov 17  }
  0x10   :  { %9367 = sst [smem:[#allocation34_spill]] %s7927_s3 }
  0x11   :  { %s7947_s24 = sld [smem:[%s9314_s0 + %s7824_s20]]  }
  0x12   :  { %9368 = sst [smem:[#allocation35_spill]] %s7932_s8 }
  0x13   :  { %9369 = sst [smem:[#allocation36_spill]] %s7937_s14 }
  0x14   :  { %9370 = sst [smem:[#allocation37_spill]] %s7942_s19 }
  0x15   :  { %s7952_s30 = sld [smem:[%s9314_s0 + %s7825_s26]]  }
  0x16   :  { %s7957_s6 = sld [smem:[%s9314_s0 + %s7826_s1]]  }
  0x17   :  { %9371 = sst [smem:[#allocation38_spill]] %s7947_s24 }
  0x18   :  { %s7962_s12 = sld [smem:[%s9314_s0 + %s7827_s7]]   ;;  %s7831_s7 = smov 18  }
  0x19   :  { %s7967_s20 = sld [smem:[%s9314_s0 + %s7828_s15]]   ;;  %s7832_s15 = smov 19  }
  0x1a   :  { %s7972_s27 = sld [smem:[%s9314_s0 + %s7829_s22]]   ;;  %s7833_s22 = smov 20  }
  0x1b   :  { %9372 = sst [smem:[#allocation39_spill]] %s7952_s30 }
  0x1c   :  { %9373 = sst [smem:[#allocation40_spill]] %s7957_s6 }
  0x1d   :  { %s7977_s4 = sld [smem:[%s9314_s0 + %s7830_s28]]   ;;  %s7834_s28 = smov 21  }
  0x1e   :  { %9374 = sst [smem:[#allocation41_spill]] %s7962_s12 }
  0x1f   :  { %9375 = sst [smem:[#allocation42_spill]] %s7967_s20 }
  0x20   :  { %9376 = sst [smem:[#allocation43_spill]] %s7972_s27 }
  0x21   :  { %s7982_s12 = sld [smem:[%s9314_s0 + %s7831_s7]]   ;;  %s7835_s7 = smov 22  }
  0x22   :  { %s7987_s20 = sld [smem:[%s9314_s0 + %s7832_s15]]   ;;  %s7836_s15 = smov 23  }
  0x23   :  { %9377 = sst [smem:[#allocation44_spill]] %s7977_s4 }
  0x24   :  { %s7992_s27 = sld [smem:[%s9314_s0 + %s7833_s22]]   ;;  %s7837_s22 = smov 24  }
  0x25   :  { %s7997_s4 = sld [smem:[%s9314_s0 + %s7834_s28]]   ;;  %s7838_s28 = smov 25  }
  0x27   :  { %9378 = sst [smem:[#allocation45_spill]] %s7982_s12 }
  0x28   :  { %9379 = sst [smem:[#allocation46_spill]] %s7987_s20 }
  0x29   :  { %s8002_s12 = sld [smem:[%s9314_s0 + %s7835_s7]]   ;;  %s7839_s7 = smov 26  }
  0x2a   :  { %9380 = sst [smem:[#allocation47_spill]] %s7992_s27 }
  0x2b   :  { %9381 = sst [smem:[#allocation48_spill]] %s7997_s4 }
  0x2c   :  { %s8007_s20 = sld [smem:[%s9314_s0 + %s7836_s15]]   ;;  %s7840_s15 = smov 27  }
  0x2d   :  { %s8012_s27 = sld [smem:[%s9314_s0 + %s7837_s22]]   ;;  %s7841_s22 = smov 28  }
  0x2e   :  { %s8017_s4 = sld [smem:[%s9314_s0 + %s7838_s28]]   ;;  %s7842_s28 = smov 29  }
  0x2f   :  { %9382 = sst [smem:[#allocation49_spill]] %s8002_s12 }
  0x30   :  { %s8022_s12 = sld [smem:[%s9314_s0 + %s7839_s7]]   ;;  %s7843_s7 = smov 30  }
  0x32   :  { %9383 = sst [smem:[#allocation50_spill]] %s8007_s20 }
  0x33   :  { %9384 = sst [smem:[#allocation51_spill]] %s8012_s27 }
  0x34   :  { %9385 = sst [smem:[#allocation52_spill]] %s8017_s4 }
  0x35   :  { %s8027_s20 = sld [smem:[%s9314_s0 + %s7840_s15]]   ;;  %s7844_s15 = smov 31  }
  0x36   :  { %9386 = sst [smem:[#allocation53_spill]] %s8022_s12 }
  0x37   :  { %s8032_s27 = sld [smem:[%s9314_s0 + %s7841_s22]]   ;;  %s7845_s22 = smov 32  }
  0x38   :  { %s8037_s4 = sld [smem:[%s9314_s0 + %s7842_s28]]   ;;  %s7846_s28 = smov 33  }
  0x39   :  { %s8042_s12 = sld [smem:[%s9314_s0 + %s7843_s7]]   ;;  %s7847_s7 = smov 34  }
  0x3b   :  { %9387 = sst [smem:[#allocation54_spill]] %s8027_s20 }
  0x3c   :  { %s8047_s20 = sld [smem:[%s9314_s0 + %s7844_s15]]   ;;  %s7848_s15 = smov 35  }
  0x3d   :  { %9388 = sst [smem:[#allocation55_spill]] %s8032_s27 }
  0x3e   :  { %9389 = sst [smem:[#allocation56_spill]] %s8037_s4 }
  0x3f   :  { %9390 = sst [smem:[#allocation57_spill]] %s8042_s12 }
  0x40   :  { %s8052_s27 = sld [smem:[%s9314_s0 + %s7845_s22]]   ;;  %s7849_s22 = smov 36  }
  0x41   :  { %s8057_s4 = sld [smem:[%s9314_s0 + %s7846_s28]]   ;;  %s7850_s28 = smov 37  }
  0x42   :  { %9391 = sst [smem:[#allocation58_spill]] %s8047_s20 }
  0x43   :  { %s8062_s12 = sld [smem:[%s9314_s0 + %s7847_s7]]   ;;  %s7851_s7 = smov 38  }
  0x44   :  { %s8067_s20 = sld [smem:[%s9314_s0 + %s7848_s15]]   ;;  %s7852_s15 = smov 39  }
  0x45   :  { %s8082_s30 = sld [smem:[%s9314_s0 + %s7851_s7]]   ;;  %s7855_s7 = smov 42  }
  0x46   :  { %9392 = sst [smem:[#allocation59_spill]] %s8052_s27 }
  0x47   :  { %9393 = sst [smem:[#allocation60_spill]] %s8057_s4 }
  0x48   :  { %s8072_s27 = sld [smem:[%s9314_s0 + %s7849_s22]]   ;;  %s7853_s22 = smov 40  }
  0x49   :  { %s8077_s4 = sld [smem:[%s9314_s0 + %s7850_s28]]   ;;  %s7854_s28 = smov 41  }
  0x4a   :  { %9394 = sst [smem:[#allocation61_spill]] %s8067_s20 }
  0x4b   :  { %9397 = sst [smem:[#allocation64_spill]] %s8082_s30 }
  0x4c   :  { %s8087_s20 = sld [smem:[%s9314_s0 + %s7852_s15]]   ;;  %s7856_s15 = smov 43  }
  0x4d   :  { %s8092_s6 = sld [smem:[%s9314_s0 + %s7853_s22]]   ;;  %s7857_s22 = smov 44  }
  0x4e   :  { %9395 = sst [smem:[#allocation62_spill]] %s8072_s27 }
  0x4f   :  { %9396 = sst [smem:[#allocation63_spill]] %s8077_s4 }
  0x50   :  { %s8097_s4 = sld [smem:[%s9314_s0 + %s7854_s28]]   ;;  %s7858_s28 = smov 45  }
  0x51   :  { %s8102_s30 = sld [smem:[%s9314_s0 + %s7855_s7]]   ;;  %s7859_s7 = smov 46  }
  0x52   :  { %9398 = sst [smem:[#allocation65_spill]] %s8087_s20 }
  0x53   :  { %9399 = sst [smem:[#allocation66_spill]] %s8092_s6 }
  0x54   :  { %s8107_s20 = sld [smem:[%s9314_s0 + %s7856_s15]]   ;;  %s7860_s15 = smov 47  }
  0x55   :  { %s8112_s19 = sld [smem:[%s9314_s0 + %s7857_s22]]   ;;  %s7861_s22 = smov 48  }
  0x56   :  { %9400 = sst [smem:[#allocation67_spill]] %s8097_s4 }
  0x57   :  { %s8117_s4 = sld [smem:[%s9314_s0 + %s7858_s28]]   ;;  %s7862_s28 = smov 49  }
  0x58   :  { %s8122_s8 = sld [smem:[%s9314_s0 + %s7859_s7]]   ;;  %s7863_s7 = smov 50  }
  0x59   :  { %s8132_s14 = sld [smem:[%s9314_s0 + %s7861_s22]]   ;;  %s7865_s22 = smov 52  }
  0x5a   :  { %9401 = sst [smem:[#allocation68_spill]] %s8107_s20 }
  0x5b   :  { %s8127_s20 = sld [smem:[%s9314_s0 + %s7860_s15]]   ;;  %s7864_s15 = smov 51  }
  0x5c   :  { %s8142_s24 = sld [smem:[%s9314_s0 + %s7863_s7]]   ;;  %s7867_s7 = smov 54  }
  0x5d   :  { %9402 = sst [smem:[#allocation69_spill]] %s8117_s4 }
  0x5e   :  { %9403 = sst [smem:[#allocation70_spill]] %s8122_s8 }
  0x5f   :  { %s8137_s4 = sld [smem:[%s9314_s0 + %s7862_s28]]   ;;  %s7866_s28 = smov 53  }
  0x60   :  { %s8152_s29 = sld [smem:[%s9314_s0 + %s7865_s22]]   ;;  %s7869_s22 = smov 56  }
  0x61   :  { %9404 = sst [smem:[#allocation71_spill]] %s8127_s20 }
  0x62   :  { %s8147_s20 = sld [smem:[%s9314_s0 + %s7864_s15]]   ;;  %s7868_s15 = smov 55  }
  0x63   :  { %s8162_s3 = sld [smem:[%s9314_s0 + %s7867_s7]]  }
  0x64   :  { %s8172_s21 = sld [smem:[%s9314_s0 + %s7869_s22]]  }
  0x65   :  { %9405 = sst [smem:[#allocation72_spill]] %s8137_s4 }
  0x66   :  { %s8157_s4 = sld [smem:[%s9314_s0 + %s7866_s28]]  }
  0x68   :  { %9406 = sst [smem:[#allocation73_spill]] %s8147_s20 }
  0x69   :  { %9408 = sst [smem:[#allocation75_spill]] %s8162_s3 }
  0x6a   :  { %s8167_s20 = sld [smem:[%s9314_s0 + %s7868_s15]]  }
  0x6c   :  { %9407 = sst [smem:[#allocation74_spill]] %s8157_s4 }
  0x6d   :  { %119 = vsyncpa [#allocation6], 0 }
  0x6e   :  { %120 = vsyncpa [#allocation9], 0 }
  0x6f   :  { %121 = vsyncpa [#allocation12], 0 }
  0x70   :  { %122 = vsyncpa [#allocation15], 0 }
  0x71   :  { %123 = vsyncpa [#allocation18], 0 }
  0x72   :  { %124 = vsyncpa [#allocation7], 0 }
  0x73   :  { %126 = vsyncpa [#allocation7 + $0x1], 0 }
  0x74   :  { %127 = vsyncpa [#allocation22], 0 }
  0x75   :  { %129 = vsyncpa [#allocation22 + $0x1], 0  ;;  %s8174_s28 = smov 0   ;;  %s8176_s1 = smov 0  }
  0x76   :  { %s8178_s2 = smov 0   ;;  %s8180_s7 = smov 0  }
  0x77 LB: > { %s9409_s9 = sld [smem:[#allocation31_spill]]  ;;  %s8195_s0 = sadd.s32 4294967295, %s7812_s7   ;;  %s7800_s28 = sphi %s8174_s28, %s9499_s28   ;;  %s7812_s7 = sphi %s8180_s7, %s9496_s7   ;;  %s7808_s2 = sphi %s8178_s2, %s9498_s2   ;;  %s7804_s1 = sphi %s8176_s1, %s9500_s1  }
  0x78   : > { %9410 = sst [smem:[#allocation76_spill]] %s7800_s28  ;;  %s6326_s10 = sadd.s32 4294967294, %s7812_s7  }
  0x79   : > { %9411 = sst [smem:[#allocation77_spill]] %s7808_s2  ;;  %s8199_s11 = sadd.s32 1, %s7812_s7  }
  0x7a   : > { %9412 = sst [smem:[#allocation78_spill]] %s7812_s7  ;;  %s1302_s15 = sadd.s32 1, %s7808_s2 }
  0x7b   : > { %9413 = sst [smem:[#allocation79_spill]] %s8199_s11  ;;  %s1299_s16 = ssub.s32 %s7812_s7, %s8199_s11 }
  0x7c   : > { %p1312_p0 = scmp.ne.s32.totalorder %s7808_s2, %s7804_s1  ;;  %p1300_p1 = scmp.eq.s32.totalorder %s1299_s16, 0 }
  0x7d   : > { %p1313_p2 = scmp.eq.s32.totalorder %s8195_s0, 1  ;;  %p1318_p3 = scmp.ne.s32.totalorder %s7804_s1, %s7800_s28 }
  0x7e   : > { %p1319_p4 = scmp.eq.s32.totalorder %s6326_s10, 1  ;;  %p6327_p7 = scmp.ge.s32.totalorder %s7812_s7, 1 }
  0x7f   : > { %s8210_s18 = scalar_select %p1300_p1, %s7808_s2, %s1302_s15  }
  0x80   : > { %p8212_p5 = por %p1313_p2, %p1312_p0  ;;  %p8216_p6 = por %p1319_p4, %p1318_p3 }
  0x81   : > { %9414 = sst [smem:[#allocation80_spill]] %s8210_s18  ;;  %p1352_p8 = scmp.lt.s32.totalorder %s7812_s7, 3 }
  0x82   : > { %s9415_s22 = scalar_select %p8212_p5, 1, 0 }
  0x83   : > { %s9416_s23 = scalar_select %p8216_p6, 1, 0 }
  0x84   : > { %p9342_p9 = scmp.eq.s32.totalorder %s8195_s0, 0  ;;  %p8223_p10 = pnand %p6327_p7, %p1352_p8 }
  0x85   : > { %9417 = sst [smem:[#allocation81_spill]] %s9416_s23  ;;  %s7870_s16 = smov [#allocation8]  }
  0x86   : > { %s9418_s26 = scalar_select %p8223_p10, 1, 0 }
  0x87   : > { %s1478_s10 = sshll.u32 %s7870_s16, 4  ;;  %p7311_p11 = pneg %p8223_p10  ;;  %s1479_s10 = int_to_ptr.vmem [resolvable:$true] %s1478_s10 }
  0x88   : > { %s7871_s15 = smov [#allocation11]   ;;  %s7872_s11 = smov [#allocation14]  }
  0x89   : > { %s1512_s18 = sshll.u32 %s7871_s15, 4  ;;  %p8231_p12 = pnand %p9342_p9, %p7311_p11  ;;  %s1513_s18 = int_to_ptr.vmem [resolvable:$true] %s1512_s18 }
  0x8a   : > { %s1540_s23 = sshll.u32 %s7872_s11, 4  ;;  %s7479_s16 = scalar_lea.vmem %s1479_s10, 16  ;;  %s8235_s23 = int_to_ptr.vmem [resolvable:$true] %s1540_s23 }
  0x8b   : > { %p8239_p13 = pneg %p8231_p12  ;;  %p7480_p0 = scmp.ne.s32.totalorder %s1479_s10, %s7479_s16 }
  0x8c   : > { %s7486_s15 = scalar_lea.vmem %s1479_s10, 32  ;;  %p7487_p3 = scmp.lt.s32.totalorder %s1479_s10, %s1479_s10 }
  0x8d   : > { %p7482_p1 = pnand %p7480_p0, %p8239_p13  ;;  %p7488_p4 = scmp.lt.s32.totalorder %s7486_s15, %s7479_s16 }
  0x8f   : > { %p7483_p2 = pneg %p7482_p1  ;;  %p7489_p7 = por %p7488_p4, %p7487_p3 }
  0x91   : > { %p7490_p8 = pnand %p7489_p7, %p7483_p2 }
  0x93   : > { %7493 = shalt.err (!%p7490_p8)
}
  0x94   : > { %s9421_s27 = sld [smem:[#allocation62_spill]]  ;;  %s7505_s11 = scalar_lea.vmem %s1513_s18, 16 }
  0x95   : > { %p7506_p11 = scmp.ne.s32.totalorder %s1513_s18, %s7505_s11  ;;  %s7512_s7 = scalar_lea.vmem %s1513_s18, 32 }
  0x96   : > { %p7513_p5 = scmp.lt.s32.totalorder %s1513_s18, %s1513_s18  ;;  %p7514_p0 = scmp.lt.s32.totalorder %s7512_s7, %s7505_s11 }
  0x97   : > { %p7508_p9 = pnand %p7506_p11, %p8239_p13 }
  0x98   : > { %p7515_p1 = por %p7514_p0, %p7513_p5 }
  0x99   : > { %p7509_p6 = pneg %p7508_p9 }
  0x9a   : > { %7317 = dma.hbm_to_vmem [thread:$0]  (!%p8231_p12), %s9421_s27, 16, %s1479_s10, [#allocation9]  }
  0x9b   : > { %p7516_p10 = pnand %p7515_p1, %p7509_p6 }
  0x9d   : > { %7519 = shalt.err (!%p7516_p10)
}
  0x9e   : > { %7323 = dma.hbm_to_vmem [thread:$0]  (!%p8231_p12), %s8102_s30, 16, %s1513_s18, [#allocation12]  }
  0x9f   : > { %s7531_s10 = scalar_lea.vmem %s8235_s23, 16  ;;  %s7538_s16 = scalar_lea.vmem %s8235_s23, 32 }
  0xa0   : > { %p7532_p2 = scmp.ne.s32.totalorder %s8235_s23, %s7531_s10  ;;  %p7539_p4 = scmp.lt.s32.totalorder %s8235_s23, %s8235_s23 }
  0xa1   : > { %p7540_p5 = scmp.lt.s32.totalorder %s7538_s16, %s7531_s10 }
  0xa2   : > { %p7534_p3 = pnand %p7532_p2, %p8239_p13 }
  0xa3   : > { %p7541_p6 = por %p7540_p5, %p7539_p4 }
  0xa4   : > { %p7535_p9 = pneg %p7534_p3 }
  0xa6   : > { %p7542_p10 = pnand %p7541_p6, %p7535_p9 }
  0xa8   : > { %7545 = shalt.err (!%p7542_p10)
}
  0xa9   : > { %s9422_s8 = sld [smem:[#allocation70_spill]]  ;;  %s7873_s7 = smov [#allocation17]  }
  0xaa   : > { %s1568_s18 = sshll.u32 %s7873_s7, 4  ;;  %s7874_s15 = smov [#allocation5]   ;;  %s1569_s18 = int_to_ptr.vmem [resolvable:$true] %s1568_s18 }
  0xab   : > { %s1464_s11 = sshll.u32 %s7874_s15, 4  ;;  %s7557_s27 = scalar_lea.vmem %s1569_s18, 16  ;;  %s1465_s11 = int_to_ptr.vmem [resolvable:$true] %s1464_s11 }
  0xac   : > { %p7558_p7 = scmp.ne.s32.totalorder %s1569_s18, %s7557_s27  ;;  %s7564_s10 = scalar_lea.vmem %s1569_s18, 32 }
  0xad   : > { %p7565_p0 = scmp.lt.s32.totalorder %s1569_s18, %s1569_s18  ;;  %p7566_p1 = scmp.lt.s32.totalorder %s7564_s10, %s7557_s27 }
  0xae   : > { %p7560_p8 = pnand %p7558_p7, %p8239_p13 }
  0xaf   : > { %7329 = dma.hbm_to_vmem [thread:$0]  (!%p8231_p12), %s9422_s8, 16, %s8235_s23, [#allocation15]  }
  0xb0   : > { %p7561_p11 = pneg %p7560_p8  ;;  %p7567_p2 = por %p7566_p1, %p7565_p0 }
  0xb2   : > { %p7568_p3 = pnand %p7567_p2, %p7561_p11 }
  0xb4   : > { %7571 = shalt.err (!%p7568_p3)
}
  0xb5   : > { %7335 = dma.hbm_to_vmem [thread:$0]  (!%p8231_p12), %s8142_s24, 16, %s1569_s18, [#allocation18]  }
  0xb6   : > { %s7583_s23 = scalar_lea.vmem %s1465_s11, 16  ;;  %s7590_s16 = scalar_lea.vmem %s1465_s11, 32 }
  0xb7   : > { %p7584_p9 = scmp.ne.s32.totalorder %s1465_s11, %s7583_s23  ;;  %p7591_p6 = scmp.lt.s32.totalorder %s1465_s11, %s1465_s11 }
  0xb8   : > { %p7592_p10 = scmp.lt.s32.totalorder %s7590_s16, %s7583_s23 }
  0xb9   : > { %p7586_p4 = pnand %p7584_p9, %p8239_p13 }
  0xba   : > { %p7593_p7 = por %p7592_p10, %p7591_p6 }
  0xbb   : > { %p7587_p5 = pneg %p7586_p4 }
  0xbd   : > { %p7594_p8 = pnand %p7593_p7, %p7587_p5 }
  0xbf   : > { %7597 = shalt.err (!%p7594_p8)
}
  0xc0   : > { %7314 = dma.hbm_to_vmem [thread:$0]  (!%p8231_p12), %s8062_s12, 16, %s1465_s11, [#allocation6]  }
  0xc1   : > { %s7875_s27 = smov [#allocation10]   ;;  %s7876_s18 = smov [#allocation13]  }
  0xc2   : > { %s1498_s7 = sshll.u32 %s7875_s27, 4  ;;  %s1526_s15 = sshll.u32 %s7876_s18, 4  ;;  %s1499_s7 = int_to_ptr.vmem [resolvable:$true] %s1498_s7  ;;  %s1527_s15 = int_to_ptr.vmem [resolvable:$true] %s1526_s15 }
  0xc3   : > { %s7609_s10 = scalar_lea.vmem %s1499_s7, 16  ;;  %s7616_s8 = scalar_lea.vmem %s1499_s7, 32 }
  0xc4   : > { %p7610_p11 = scmp.ne.s32.totalorder %s1499_s7, %s7609_s10  ;;  %p7617_p2 = scmp.lt.s32.totalorder %s1499_s7, %s1499_s7 }
  0xc5   : > { %p7618_p3 = scmp.lt.s32.totalorder %s7616_s8, %s7609_s10 }
  0xc6   : > { %p7612_p0 = pnand %p7610_p11, %p8239_p13 }
  0xc7   : > { %p7619_p9 = por %p7618_p3, %p7617_p2 }
  0xc8   : > { %p7613_p1 = pneg %p7612_p0 }
  0xca   : > { %p7620_p4 = pnand %p7619_p9, %p7613_p1 }
  0xcc   : > { %7623 = shalt.err (!%p7620_p4)
}
  0xcd   : > { %s9423_s6 = sld [smem:[#allocation66_spill]]  ;;  %s7635_s11 = scalar_lea.vmem %s1527_s15, 16 }
  0xce   : > { %p7636_p5 = scmp.ne.s32.totalorder %s1527_s15, %s7635_s11  ;;  %s7642_s23 = scalar_lea.vmem %s1527_s15, 32 }
  0xcf   : > { %p7643_p7 = scmp.lt.s32.totalorder %s1527_s15, %s1527_s15  ;;  %p7644_p8 = scmp.lt.s32.totalorder %s7642_s23, %s7635_s11 }
  0xd0   : > { %p7638_p6 = pnand %p7636_p5, %p8239_p13 }
  0xd1   : > { %p7645_p11 = por %p7644_p8, %p7643_p7 }
  0xd2   : > { %p7639_p10 = pneg %p7638_p6 }
  0xd3   : > { %7320 = dma.hbm_to_vmem [thread:$0]  (!%p8231_p12), %s9423_s6, 16, %s1499_s7, [#allocation9]  }
  0xd4   : > { %p7646_p0 = pnand %p7645_p11, %p7639_p10 }
  0xd6   : > { %7649 = shalt.err (!%p7646_p0)
}
  0xd7   : > { %7326 = dma.hbm_to_vmem [thread:$0]  (!%p8231_p12), %s8112_s19, 16, %s1527_s15, [#allocation12]  }
  0xd8   : > { %s7877_s8 = smov [#allocation16]   ;;  %s7878_s27 = smov [#allocation19]  }
  0xd9   : > { %s1554_s16 = sshll.u32 %s7877_s8, 4  ;;  %s1582_s7 = sshll.u32 %s7878_s27, 4  ;;  %s1555_s16 = int_to_ptr.vmem [resolvable:$true] %s1554_s16  ;;  %s1583_s7 = int_to_ptr.vmem [resolvable:$true] %s1582_s7 }
  0xda   : > { %s7661_s18 = scalar_lea.vmem %s1555_s16, 16  ;;  %s7668_s10 = scalar_lea.vmem %s1555_s16, 32 }
  0xdb   : > { %p7662_p1 = scmp.ne.s32.totalorder %s1555_s16, %s7661_s18  ;;  %p7669_p9 = scmp.lt.s32.totalorder %s1555_s16, %s1555_s16 }
  0xdc   : > { %p7670_p4 = scmp.lt.s32.totalorder %s7668_s10, %s7661_s18 }
  0xdd   : > { %p7664_p2 = pnand %p7662_p1, %p8239_p13 }
  0xde   : > { %p7671_p5 = por %p7670_p4, %p7669_p9 }
  0xdf   : > { %p7665_p3 = pneg %p7664_p2 }
  0xe1   : > { %p7672_p6 = pnand %p7671_p5, %p7665_p3 }
  0xe3   : > { %7675 = shalt.err (!%p7672_p6)
}
  0xe4   : > { %7332 = dma.hbm_to_vmem [thread:$0]  (!%p8231_p12), %s8132_s14, 16, %s1555_s16, [#allocation15]  }
  0xe5   : > { %s7687_s15 = scalar_lea.vmem %s1583_s7, 16  ;;  %s7694_s11 = scalar_lea.vmem %s1583_s7, 32 }
  0xe6   : > { %p7688_p10 = scmp.ne.s32.totalorder %s1583_s7, %s7687_s15  ;;  %p7695_p11 = scmp.lt.s32.totalorder %s1583_s7, %s1583_s7 }
  0xe7   : > { %p7696_p0 = scmp.lt.s32.totalorder %s7694_s11, %s7687_s15 }
  0xe8   : > { %p7690_p7 = pnand %p7688_p10, %p8239_p13 }
  0xe9   : > { %p7697_p1 = por %p7696_p0, %p7695_p11 }
  0xea   : > { %p7691_p8 = pneg %p7690_p7 }
  0xec   : > { %p7698_p2 = pnand %p7697_p1, %p7691_p8 }
  0xee   : > { %7701 = shalt.err (!%p7698_p2)
}
  0xef   : > { %7338 = dma.hbm_to_vmem [thread:$0]  (!%p8231_p12), %s8152_s29, 16, %s1583_s7, [#allocation18]  }
  0xf0   : > { %p9424_p3 = scmp.ne.s32.totalorder %s9418_s26, 0 }
  0xf1   : > { %p9425_p9 = scmp.eq.s32.totalorder (!%p9424_p3), %s8195_s0, 0 }
  0xf2   : > { %1609 = sbr.rel (%p9424_p3) target bundleno = 4550 (0x11c6), region = 240 }
  0xf7   : > { %7771 = dma.done.wait (%p9425_p9), [#allocation6], 16   ;;  %p9426_p4 = pmov %p9425_p9 }
  0xf9   : > { %7773 = vsyncadd (%p9426_p4), [#allocation6], 4294967280  ;;  %p9427_p13 = pmov %p9426_p4 }
  0xfa   : > { %p9428_p5 = pmov %p9426_p4 }
  0xfb   : > { %7775 = dma.done.wait (%p9427_p13), [#allocation9], 32  }
  0xfc   : > { %7777 = vsyncadd (%p9428_p5), [#allocation9], 4294967264  ;;  %p9429_p6 = pmov %p9426_p4 }
  0xfd   : > { %p9430_p12 = pmov %p9426_p4 }
  0xfe   : > { %7779 = dma.done.wait (%p9429_p6), [#allocation12], 32  }
  0xff   : > { %7781 = vsyncadd (%p9430_p12), [#allocation12], 4294967264  ;;  %p9431_p10 = pmov %p9426_p4 }
 0x100   : > { %p9432_p7 = pmov %p9426_p4 }
 0x101   : > { %7783 = dma.done.wait (%p9431_p10), [#allocation15], 32  }
 0x102   : > { %7785 = vsyncadd (%p9432_p7), [#allocation15], 4294967264  ;;  %p9433_p8 = pmov %p9426_p4 }
 0x103   : > { %p9434_p11 = pmov %p9426_p4 }
 0x104   : > { %7787 = dma.done.wait (%p9433_p8), [#allocation18], 32  }
 0x105   : > { %7789 = vsyncadd (%p9434_p11), [#allocation18], 4294967264  ;;  %s9435_s5 = sld [smem:[#allocation30_spill]]  ;;  %p1776_p0 = scmp.lt.s32.totalorder %s8195_s0, 1  ;;  %vm1794_vm0 = vcmask 261120   ;;  %v1786_v0 = vld [vmem:[%s9409_s9 + $0x18] sm:$0xff] }
 0x106   : > { %v1785_v1 = vld [vmem:[%s9409_s9 + $0x10] sm:$0xff]  ;;  %6838 = vmatprep.subr.mxu0 %v1786_v0  ;;  %v1784_v3 = vld [vmem:[%s9409_s9 + $0x8] sm:$0xff]  ;;  %v1783_v4 = vld [vmem:[%s9409_s9] sm:$0xff]  ;;  %v7879_v6 = vmov 0.0   ;;  %s9436_s23 = sld [smem:[#allocation32_spill]]  ;;  %vm7880_vm1 = vmmov 0  }
 0x107   : > { %s1777_s28 = scalar_select %p1776_p0, %s8195_s0, 1  ;;  %6839 = vmatpush3.msra.mxu0 %v1786_v0  ;;  %1881 = vst [vmem:[#allocation2 + $0x19] sm:$0x7f] %v7879_v6  ;;  %1880 = vst [vmem:[#allocation2 + $0x11] sm:$0xff] %v7879_v6  ;;  %v2232_v12 = vld [vmem:[%s7917_s25 + $0x78] sm:$0xff]  ;;  %v2231_v13 = vld [vmem:[%s7917_s25 + $0x70] sm:$0xff] }
 0x108   : > { %6840 = vmatprep.subr.mxu0 %v1785_v1  ;;  %1882 = vst [vmem:[#allocation2 + $0x30] sm:$0xff] %v7879_v6  ;;  %1883 = vst [vmem:[#allocation2 + $0x38] sm:$0x7f] %v7879_v6  ;;  %6849 = vmatprep.subr.mxu1 %v2232_v12  ;;  %v2230_v14 = vld [vmem:[%s7917_s25 + $0x68] sm:$0xff]  ;;  %v2229_v15 = vld [vmem:[%s7917_s25 + $0x60] sm:$0xff]  ;;  %s9437_s8 = sld [smem:[#allocation34_spill]] }
 0x109   : > { %s6607_s2 = sshll.u32 %s1777_s28, 4  ;;  %6841 = vmatpush3.msra.mxu0 %v1785_v1  ;;  %2413 = vst [vmem:[#allocation2 + $0x8] sm:$0xff] %v7879_v6  ;;  %6850 = vmatpush3.msra.mxu1 %v2232_v12  ;;  %v2228_v16 = vld [vmem:[%s7917_s25 + $0x58] sm:$0xff]  ;;  %v2227_v17 = vld [vmem:[%s7917_s25 + $0x50] sm:$0xff]  ;;  %v2226_v18 = vld [vmem:[%s7917_s25 + $0x48] sm:$0xff]  ;;  %s9438_s16 = sld [smem:[#allocation33_spill]] }
 0x10a   : > { %6842 = vmatprep.subr.mxu0 %v1784_v3  ;;  %2946 = vst [vmem:[#allocation2 + $0x1] sm:$0xff] %v7879_v6  ;;  %6851 = vmatprep.subr.mxu1 %v2231_v13  ;;  %v2225_v19 = vld [vmem:[%s7917_s25 + $0x40] sm:$0xff]  ;;  %v2224_v20 = vld [vmem:[%s7917_s25 + $0x38] sm:$0xff]  ;;  %v2223_v21 = vld [vmem:[%s7917_s25 + $0x30] sm:$0xff]  ;;  %s9439_s27 = sld [smem:[#allocation38_spill]]  ;;  %vm4483_vm2 = vcmask 253952  }
 0x10b   : > { %s1780_s26 = scalar_lea.vmem %s9435_s5, %s6607_s2  ;;  %6843 = vmatpush3.msra.mxu0 %v1784_v3  ;;  %6852 = vmatpush3.msra.mxu1 %v2231_v13  ;;  %v2222_v22 = vld [vmem:[%s7917_s25 + $0x28] sm:$0xff]  ;;  %v2221_v23 = vld [vmem:[%s7917_s25 + $0x20] sm:$0xff]  ;;  %v2220_v24 = vld [vmem:[%s7917_s25 + $0x18] sm:$0xff]  ;;  %s9440_s7 = sld [smem:[#allocation36_spill]]  ;;  %vm4957_vm3 = vcmask 130048   ;;  %vm4481_vm12 = vcmask 125952  }
 0x10c   : > { %v8321_v2 = vld [vmem:[%s1780_s26] sm:$0xff]  ;;  %v8327_v5 = vld [vmem:[%s1780_s26 + $0x8] sm:$0xff]  ;;  %6844 = vmatprep.subr.mxu0 %v1783_v4  ;;  %6853 = vmatprep.subr.mxu1 %v2230_v14  ;;  %v2219_v25 = vld [vmem:[%s7917_s25 + $0x10] sm:$0xff]  ;;  %s9442_s10 = sld [smem:[#allocation35_spill]]  ;;  %vm5266_vm13 = vcmask 520192   ;;  %vm5269_vm14 = vcmask 523264  }
 0x10d   : > { %6846 = vmatprep.mubr.msk.f32.mxu0 %vm1794_vm0, %v8321_v2  ;;  %6845 = vmatpush3.msra.mxu0 %v1783_v4  ;;  %v2218_v26 = vld [vmem:[%s7917_s25 + $0x8] sm:$0xff]  ;;  %v2217_v27 = vld [vmem:[%s7917_s25] sm:$0xff]  ;;  %v6355_v28 = vld [vmem:[%s7907_s17 + $0x11] ss:$0 sm:$0xff]  ;;  %s9443_s15 = sld [smem:[#allocation37_spill]]  ;;  %vm5274_vm15 = vcmask 516096  }
 0x10e   : > { %6847 = vmatmul.mubr.msk.f32.vlgmr.msra.gmra.mxu0 %vm1794_vm0, %v8327_v5  ;;  %v1897_v7 = vld [vmem:[#allocation2 + $0x12] sm:$0xff]  ;;  %6854 = vmatpush3.msra.mxu1 %v2230_v14  ;;  %v1893_v30 = vmul.f32 0.0, %v6355_v28  ;;  %v6352_v39 = vld [vmem:[%s7902_s13] ss:$0 sm:$0xff]  ;;  %v8394_v63 = vld [vmem:[%s7907_s17 + $0x1a] ss:$0 sm:$0xff] }
 0x10f   : > { %v1908_v8 = vld [vmem:[#allocation2 + $0x13] sm:$0xff]  ;;  %6855 = vmatprep.subr.mxu1 %v2229_v15  ;;  %v6356_v29 = vld [vmem:[%s7907_s17 + $0x12] ss:$0 sm:$0xff]  ;;  %v8403_v14 = vld [vmem:[%s7907_s17 + $0x1c] ss:$0 sm:$0xff]  ;;  %s9444_s11 = sld [smem:[#allocation40_spill]] }
 0x110   : > { %v1919_v9 = vld [vmem:[#allocation2 + $0x14] sm:$0xff]  ;;  %6856 = vmatpush3.msra.mxu1 %v2229_v15  ;;  %v1904_v31 = vmul.f32 %v6356_v29, %v1897_v7  ;;  %v6357_v32 = vld [vmem:[%s7907_s17 + $0x13] ss:$0 sm:$0xff]  ;;  %s9445_s28 = sld [smem:[#allocation39_spill]]  ;;  %p9491_p2 = scmp.ne.s32.totalorder %s9415_s22, 0 }
 0x111   : > { %v8337_v10 = vld [vmem:[#allocation2 + $0x15] sm:$0xff]  ;;  %6857 = vmatprep.subr.mxu1 %v2228_v16  ;;  %v1915_v34 = vmul.f32 %v6357_v32, %v1908_v8  ;;  %v8362_v35 = vld [vmem:[%s7907_s17 + $0x14] ss:$0 sm:$0xff]  ;;  %s9441_s18 = smov %s9440_s7  ;;  %s9446_s2 = sld [smem:[#allocation44_spill]] }
 0x112   : > { %v8339_v11 = vld [vmem:[#allocation2 + $0x16] sm:$0xff]  ;;  %6858 = vmatpush3.msra.mxu1 %v2228_v16  ;;  %v1906_v33 = vadd.f32 %v1904_v31, %v1893_v30  ;;  %v1926_v37 = vmul.f32 %v8362_v35, %v1919_v9  ;;  %v8366_v38 = vld [vmem:[%s7907_s17 + $0x15] ss:$0 sm:$0xff]  ;;  %s9462_s6 = sld [smem:[#allocation56_spill]]  ;;  %s7882_s9 = smov [#allocation21]  }
 0x113   : > { %2414 = vst [vmem:[#allocation2 + $0x10] sm:$0x7f] %v7879_v6  ;;  %6859 = vmatprep.subr.mxu1 %v2227_v17  ;;  %v1937_v41 = vmul.f32 %v8366_v38, %v8337_v10  ;;  %v8372_v43 = vld [vmem:[%s7907_s17 + $0x16] ss:$0 sm:$0xff]  ;;  %v1952_v50 = vld [vmem:[#allocation2 + $0x17] sm:$0xff]  ;;  %s9489_s3 = sld [smem:[#allocation75_spill]] }
 0x114   : > { %6860 = vmatpush3.msra.mxu1 %v2227_v17  ;;  %v1917_v36 = vadd.f32 %v1915_v34, %v1906_v33  ;;  %v1948_v49 = vmul.f32 %v8372_v43, %v8339_v11  ;;  %v8377_v51 = vld [vmem:[%s7907_s17 + $0x17] ss:$0 sm:$0xff]  ;;  %v1963_v57 = vld [vmem:[#allocation2 + $0x18] sm:$0xff]  ;;  %s9490_s4 = sld [smem:[#allocation74_spill]] }
 0x115   : > { %6861 = vmatprep.subr.mxu1 %v2226_v18  ;;  %v1959_v56 = vmul.f32 %v8377_v51, %v1952_v50  ;;  %v8387_v58 = vld [vmem:[%s7907_s17 + $0x18] ss:$0 sm:$0xff]  ;;  %v8391_v61 = vld [vmem:[%s7907_s17 + $0x19] ss:$0 sm:$0xff]  ;;  %v8398_v10 = vld [vmem:[%s7907_s17 + $0x1b] ss:$0 sm:$0xff] }
 0x116   : > { %6862 = vmatpush3.msra.mxu1 %v2226_v18  ;;  %v1928_v40 = vadd.f32 %v1926_v37, %v1917_v36  ;;  %v1970_v60 = vmul.f32 %v8387_v58, %v1963_v57  ;;  %v6368_v50 = vld [vmem:[%s7907_s17 + $0x1e] ss:$0 sm:$0xff]  ;;  %v6369_v57 = vld [vmem:[%s7907_s17 + $0x1f] ss:$0 sm:$0xff] }
 0x117   : > { %6863 = vmatprep.subr.mxu1 %v2225_v19  ;;  %s9447_s26 = smov %s9446_s2 }
 0x118   : > { %6864 = vmatpush3.msra.mxu1 %v2225_v19  ;;  %v1939_v48 = vadd.f32 %v1937_v41, %v1928_v40 }
 0x119   : > { %6865 = vmatprep.subr.mxu1 %v2224_v20 }
 0x11a   : > { %6866 = vmatpush3.msra.mxu1 %v2224_v20  ;;  %v1950_v55 = vadd.f32 %v1948_v49, %v1939_v48 }
 0x11b   : > { %6867 = vmatprep.subr.mxu1 %v2223_v21 }
 0x11c   : > { %6868 = vmatpush3.msra.mxu1 %v2223_v21  ;;  %v1961_v59 = vadd.f32 %v1959_v56, %v1950_v55  ;;  %v8417_v21 = vld [vmem:[#allocation2 + $0x31] sm:$0xff] }
 0x11d   : > { %6869 = vmatprep.subr.mxu1 %v2222_v22 }
 0x11e   : > { %6870 = vmatpush3.msra.mxu1 %v2222_v22  ;;  %v1972_v62 = vadd.f32 %v1970_v60, %v1961_v59  ;;  %v8419_v22 = vld [vmem:[#allocation2 + $0x32] sm:$0xff] }
 0x11f   : > { %6871 = vmatprep.subr.mxu1 %v2221_v23 }
 0x120   : > { %6872 = vmatpush3.msra.mxu1 %v2221_v23  ;;  %v8421_v23 = vld [vmem:[#allocation2 + $0x33] sm:$0xff] }
 0x121   : > { %6873 = vmatprep.subr.mxu1 %v2220_v24 }
 0x122   : > { %6874 = vmatpush3.msra.mxu1 %v2220_v24  ;;  %v8423_v24 = vld [vmem:[#allocation2 + $0x34] sm:$0xff] }
 0x123   : > { %6875 = vmatprep.subr.mxu1 %v2219_v25 }
 0x124   : > { %6876 = vmatpush3.msra.mxu1 %v2219_v25  ;;  %v8425_v25 = vld [vmem:[#allocation2 + $0x35] sm:$0xff] }
 0x125   : > { %6877 = vmatprep.subr.mxu1 %v2218_v26 }
 0x126   : > { %6878 = vmatpush3.msra.mxu1 %v2218_v26 }
 0x127   : > { %6879 = vmatprep.subr.mxu1 %v2217_v27 }
 0x128   : > { %6880 = vmatpush3.msra.mxu1 %v2217_v27 }
 0x1ce   : > { %v6848_v42 = vpop.f32.mrf.mxu0 }
 0x1cf   : > { %v1873_v44 = vadd.f32 %v6848_v42, %v6352_v39 }
 0x1d0   : > { %v1867_v45 = vpop.f32.mrf.mxu0 }
 0x1d1   : > { %v1877_v46 = vmax.f32 %v1873_v44, 0.0  ;;  %v1868_v47 = vadd.f32 %v6352_v39, %v1867_v45  ;;  %v6367_v44 = vld [vmem:[%s7907_s17 + $0x1d] ss:$0 sm:$0xff] }
 0x1d3   : > { %v8379_v52 = vmin.f32 %v1877_v46, 6.0  ;;  %v1876_v53 = vmax.f32 %v1868_v47, 0.0 }
 0x1d5   : > { %1885 = vst [vmem:[#allocation2 + $0x28] sm:$0xff] %v8379_v52  ;;  %v8382_v54 = vmin.f32 %v1876_v53, 6.0 }
 0x1d7   : > { %1884 = vst [vmem:[#allocation2 + $0x20] sm:$0xff] %v8382_v54 }
 0x1dc   : > { %v8405_v15 = vld [vmem:[#allocation2 + $0x29] sm:$0xff] }
 0x1dd   : > { %v8407_v16 = vld [vmem:[#allocation2 + $0x2a] sm:$0xff] }
 0x1de   : > { %v1887_v0 = vld [vmem:[#allocation2 + $0x19] sm:$0xff]  ;;  %v1974_v12 = vld [vmem:[#allocation2 + $0x21] sm:$0xff]  ;;  %v8409_v17 = vld [vmem:[#allocation2 + $0x2b] sm:$0xff] }
 0x1df   : > { %v1898_v1 = vld [vmem:[#allocation2 + $0x1a] sm:$0xff]  ;;  %v1894_v7 = vmul.f32 %v6355_v28, %v1887_v0  ;;  %v1980_v9 = vmul.f32 %v8391_v61, %v1887_v0  ;;  %v8400_v13 = vld [vmem:[#allocation2 + $0x22] sm:$0xff]  ;;  %v8411_v18 = vld [vmem:[#allocation2 + $0x2c] sm:$0xff] }
 0x1e0   : > { %v1909_v3 = vld [vmem:[#allocation2 + $0x1b] sm:$0xff]  ;;  %v1905_v8 = vmul.f32 %v6356_v29, %v1898_v1  ;;  %v8413_v19 = vld [vmem:[#allocation2 + $0x2d] sm:$0xff]  ;;  %v1990_v29 = vmul.f32 %v8394_v63, %v1898_v1  ;;  %v1994_v30 = vld [vmem:[#allocation2 + $0x23] sm:$0xff]  ;;  %v1971_v1 = vmul.f32 %v8387_v58, %v8382_v54 }
 0x1e1   : > { %v1920_v4 = vld [vmem:[#allocation2 + $0x1c] sm:$0xff]  ;;  %v8415_v20 = vld [vmem:[#allocation2 + $0x2e] sm:$0xff]  ;;  %v1916_v27 = vmul.f32 %v6357_v32, %v1909_v3  ;;  %v1982_v28 = vadd.f32 %v1980_v9, %v1972_v62  ;;  %v2004_v31 = vld [vmem:[#allocation2 + $0x24] sm:$0xff]  ;;  %v2000_v32 = vmul.f32 %v8398_v10, %v1909_v3 }
 0x1e2   : > { %v1931_v11 = vld [vmem:[#allocation2 + $0x1d] sm:$0xff]  ;;  %v1907_v26 = vadd.f32 %v1905_v8, %v1894_v7  ;;  %v2014_v33 = vld [vmem:[#allocation2 + $0x25] sm:$0xff]  ;;  %v8432_v37 = vld [vmem:[#allocation2 + $0x2f] sm:$0xff]  ;;  %v1927_v40 = vmul.f32 %v8362_v35, %v1920_v4  ;;  %v2010_v48 = vmul.f32 %v8403_v14, %v1920_v4 }
 0x1e3   : > { %v8428_v34 = vld [vmem:[#allocation2 + $0x26] sm:$0xff]  ;;  %v1992_v41 = vadd.f32 %v1990_v29, %v1982_v28  ;;  %2416 = vst [vmem:[#allocation2 + $0x2f] sm:$0x7f] %v7879_v6  ;;  %v1942_v42 = vld [vmem:[#allocation2 + $0x1e] sm:$0xff]  ;;  %v1938_v46 = vmul.f32 %v8366_v38, %v1931_v11  ;;  %v2020_v56 = vmul.f32 %v6367_v44, %v1931_v11 }
 0x1e4   : > { %v8430_v36 = vld [vmem:[#allocation2 + $0x27] sm:$0xff]  ;;  %v1918_v39 = vadd.f32 %v1916_v27, %v1907_v26  ;;  %v1953_v49 = vld [vmem:[#allocation2 + $0x1f] sm:$0xff]  ;;  %v1949_v53 = vmul.f32 %v8372_v43, %v1942_v42  ;;  %v2030_v0 = vmul.f32 %v6368_v50, %v1942_v42  ;;  %v1981_v43 = vmul.f32 %v8391_v61, %v1974_v12 }
 0x1e5   : > { %2415 = vst [vmem:[#allocation2 + $0x27] sm:$0xff] %v7879_v6  ;;  %v2002_v47 = vadd.f32 %v2000_v32, %v1992_v41  ;;  %v1960_v60 = vmul.f32 %v8377_v51, %v1953_v49  ;;  %v2040_v4 = vmul.f32 %v6369_v57, %v1953_v49  ;;  %v6370_v7 = vld [vmem:[%s7907_s17 + $0x20] ss:$0 sm:$0xff]  ;;  %v6371_v26 = vld [vmem:[%s7907_s17 + $0x21] ss:$0 sm:$0xff]  ;;  %v1991_v27 = vmul.f32 %v8394_v63, %v8400_v13 }
 0x1e6   : > { %v1929_v45 = vadd.f32 %v1927_v40, %v1918_v39  ;;  %v2050_v11 = vmul.f32 %v6370_v7, %v8382_v54  ;;  %v2060_v29 = vmul.f32 %v6371_v26, %v1974_v12  ;;  %v6372_v58 = vld [vmem:[%s7907_s17 + $0x22] ss:$0 sm:$0xff]  ;;  %v2001_v40 = vmul.f32 %v8398_v10, %v1994_v30  ;;  %v6373_v61 = vld [vmem:[%s7907_s17 + $0x23] ss:$0 sm:$0xff] }
 0x1e7   : > { %v2012_v55 = vadd.f32 %v2010_v48, %v2002_v47  ;;  %v2070_v32 = vmul.f32 %v6372_v58, %v8400_v13  ;;  %v2011_v54 = vmul.f32 %v8403_v14, %v2004_v31  ;;  %v6374_v47 = vld [vmem:[%s7907_s17 + $0x24] ss:$0 sm:$0xff]  ;;  %v2021_v12 = vmul.f32 %v6367_v44, %v2014_v33  ;;  %v6378_v44 = vld [vmem:[%s7907_s17 + $0x28] ss:$0 sm:$0xff] }
 0x1e8   : > { %v1940_v35 = vadd.f32 %v1938_v46, %v1929_v45  ;;  %v2080_v46 = vmul.f32 %v6373_v61, %v1994_v30  ;;  %v2090_v49 = vmul.f32 %v6374_v47, %v2004_v31  ;;  %v2041_v14 = vmul.f32 %v6369_v57, %v8430_v36 }
 0x1e9   : > { %v2022_v62 = vadd.f32 %v2020_v56, %v2012_v55  ;;  %v6376_v56 = vld [vmem:[%s7907_s17 + $0x26] ss:$0 sm:$0xff]  ;;  %v2051_v31 = vmul.f32 %v6370_v7, %v8379_v52  ;;  %v2130_v57 = vmul.f32 %v6378_v44, %v8379_v52  ;;  %v6381_v7 = vld [vmem:[%s7907_s17 + $0x2b] ss:$0 sm:$0xff]  ;;  %v2091_v52 = vmul.f32 %v6374_v47, %v8411_v18  ;;  %v6385_v47 = vld [vmem:[%s7907_s17 + $0x2f] ss:$0 sm:$0xff] }
 0x1ea   : > { %v1951_v59 = vadd.f32 %v1949_v53, %v1940_v35  ;;  %v6375_v35 = vld [vmem:[%s7907_s17 + $0x25] ss:$0 sm:$0xff]  ;;  %v2031_v53 = vmul.f32 %v6368_v50, %v8428_v34  ;;  %v6379_v50 = vld [vmem:[%s7907_s17 + $0x29] ss:$0 sm:$0xff] }
 0x1eb   : > { %v2032_v3 = vadd.f32 %v2030_v0, %v2022_v62  ;;  %v2100_v55 = vmul.f32 %v6375_v35, %v2014_v33  ;;  %v6377_v62 = vld [vmem:[%s7907_s17 + $0x27] ss:$0 sm:$0xff] }
 0x1ec   : > { %v1962_v38 = vadd.f32 %v1960_v60, %v1951_v59  ;;  %v2110_v60 = vmul.f32 %v6376_v56, %v8428_v34 }
 0x1ed   : > { %v2042_v9 = vadd.f32 %v2040_v4, %v2032_v3  ;;  %v2061_v3 = vmul.f32 %v6371_v26, %v8405_v15  ;;  %v6382_v26 = vld [vmem:[%s7907_s17 + $0x2c] ss:$0 sm:$0xff] }
 0x1ee   : > { %v1973_v8 = vadd.f32 %v1971_v1, %v1962_v38  ;;  %v2120_v1 = vmul.f32 %v6377_v62, %v8430_v36  ;;  %v2081_v36 = vmul.f32 %v6373_v61, %v8409_v17  ;;  %v6384_v61 = vld [vmem:[%s7907_s17 + $0x2e] ss:$0 sm:$0xff] }
 0x1ef   : > { %v2052_v28 = vadd.f32 %v2050_v11, %v2042_v9  ;;  %v2140_v11 = vmul.f32 %v6379_v50, %v8405_v15  ;;  %v2101_v15 = vmul.f32 %v6375_v35, %v8413_v19 }
 0x1f0   : > { %v1983_v51 = vadd.f32 %v1981_v43, %v1973_v8  ;;  %v6380_v8 = vld [vmem:[%s7907_s17 + $0x2a] ss:$0 sm:$0xff]  ;;  %v2071_v43 = vmul.f32 %v6372_v58, %v8407_v16  ;;  %v6383_v58 = vld [vmem:[%s7907_s17 + $0x2d] ss:$0 sm:$0xff] }
 0x1f1   : > { %v2062_v41 = vadd.f32 %v2060_v29, %v2052_v28  ;;  %v2150_v28 = vmul.f32 %v6380_v8, %v8407_v16  ;;  %v2111_v16 = vmul.f32 %v6376_v56, %v8415_v20  ;;  %v2151_v56 = vmul.f32 %v6380_v8, %v8419_v22  ;;  %v2318_v8 = vld [vmem:[%s9437_s8 + $0x8] sm:$0xff] }
 0x1f2   : > { %v1993_v39 = vadd.f32 %v1991_v27, %v1983_v51 }
 0x1f3   : > { %v2072_v45 = vadd.f32 %v2070_v32, %v2062_v41 }
 0x1f4   : > { %v2003_v42 = vadd.f32 %v2001_v40, %v1993_v39  ;;  %v2160_v40 = vmul.f32 %v6381_v7, %v8409_v17  ;;  %v2121_v17 = vmul.f32 %v6377_v62, %v8432_v37  ;;  %v2171_v62 = vmul.f32 %v6382_v26, %v8423_v24 }
 0x1f5   : > { %v2082_v48 = vadd.f32 %v2080_v46, %v2072_v45  ;;  %v2180_v46 = vmul.f32 %v6383_v58, %v8413_v19 }
 0x1f6   : > { %v2013_v63 = vadd.f32 %v2011_v54, %v2003_v42  ;;  %v2170_v42 = vmul.f32 %v6382_v26, %v8411_v18  ;;  %v2764_v26 = vld [vmem:[%s9439_s27 + $0x70] sm:$0xff] }
 0x1f7   : > { %v2092_v13 = vadd.f32 %v2090_v49, %v2082_v48  ;;  %v2190_v49 = vmul.f32 %v6384_v61, %v8415_v20  ;;  %v2184_v20 = vld [vmem:[#allocation2 + $0x36] sm:$0xff] }
 0x1f8   : > { %v2023_v10 = vadd.f32 %v2021_v12, %v2013_v63  ;;  %v2131_v63 = vmul.f32 0.0, %v6378_v44  ;;  %v2191_v22 = vmul.f32 %v6384_v61, %v2184_v20  ;;  %v2463_v61 = vld [vmem:[#allocation2 + $0xc] sm:$0xff] }
 0x1f9   : > { %v2102_v30 = vadd.f32 %v2100_v55, %v2092_v13  ;;  %v6386_v13 = vld [vmem:[%s9436_s23] ss:$0 sm:$0xff]  ;;  %v8541_v20 = vld [vmem:[%s9441_s18 + $0xd] ss:$0 sm:$0xff]  ;;  %s9448_s23 = sld [smem:[#allocation42_spill]] }
 0x1fa   : > { %v2033_v59 = vadd.f32 %v2031_v53, %v2023_v10  ;;  %v2141_v10 = vmul.f32 %v6379_v50, %v8417_v21  ;;  %v2200_v53 = vmul.f32 %v6385_v47, %v8432_v37  ;;  %v2181_v21 = vmul.f32 %v6383_v58, %v8425_v25  ;;  %v2194_v37 = vld [vmem:[#allocation2 + $0x37] sm:$0xff] }
 0x1fb   : > { %v2112_v38 = vadd.f32 %v2110_v60, %v2102_v30  ;;  %v2319_v25 = vld [vmem:[%s9437_s8 + $0x10] sm:$0xff]  ;;  %v2757_v58 = vld [vmem:[%s9439_s27 + $0x38] sm:$0xff] }
 0x1fc   : > { %v2043_v0 = vadd.f32 %v2041_v14, %v2033_v59  ;;  %v2161_v14 = vmul.f32 %v6381_v7, %v8421_v23  ;;  %v2201_v23 = vmul.f32 %v6385_v47, %v2194_v37  ;;  %v2753_v47 = vld [vmem:[%s9439_s27 + $0x18] sm:$0xff] }
 0x1fd   : > { %v2122_v4 = vadd.f32 %v2120_v1, %v2112_v38 }
 0x1fe   : > { %v2053_v33 = vadd.f32 %v2051_v31, %v2043_v0 }
 0x1ff   : > { %v2132_v9 = vadd.f32 %v2130_v57, %v2122_v4  ;;  %v2320_v57 = vld [vmem:[%s9437_s8 + $0x18] sm:$0xff] }
 0x200   : > { %v2063_v34 = vadd.f32 %v2061_v3, %v2053_v33  ;;  %6884 = vmatprep.subr.mxu0 %v2320_v57 }
 0x201   : > { %v2142_v27 = vadd.f32 %v2140_v11, %v2132_v9  ;;  %6885 = vmatpush3.msra.mxu0 %v2320_v57 }
 0x202   : > { %v2073_v51 = vadd.f32 %v2071_v43, %v2063_v34  ;;  %6886 = vmatprep.subr.mxu0 %v2319_v25  ;;  %v2317_v34 = vld [vmem:[%s9437_s8] sm:$0xff] }
 0x203   : > { %v2152_v39 = vadd.f32 %v2150_v28, %v2142_v27  ;;  %6887 = vmatpush3.msra.mxu0 %v2319_v25  ;;  %v6387_v43 = vld [vmem:[%s9438_s16] ss:$0 sm:$0xff]  ;;  %v2765_v28 = vld [vmem:[%s9439_s27 + $0x78] sm:$0xff]  ;;  %s9449_s16 = sld [smem:[#allocation41_spill]] }
 0x204   : > { %v2083_v29 = vadd.f32 %v2081_v36, %v2073_v51  ;;  %6888 = vmatprep.subr.mxu0 %v2318_v8 }
 0x205   : > { %v2162_v32 = vadd.f32 %v2160_v40, %v2152_v39  ;;  %6889 = vmatpush3.msra.mxu0 %v2318_v8  ;;  %v2759_v39 = vld [vmem:[%s9439_s27 + $0x48] sm:$0xff]  ;;  %v2758_v40 = vld [vmem:[%s9439_s27 + $0x40] sm:$0xff]  ;;  %v8559_v8 = vld [vmem:[%s9441_s18 + $0x10] ss:$0 sm:$0xff] }
 0x206   : > { %v2093_v41 = vadd.f32 %v2091_v52, %v2083_v29  ;;  %6890 = vmatprep.subr.mxu0 %v2317_v34  ;;  %v2763_v29 = vld [vmem:[%s9439_s27 + $0x68] sm:$0xff]  ;;  %v2760_v52 = vld [vmem:[%s9439_s27 + $0x50] sm:$0xff] }
 0x207   : > { %v2172_v45 = vadd.f32 %v2170_v42, %v2162_v32  ;;  %6891 = vmatpush3.msra.mxu0 %v2317_v34  ;;  %v2441_v32 = vld [vmem:[#allocation2 + $0xa] sm:$0xff] }
 0x208   : > { %v2103_v54 = vadd.f32 %v2101_v15, %v2093_v41  ;;  %6895 = vmatprep.subr.mxu0 %v2765_v28  ;;  %v2756_v41 = vld [vmem:[%s9439_s27 + $0x30] sm:$0xff] }
 0x209   : > { %v2182_v48 = vadd.f32 %v2180_v46, %v2172_v45  ;;  %v2430_v15 = vld [vmem:[#allocation2 + $0x9] sm:$0xff] }
 0x20a   : > { %v2113_v12 = vadd.f32 %v2111_v16, %v2103_v54  ;;  %v2452_v42 = vld [vmem:[#allocation2 + $0xb] sm:$0xff] }
 0x20b   : > { %v2192_v18 = vadd.f32 %v2190_v49, %v2182_v48  ;;  %v2474_v54 = vld [vmem:[#allocation2 + $0xd] sm:$0xff]  ;;  %v2750_v48 = vld [vmem:[%s9439_s27] sm:$0xff]  ;;  %v6391_v49 = vld [vmem:[%s9440_s7 + $0x8] ss:$0 sm:$0xff]  ;;  %s9450_s7 = sld [smem:[#allocation43_spill]] }
 0x20c   : > { %v2123_v35 = vadd.f32 %v2121_v17, %v2113_v12  ;;  %v2485_v16 = vld [vmem:[#allocation2 + $0xe] sm:$0xff] }
 0x20d   : > { %v2202_v59 = vadd.f32 %v2200_v53, %v2192_v18  ;;  %v2496_v45 = vld [vmem:[#allocation2 + $0xf] sm:$0xff]  ;;  %v6393_v53 = vld [vmem:[%s9441_s18 + $0xa] ss:$0 sm:$0xff] }
 0x20e   : > { %v2133_v55 = vadd.f32 %v2131_v63, %v2123_v35  ;;  %2947 = vst [vmem:[#allocation2 + $0x9] sm:$0x7f] %v7879_v6  ;;  %v2755_v46 = vld [vmem:[%s9439_s27 + $0x28] sm:$0xff]  ;;  %v2754_v63 = vld [vmem:[%s9439_s27 + $0x20] sm:$0xff]  ;;  %v2752_v12 = vld [vmem:[%s9439_s27 + $0x10] sm:$0xff] }
 0x20f   : > { %v2211_v30 = vadd.f32 %v6386_v13, %v2202_v59  ;;  %v2751_v17 = vld [vmem:[%s9439_s27 + $0x8] sm:$0xff] }
 0x210   : > { %v2143_v19 = vadd.f32 %v2141_v10, %v2133_v55  ;;  %v6392_v35 = vld [vmem:[%s9441_s18 + $0x9] ss:$0 sm:$0xff]  ;;  %v2426_v10 = vmul.f32 0.0, %v6391_v49  ;;  %v2448_v55 = vmul.f32 %v6393_v53, %v2441_v32 }
 0x211   : > { %v2213_v44 = vmax.f32 %v2211_v30, 0.0  ;;  %v2437_v18 = vmul.f32 %v6392_v35, %v2430_v15  ;;  %v6388_v30 = vld [vmem:[%s9442_s10] ss:$0 sm:$0xff]  ;;  %s9451_s10 = sld [smem:[#allocation46_spill]] }
 0x212   : > { %v2153_v60 = vadd.f32 %v2151_v56, %v2143_v19  ;;  %v8532_v56 = vld [vmem:[%s9441_s18 + $0xb] ss:$0 sm:$0xff] }
 0x213   : > { %v2215_v31 = vmin.f32 %v2213_v44, 6.0  ;;  %v2459_v19 = vmul.f32 %v8532_v56, %v2452_v42 }
 0x214   : > { %v2163_v0 = vadd.f32 %v2161_v14, %v2153_v60  ;;  %v8536_v14 = vld [vmem:[%s9441_s18 + $0xc] ss:$0 sm:$0xff] }
 0x215   : > { %6881 = vmatprep.mubr.f32.mxu1 %v2215_v31 }
 0x216   : > { %v2173_v38 = vadd.f32 %v2171_v62, %v2163_v0  ;;  %v2470_v62 = vmul.f32 %v8536_v14, %v2463_v61  ;;  %v8585_v61 = vld [vmem:[#allocation2 + $0x28] sm:$0xff] }
 0x218   : > { %v2183_v1 = vadd.f32 %v2181_v21, %v2173_v38 }
 0x21a   : > { %v2193_v50 = vadd.f32 %v2191_v22, %v2183_v1  ;;  %v2481_v22 = vmul.f32 %v8541_v20, %v2474_v54  ;;  %v8545_v1 = vld [vmem:[%s9441_s18 + $0xe] ss:$0 sm:$0xff] }
 0x21b   : > { %v8587_v54 = vld [vmem:[#allocation2 + $0x29] sm:$0xff] }
 0x21c   : > { %v2203_v33 = vadd.f32 %v2201_v23, %v2193_v50 }
 0x21e   : > { %v2212_v3 = vadd.f32 %v6386_v13, %v2203_v33  ;;  %v2439_v13 = vadd.f32 %v2437_v18, %v2426_v10 }
 0x220   : > { %v2214_v24 = vmax.f32 %v2212_v3, 0.0  ;;  %v2450_v59 = vadd.f32 %v2448_v55, %v2439_v13 }
 0x222   : > { %v2216_v4 = vmin.f32 %v2214_v24, 6.0  ;;  %v2461_v60 = vadd.f32 %v2459_v19, %v2450_v59  ;;  %v2492_v24 = vmul.f32 %v8545_v1, %v2485_v16  ;;  %v8589_v16 = vld [vmem:[#allocation2 + $0x2a] sm:$0xff] }
 0x224   : > { %6882 = vmatmul.mubr.f32.vlgmr.msra.gmra.mxu1 %v2216_v4  ;;  %v2472_v38 = vadd.f32 %v2470_v62, %v2461_v60  ;;  %v8555_v4 = vld [vmem:[%s9441_s18 + $0xf] ss:$0 sm:$0xff] }
 0x225   : > { %v2503_v25 = vmul.f32 %v8555_v4, %v2496_v45  ;;  %v8591_v45 = vld [vmem:[#allocation2 + $0x2b] sm:$0xff] }
 0x226   : > { %v2483_v3 = vadd.f32 %v2481_v22, %v2472_v38  ;;  %v6404_v22 = vld [vmem:[%s9441_s18 + $0x15] ss:$0 sm:$0xff] }
 0x228   : > { %v2494_v57 = vadd.f32 %v2492_v24, %v2483_v3 }
 0x22a   : > { %v2505_v34 = vadd.f32 %v2503_v25, %v2494_v57  ;;  %v6405_v57 = vld [vmem:[%s9441_s18 + $0x16] ss:$0 sm:$0xff] }
 0x2e4   : > { %v6883_v9 = vpop.f32.mrf.mxu1 }
 0x2e5   : > { %v2312_v11 = vadd.f32 %v6883_v9, %v6387_v43 }
 0x2e6   : > { %v2306_v7 = vpop.f32.mrf.mxu1 }
 0x2e7   : > { %v2307_v51 = vadd.f32 %v6387_v43, %v2306_v7  ;;  %v8505_v27 = vadd.f32 %v2312_v11, %v8327_v5  ;;  %v2761_v5 = vld [vmem:[%s9439_s27 + $0x58] sm:$0xff]  ;;  %v8562_v43 = vld [vmem:[%s9441_s18 + $0x11] ss:$0 sm:$0xff] }
 0x2e9   : > { %v8502_v36 = vadd.f32 %v2307_v51, %v8321_v2  ;;  %v2762_v2 = vld [vmem:[%s9439_s27 + $0x60] sm:$0xff] }
 0x2eb   : > { %6892 = vmatprep.mubr.msk.f32.mxu0 %vm1794_vm0, %v8502_v36 }
 0x2ec   : > { %6893 = vmatmul.mubr.msk.f32.vlgmr.msra.gmra.mxu0 %vm1794_vm0, %v8505_v27 }
 0x2ed   : > { %6896 = vmatpush3.msra.mxu0 %v2765_v28 }
 0x2ee   : > { %6897 = vmatprep.subr.mxu0 %v2764_v26 }
 0x2ef   : > { %6898 = vmatpush3.msra.mxu0 %v2764_v26 }
 0x2f0   : > { %6899 = vmatprep.subr.mxu0 %v2763_v29 }
 0x2f1   : > { %6900 = vmatpush3.msra.mxu0 %v2763_v29  ;;  %v8566_v29 = vld [vmem:[%s9441_s18 + $0x12] ss:$0 sm:$0xff] }
 0x2f2   : > { %6901 = vmatprep.subr.mxu0 %v2762_v2 }
 0x2f3   : > { %6902 = vmatpush3.msra.mxu0 %v2762_v2 }
 0x2f4   : > { %6903 = vmatprep.subr.mxu0 %v2761_v5 }
 0x2f5   : > { %6904 = vmatpush3.msra.mxu0 %v2761_v5 }
 0x2f6   : > { %6905 = vmatprep.subr.mxu0 %v2760_v52 }
 0x2f7   : > { %6906 = vmatpush3.msra.mxu0 %v2760_v52 }
 0x2f8   : > { %6907 = vmatprep.subr.mxu0 %v2759_v39 }
 0x2f9   : > { %6908 = vmatpush3.msra.mxu0 %v2759_v39  ;;  %v8571_v39 = vld [vmem:[%s9441_s18 + $0x13] ss:$0 sm:$0xff] }
 0x2fa   : > { %6909 = vmatprep.subr.mxu0 %v2758_v40 }
 0x2fb   : > { %6910 = vmatpush3.msra.mxu0 %v2758_v40 }
 0x2fc   : > { %6911 = vmatprep.subr.mxu0 %v2757_v58 }
 0x2fd   : > { %6912 = vmatpush3.msra.mxu0 %v2757_v58 }
 0x2fe   : > { %6913 = vmatprep.subr.mxu0 %v2756_v41 }
 0x2ff   : > { %6914 = vmatpush3.msra.mxu0 %v2756_v41 }
 0x300   : > { %6915 = vmatprep.subr.mxu0 %v2755_v46 }
 0x301   : > { %6916 = vmatpush3.msra.mxu0 %v2755_v46  ;;  %v8593_v46 = vld [vmem:[#allocation2 + $0x2c] sm:$0xff] }
 0x302   : > { %6917 = vmatprep.subr.mxu0 %v2754_v63 }
 0x303   : > { %6918 = vmatpush3.msra.mxu0 %v2754_v63  ;;  %v8595_v63 = vld [vmem:[#allocation2 + $0x2d] sm:$0xff] }
 0x304   : > { %6919 = vmatprep.subr.mxu0 %v2753_v47 }
 0x305   : > { %6920 = vmatpush3.msra.mxu0 %v2753_v47  ;;  %v8597_v47 = vld [vmem:[#allocation2 + $0x2e] sm:$0xff] }
 0x306   : > { %6921 = vmatprep.subr.mxu0 %v2752_v12 }
 0x307   : > { %6922 = vmatpush3.msra.mxu0 %v2752_v12 }
 0x308   : > { %6923 = vmatprep.subr.mxu0 %v2751_v17 }
 0x309   : > { %6924 = vmatpush3.msra.mxu0 %v2751_v17 }
 0x30a   : > { %6925 = vmatprep.subr.mxu0 %v2750_v48 }
 0x30b   : > { %6926 = vmatpush3.msra.mxu0 %v2750_v48 }
 0x3ac   : > { %v6894_v44 = vpop.f32.mrf.mxu0 }
 0x3ad   : > { %v2406_v0 = vadd.f32 %v6894_v44, %v6388_v30  ;;  %v6403_v44 = vld [vmem:[%s9441_s18 + $0x14] ss:$0 sm:$0xff] }
 0x3ae   : > { %v2400_v21 = vpop.f32.mrf.mxu0 }
 0x3af   : > { %v2410_v31 = vmax.f32 %v2406_v0, 0.0  ;;  %v2401_v37 = vadd.f32 %v6388_v30, %v2400_v21 }
 0x3b1   : > { %v8547_v23 = vmin.f32 %v2410_v31, 6.0  ;;  %v2409_v50 = vmax.f32 %v2401_v37, 0.0 }
 0x3b3   : > { %2418 = vst [vmem:[#allocation2 + $0x1f] sm:$0xff] %v8547_v23  ;;  %v8550_v33 = vmin.f32 %v2409_v50, 6.0 }
 0x3b5   : > { %2417 = vst [vmem:[#allocation2 + $0x17] sm:$0xff] %v8550_v33 }
 0x3ba   : > { %v8573_v40 = vld [vmem:[#allocation2 + $0x20] sm:$0xff] }
 0x3bb   : > { %v8575_v58 = vld [vmem:[#allocation2 + $0x21] sm:$0xff] }
 0x3bc   : > { %v2420_v9 = vld [vmem:[#allocation2 + $0x10] sm:$0xff]  ;;  %v8568_v52 = vld [vmem:[#allocation2 + $0x19] sm:$0xff]  ;;  %v8577_v41 = vld [vmem:[#allocation2 + $0x22] sm:$0xff] }
 0x3bd   : > { %v2431_v11 = vld [vmem:[#allocation2 + $0x11] sm:$0xff]  ;;  %v2427_v51 = vmul.f32 %v6391_v49, %v2420_v9  ;;  %v2513_v26 = vmul.f32 %v8559_v8, %v2420_v9  ;;  %v8579_v15 = vld [vmem:[#allocation2 + $0x23] sm:$0xff]  ;;  %v2537_v10 = vld [vmem:[#allocation2 + $0x1b] sm:$0xff] }
 0x3be   : > { %v2442_v7 = vld [vmem:[#allocation2 + $0x12] sm:$0xff]  ;;  %v2438_v28 = vmul.f32 %v6392_v35, %v2431_v11  ;;  %v8581_v32 = vld [vmem:[#allocation2 + $0x24] sm:$0xff]  ;;  %v2523_v49 = vmul.f32 %v8562_v43, %v2431_v11  ;;  %v2527_v35 = vld [vmem:[#allocation2 + $0x1a] sm:$0xff] }
 0x3bf   : > { %v2453_v2 = vld [vmem:[#allocation2 + $0x13] sm:$0xff]  ;;  %v8583_v42 = vld [vmem:[#allocation2 + $0x25] sm:$0xff]  ;;  %v2449_v17 = vmul.f32 %v6393_v53, %v2442_v7  ;;  %v2515_v48 = vadd.f32 %v2513_v26, %v2505_v34  ;;  %v2547_v18 = vld [vmem:[#allocation2 + $0x1c] sm:$0xff]  ;;  %v2533_v53 = vmul.f32 %v8566_v29, %v2442_v7 }
 0x3c0   : > { %v2464_v5 = vld [vmem:[#allocation2 + $0x14] sm:$0xff]  ;;  %v2440_v12 = vadd.f32 %v2438_v28, %v2427_v51  ;;  %v8600_v13 = vld [vmem:[#allocation2 + $0x1d] sm:$0xff]  ;;  %v8604_v59 = vld [vmem:[#allocation2 + $0x26] sm:$0xff]  ;;  %v2460_v30 = vmul.f32 %v8532_v56, %v2453_v2  ;;  %v2543_v37 = vmul.f32 %v8571_v39, %v2453_v2  ;;  %v2504_v51 = vmul.f32 %v8555_v4, %v8550_v33 }
 0x3c1   : > { %v8602_v55 = vld [vmem:[#allocation2 + $0x1e] sm:$0xff]  ;;  %v2525_v60 = vadd.f32 %v2523_v49, %v2515_v48  ;;  %2949 = vst [vmem:[#allocation2 + $0x28] sm:$0x7f] %v7879_v6  ;;  %v2475_v62 = vld [vmem:[#allocation2 + $0x15] sm:$0xff]  ;;  %v2471_v21 = vmul.f32 %v8536_v14, %v2464_v5  ;;  %v2553_v24 = vmul.f32 %v6403_v44, %v2464_v5  ;;  %v2524_v49 = vmul.f32 %v8562_v43, %v8568_v52 }
 0x3c2   : > { %v2451_v19 = vadd.f32 %v2449_v17, %v2440_v12  ;;  %2948 = vst [vmem:[#allocation2 + $0x20] sm:$0xff] %v7879_v6  ;;  %v2486_v38 = vld [vmem:[#allocation2 + $0x16] sm:$0xff]  ;;  %v2482_v50 = vmul.f32 %v8541_v20, %v2475_v62  ;;  %v2563_v11 = vmul.f32 %v6404_v22, %v2475_v62 }
 0x3c3   : > { %v2535_v31 = vadd.f32 %v2533_v53, %v2525_v60  ;;  %v2493_v34 = vmul.f32 %v8545_v1, %v2486_v38  ;;  %v2507_v14 = vld [vmem:[#allocation2 + $0x18] sm:$0xff]  ;;  %v2573_v26 = vmul.f32 %v6405_v57, %v2486_v38  ;;  %v6406_v2 = vld [vmem:[%s9441_s18 + $0x17] ss:$0 sm:$0xff]  ;;  %v2534_v53 = vmul.f32 %v8566_v29, %v2527_v35 }
 0x3c4   : > { %v2462_v0 = vadd.f32 %v2460_v30, %v2451_v19  ;;  %v2514_v5 = vmul.f32 %v8559_v8, %v2507_v14  ;;  %v2583_v17 = vmul.f32 %v6406_v2, %v8550_v33  ;;  %v6407_v1 = vld [vmem:[%s9441_s18 + $0x18] ss:$0 sm:$0xff]  ;;  %v6408_v4 = vld [vmem:[%s9441_s18 + $0x19] ss:$0 sm:$0xff]  ;;  %v6409_v8 = vld [vmem:[%s9441_s18 + $0x1a] ss:$0 sm:$0xff]  ;;  %v2544_v33 = vmul.f32 %v8571_v39, %v2537_v10 }
 0x3c5   : > { %v2545_v3 = vadd.f32 %v2543_v37, %v2535_v31  ;;  %v2593_v30 = vmul.f32 %v6407_v1, %v2507_v14  ;;  %v2613_v37 = vmul.f32 %v6409_v8, %v2527_v35  ;;  %v6410_v38 = vld [vmem:[%s9441_s18 + $0x1b] ss:$0 sm:$0xff]  ;;  %v2574_v39 = vmul.f32 %v6405_v57, %v8602_v55 }
 0x3c6   : > { %v2473_v56 = vadd.f32 %v2471_v21, %v2462_v0  ;;  %v2603_v0 = vmul.f32 %v6408_v4, %v8568_v52 }
 0x3c7   : > { %v2555_v9 = vadd.f32 %v2553_v24, %v2545_v3  ;;  %v2623_v3 = vmul.f32 %v6410_v38, %v2537_v10  ;;  %v6411_v24 = vld [vmem:[%s9441_s18 + $0x1c] ss:$0 sm:$0xff]  ;;  %v2584_v10 = vmul.f32 %v6406_v2, %v8547_v23  ;;  %v6417_v2 = vld [vmem:[%s9441_s18 + $0x22] ss:$0 sm:$0xff] }
 0x3c8   : > { %v2484_v25 = vadd.f32 %v2482_v50, %v2473_v56  ;;  %v2554_v56 = vmul.f32 %v6403_v44, %v2547_v18  ;;  %v6414_v44 = vld [vmem:[%s9441_s18 + $0x1f] ss:$0 sm:$0xff] }
 0x3c9   : > { %v2565_v28 = vadd.f32 %v2563_v11, %v2555_v9  ;;  %v6412_v9 = vld [vmem:[%s9441_s18 + $0x1d] ss:$0 sm:$0xff]  ;;  %v2663_v57 = vmul.f32 %v6414_v44, %v8547_v23  ;;  %v2624_v23 = vmul.f32 %v6410_v38, %v8579_v15  ;;  %v6421_v38 = vld [vmem:[%s9441_s18 + $0x26] ss:$0 sm:$0xff] }
 0x3ca   : > { %v2495_v7 = vadd.f32 %v2493_v34, %v2484_v25  ;;  %v2564_v25 = vmul.f32 %v6404_v22, %v8600_v13  ;;  %v2633_v34 = vmul.f32 %v6411_v24, %v2547_v18  ;;  %v2643_v14 = vmul.f32 %v6412_v9, %v8600_v13  ;;  %v6415_v22 = vld [vmem:[%s9441_s18 + $0x20] ss:$0 sm:$0xff] }
 0x3cb   : > { %v2575_v12 = vadd.f32 %v2573_v26, %v2565_v28 }
 0x3cc   : > { %v2506_v20 = vadd.f32 %v2504_v51, %v2495_v7  ;;  %v6413_v7 = vld [vmem:[%s9441_s18 + $0x1e] ss:$0 sm:$0xff] }
 0x3cd   : > { %v2585_v19 = vadd.f32 %v2583_v17, %v2575_v12  ;;  %v2653_v26 = vmul.f32 %v6413_v7, %v8602_v55  ;;  %v6416_v12 = vld [vmem:[%s9441_s18 + $0x21] ss:$0 sm:$0xff]  ;;  %v2604_v17 = vmul.f32 %v6408_v4, %v8575_v58  ;;  %v2614_v55 = vmul.f32 %v6409_v8, %v8577_v41  ;;  %v6419_v4 = vld [vmem:[%s9441_s18 + $0x24] ss:$0 sm:$0xff]  ;;  %v6420_v8 = vld [vmem:[%s9441_s18 + $0x25] ss:$0 sm:$0xff] }
 0x3ce   : > { %v2516_v48 = vadd.f32 %v2514_v5, %v2506_v20  ;;  %v2594_v20 = vmul.f32 %v6407_v1, %v8573_v40  ;;  %v6418_v1 = vld [vmem:[%s9441_s18 + $0x23] ss:$0 sm:$0xff] }
 0x3cf   : > { %v2595_v62 = vadd.f32 %v2593_v30, %v2585_v19 }
 0x3d0   : > { %v2526_v60 = vadd.f32 %v2524_v49, %v2516_v48  ;;  %v2673_v49 = vmul.f32 %v6415_v22, %v8573_v40  ;;  %v2634_v40 = vmul.f32 %v6411_v24, %v8581_v32 }
 0x3d1   : > { %v2605_v31 = vadd.f32 %v2603_v0, %v2595_v62  ;;  %v2693_v0 = vmul.f32 %v6417_v2, %v8577_v41  ;;  %v2654_v41 = vmul.f32 %v6413_v7, %v8604_v59  ;;  %v2704_v7 = vmul.f32 %v6418_v1, %v8591_v45 }
 0x3d2   : > { %v2536_v21 = vadd.f32 %v2534_v53, %v2526_v60  ;;  %v2683_v60 = vmul.f32 %v6416_v12, %v8575_v58  ;;  %v2644_v58 = vmul.f32 %v6412_v9, %v8583_v42  ;;  %v2684_v9 = vmul.f32 %v6416_v12, %v8587_v54  ;;  %v2851_v12 = vld [vmem:[%s9444_s11 + $0x8] sm:$0xff] }
 0x3d3   : > { %v2615_v50 = vadd.f32 %v2613_v37, %v2605_v31  ;;  %v2703_v31 = vmul.f32 %v6418_v1, %v8579_v15  ;;  %v3293_v1 = vld [vmem:[%s9447_s26 + $0x50] sm:$0xff] }
 0x3d4   : > { %v2546_v43 = vadd.f32 %v2544_v33, %v2536_v21 }
 0x3d5   : > { %v2625_v52 = vadd.f32 %v2623_v3, %v2615_v50  ;;  %v2664_v50 = vmul.f32 0.0, %v6414_v44 }
 0x3d6   : > { %v2556_v29 = vadd.f32 %v2554_v56, %v2546_v43  ;;  %v2713_v56 = vmul.f32 %v6419_v4, %v8581_v32 }
 0x3d7   : > { %v2635_v35 = vadd.f32 %v2633_v34, %v2625_v52  ;;  %v2674_v52 = vmul.f32 %v6415_v22, %v8585_v61  ;;  %v2733_v34 = vmul.f32 %v6421_v38, %v8604_v59  ;;  %v2714_v61 = vmul.f32 %v6419_v4, %v8593_v46  ;;  %v2852_v46 = vld [vmem:[%s9444_s11 + $0x10] sm:$0xff]  ;;  %v2974_v4 = vld [vmem:[#allocation2 + $0x3] sm:$0xff] }
 0x3d8   : > { %v2566_v11 = vadd.f32 %v2564_v25, %v2556_v29  ;;  %v2723_v25 = vmul.f32 %v6420_v8, %v8583_v42 }
 0x3d9   : > { %v2645_v28 = vadd.f32 %v2643_v14, %v2635_v35  ;;  %v2694_v14 = vmul.f32 %v6417_v2, %v8589_v16  ;;  %v2734_v16 = vmul.f32 %v6421_v38, %v8597_v47  ;;  %v6423_v47 = vld [vmem:[%s9445_s28] ss:$0 sm:$0xff]  ;;  %s9453_s28 = sld [smem:[#allocation50_spill]] }
 0x3da   : > { %v2576_v51 = vadd.f32 %v2574_v39, %v2566_v11  ;;  %v6422_v11 = vld [vmem:[%s9443_s15] ss:$0 sm:$0xff]  ;;  %s9452_s15 = sld [smem:[#allocation45_spill]] }
 0x3db   : > { %v2655_v5 = vadd.f32 %v2653_v26, %v2645_v28  ;;  %v2724_v26 = vmul.f32 %v6420_v8, %v8595_v63  ;;  %v2850_v63 = vld [vmem:[%s9444_s11] sm:$0xff]  ;;  %v3289_v8 = vld [vmem:[%s9447_s26 + $0x30] sm:$0xff] }
 0x3dc   : > { %v2586_v18 = vadd.f32 %v2584_v10, %v2576_v51  ;;  %v3283_v38 = vld [vmem:[%s9447_s26] sm:$0xff] }
 0x3dd   : > { %v2665_v48 = vadd.f32 %v2663_v57, %v2655_v5  ;;  %v2853_v57 = vld [vmem:[%s9444_s11 + $0x18] sm:$0xff] }
 0x3de   : > { %v2596_v13 = vadd.f32 %v2594_v20, %v2586_v18  ;;  %6930 = vmatprep.subr.mxu1 %v2853_v57 }
 0x3df   : > { %v2675_v30 = vadd.f32 %v2673_v49, %v2665_v48  ;;  %6931 = vmatpush3.msra.mxu1 %v2853_v57 }
 0x3e0   : > { %v2606_v19 = vadd.f32 %v2604_v17, %v2596_v13  ;;  %6932 = vmatprep.subr.mxu1 %v2852_v46 }
 0x3e1   : > { %v2685_v62 = vadd.f32 %v2683_v60, %v2675_v30  ;;  %6933 = vmatpush3.msra.mxu1 %v2852_v46  ;;  %v3297_v30 = vld [vmem:[%s9447_s26 + $0x70] sm:$0xff]  ;;  %v3296_v60 = vld [vmem:[%s9447_s26 + $0x68] sm:$0xff] }
 0x3e2   : > { %v2616_v53 = vadd.f32 %v2614_v55, %v2606_v19  ;;  %6934 = vmatprep.subr.mxu1 %v2851_v12  ;;  %v3298_v55 = vld [vmem:[%s9446_s2 + $0x78] sm:$0xff]  ;;  %s9455_s2 = sld [smem:[#allocation47_spill]] }
 0x3e3   : > { %v2695_v33 = vadd.f32 %v2693_v0, %v2685_v62  ;;  %6935 = vmatpush3.msra.mxu1 %v2851_v12  ;;  %v3290_v62 = vld [vmem:[%s9447_s26 + $0x38] sm:$0xff]  ;;  %v2963_v0 = vld [vmem:[#allocation2 + $0x2] sm:$0xff] }
 0x3e4   : > { %v2626_v21 = vadd.f32 %v2624_v23, %v2616_v53  ;;  %6936 = vmatprep.subr.mxu1 %v2850_v63  ;;  %v3292_v53 = vld [vmem:[%s9447_s26 + $0x48] sm:$0xff]  ;;  %v3291_v23 = vld [vmem:[%s9447_s26 + $0x40] sm:$0xff] }
 0x3e5   : > { %v2705_v43 = vadd.f32 %v2703_v31, %v2695_v33  ;;  %6937 = vmatpush3.msra.mxu1 %v2850_v63  ;;  %v3007_v33 = vld [vmem:[#allocation2 + $0x6] sm:$0xff] }
 0x3e6   : > { %v2636_v37 = vadd.f32 %v2634_v40, %v2626_v21  ;;  %6941 = vmatprep.subr.mxu1 %v3298_v55  ;;  %v2985_v21 = vld [vmem:[#allocation2 + $0x4] sm:$0xff] }
 0x3e7   : > { %v2715_v29 = vadd.f32 %v2713_v56, %v2705_v43  ;;  %v2996_v40 = vld [vmem:[#allocation2 + $0x5] sm:$0xff]  ;;  %v3286_v43 = vld [vmem:[%s9447_s26 + $0x18] sm:$0xff]  ;;  %v3285_v56 = vld [vmem:[%s9447_s26 + $0x10] sm:$0xff] }
 0x3e8   : > { %v2646_v3 = vadd.f32 %v2644_v58, %v2636_v37  ;;  %v3018_v31 = vld [vmem:[#allocation2 + $0x7] sm:$0xff] }
 0x3e9   : > { %v2725_v15 = vadd.f32 %v2723_v25, %v2715_v29  ;;  %3479 = vst [vmem:[#allocation2] sm:$0xff] %v7879_v6  ;;  %v3288_v37 = vld [vmem:[%s9447_s26 + $0x28] sm:$0xff]  ;;  %v3287_v58 = vld [vmem:[%s9447_s26 + $0x20] sm:$0xff] }
 0x3ea   : > { %v2656_v24 = vadd.f32 %v2654_v41, %v2646_v3  ;;  %v6427_v3 = vld [vmem:[%s9448_s23 + $0x1] ss:$0 sm:$0xff]  ;;  %v6428_v41 = vld [vmem:[%s9448_s23 + $0x2] ss:$0 sm:$0xff]  ;;  %v6435_v12 = vld [vmem:[%s9448_s23 + $0x9] ss:$0 sm:$0xff] }
 0x3eb   : > { %v2735_v35 = vadd.f32 %v2733_v34, %v2725_v15  ;;  %v2959_v29 = vmul.f32 0.0, %v6427_v3  ;;  %v2970_v25 = vmul.f32 %v6428_v41, %v2963_v0  ;;  %v6430_v34 = vld [vmem:[%s9448_s23 + $0x4] ss:$0 sm:$0xff] }
 0x3ec   : > { %v2666_v39 = vadd.f32 %v2664_v50, %v2656_v24  ;;  %v3284_v50 = vld [vmem:[%s9447_s26 + $0x8] sm:$0xff]  ;;  %v6429_v24 = vld [vmem:[%s9448_s23 + $0x3] ss:$0 sm:$0xff] }
 0x3ed   : > { %v2744_v44 = vadd.f32 %v6422_v11, %v2735_v35  ;;  %v2981_v15 = vmul.f32 %v6429_v24, %v2974_v4  ;;  %v6424_v35 = vld [vmem:[%s9449_s16] ss:$0 sm:$0xff]  ;;  %s9454_s16 = smov %s9453_s28 }
 0x3ee   : > { %v2676_v32 = vadd.f32 %v2674_v52, %v2666_v39  ;;  %v2972_v52 = vadd.f32 %v2970_v25, %v2959_v29  ;;  %v2992_v39 = vmul.f32 %v6430_v34, %v2985_v21 }
 0x3ef   : > { %v2746_v42 = vmax.f32 %v2744_v44, 0.0 }
 0x3f0   : > { %v2686_v51 = vadd.f32 %v2684_v9, %v2676_v32  ;;  %v8707_v9 = vld [vmem:[%s9448_s23 + $0x5] ss:$0 sm:$0xff] }
 0x3f1   : > { %v2748_v28 = vmin.f32 %v2746_v42, 6.0 }
 0x3f2   : > { %v2696_v10 = vadd.f32 %v2694_v14, %v2686_v51  ;;  %v3003_v14 = vmul.f32 %v8707_v9, %v2996_v40  ;;  %v8712_v51 = vld [vmem:[%s9448_s23 + $0x6] ss:$0 sm:$0xff] }
 0x3f3   : > { %6927 = vmatprep.mubr.f32.mxu0 %v2748_v28 }
 0x3f4   : > { %v2706_v59 = vadd.f32 %v2704_v7, %v2696_v10 }
 0x3f6   : > { %v2716_v54 = vadd.f32 %v2714_v61, %v2706_v59  ;;  %v3014_v59 = vmul.f32 %v8712_v51, %v3007_v33 }
 0x3f8   : > { %v2726_v22 = vadd.f32 %v2724_v26, %v2716_v54  ;;  %v6433_v26 = vld [vmem:[%s9448_s23 + $0x7] ss:$0 sm:$0xff] }
 0x3fa   : > { %v2736_v18 = vadd.f32 %v2734_v16, %v2726_v22 }
 0x3fc   : > { %v2745_v20 = vadd.f32 %v6422_v11, %v2736_v18  ;;  %v2983_v11 = vadd.f32 %v2981_v15, %v2972_v52 }
 0x3fe   : > { %v2747_v45 = vmax.f32 %v2745_v20, 0.0  ;;  %v2994_v32 = vadd.f32 %v2992_v39, %v2983_v11  ;;  %v3025_v20 = vmul.f32 %v6433_v26, %v3018_v31  ;;  %v6439_v11 = vld [vmem:[%s9448_s23 + $0xd] ss:$0 sm:$0xff] }
 0x400   : > { %v2749_v5 = vmin.f32 %v2747_v45, 6.0  ;;  %v3005_v28 = vadd.f32 %v3003_v14, %v2994_v32  ;;  %v3029_v45 = vld [vmem:[#allocation2 + $0x8] sm:$0xff] }
 0x402   : > { %6928 = vmatmul.mubr.f32.vlgmr.msra.gmra.mxu0 %v2749_v5  ;;  %v3016_v18 = vadd.f32 %v3014_v59, %v3005_v28  ;;  %v6434_v5 = vld [vmem:[%s9448_s23 + $0x8] ss:$0 sm:$0xff]  ;;  %v6441_v28 = vld [vmem:[%s9448_s23 + $0xf] ss:$0 sm:$0xff] }
 0x403   : > { %v3036_v46 = vmul.f32 %v6434_v5, %v3029_v45 }
 0x404   : > { %v3027_v57 = vadd.f32 %v3025_v20, %v3016_v18 }
 0x406   : > { %v3038_v63 = vadd.f32 %v3036_v46, %v3027_v57  ;;  %v6442_v46 = vld [vmem:[%s9448_s23 + $0x10] ss:$0 sm:$0xff] }
 0x4c2   : > { %v6929_v13 = vpop.f32.mrf.mxu0 }
 0x4c3   : > { %v2845_v17 = vadd.f32 %v6929_v13, %v6423_v47 }
 0x4c4   : > { %v2839_v48 = vpop.f32.mrf.mxu0 }
 0x4c5   : > { %v2840_v49 = vadd.f32 %v6423_v47, %v2839_v48  ;;  %v8679_v19 = vadd.f32 %v2845_v17, %v8505_v27  ;;  %v3294_v27 = vld [vmem:[%s9447_s26 + $0x58] sm:$0xff]  ;;  %v6436_v47 = vld [vmem:[%s9448_s23 + $0xa] ss:$0 sm:$0xff] }
 0x4c7   : > { %v8676_v2 = vadd.f32 %v2840_v49, %v8502_v36  ;;  %v3295_v36 = vld [vmem:[%s9447_s26 + $0x60] sm:$0xff] }
 0x4c9   : > { %6938 = vmatprep.mubr.msk.f32.mxu1 %vm1794_vm0, %v8676_v2 }
 0x4ca   : > { %6939 = vmatmul.mubr.msk.f32.vlgmr.msra.gmra.mxu1 %vm1794_vm0, %v8679_v19 }
 0x4cb   : > { %6942 = vmatpush3.msra.mxu1 %v3298_v55 }
 0x4cc   : > { %6943 = vmatprep.subr.mxu1 %v3297_v30 }
 0x4cd   : > { %6944 = vmatpush3.msra.mxu1 %v3297_v30 }
 0x4ce   : > { %6945 = vmatprep.subr.mxu1 %v3296_v60 }
 0x4cf   : > { %6946 = vmatpush3.msra.mxu1 %v3296_v60 }
 0x4d0   : > { %6947 = vmatprep.subr.mxu1 %v3295_v36 }
 0x4d1   : > { %6948 = vmatpush3.msra.mxu1 %v3295_v36  ;;  %v6437_v36 = vld [vmem:[%s9448_s23 + $0xb] ss:$0 sm:$0xff] }
 0x4d2   : > { %6949 = vmatprep.subr.mxu1 %v3294_v27 }
 0x4d3   : > { %6950 = vmatpush3.msra.mxu1 %v3294_v27 }
 0x4d4   : > { %6951 = vmatprep.subr.mxu1 %v3293_v1 }
 0x4d5   : > { %6952 = vmatpush3.msra.mxu1 %v3293_v1 }
 0x4d6   : > { %6953 = vmatprep.subr.mxu1 %v3292_v53 }
 0x4d7   : > { %6954 = vmatpush3.msra.mxu1 %v3292_v53 }
 0x4d8   : > { %6955 = vmatprep.subr.mxu1 %v3291_v23 }
 0x4d9   : > { %6956 = vmatpush3.msra.mxu1 %v3291_v23  ;;  %v6438_v23 = vld [vmem:[%s9448_s23 + $0xc] ss:$0 sm:$0xff] }
 0x4da   : > { %6957 = vmatprep.subr.mxu1 %v3290_v62 }
 0x4db   : > { %6958 = vmatpush3.msra.mxu1 %v3290_v62 }
 0x4dc   : > { %6959 = vmatprep.subr.mxu1 %v3289_v8 }
 0x4dd   : > { %6960 = vmatpush3.msra.mxu1 %v3289_v8 }
 0x4de   : > { %6961 = vmatprep.subr.mxu1 %v3288_v37 }
 0x4df   : > { %6962 = vmatpush3.msra.mxu1 %v3288_v37 }
 0x4e0   : > { %6963 = vmatprep.subr.mxu1 %v3287_v58 }
 0x4e1   : > { %6964 = vmatpush3.msra.mxu1 %v3287_v58 }
 0x4e2   : > { %6965 = vmatprep.subr.mxu1 %v3286_v43 }
 0x4e3   : > { %6966 = vmatpush3.msra.mxu1 %v3286_v43 }
 0x4e4   : > { %6967 = vmatprep.subr.mxu1 %v3285_v56 }
 0x4e5   : > { %6968 = vmatpush3.msra.mxu1 %v3285_v56 }
 0x4e6   : > { %6969 = vmatprep.subr.mxu1 %v3284_v50 }
 0x4e7   : > { %6970 = vmatpush3.msra.mxu1 %v3284_v50 }
 0x4e8   : > { %6971 = vmatprep.subr.mxu1 %v3283_v38 }
 0x4e9   : > { %6972 = vmatpush3.msra.mxu1 %v3283_v38 }
 0x58a   : > { %v6940_v44 = vpop.f32.mrf.mxu1 }
 0x58b   : > { %v2939_v7 = vadd.f32 %v6940_v44, %v6424_v35 }
 0x58c   : > { %v2933_v42 = vpop.f32.mrf.mxu1 }
 0x58d   : > { %v2943_v10 = vmax.f32 %v2939_v7, 0.0  ;;  %v2934_v61 = vadd.f32 %v6424_v35, %v2933_v42  ;;  %v6440_v7 = vld [vmem:[%s9448_s23 + $0xe] ss:$0 sm:$0xff] }
 0x58f   : > { %v8716_v54 = vmin.f32 %v2943_v10, 6.0  ;;  %v2942_v16 = vmax.f32 %v2934_v61, 0.0 }
 0x591   : > { %2951 = vst [vmem:[#allocation2 + $0x18] sm:$0xff] %v8716_v54  ;;  %v8719_v22 = vmin.f32 %v2942_v16, 6.0 }
 0x593   : > { %2950 = vst [vmem:[#allocation2 + $0x10] sm:$0xff] %v8719_v22 }
 0x598   : > { %v8727_v62 = vld [vmem:[#allocation2 + $0x19] sm:$0xff] }
 0x599   : > { %v8729_v0 = vld [vmem:[#allocation2 + $0x1a] sm:$0xff] }
 0x59a   : > { %v2953_v13 = vld [vmem:[#allocation2 + $0x9] sm:$0xff]  ;;  %v3040_v1 = vld [vmem:[#allocation2 + $0x11] sm:$0xff]  ;;  %v8731_v4 = vld [vmem:[#allocation2 + $0x1b] sm:$0xff] }
 0x59b   : > { %v2964_v17 = vld [vmem:[#allocation2 + $0xa] sm:$0xff]  ;;  %v2960_v49 = vmul.f32 %v6427_v3, %v2953_v13  ;;  %v3046_v60 = vmul.f32 %v6435_v12, %v2953_v13  ;;  %v3050_v53 = vld [vmem:[#allocation2 + $0x12] sm:$0xff]  ;;  %v8733_v21 = vld [vmem:[#allocation2 + $0x1c] sm:$0xff]  ;;  %v3047_v13 = vmul.f32 %v6435_v12, %v3040_v1 }
 0x59c   : > { %v2975_v48 = vld [vmem:[#allocation2 + $0xb] sm:$0xff]  ;;  %v2971_v55 = vmul.f32 %v6428_v41, %v2964_v17  ;;  %v8735_v40 = vld [vmem:[#allocation2 + $0x1d] sm:$0xff]  ;;  %v3056_v58 = vmul.f32 %v6436_v47, %v2964_v17  ;;  %v3060_v43 = vld [vmem:[#allocation2 + $0x13] sm:$0xff] }
 0x59d   : > { %v2986_v30 = vld [vmem:[#allocation2 + $0xc] sm:$0xff]  ;;  %v8737_v33 = vld [vmem:[#allocation2 + $0x1e] sm:$0xff]  ;;  %v2982_v8 = vmul.f32 %v6429_v24, %v2975_v48  ;;  %v3048_v37 = vadd.f32 %v3046_v60, %v3038_v63  ;;  %v3070_v56 = vld [vmem:[#allocation2 + $0x14] sm:$0xff]  ;;  %v3066_v15 = vmul.f32 %v6437_v36, %v2975_v48 }
 0x59e   : > { %v2997_v27 = vld [vmem:[#allocation2 + $0xd] sm:$0xff]  ;;  %v2973_v31 = vadd.f32 %v2971_v55, %v2960_v49  ;;  %v3080_v50 = vld [vmem:[#allocation2 + $0x15] sm:$0xff]  ;;  %v8743_v41 = vld [vmem:[#allocation2 + $0x1f] sm:$0xff]  ;;  %v2993_v25 = vmul.f32 %v6430_v34, %v2986_v30  ;;  %v3076_v14 = vmul.f32 %v6438_v23, %v2986_v30  ;;  %v3057_v55 = vmul.f32 %v6436_v47, %v3050_v53 }
 0x59f   : > { %v8739_v38 = vld [vmem:[#allocation2 + $0x16] sm:$0xff]  ;;  %v3058_v52 = vadd.f32 %v3056_v58, %v3048_v37  ;;  %v3008_v24 = vld [vmem:[#allocation2 + $0xe] sm:$0xff]  ;;  %v3004_v35 = vmul.f32 %v8707_v9, %v2997_v27  ;;  %v3086_v34 = vmul.f32 %v6439_v11, %v2997_v27  ;;  %v3037_v9 = vmul.f32 %v6434_v5, %v8719_v22 }
 0x5a0   : > { %v8741_v3 = vld [vmem:[#allocation2 + $0x17] sm:$0xff]  ;;  %v2984_v29 = vadd.f32 %v2982_v8, %v2973_v31  ;;  %v3019_v44 = vld [vmem:[#allocation2 + $0xf] sm:$0xff]  ;;  %v3015_v10 = vmul.f32 %v8712_v51, %v3008_v24  ;;  %v3096_v18 = vmul.f32 %v6440_v7, %v3008_v24  ;;  %v3116_v51 = vmul.f32 %v6442_v46, %v8719_v22 }
 0x5a1   : > { %3480 = vst [vmem:[#allocation2 + $0x18] sm:$0xff] %v7879_v6  ;;  %v3068_v32 = vadd.f32 %v3066_v15, %v3058_v52  ;;  %v3026_v16 = vmul.f32 %v6433_v26, %v3019_v44  ;;  %v3106_v57 = vmul.f32 %v6441_v28, %v3019_v44  ;;  %v6443_v48 = vld [vmem:[%s9448_s23 + $0x11] ss:$0 sm:$0xff]  ;;  %v6444_v60 = vld [vmem:[%s9448_s23 + $0x12] ss:$0 sm:$0xff]  ;;  %v3067_v31 = vmul.f32 %v6437_v36, %v3060_v43 }
 0x5a2   : > { %v2995_v39 = vadd.f32 %v2993_v25, %v2984_v29  ;;  %v3126_v30 = vmul.f32 %v6443_v48, %v3040_v1  ;;  %v3136_v8 = vmul.f32 %v6444_v60, %v3050_v53  ;;  %v6445_v37 = vld [vmem:[%s9448_s23 + $0x13] ss:$0 sm:$0xff]  ;;  %v3077_v29 = vmul.f32 %v6438_v23, %v3070_v56  ;;  %v6446_v22 = vld [vmem:[%s9448_s23 + $0x14] ss:$0 sm:$0xff]  ;;  %v6447_v1 = vld [vmem:[%s9448_s23 + $0x15] ss:$0 sm:$0xff] }
 0x5a3   : > { %v3078_v61 = vadd.f32 %v3076_v14, %v3068_v32  ;;  %v3146_v25 = vmul.f32 %v6445_v37, %v3060_v43  ;;  %v3087_v15 = vmul.f32 %v6439_v11, %v3080_v50  ;;  %v3156_v24 = vmul.f32 %v6446_v22, %v3070_v56  ;;  %v6448_v32 = vld [vmem:[%s9448_s23 + $0x16] ss:$0 sm:$0xff]  ;;  %v6450_v11 = vld [vmem:[%s9448_s23 + $0x18] ss:$0 sm:$0xff] }
 0x5a4   : > { %v3006_v42 = vadd.f32 %v3004_v35, %v2995_v39  ;;  %v3097_v36 = vmul.f32 %v6440_v7, %v8739_v38  ;;  %v3166_v53 = vmul.f32 %v6447_v1, %v3080_v50  ;;  %v3107_v23 = vmul.f32 %v6441_v28, %v8741_v3  ;;  %v6451_v7 = vld [vmem:[%s9448_s23 + $0x19] ss:$0 sm:$0xff] }
 0x5a5   : > { %v3088_v6 = vadd.f32 %v3086_v34, %v3078_v61  ;;  %v3176_v44 = vmul.f32 %v6448_v32, %v8739_v38  ;;  %v3117_v56 = vmul.f32 %v6442_v46, %v8716_v54  ;;  %v3196_v28 = vmul.f32 %v6450_v11, %v8716_v54 }
 0x5a6   : > { %v3017_v59 = vadd.f32 %v3015_v10, %v3006_v42  ;;  %v6449_v42 = vld [vmem:[%s9448_s23 + $0x17] ss:$0 sm:$0xff]  ;;  %v3157_v54 = vmul.f32 %v6446_v22, %v8733_v21  ;;  %v3210_v22 = vld [vmem:[#allocation2 + $0x22] sm:$0xff] }
 0x5a7   : > { %v3098_v45 = vadd.f32 %v3096_v18, %v3088_v6  ;;  %v3186_v34 = vmul.f32 %v6449_v42, %v8741_v3  ;;  %v6452_v6 = vld [vmem:[%s9448_s23 + $0x1a] ss:$0 sm:$0xff]  ;;  %v3137_v18 = vmul.f32 %v6444_v60, %v8729_v0  ;;  %v3147_v3 = vmul.f32 %v6445_v37, %v8731_v4  ;;  %v6456_v60 = vld [vmem:[%s9448_s23 + $0x1e] ss:$0 sm:$0xff]  ;;  %v3200_v37 = vld [vmem:[#allocation2 + $0x21] sm:$0xff] }
 0x5a8   : > { %v3028_v20 = vadd.f32 %v3026_v16, %v3017_v59  ;;  %v3127_v59 = vmul.f32 %v6443_v48, %v8727_v62 }
 0x5a9   : > { %v3108_v17 = vadd.f32 %v3106_v57, %v3098_v45  ;;  %v6453_v45 = vld [vmem:[%s9448_s23 + $0x1b] ss:$0 sm:$0xff] }
 0x5aa   : > { %v3039_v63 = vadd.f32 %v3037_v9, %v3028_v20  ;;  %v3206_v9 = vmul.f32 %v6451_v7, %v8727_v62  ;;  %v3226_v48 = vmul.f32 %v6453_v45, %v8731_v4  ;;  %v3167_v62 = vmul.f32 %v6447_v1, %v8735_v40  ;;  %v6458_v1 = vld [vmem:[%s9450_s7] ss:$0 sm:$0xff]  ;;  %s9456_s7 = sld [smem:[#allocation48_spill]] }
 0x5ab   : > { %v3118_v26 = vadd.f32 %v3116_v51, %v3108_v17  ;;  %v3187_v4 = vmul.f32 %v6449_v42, %v8743_v41 }
 0x5ac   : > { %v3049_v49 = vadd.f32 %v3047_v13, %v3039_v63  ;;  %v3216_v63 = vmul.f32 %v6452_v6, %v8729_v0  ;;  %v6454_v13 = vld [vmem:[%s9448_s23 + $0x1c] ss:$0 sm:$0xff] }
 0x5ad   : > { %v3128_v5 = vadd.f32 %v3126_v30, %v3118_v26  ;;  %v3236_v30 = vmul.f32 %v6454_v13, %v8733_v21  ;;  %v3207_v21 = vmul.f32 %v6451_v7, %v3200_v37  ;;  %v3674_v37 = vld [vmem:[%s9454_s16] sm:$0xff] }
 0x5ae   : > { %v3059_v27 = vadd.f32 %v3057_v55, %v3049_v49  ;;  %v6455_v49 = vld [vmem:[%s9448_s23 + $0x1d] ss:$0 sm:$0xff] }
 0x5af   : > { %v3138_v12 = vadd.f32 %v3136_v8, %v3128_v5  ;;  %v3246_v5 = vmul.f32 %v6455_v49, %v8735_v40  ;;  %v3197_v8 = vmul.f32 0.0, %v6450_v11 }
 0x5b0   : > { %v3069_v58 = vadd.f32 %v3067_v31, %v3059_v27  ;;  %v3177_v31 = vmul.f32 %v6448_v32, %v8737_v33 }
 0x5b1   : > { %v3148_v47 = vadd.f32 %v3146_v25, %v3138_v12  ;;  %v3256_v25 = vmul.f32 %v6456_v60, %v8737_v33  ;;  %v3250_v33 = vld [vmem:[#allocation2 + $0x26] sm:$0xff] }
 0x5b2   : > { %v3079_v52 = vadd.f32 %v3077_v29, %v3069_v58  ;;  %v6457_v58 = vld [vmem:[%s9448_s23 + $0x1f] ss:$0 sm:$0xff] }
 0x5b3   : > { %v3158_v35 = vadd.f32 %v3156_v24, %v3148_v47  ;;  %v3266_v47 = vmul.f32 %v6457_v58, %v8743_v41  ;;  %v3220_v24 = vld [vmem:[#allocation2 + $0x23] sm:$0xff] }
 0x5b4   : > { %v3089_v39 = vadd.f32 %v3087_v15, %v3079_v52  ;;  %v3227_v32 = vmul.f32 %v6453_v45, %v3220_v24  ;;  %v3260_v41 = vld [vmem:[#allocation2 + $0x27] sm:$0xff] }
 0x5b5   : > { %v3168_v43 = vadd.f32 %v3166_v53, %v3158_v35  ;;  %v3230_v35 = vld [vmem:[#allocation2 + $0x24] sm:$0xff] }
 0x5b6   : > { %v3099_v14 = vadd.f32 %v3097_v36, %v3089_v39  ;;  %v3217_v36 = vmul.f32 %v6452_v6, %v3210_v22  ;;  %v3383_v45 = vld [vmem:[%s9451_s10] sm:$0xff] }
 0x5b7   : > { %v3178_v61 = vadd.f32 %v3176_v44, %v3168_v43  ;;  %v3237_v44 = vmul.f32 %v6454_v13, %v3230_v35 }
 0x5b8   : > { %v3109_v10 = vadd.f32 %v3107_v23, %v3099_v14  ;;  %v3240_v23 = vld [vmem:[#allocation2 + $0x25] sm:$0xff] }
 0x5b9   : > { %v3188_v16 = vadd.f32 %v3186_v34, %v3178_v61  ;;  %v3257_v34 = vmul.f32 %v6456_v60, %v3250_v33  ;;  %v3680_v60 = vld [vmem:[%s9454_s16 + $0x30] sm:$0xff] }
 0x5ba   : > { %v3119_v50 = vadd.f32 %v3117_v56, %v3109_v10  ;;  %v3247_v10 = vmul.f32 %v6455_v49, %v3240_v23  ;;  %v3687_v49 = vld [vmem:[%s9454_s16 + $0x68] sm:$0xff] }
 0x5bb   : > { %v3198_v20 = vadd.f32 %v3196_v28, %v3188_v16 }
 0x5bc   : > { %v3129_v38 = vadd.f32 %v3127_v59, %v3119_v50  ;;  %v3267_v50 = vmul.f32 %v6457_v58, %v3260_v41  ;;  %v6460_v58 = vld [vmem:[%s9455_s2] ss:$0 sm:$0xff]  ;;  %s9459_s2 = sld [smem:[#allocation52_spill]] }
 0x5bd   : > { %v3208_v46 = vadd.f32 %v3206_v9, %v3198_v20  ;;  %v3385_v20 = vld [vmem:[%s9451_s10 + $0x10] sm:$0xff]  ;;  %v3384_v9 = vld [vmem:[%s9451_s10 + $0x8] sm:$0xff] }
 0x5be   : > { %v3139_v57 = vadd.f32 %v3137_v18, %v3129_v38  ;;  %v3386_v18 = vld [vmem:[%s9451_s10 + $0x18] sm:$0xff]  ;;  %s7706_s10 = sshll.u32 %s7882_s9, 4  ;;  %s7707_s10 = int_to_ptr.vmem [resolvable:$false] %s7706_s10 }
 0x5bf   : > { %v3218_v51 = vadd.f32 %v3216_v63, %v3208_v46  ;;  %6976 = vmatprep.subr.mxu0 %v3386_v18  ;;  %s7708_s11 = scalar_lea.vmem %s7707_s10, 128 }
 0x5c0   : > { %v3149_v17 = vadd.f32 %v3147_v3, %v3139_v57  ;;  %6977 = vmatpush3.msra.mxu0 %v3386_v18  ;;  %v6459_v57 = vld [vmem:[%s9452_s15] ss:$0 sm:$0xff]  ;;  %s9457_s15 = smov %s9456_s7 }
 0x5c1   : > { %v3228_v26 = vadd.f32 %v3226_v48, %v3218_v51  ;;  %6978 = vmatprep.subr.mxu0 %v3385_v20  ;;  %v3689_v51 = vld [vmem:[%s9453_s28 + $0x78] sm:$0xff]  ;;  %v3688_v48 = vld [vmem:[%s9454_s16 + $0x70] sm:$0xff]  ;;  %v6464_v24 = vld [vmem:[%s9457_s15 + $0x1] ss:$0 sm:$0xff]  ;;  %s9458_s28 = sld [smem:[#allocation49_spill]] }
 0x5c2   : > { %v3159_v55 = vadd.f32 %v3157_v54, %v3149_v17  ;;  %6979 = vmatpush3.msra.mxu0 %v3385_v20  ;;  %s9460_s5 = smov %s9459_s2 }
 0x5c3   : > { %v3238_v0 = vadd.f32 %v3236_v30, %v3228_v26  ;;  %6980 = vmatprep.subr.mxu0 %v3384_v9  ;;  %v3682_v26 = vld [vmem:[%s9454_s16 + $0x40] sm:$0xff]  ;;  %v3681_v30 = vld [vmem:[%s9454_s16 + $0x38] sm:$0xff] }
 0x5c4   : > { %v3169_v27 = vadd.f32 %v3167_v62, %v3159_v55  ;;  %6981 = vmatpush3.msra.mxu0 %v3384_v9  ;;  %v3684_v55 = vld [vmem:[%s9454_s16 + $0x50] sm:$0xff]  ;;  %v3683_v62 = vld [vmem:[%s9454_s16 + $0x48] sm:$0xff] }
 0x5c5   : > { %v3248_v12 = vadd.f32 %v3246_v5, %v3238_v0  ;;  %6982 = vmatprep.subr.mxu0 %v3383_v45  ;;  %v3677_v0 = vld [vmem:[%s9454_s16 + $0x18] sm:$0xff]  ;;  %v3676_v5 = vld [vmem:[%s9454_s16 + $0x10] sm:$0xff] }
 0x5c6   : > { %v3179_v29 = vadd.f32 %v3177_v31, %v3169_v27  ;;  %6983 = vmatpush3.msra.mxu0 %v3383_v45  ;;  %v3679_v27 = vld [vmem:[%s9454_s16 + $0x28] sm:$0xff]  ;;  %v3678_v31 = vld [vmem:[%s9454_s16 + $0x20] sm:$0xff] }
 0x5c7   : > { %v3258_v15 = vadd.f32 %v3256_v25, %v3248_v12  ;;  %6987 = vmatprep.subr.mxu0 %v3689_v51 }
 0x5c8   : > { %v3189_v52 = vadd.f32 %v3187_v4, %v3179_v29 }
 0x5c9   : > { %v3268_v40 = vadd.f32 %v3266_v47, %v3258_v15  ;;  %v6463_v47 = vld [vmem:[%s9456_s7] ss:$0 sm:$0xff]  ;;  %s9461_s7 = sld [smem:[#allocation51_spill]] }
 0x5ca   : > { %v3199_v39 = vadd.f32 %v3197_v8, %v3189_v52  ;;  %v3675_v8 = vld [vmem:[%s9454_s16 + $0x8] sm:$0xff] }
 0x5cb   : > { %v3277_v14 = vadd.f32 %v6458_v1, %v3268_v40 }
 0x5cc   : > { %v3209_v53 = vadd.f32 %v3207_v21, %v3199_v39  ;;  %v6465_v39 = vld [vmem:[%s9457_s15 + $0x2] ss:$0 sm:$0xff] }
 0x5cd   : > { %v3279_v42 = vmax.f32 %v3277_v14, 0.0 }
 0x5ce   : > { %v3219_v43 = vadd.f32 %v3217_v36, %v3209_v53 }
 0x5cf   : > { %v3281_v56 = vmin.f32 %v3279_v42, 6.0 }
 0x5d0   : > { %v3229_v11 = vadd.f32 %v3227_v32, %v3219_v43  ;;  %v6466_v43 = vld [vmem:[%s9457_s15 + $0x3] ss:$0 sm:$0xff] }
 0x5d1   : > { %6973 = vmatprep.mubr.f32.mxu1 %v3281_v56 }
 0x5d2   : > { %v3239_v61 = vadd.f32 %v3237_v44, %v3229_v11  ;;  %v6467_v11 = vld [vmem:[%s9457_s15 + $0x4] ss:$0 sm:$0xff] }
 0x5d4   : > { %v3249_v7 = vadd.f32 %v3247_v10, %v3239_v61 }
 0x5d6   : > { %v3259_v59 = vadd.f32 %v3257_v34, %v3249_v7 }
 0x5d8   : > { %v3269_v16 = vadd.f32 %v3267_v50, %v3259_v59 }
 0x5da   : > { %v3278_v28 = vadd.f32 %v6458_v1, %v3269_v16  ;;  %v3490_v1 = vmul.f32 0.0, %v6463_v47 }
 0x5dc   : > { %v3280_v6 = vmax.f32 %v3278_v28, 0.0 }
 0x5de   : > { %v3282_v38 = vmin.f32 %v3280_v6, 6.0 }
 0x5e0   : > { %6974 = vmatmul.mubr.f32.vlgmr.msra.gmra.mxu1 %v3282_v38  ;;  %v8848_v38 = vld [vmem:[#allocation2 + $0x20] sm:$0xff] }
 0x5e1   : > { %4484 = vst.msk [vmem:[#allocation3] sm:$0x1] %vm4483_vm2, %v8848_v38  ;;  %4485 = vst.msk [vmem:[#allocation3 + $0x11] sm:$0x1] %vm4483_vm2, %v8848_v38 }
 0x6a0   : > { %v6975_v3 = vpop.f32.mrf.mxu1 }
 0x6a1   : > { %v3378_v46 = vadd.f32 %v6975_v3, %v6459_v57 }
 0x6a2   : > { %v3372_v63 = vpop.f32.mrf.mxu1 }
 0x6a3   : > { %v3373_v13 = vadd.f32 %v6459_v57, %v3372_v63  ;;  %v8799_v54 = vadd.f32 %v3378_v46, %v8679_v19  ;;  %v3685_v19 = vld [vmem:[%s9454_s16 + $0x58] sm:$0xff] }
 0x6a5   : > { %v8796_v17 = vadd.f32 %v3373_v13, %v8676_v2  ;;  %v3686_v2 = vld [vmem:[%s9454_s16 + $0x60] sm:$0xff] }
 0x6a7   : > { %6984 = vmatprep.mubr.msk.f32.mxu0 %vm1794_vm0, %v8796_v17 }
 0x6a8   : > { %6985 = vmatmul.mubr.msk.f32.vlgmr.msra.gmra.mxu0 %vm1794_vm0, %v8799_v54 }
 0x6a9   : > { %6988 = vmatpush3.msra.mxu0 %v3689_v51  ;;  %v6468_v51 = vld [vmem:[%s9457_s15 + $0x5] ss:$0 sm:$0xff] }
 0x6aa   : > { %6989 = vmatprep.subr.mxu0 %v3688_v48 }
 0x6ab   : > { %6990 = vmatpush3.msra.mxu0 %v3688_v48 }
 0x6ac   : > { %6991 = vmatprep.subr.mxu0 %v3687_v49 }
 0x6ad   : > { %6992 = vmatpush3.msra.mxu0 %v3687_v49 }
 0x6ae   : > { %6993 = vmatprep.subr.mxu0 %v3686_v2 }
 0x6af   : > { %6994 = vmatpush3.msra.mxu0 %v3686_v2 }
 0x6b0   : > { %6995 = vmatprep.subr.mxu0 %v3685_v19 }
 0x6b1   : > { %6996 = vmatpush3.msra.mxu0 %v3685_v19 }
 0x6b2   : > { %6997 = vmatprep.subr.mxu0 %v3684_v55 }
 0x6b3   : > { %6998 = vmatpush3.msra.mxu0 %v3684_v55 }
 0x6b4   : > { %6999 = vmatprep.subr.mxu0 %v3683_v62 }
 0x6b5   : > { %7000 = vmatpush3.msra.mxu0 %v3683_v62  ;;  %v6469_v62 = vld [vmem:[%s9457_s15 + $0x6] ss:$0 sm:$0xff] }
 0x6b6   : > { %7001 = vmatprep.subr.mxu0 %v3682_v26 }
 0x6b7   : > { %7002 = vmatpush3.msra.mxu0 %v3682_v26 }
 0x6b8   : > { %7003 = vmatprep.subr.mxu0 %v3681_v30 }
 0x6b9   : > { %7004 = vmatpush3.msra.mxu0 %v3681_v30 }
 0x6ba   : > { %7005 = vmatprep.subr.mxu0 %v3680_v60 }
 0x6bb   : > { %7006 = vmatpush3.msra.mxu0 %v3680_v60 }
 0x6bc   : > { %7007 = vmatprep.subr.mxu0 %v3679_v27 }
 0x6bd   : > { %7008 = vmatpush3.msra.mxu0 %v3679_v27 }
 0x6be   : > { %7009 = vmatprep.subr.mxu0 %v3678_v31 }
 0x6bf   : > { %7010 = vmatpush3.msra.mxu0 %v3678_v31 }
 0x6c0   : > { %7011 = vmatprep.subr.mxu0 %v3677_v0 }
 0x6c1   : > { %7012 = vmatpush3.msra.mxu0 %v3677_v0  ;;  %v6470_v0 = vld [vmem:[%s9457_s15 + $0x7] ss:$0 sm:$0xff] }
 0x6c2   : > { %7013 = vmatprep.subr.mxu0 %v3676_v5 }
 0x6c3   : > { %7014 = vmatpush3.msra.mxu0 %v3676_v5 }
 0x6c4   : > { %7015 = vmatprep.subr.mxu0 %v3675_v8 }
 0x6c5   : > { %7016 = vmatpush3.msra.mxu0 %v3675_v8 }
 0x6c6   : > { %7017 = vmatprep.subr.mxu0 %v3674_v37 }
 0x6c7   : > { %7018 = vmatpush3.msra.mxu0 %v3674_v37 }
 0x768   : > { %v6986_v29 = vpop.f32.mrf.mxu0 }
 0x769   : > { %v3472_v4 = vadd.f32 %v6986_v29, %v6460_v58  ;;  %v6471_v29 = vld [vmem:[%s9457_s15 + $0x8] ss:$0 sm:$0xff] }
 0x76a   : > { %v3466_v12 = vpop.f32.mrf.mxu0 }
 0x76b   : > { %v3476_v25 = vmax.f32 %v3472_v4, 0.0  ;;  %v3467_v22 = vadd.f32 %v6460_v58, %v3466_v12 }
 0x76d   : > { %v8822_v52 = vmin.f32 %v3476_v25, 6.0  ;;  %v3475_v21 = vmax.f32 %v3467_v22, 0.0 }
 0x76f   : > { %3482 = vst [vmem:[#allocation2 + $0x10] sm:$0xff] %v8822_v52  ;;  %v8825_v15 = vmin.f32 %v3475_v21, 6.0  ;;  %v6472_v21 = vld [vmem:[%s9457_s15 + $0x9] ss:$0 sm:$0xff] }
 0x771   : > { %3481 = vst [vmem:[#allocation2 + $0x8] sm:$0xff] %v8825_v15  ;;  %v3491_v53 = vmul.f32 %v6463_v47, %v8825_v15 }
 0x776   : > { %v3581_v10 = vld [vmem:[#allocation2 + $0x11] sm:$0xff] }
 0x777   : > { %v3591_v56 = vld [vmem:[#allocation2 + $0x12] sm:$0xff] }
 0x778   : > { %v3494_v36 = vld [vmem:[#allocation2 + $0x1] sm:$0xff]  ;;  %v8831_v40 = vld [vmem:[#allocation2 + $0x9] sm:$0xff]  ;;  %v3601_v41 = vld [vmem:[#allocation2 + $0x13] sm:$0xff] }
 0x779   : > { %v3505_v35 = vld [vmem:[#allocation2 + $0x2] sm:$0xff]  ;;  %v3501_v32 = vmul.f32 %v6464_v24, %v3494_v36  ;;  %v3502_v14 = vmul.f32 %v6464_v24, %v8831_v40  ;;  %v8835_v23 = vld [vmem:[#allocation2 + $0xa] sm:$0xff]  ;;  %v8841_v61 = vld [vmem:[#allocation2 + $0x14] sm:$0xff] }
 0x77a   : > { %v3516_v44 = vld [vmem:[#allocation2 + $0x3] sm:$0xff]  ;;  %v8838_v42 = vld [vmem:[#allocation2 + $0xb] sm:$0xff]  ;;  %v3512_v50 = vmul.f32 %v6465_v39, %v3505_v35  ;;  %v3513_v59 = vmul.f32 %v6465_v39, %v8835_v23  ;;  %v8844_v28 = vld [vmem:[#allocation2 + $0x15] sm:$0xff]  ;;  %v3578_v39 = vmul.f32 %v6471_v29, %v8822_v52 }
 0x77b   : > { %v3527_v33 = vld [vmem:[#allocation2 + $0x4] sm:$0xff]  ;;  %v3503_v34 = vadd.f32 %v3501_v32, %v3490_v1  ;;  %v3504_v7 = vadd.f32 %v3502_v14, %v3491_v53  ;;  %v3528_v16 = vld [vmem:[#allocation2 + $0xc] sm:$0xff]  ;;  %v8846_v6 = vld [vmem:[#allocation2 + $0x16] sm:$0xff]  ;;  %v3523_v3 = vmul.f32 %v6466_v43, %v3516_v44  ;;  %v3524_v46 = vmul.f32 %v6466_v43, %v8838_v42 }
 0x77c   : > { %3870 = vst [vmem:[#allocation2] sm:$0x1f] %v8848_v38  ;;  %v8851_v18 = vld [vmem:[#allocation2 + $0xe] sm:$0xff]  ;;  %v8855_v9 = vld [vmem:[#allocation2 + $0x17] sm:$0xff]  ;;  %v3538_v63 = vld [vmem:[#allocation2 + $0x5] sm:$0xff]  ;;  %v3534_v2 = vmul.f32 %v6467_v11, %v3527_v33  ;;  %v3535_v19 = vmul.f32 %v6467_v11, %v3528_v16  ;;  %v3577_v1 = vmul.f32 %v6471_v29, %v8825_v15  ;;  %v3587_v32 = vmul.f32 %v6472_v21, %v8831_v40 }
 0x77d   : > { %v8853_v20 = vld [vmem:[#allocation2 + $0xf] sm:$0xff]  ;;  %v3514_v45 = vadd.f32 %v3512_v50, %v3503_v34  ;;  %v3515_v57 = vadd.f32 %v3513_v59, %v3504_v7  ;;  %v3549_v55 = vld [vmem:[#allocation2 + $0x6] sm:$0xff]  ;;  %v3545_v60 = vmul.f32 %v6468_v51, %v3538_v63  ;;  %v3557_v58 = vmul.f32 %v6469_v62, %v8851_v18  ;;  %v6477_v63 = vld [vmem:[%s9457_s15 + $0xe] ss:$0 sm:$0xff] }
 0x77e   : > { %3871 = vst [vmem:[#allocation2 + $0x15] sm:$0x1f] %v8848_v38  ;;  %v3539_v13 = vld [vmem:[#allocation2 + $0xd] sm:$0xff]  ;;  %v3556_v37 = vmul.f32 %v6469_v62, %v3549_v55  ;;  %v3568_v22 = vmul.f32 %v6470_v0, %v8853_v20  ;;  %v6473_v36 = vld [vmem:[%s9457_s15 + $0xa] ss:$0 sm:$0xff]  ;;  %v3588_v14 = vmul.f32 %v6472_v21, %v3581_v10 }
 0x77f   : > { %v3525_v48 = vadd.f32 %v3523_v3, %v3514_v45  ;;  %v3526_v49 = vadd.f32 %v3524_v46, %v3515_v57  ;;  %v3546_v27 = vmul.f32 %v6468_v51, %v3539_v13  ;;  %v3560_v31 = vld [vmem:[#allocation2 + $0x7] sm:$0xff]  ;;  %v3597_v11 = vmul.f32 %v6473_v36, %v8835_v23  ;;  %v6479_v55 = vld [vmem:[%s9457_s15 + $0x10] ss:$0 sm:$0xff] }
 0x780   : > { %v3567_v25 = vmul.f32 %v6470_v0, %v3560_v31  ;;  %v6474_v43 = vld [vmem:[%s9457_s15 + $0xb] ss:$0 sm:$0xff]  ;;  %v3598_v34 = vmul.f32 %v6473_v36, %v3591_v56  ;;  %v6475_v7 = vld [vmem:[%s9457_s15 + $0xc] ss:$0 sm:$0xff]  ;;  %v6476_v57 = vld [vmem:[%s9457_s15 + $0xd] ss:$0 sm:$0xff]  ;;  %v3658_v62 = vmul.f32 %v8848_v38, %v6479_v55 }
 0x781   : > { %v3536_v26 = vadd.f32 %v3534_v2, %v3525_v48  ;;  %v3537_v30 = vadd.f32 %v3535_v19, %v3526_v49  ;;  %v3607_v59 = vmul.f32 %v6474_v43, %v8838_v42  ;;  %v3608_v45 = vmul.f32 %v6474_v43, %v3601_v41  ;;  %v6478_v56 = vld [vmem:[%s9457_s15 + $0xf] ss:$0 sm:$0xff]  ;;  %v4011_v43 = vld [vmem:[%s9462_s6 + $0x30] sm:$0xff] }
 0x782   : > { %v3617_v40 = vmul.f32 %v6475_v7, %v3528_v16  ;;  %v3618_v10 = vmul.f32 %v6475_v7, %v8841_v61  ;;  %v3627_v49 = vmul.f32 %v6476_v57, %v3539_v13  ;;  %v3628_v23 = vmul.f32 %v6476_v57, %v8844_v28  ;;  %v3775_v29 = vld [vmem:[%s9460_s5 + $0x8] sm:$0xff] }
 0x783   : > { %v3547_v5 = vadd.f32 %v3545_v60, %v3536_v26  ;;  %v3548_v8 = vadd.f32 %v3546_v27, %v3537_v30  ;;  %v3637_v42 = vmul.f32 %v6477_v63, %v8851_v18  ;;  %v3638_v41 = vmul.f32 %v6477_v63, %v8846_v6  ;;  %v6480_v27 = vld [vmem:[%s9458_s28] ss:$0 sm:$0xff]  ;;  %v4018_v36 = vld [vmem:[%s9462_s6 + $0x68] sm:$0xff]  ;;  %s9463_s28 = sld [smem:[#allocation53_spill]] }
 0x784   : > { %v3647_v61 = vmul.f32 %v6478_v56, %v8853_v20  ;;  %v3648_v13 = vmul.f32 %v6478_v56, %v8855_v9  ;;  %v3657_v28 = vmul.f32 %v6479_v55, %v8822_v52  ;;  %v3777_v9 = vld [vmem:[%s9459_s2 + $0x18] sm:$0xff]  ;;  %v3774_v52 = vld [vmem:[%s9460_s5] sm:$0xff]  ;;  %v4006_v7 = vld [vmem:[%s9462_s6 + $0x8] sm:$0xff]  ;;  %s9464_s2 = sld [smem:[#allocation54_spill]] }
 0x785   : > { %v3558_v4 = vadd.f32 %v3556_v37, %v3547_v5  ;;  %v3559_v12 = vadd.f32 %v3557_v58, %v3548_v8  ;;  %7022 = vmatprep.subr.mxu1 %v3777_v9  ;;  %v3776_v58 = vld [vmem:[%s9460_s5 + $0x10] sm:$0xff] }
 0x786   : > { %7023 = vmatpush3.msra.mxu1 %v3777_v9 }
 0x787   : > { %v3569_v47 = vadd.f32 %v3567_v25, %v3558_v4  ;;  %v3570_v24 = vadd.f32 %v3568_v22, %v3559_v12  ;;  %7024 = vmatprep.subr.mxu1 %v3776_v58  ;;  %v6481_v4 = vld [vmem:[%s9461_s7] ss:$0 sm:$0xff]  ;;  %s9466_s7 = sld [smem:[#allocation55_spill]] }
 0x788   : > { %7025 = vmatpush3.msra.mxu1 %v3776_v58 }
 0x789   : > { %v3579_v35 = vadd.f32 %v3577_v1, %v3569_v47  ;;  %v3580_v53 = vadd.f32 %v3578_v39, %v3570_v24  ;;  %7026 = vmatprep.subr.mxu1 %v3775_v29  ;;  %v4020_v1 = vld [vmem:[%s9462_s6 + $0x78] sm:$0xff]  ;;  %v4019_v39 = vld [vmem:[%s9462_s6 + $0x70] sm:$0xff] }
 0x78a   : > { %7027 = vmatpush3.msra.mxu1 %v3775_v29  ;;  %s9465_s5 = smov %s9464_s2 }
 0x78b   : > { %v3589_v44 = vadd.f32 %v3587_v32, %v3579_v35  ;;  %v3590_v33 = vadd.f32 %v3588_v14, %v3580_v53  ;;  %7028 = vmatprep.subr.mxu1 %v3774_v52  ;;  %v4015_v35 = vld [vmem:[%s9462_s6 + $0x50] sm:$0xff]  ;;  %v4014_v53 = vld [vmem:[%s9462_s6 + $0x48] sm:$0xff]  ;;  %v4013_v32 = vld [vmem:[%s9462_s6 + $0x40] sm:$0xff] }
 0x78c   : > { %7029 = vmatpush3.msra.mxu1 %v3774_v52  ;;  %v4012_v14 = vld [vmem:[%s9462_s6 + $0x38] sm:$0xff]  ;;  %v6489_v9 = vld [vmem:[%s9465_s5 + $0x4] ss:$0 sm:$0xff] }
 0x78d   : > { %v3599_v50 = vadd.f32 %v3597_v11, %v3589_v44  ;;  %v3600_v15 = vadd.f32 %v3598_v34, %v3590_v33  ;;  %7033 = vmatprep.subr.mxu1 %v4020_v1  ;;  %v4010_v44 = vld [vmem:[%s9462_s6 + $0x28] sm:$0xff]  ;;  %v4009_v33 = vld [vmem:[%s9462_s6 + $0x20] sm:$0xff]  ;;  %v4008_v11 = vld [vmem:[%s9462_s6 + $0x18] sm:$0xff] }
 0x78e   : > { %v4007_v34 = vld [vmem:[%s9462_s6 + $0x10] sm:$0xff] }
 0x78f   : > { %v3609_v3 = vadd.f32 %v3607_v59, %v3599_v50  ;;  %v3610_v46 = vadd.f32 %v3608_v45, %v3600_v15  ;;  %v4005_v50 = vld [vmem:[%s9462_s6] sm:$0xff] }
 0x790   : > { %v6482_v15 = vld [vmem:[%s9463_s28] ss:$0 sm:$0xff]  ;;  %s9467_s28 = sld [smem:[#allocation58_spill]] }
 0x791   : > { %v3619_v51 = vadd.f32 %v3617_v40, %v3609_v3  ;;  %v3620_v48 = vadd.f32 %v3618_v10, %v3610_v46 }
 0x793   : > { %v3629_v2 = vadd.f32 %v3627_v49, %v3619_v51  ;;  %v3630_v19 = vadd.f32 %v3628_v23, %v3620_v48  ;;  %v6485_v51 = vld [vmem:[%s9464_s2] ss:$0 sm:$0xff]  ;;  %v6486_v48 = vld [vmem:[%s9465_s5 + $0x1] ss:$0 sm:$0xff]  ;;  %v6487_v49 = vld [vmem:[%s9465_s5 + $0x2] ss:$0 sm:$0xff] }
 0x794   : > { %s9469_s2 = sld [smem:[#allocation57_spill]] }
 0x795   : > { %v3639_v16 = vadd.f32 %v3637_v42, %v3629_v2  ;;  %v3640_v26 = vadd.f32 %v3638_v41, %v3630_v19  ;;  %v6488_v19 = vld [vmem:[%s9465_s5 + $0x3] ss:$0 sm:$0xff] }
 0x797   : > { %v3649_v30 = vadd.f32 %v3647_v61, %v3639_v16  ;;  %v3650_v60 = vadd.f32 %v3648_v13, %v3640_v26 }
 0x799   : > { %v3659_v18 = vadd.f32 %v3657_v28, %v3649_v30  ;;  %v3660_v31 = vadd.f32 %v3658_v62, %v3650_v60 }
 0x79b   : > { %v3668_v6 = vadd.f32 %v6480_v27, %v3659_v18  ;;  %v3669_v0 = vadd.f32 %v6480_v27, %v3660_v31 }
 0x79d   : > { %v3670_v5 = vmax.f32 %v3668_v6, 0.0  ;;  %v3671_v8 = vmax.f32 %v3669_v0, 0.0 }
 0x79f   : > { %v3672_v37 = vmin.f32 %v3670_v5, 6.0  ;;  %v3673_v20 = vmin.f32 %v3671_v8, 6.0 }
 0x7a1   : > { %7019 = vmatprep.mubr.f32.mxu0 %v3672_v37 }
 0x7a2   : > { %7020 = vmatmul.mubr.f32.vlgmr.msra.gmra.mxu0 %v3673_v20 }
 0x862   : > { %v7021_v12 = vpop.f32.mrf.mxu0 }
 0x863   : > { %v3769_v25 = vadd.f32 %v7021_v12, %v6481_v4 }
 0x864   : > { %v3763_v22 = vpop.f32.mrf.mxu0 }
 0x865   : > { %v3764_v21 = vadd.f32 %v6481_v4, %v3763_v22  ;;  %v8896_v24 = vadd.f32 %v3769_v25, %v8799_v54  ;;  %v4016_v54 = vld [vmem:[%s9462_s6 + $0x58] sm:$0xff]  ;;  %v6490_v22 = vld [vmem:[%s9465_s5 + $0x5] ss:$0 sm:$0xff] }
 0x867   : > { %v8893_v47 = vadd.f32 %v3764_v21, %v8796_v17  ;;  %v4017_v17 = vld [vmem:[%s9462_s6 + $0x60] sm:$0xff]  ;;  %s9468_s6 = smov %s9467_s28 }
 0x869   : > { %7030 = vmatprep.mubr.msk.f32.mxu1 %vm1794_vm0, %v8893_v47 }
 0x86a   : > { %7031 = vmatmul.mubr.msk.f32.vlgmr.msra.gmra.mxu1 %vm1794_vm0, %v8896_v24 }
 0x86b   : > { %7034 = vmatpush3.msra.mxu1 %v4020_v1 }
 0x86c   : > { %7035 = vmatprep.subr.mxu1 %v4019_v39 }
 0x86d   : > { %7036 = vmatpush3.msra.mxu1 %v4019_v39 }
 0x86e   : > { %7037 = vmatprep.subr.mxu1 %v4018_v36 }
 0x86f   : > { %7038 = vmatpush3.msra.mxu1 %v4018_v36 }
 0x870   : > { %7039 = vmatprep.subr.mxu1 %v4017_v17 }
 0x871   : > { %7040 = vmatpush3.msra.mxu1 %v4017_v17 }
 0x872   : > { %7041 = vmatprep.subr.mxu1 %v4016_v54 }
 0x873   : > { %7042 = vmatpush3.msra.mxu1 %v4016_v54  ;;  %v6491_v54 = vld [vmem:[%s9465_s5 + $0x6] ss:$0 sm:$0xff] }
 0x874   : > { %7043 = vmatprep.subr.mxu1 %v4015_v35 }
 0x875   : > { %7044 = vmatpush3.msra.mxu1 %v4015_v35 }
 0x876   : > { %7045 = vmatprep.subr.mxu1 %v4014_v53 }
 0x877   : > { %7046 = vmatpush3.msra.mxu1 %v4014_v53 }
 0x878   : > { %7047 = vmatprep.subr.mxu1 %v4013_v32 }
 0x879   : > { %7048 = vmatpush3.msra.mxu1 %v4013_v32 }
 0x87a   : > { %7049 = vmatprep.subr.mxu1 %v4012_v14 }
 0x87b   : > { %7050 = vmatpush3.msra.mxu1 %v4012_v14 }
 0x87c   : > { %7051 = vmatprep.subr.mxu1 %v4011_v43 }
 0x87d   : > { %7052 = vmatpush3.msra.mxu1 %v4011_v43 }
 0x87e   : > { %7053 = vmatprep.subr.mxu1 %v4010_v44 }
 0x87f   : > { %7054 = vmatpush3.msra.mxu1 %v4010_v44  ;;  %v6492_v44 = vld [vmem:[%s9465_s5 + $0x7] ss:$0 sm:$0xff] }
 0x880   : > { %7055 = vmatprep.subr.mxu1 %v4009_v33 }
 0x881   : > { %7056 = vmatpush3.msra.mxu1 %v4009_v33 }
 0x882   : > { %7057 = vmatprep.subr.mxu1 %v4008_v11 }
 0x883   : > { %7058 = vmatpush3.msra.mxu1 %v4008_v11 }
 0x884   : > { %7059 = vmatprep.subr.mxu1 %v4007_v34 }
 0x885   : > { %7060 = vmatpush3.msra.mxu1 %v4007_v34 }
 0x886   : > { %7061 = vmatprep.subr.mxu1 %v4006_v7 }
 0x887   : > { %7062 = vmatpush3.msra.mxu1 %v4006_v7 }
 0x888   : > { %7063 = vmatprep.subr.mxu1 %v4005_v50 }
 0x889   : > { %7064 = vmatpush3.msra.mxu1 %v4005_v50  ;;  %v6493_v50 = vld [vmem:[%s9465_s5 + $0x8] ss:$0 sm:$0xff] }
 0x88a   : > { %7114 = vmatprep.subr.mxu1 %v8848_v38 }
 0x92a   : > { %v7032_v59 = vpop.f32.mrf.mxu1 }
 0x92b   : > { %v3863_v45 = vadd.f32 %v7032_v59, %v6482_v15 }
 0x92c   : > { %v3857_v57 = vpop.f32.mrf.mxu1 }
 0x92d   : > { %v3867_v3 = vmax.f32 %v3863_v45, 0.0  ;;  %v3858_v46 = vadd.f32 %v6482_v15, %v3857_v57 }
 0x92f   : > { %v3869_v40 = vmin.f32 %v3867_v3, 6.0  ;;  %v3866_v10 = vmax.f32 %v3858_v46, 0.0  ;;  %v6494_v3 = vld [vmem:[%s9465_s5 + $0x9] ss:$0 sm:$0xff] }
 0x931   : > { %3873 = vst [vmem:[#allocation2 + $0xd] sm:$0xff] %v3869_v40  ;;  %v3868_v63 = vmin.f32 %v3866_v10, 6.0  ;;  %v3937_v53 = vmul.f32 %v6490_v22, %v3869_v40 }
 0x933   : > { %3872 = vst [vmem:[#allocation2 + $0x5] sm:$0xff] %v3868_v63  ;;  %v3936_v17 = vmul.f32 %v6490_v22, %v3868_v63 }
 0x938   : > { %v3941_v61 = vld [vmem:[#allocation2 + $0xe] sm:$0xff] }
 0x939   : > { %v3952_v13 = vld [vmem:[#allocation2 + $0xf] sm:$0xff]  ;;  %v3948_v11 = vmul.f32 %v6491_v54, %v3941_v61 }
 0x93a   : > { %v3874_v23 = vld [vmem:[#allocation2] sm:$0xff]  ;;  %v3875_v56 = vld [vmem:[#allocation2 + $0x8] sm:$0xff]  ;;  %v3962_v28 = vld [vmem:[#allocation2 + $0x10] sm:$0xff]  ;;  %v3959_v59 = vmul.f32 %v6492_v44, %v3952_v13 }
 0x93b   : > { %v3885_v2 = vld [vmem:[#allocation2 + $0x1] sm:$0xff]  ;;  %v3881_v42 = vmul.f32 %v6485_v51, %v3874_v23  ;;  %v3882_v41 = vmul.f32 %v6485_v51, %v3875_v56  ;;  %v3886_v55 = vld [vmem:[#allocation2 + $0x9] sm:$0xff]  ;;  %v3972_v27 = vld [vmem:[#allocation2 + $0x11] sm:$0xff]  ;;  %v3968_v57 = vmul.f32 %v6493_v50, %v3875_v56  ;;  %v3969_v10 = vmul.f32 %v6493_v50, %v3962_v28 }
 0x93c   : > { %v3892_v62 = vmul.f32 %v6486_v48, %v3885_v2  ;;  %v3896_v16 = vld [vmem:[#allocation2 + $0x2] sm:$0xff]  ;;  %v3897_v26 = vld [vmem:[#allocation2 + $0xa] sm:$0xff]  ;;  %v3893_v30 = vmul.f32 %v6486_v48, %v3886_v55  ;;  %v3982_v5 = vld [vmem:[#allocation2 + $0x12] sm:$0xff]  ;;  %v3978_v40 = vmul.f32 %v6494_v3, %v3886_v55 }
 0x93d   : > { %v3907_v60 = vld [vmem:[#allocation2 + $0x3] sm:$0xff]  ;;  %4201 = vst [vmem:[#allocation2] sm:$0x7] %v8848_v38  ;;  %v3903_v31 = vmul.f32 %v6487_v49, %v3896_v16  ;;  %v3908_v6 = vld [vmem:[#allocation2 + $0xb] sm:$0xff]  ;;  %v3904_v37 = vmul.f32 %v6487_v49, %v3897_v26  ;;  %v3979_v49 = vmul.f32 %v6494_v3, %v3972_v27  ;;  %v4108_v28 = vld [vmem:[%s9467_s28 + $0x18] sm:$0xff]  ;;  %s9472_s28 = sld [smem:[#allocation60_spill]] }
 0x93e   : > { %v3894_v18 = vadd.f32 %v3892_v62, %v3881_v42  ;;  %v3919_v0 = vld [vmem:[#allocation2 + $0xc] sm:$0xff]  ;;  %v3895_v8 = vadd.f32 %v3893_v30, %v3882_v41  ;;  %v3918_v20 = vld [vmem:[#allocation2 + $0x4] sm:$0xff]  ;;  %v3914_v29 = vmul.f32 %v6488_v19, %v3907_v60  ;;  %v3915_v4 = vmul.f32 %v6488_v19, %v3908_v6  ;;  %v6496_v41 = vld [vmem:[%s9466_s7] ss:$0 sm:$0xff]  ;;  %7068 = vmatprep.subr.mxu0 %v4108_v28  ;;  %s9471_s7 = sld [smem:[#allocation59_spill]] }
 0x93f   : > { %4202 = vst [vmem:[#allocation2 + $0x13] sm:$0x7] %v8848_v38  ;;  %v3925_v25 = vmul.f32 %v6489_v9, %v3918_v20  ;;  %v3926_v1 = vmul.f32 %v6489_v9, %v3919_v0  ;;  %v3940_v39 = vld [vmem:[#allocation2 + $0x6] sm:$0xff]  ;;  %7069 = vmatpush3.msra.mxu0 %v4108_v28 }
 0x940   : > { %v3905_v58 = vadd.f32 %v3903_v31, %v3894_v18  ;;  %v3906_v52 = vadd.f32 %v3904_v37, %v3895_v8  ;;  %v3951_v32 = vld [vmem:[#allocation2 + $0x7] sm:$0xff]  ;;  %v3947_v43 = vmul.f32 %v6491_v54, %v3940_v39  ;;  %v6497_v31 = vld [vmem:[%s9469_s2] ss:$0 sm:$0xff]  ;;  %s9474_s2 = sld [smem:[#allocation65_spill]] }
 0x941   : > { %v3958_v7 = vmul.f32 %v6492_v44, %v3951_v32  ;;  %v6495_v51 = vld [vmem:[%s9465_s5 + $0xa] ss:$0 sm:$0xff]  ;;  %s9470_s5 = sld [smem:[#allocation61_spill]]  ;;  %v4105_v18 = vld [vmem:[%s9468_s6] sm:$0xff] }
 0x942   : > { %v3916_v12 = vadd.f32 %v3914_v29, %v3905_v58  ;;  %v3917_v21 = vadd.f32 %v3915_v4, %v3906_v52  ;;  %v3988_v2 = vmul.f32 %v6495_v51, %v3897_v26  ;;  %v3989_v42 = vmul.f32 %v6495_v51, %v3982_v5  ;;  %v4107_v26 = vld [vmem:[%s9468_s6 + $0x10] sm:$0xff]  ;;  %v4106_v27 = vld [vmem:[%s9468_s6 + $0x8] sm:$0xff] }
 0x943   : > { %7070 = vmatprep.subr.mxu0 %v4107_v26  ;;  %s9473_s6 = smov %s9472_s28 }
 0x944   : > { %v3927_v36 = vadd.f32 %v3925_v25, %v3916_v12  ;;  %v3928_v35 = vadd.f32 %v3926_v1, %v3917_v21  ;;  %7071 = vmatpush3.msra.mxu0 %v4107_v26  ;;  %v6502_v50 = vld [vmem:[%s9473_s6 + $0x1] ss:$0 sm:$0xff] }
 0x945   : > { %7072 = vmatprep.subr.mxu0 %v4106_v27 }
 0x946   : > { %v3938_v14 = vadd.f32 %v3936_v17, %v3927_v36  ;;  %v3939_v33 = vadd.f32 %v3937_v53, %v3928_v35  ;;  %7073 = vmatpush3.msra.mxu0 %v4106_v27  ;;  %v6498_v35 = vld [vmem:[%s9471_s7] ss:$0 sm:$0xff]  ;;  %v6506_v27 = vld [vmem:[%s9473_s6 + $0x5] ss:$0 sm:$0xff]  ;;  %s9476_s7 = sld [smem:[#allocation64_spill]] }
 0x947   : > { %7074 = vmatprep.subr.mxu0 %v4105_v18  ;;  %v4310_v9 = vld [vmem:[%s9470_s5 + $0x78] sm:$0xff]  ;;  %v4309_v58 = vld [vmem:[%s9470_s5 + $0x70] sm:$0xff]  ;;  %v4308_v29 = vld [vmem:[%s9470_s5 + $0x68] sm:$0xff] }
 0x948   : > { %v3949_v34 = vadd.f32 %v3947_v43, %v3938_v14  ;;  %v3950_v15 = vadd.f32 %v3948_v11, %v3939_v33  ;;  %7075 = vmatpush3.msra.mxu0 %v4105_v18  ;;  %v4305_v52 = vld [vmem:[%s9470_s5 + $0x50] sm:$0xff]  ;;  %v4304_v4 = vld [vmem:[%s9470_s5 + $0x48] sm:$0xff]  ;;  %v4303_v12 = vld [vmem:[%s9470_s5 + $0x40] sm:$0xff] }
 0x949   : > { %7079 = vmatprep.subr.mxu0 %v4310_v9  ;;  %v4302_v25 = vld [vmem:[%s9470_s5 + $0x38] sm:$0xff]  ;;  %v4301_v22 = vld [vmem:[%s9470_s5 + $0x30] sm:$0xff]  ;;  %v4300_v21 = vld [vmem:[%s9470_s5 + $0x28] sm:$0xff] }
 0x94a   : > { %v3960_v45 = vadd.f32 %v3958_v7, %v3949_v34  ;;  %v3961_v46 = vadd.f32 %v3959_v59, %v3950_v15  ;;  %v4299_v1 = vld [vmem:[%s9470_s5 + $0x20] sm:$0xff]  ;;  %v4298_v39 = vld [vmem:[%s9470_s5 + $0x18] sm:$0xff]  ;;  %v4297_v36 = vld [vmem:[%s9470_s5 + $0x10] sm:$0xff] }
 0x94b   : > { %v4296_v17 = vld [vmem:[%s9470_s5 + $0x8] sm:$0xff]  ;;  %v4295_v54 = vld [vmem:[%s9470_s5] sm:$0xff] }
 0x94c   : > { %v3970_v63 = vadd.f32 %v3968_v57, %v3960_v45  ;;  %v3971_v48 = vadd.f32 %v3969_v10, %v3961_v46  ;;  %v6501_v7 = vld [vmem:[%s9472_s28] ss:$0 sm:$0xff]  ;;  %v6503_v15 = vld [vmem:[%s9473_s6 + $0x2] ss:$0 sm:$0xff]  ;;  %s9477_s28 = sld [smem:[#allocation63_spill]] }
 0x94e   : > { %v3980_v23 = vadd.f32 %v3978_v40, %v3970_v63  ;;  %v3981_v19 = vadd.f32 %v3979_v49, %v3971_v48 }
 0x950   : > { %v3990_v62 = vadd.f32 %v3988_v2, %v3980_v23  ;;  %v3991_v16 = vadd.f32 %v3989_v42, %v3981_v19  ;;  %v6504_v2 = vld [vmem:[%s9473_s6 + $0x3] ss:$0 sm:$0xff] }
 0x952   : > { %v3999_v56 = vadd.f32 %v6496_v41, %v3990_v62  ;;  %v4000_v61 = vadd.f32 %v6496_v41, %v3991_v16 }
 0x954   : > { %v4001_v13 = vmax.f32 %v3999_v56, 0.0  ;;  %v4002_v30 = vmax.f32 %v4000_v61, 0.0  ;;  %v6505_v61 = vld [vmem:[%s9473_s6 + $0x4] ss:$0 sm:$0xff] }
 0x956   : > { %v4003_v60 = vmin.f32 %v4001_v13, 6.0  ;;  %v4004_v55 = vmin.f32 %v4002_v30, 6.0 }
 0x958   : > { %7065 = vmatprep.mubr.f32.mxu1 %v4003_v60 }
 0x959   : > { %7066 = vmatmul.mubr.f32.vlgmr.msra.gmra.mxu1 %v4004_v55 }
 0x95a   : > { %7118 = vmatprep.mubr.msk.f32.mxu1 %vm7880_vm1, %v8848_v38 }
 0xa19   : > { %v7067_v6 = vpop.f32.mrf.mxu1 }
 0xa1a   : > { %v4100_v0 = vadd.f32 %v7067_v6, %v6497_v31 }
 0xa1b   : > { %v4094_v5 = vpop.f32.mrf.mxu1 }
 0xa1c   : > { %v4095_v8 = vadd.f32 %v6497_v31, %v4094_v5  ;;  %v8943_v20 = vadd.f32 %v4100_v0, %v8896_v24  ;;  %v4306_v24 = vld [vmem:[%s9470_s5 + $0x58] sm:$0xff] }
 0xa1e   : > { %v8940_v37 = vadd.f32 %v4095_v8, %v8893_v47  ;;  %v4307_v47 = vld [vmem:[%s9470_s5 + $0x60] sm:$0xff]  ;;  %s9475_s5 = smov %s9474_s2 }
 0xa20   : > { %7076 = vmatprep.mubr.msk.f32.mxu0 %vm1794_vm0, %v8940_v37 }
 0xa21   : > { %7077 = vmatmul.mubr.msk.f32.vlgmr.msra.gmra.mxu0 %vm1794_vm0, %v8943_v20 }
 0xa22   : > { %7080 = vmatpush3.msra.mxu0 %v4310_v9  ;;  %v6507_v9 = vld [vmem:[%s9473_s6 + $0x6] ss:$0 sm:$0xff] }
 0xa23   : > { %7081 = vmatprep.subr.mxu0 %v4309_v58 }
 0xa24   : > { %7082 = vmatpush3.msra.mxu0 %v4309_v58 }
 0xa25   : > { %7083 = vmatprep.subr.mxu0 %v4308_v29 }
 0xa26   : > { %7084 = vmatpush3.msra.mxu0 %v4308_v29 }
 0xa27   : > { %7085 = vmatprep.subr.mxu0 %v4307_v47 }
 0xa28   : > { %7086 = vmatpush3.msra.mxu0 %v4307_v47 }
 0xa29   : > { %7087 = vmatprep.subr.mxu0 %v4306_v24 }
 0xa2a   : > { %7088 = vmatpush3.msra.mxu0 %v4306_v24 }
 0xa2b   : > { %7089 = vmatprep.subr.mxu0 %v4305_v52 }
 0xa2c   : > { %7090 = vmatpush3.msra.mxu0 %v4305_v52 }
 0xa2d   : > { %7091 = vmatprep.subr.mxu0 %v4304_v4 }
 0xa2e   : > { %7092 = vmatpush3.msra.mxu0 %v4304_v4 }
 0xa2f   : > { %7093 = vmatprep.subr.mxu0 %v4303_v12 }
 0xa30   : > { %7094 = vmatpush3.msra.mxu0 %v4303_v12  ;;  %v6508_v12 = vld [vmem:[#allocation5] ss:$0 sm:$0xff] }
 0xa31   : > { %7095 = vmatprep.subr.mxu0 %v4302_v25 }
 0xa32   : > { %7096 = vmatpush3.msra.mxu0 %v4302_v25 }
 0xa33   : > { %7097 = vmatprep.subr.mxu0 %v4301_v22 }
 0xa34   : > { %7098 = vmatpush3.msra.mxu0 %v4301_v22 }
 0xa35   : > { %7099 = vmatprep.subr.mxu0 %v4300_v21 }
 0xa36   : > { %7100 = vmatpush3.msra.mxu0 %v4300_v21 }
 0xa37   : > { %7101 = vmatprep.subr.mxu0 %v4299_v1 }
 0xa38   : > { %7102 = vmatpush3.msra.mxu0 %v4299_v1 }
 0xa39   : > { %7103 = vmatprep.subr.mxu0 %v4298_v39 }
 0xa3a   : > { %7104 = vmatpush3.msra.mxu0 %v4298_v39 }
 0xa3b   : > { %7105 = vmatprep.subr.mxu0 %v4297_v36 }
 0xa3c   : > { %7106 = vmatpush3.msra.mxu0 %v4297_v36 }
 0xa3d   : > { %7107 = vmatprep.subr.mxu0 %v4296_v17 }
 0xa3e   : > { %7108 = vmatpush3.msra.mxu0 %v4296_v17 }
 0xa3f   : > { %7109 = vmatprep.subr.mxu0 %v4295_v54 }
 0xa40   : > { %7110 = vmatpush3.msra.mxu0 %v4295_v54 }
 0xae1   : > { %v7078_v53 = vpop.f32.mrf.mxu0 }
 0xae2   : > { %v4194_v32 = vadd.f32 %v7078_v53, %v6498_v35  ;;  %v6515_v53 = vld [vmem:[%s9475_s5 + $0x90] sm:$0xff] }
 0xae3   : > { %v4188_v14 = vpop.f32.mrf.mxu0 }
 0xae4   : > { %v4198_v43 = vmax.f32 %v4194_v32, 0.0  ;;  %v4189_v44 = vadd.f32 %v6498_v35, %v4188_v14  ;;  %v6516_v35 = vld [vmem:[%s9474_s2 + $0x98] sm:$0xff]  ;;  %v6514_v32 = vld [vmem:[%s9475_s5 + $0x88] sm:$0xff]  ;;  %v6513_v14 = vld [vmem:[%s9475_s5 + $0x80] sm:$0xff]  ;;  %s9036_s2 = sand.u32 1, %s7804_s1  }
 0xae5   : > { %7132 = vmatprep.subr.mxu0 %v6516_v35 }
 0xae6   : > { %v4200_v33 = vmin.f32 %v4198_v43, 6.0  ;;  %v4197_v11 = vmax.f32 %v4189_v44, 0.0  ;;  %v6535_v43 = vld [vmem:[%s9475_s5 + $0x78] sm:$0xff]  ;;  %v4396_v44 = vld [vmem:[%s9476_s7] sm:$0xf]  ;;  %s6349_s7 = sshll.u32 %s9036_s2, 2 }
 0xae8   : > { %4204 = vst [vmem:[#allocation2 + $0xb] sm:$0xff] %v4200_v33  ;;  %v4199_v34 = vmin.f32 %v4197_v11, 6.0  ;;  %v4246_v30 = vmul.f32 %v6504_v2, %v4200_v33  ;;  %v7881_v33 = vmov 0   ;;  %v6509_v11 = vld [vmem:[#allocation8] ss:$0 sm:$0xff] }
 0xae9   : > { %7465 = vset.pattern.permute.xlu0 %v7881_v33 }
 0xaea   : > { %4203 = vst [vmem:[#allocation2 + $0x3] sm:$0xff] %v4199_v34  ;;  %v4245_v16 = vmul.f32 %v6504_v2, %v4199_v34  ;;  %4399 = vperm.xlu0 %7465, %v4396_v44   ;;  %v6532_v2 = vld [vmem:[%s9475_s5 + $0x60] sm:$0xff] }
 0xaef   : > { %v4250_v56 = vld [vmem:[#allocation2 + $0xc] sm:$0xff] }
 0xaf0   : > { %v4261_v26 = vld [vmem:[#allocation2 + $0xd] sm:$0xff]  ;;  %v4257_v31 = vmul.f32 %v6505_v61, %v4250_v56 }
 0xaf1   : > { %v4205_v59 = vld [vmem:[#allocation2] sm:$0xff]  ;;  %v4206_v45 = vld [vmem:[#allocation2 + $0x8] sm:$0xff]  ;;  %v4268_v29 = vmul.f32 %v6506_v27, %v4261_v26 }
 0xaf2   : > { %v4216_v57 = vld [vmem:[#allocation2 + $0x1] sm:$0xff]  ;;  %v4212_v3 = vmul.f32 %v6501_v7, %v4205_v59  ;;  %v4213_v46 = vmul.f32 %v6501_v7, %v4206_v45  ;;  %v4217_v10 = vld [vmem:[#allocation2 + $0x9] sm:$0xff] }
 0xaf3   : > { %v4223_v63 = vmul.f32 %v6502_v50, %v4216_v57  ;;  %v4227_v40 = vld [vmem:[#allocation2 + $0x2] sm:$0xff]  ;;  %v4228_v51 = vld [vmem:[#allocation2 + $0xa] sm:$0xff]  ;;  %v4224_v48 = vmul.f32 %v6502_v50, %v4217_v10  ;;  %v6520_v57 = vld [vmem:[%s9475_s5 + $0x58] sm:$0xff] }
 0xaf4   : > { %v4234_v23 = vmul.f32 %v6503_v15, %v4227_v40  ;;  %v4235_v42 = vmul.f32 %v6503_v15, %v4228_v51  ;;  %v4249_v41 = vld [vmem:[#allocation2 + $0x4] sm:$0xff]  ;;  %v4272_v8 = vld [vmem:[#allocation2 + $0xe] sm:$0xff] }
 0xaf5   : > { %v4225_v49 = vadd.f32 %v4223_v63, %v4212_v3  ;;  %v4226_v19 = vadd.f32 %v4224_v48, %v4213_v46  ;;  %v4260_v60 = vld [vmem:[#allocation2 + $0x5] sm:$0xff]  ;;  %v4256_v28 = vmul.f32 %v6505_v61, %v4249_v41  ;;  %v4279_v4 = vmul.f32 %v6507_v9, %v4272_v8  ;;  %v4395_v3 = vld [vmem:[%s9477_s28] sm:$0xf]  ;;  %v6519_v46 = vld [vmem:[%s9475_s5 + $0x50] sm:$0xff]  ;;  %s9039_s28 = scalar_lea.vmem [#allocation21], %s6349_s7  ;;  %s9478_s7 = sld [smem:[#allocation67_spill]] }
 0xaf6   : > { %v4271_v6 = vld [vmem:[#allocation2 + $0x6] sm:$0xff]  ;;  %v4267_v5 = vmul.f32 %v6506_v27, %v4260_v60  ;;  %v6534_v40 = vld [vmem:[%s9475_s5 + $0x70] sm:$0xff]  ;;  %v4924_v60 = vlaneseq }
 0xaf7   : > { %v4236_v62 = vadd.f32 %v4234_v23, %v4225_v49  ;;  %v4237_v13 = vadd.f32 %v4235_v42, %v4226_v19  ;;  %v4278_v24 = vmul.f32 %v6507_v9, %v4271_v6  ;;  %v6517_v51 = vld [vmem:[%s9475_s5 + $0x40] sm:$0xff]  ;;  %v6533_v48 = vld [vmem:[%s9475_s5 + $0x68] sm:$0xff]  ;;  %v4670_v49 = vld [vmem:[%s9475_s5 + $0x18] sm:$0xff] }
 0xaf8   : > { %v4669_v19 = vld [vmem:[%s9475_s5 + $0x10] sm:$0xff]  ;;  %v4668_v41 = vld [vmem:[%s9475_s5 + $0x8] sm:$0xff] }
 0xaf9   : > { %v4247_v55 = vadd.f32 %v4245_v16, %v4236_v62  ;;  %v4248_v18 = vadd.f32 %v4246_v30, %v4237_v13  ;;  %v4667_v62 = vld [vmem:[%s9475_s5] sm:$0xff]  ;;  %v6531_v16 = vld [vmem:[%s9475_s5 + $0x38] sm:$0xff]  ;;  %v6530_v61 = vld [vmem:[%s9475_s5 + $0x30] sm:$0xff] }
 0xafa   : > { %v6529_v13 = vld [vmem:[%s9475_s5 + $0x28] sm:$0xff]  ;;  %v6528_v30 = vld [vmem:[%s9475_s5 + $0x20] sm:$0xff] }
 0xafb   : > { %v4258_v0 = vadd.f32 %v4256_v28, %v4247_v55  ;;  %v4259_v58 = vadd.f32 %v4257_v31, %v4248_v18  ;;  %v4925_v55 = vshrl.u32 %v4924_v60, 7  ;;  %v4930_v28 = vand.u32 127, %v4924_v60  ;;  %v6556_v60 = vld [vmem:[#allocation11] ss:$0 sm:$0xff] }
 0xafd   : > { %v4269_v47 = vadd.f32 %v4267_v5, %v4258_v0  ;;  %v4270_v52 = vadd.f32 %v4268_v29, %v4259_v58  ;;  %v4931_v26 = vmul.u32 2, %v4930_v28  ;;  %v4926_v27 = vadd.s32 8, %v4925_v55 }
 0xafe   : > { %v9017_v18 = vadd.s32 16, %v4925_v55  ;;  %v9019_v31 = vadd.s32 24, %v4925_v55 }
 0xaff   : > { %v4280_v25 = vadd.f32 %v4278_v24, %v4269_v47  ;;  %v4281_v22 = vadd.f32 %v4279_v4, %v4270_v52  ;;  %vm4932_vm4 = vcmp.eq.s32.totalorder %v4925_v55, %v4931_v26  ;;  %v9021_v6 = vadd.s32 1, %v4931_v26 }
 0xb00   : > { %vm4933_vm5 = vcmp.eq.s32.totalorder %v4926_v27, %v4931_v26  ;;  %vm4934_vm6 = vcmp.eq.s32.totalorder %v9017_v18, %v4931_v26  ;;  %v6540_v0 = vsel %vm4932_vm4, 1.0, %v8848_v38  ;;  %vm4935_vm7 = vcmp.eq.s32.totalorder %v9019_v31, %v4931_v26 }
 0xb01   : > { %v4289_v21 = vadd.f32 %v6508_v12, %v4280_v25  ;;  %v4290_v1 = vadd.f32 %v6508_v12, %v4281_v22  ;;  %vm4945_vm8 = vcmp.eq.s32.totalorder %v4925_v55, %v9021_v6  ;;  %vm4946_vm9 = vcmp.eq.s32.totalorder %v4926_v27, %v9021_v6  ;;  %v6527_v12 = vld [vmem:[#allocation10] ss:$0 sm:$0xff] }
 0xb02   : > { %vm4947_vm10 = vcmp.eq.s32.totalorder %v9017_v18, %v9021_v6  ;;  %v6544_v5 = vsel %vm4945_vm8, 1.0, %v8848_v38  ;;  %vm4948_vm11 = vcmp.eq.s32.totalorder %v9019_v31, %v9021_v6 }
 0xb03   : > { %v4291_v39 = vmax.f32 %v4289_v21, 0.0  ;;  %v4292_v36 = vmax.f32 %v4290_v1, 0.0 }
 0xb05   : > { %v4293_v17 = vmin.f32 %v4291_v39, 6.0  ;;  %v4294_v54 = vmin.f32 %v4292_v36, 6.0 }
 0xb07   : > { %7111 = vmatprep.mubr.f32.mxu0 %v4293_v17 }
 0xb08   : > { %7112 = vmatmul.mubr.f32.vlgmr.msra.gmra.mxu0 %v4294_v54 }
 0xb09   : > { %7133 = vmatpush3.msra.mxu0 %v6516_v35  ;;  %v9042_v35 = vld [vmem:[#allocation2 + $0x20] sm:$0xff] }
 0xb0a   : > { %7134 = vmatprep.subr.mxu0 %v6515_v53  ;;  %5267 = vst.msk [vmem:[#allocation4] sm:$0x1f] %vm5266_vm13, %v9042_v35  ;;  %5268 = vst.msk [vmem:[#allocation4 + $0x25] sm:$0x1f] %vm5266_vm13, %v9042_v35 }
 0xb0b   : > { %7135 = vmatpush3.msra.mxu0 %v6515_v53  ;;  %v6541_v53 = vsel %vm4933_vm5, 1.0, %v9042_v35 }
 0xb0c   : > { %7136 = vmatprep.subr.mxu0 %v6514_v32 }
 0xb0d   : > { %7137 = vmatpush3.msra.mxu0 %v6514_v32  ;;  %v6542_v32 = vsel %vm4934_vm6, 1.0, %v9042_v35 }
 0xb0e   : > { %7138 = vmatprep.subr.mxu0 %v6513_v14 }
 0xb0f   : > { %7139 = vmatpush3.msra.mxu0 %v6513_v14 }
 0xb10   : > { %7154 = vmatprep.subr.mxu0 %v6535_v43 }
 0xb65   : > { %v4400_v8 = vpop.permute.xlu0 %4399 }
 0xbc8   : > { %v7113_v34 = vpop.f32.mrf.mxu0 }
 0xbc9   : > { %v4390_v7 = vadd.f32 %v7113_v34, %v6509_v11 }
 0xbca   : > { %v4384_v50 = vpop.f32.mrf.mxu0 }
 0xbcb   : > { %v4394_v15 = vadd.f32 %v4390_v7, %v8943_v20  ;;  %v4385_v59 = vadd.f32 %v6509_v11, %v4384_v50  ;;  %v6518_v20 = vld [vmem:[%s9475_s5 + $0x48] sm:$0xff]  ;;  %s9479_s5 = smov %s9478_s7  ;;  %v6543_v11 = vsel %vm4935_vm7, 1.0, %v9042_v35 }
 0xbcd   : > { %4487 = vst.msk [vmem:[#allocation3 + $0x9] sm:$0xff] %vm1794_vm0, %v4394_v15  ;;  %v4393_v45 = vadd.f32 %v4385_v59, %v8940_v37  ;;  %7115 = vmatpush3.xpose.msk.msra.mxu1 %vm1794_vm0, %v4394_v15  ;;  %v6545_v15 = vsel %vm4946_vm9, 1.0, %v9042_v35  ;;  %v5153_v59 = vld [vmem:[%s9478_s7 + $0x8] sm:$0xff]  ;;  %s9480_s7 = sld [smem:[#allocation69_spill]] }
 0xbce   : > { %7116 = vmatprep.subr.mxu1 %v8848_v38 }
 0xbcf   : > { %4486 = vst.msk [vmem:[#allocation3 + $0x1] sm:$0xff] %vm1794_vm0, %v4393_v45 }
 0xbd1   : > { %7117 = vmatpush3.xpose.msk.msra.mxu1 %vm1794_vm0, %v4393_v45  ;;  %v6546_v45 = vsel %vm4947_vm10, 1.0, %v9042_v35 }
 0xbd2   : > { %7121 = vmatprep.subr.mxu1 %v6520_v57 }
 0xbd3   : > { %s9481_s6 = smov %s9480_s7 }
 0xbd4   : > { %7119 = vmatmul.mubr.msk.f32.vlgmr.msra.gmra.mxu1 %vm1794_vm0, %v4395_v3  ;;  %v4491_v23 = vld [vmem:[#allocation3 + $0x9] sm:$0xff] }
 0xbd5   : > { %7122 = vmatpush3.msra.mxu1 %v6520_v57  ;;  %v4493_v56 = vld [vmem:[#allocation3 + $0xa] sm:$0xff]  ;;  %v6547_v57 = vsel %vm4948_vm11, 1.0, %v9042_v35 }
 0xbd6   : > { %7123 = vmatprep.subr.mxu1 %v6519_v46  ;;  %v4490_v37 = vld [vmem:[#allocation3 + $0x1] sm:$0xff]  ;;  %v5152_v3 = vld [vmem:[%s9479_s5] sm:$0xff] }
 0xbd7   : > { %v4488_v10 = vld [vmem:[#allocation3] sm:$0xff]  ;;  %v4489_v63 = vld [vmem:[#allocation3 + $0x8] sm:$0xff]  ;;  %7124 = vmatpush3.msra.mxu1 %v6519_v46  ;;  %7129 = vmatprep.mubr.msk.f32.mxu1 %vm1794_vm0, %v4490_v37 }
 0xbd8   : > { %7140 = vmatprep.mubr.msk.f32.mxu0 %vm1794_vm0, %v4488_v10  ;;  %7125 = vmatprep.subr.mxu1 %v6518_v20  ;;  %v4492_v42 = vld [vmem:[#allocation3 + $0x2] sm:$0xff] }
 0xbd9   : > { %7141 = vmatmul.mubr.msk.f32.vlgmr.msra.gmra.mxu0 %vm1794_vm0, %v4489_v63  ;;  %7126 = vmatpush3.msra.mxu1 %v6518_v20 }
 0xbda   : > { %7155 = vmatpush3.msra.mxu0 %v6535_v43  ;;  %7162 = vmatprep.mubr.msk.f32.mxu0 %vm1794_vm0, %v4490_v37 }
 0xbdb   : > { %7156 = vmatprep.subr.mxu0 %v6534_v40  ;;  %7127 = vmatprep.subr.mxu1 %v6517_v51 }
 0xbdc   : > { %7157 = vmatpush3.msra.mxu0 %v6534_v40  ;;  %7128 = vmatpush3.msra.mxu1 %v6517_v51 }
 0xbdd   : > { %7158 = vmatprep.subr.mxu0 %v6533_v48  ;;  %7130 = vmatmul.mubr.msk.f32.vlgmr.msra.gmra.mxu1 %vm1794_vm0, %v4491_v23 }
 0xbde   : > { %7143 = vmatprep.subr.mxu1 %v4670_v49  ;;  %7159 = vmatpush3.msra.mxu0 %v6533_v48 }
 0xbdf   : > { %7144 = vmatpush3.msra.mxu1 %v4670_v49  ;;  %7151 = vmatprep.mubr.msk.f32.mxu1 %vm1794_vm0, %v4492_v42 }
 0xbe0   : > { %7160 = vmatprep.subr.mxu0 %v6532_v2  ;;  %7145 = vmatprep.subr.mxu1 %v4669_v19 }
 0xbe1   : > { %7161 = vmatpush3.msra.mxu0 %v6532_v2  ;;  %7146 = vmatpush3.msra.mxu1 %v4669_v19 }
 0xbe2   : > { %7163 = vmatmul.mubr.msk.f32.vlgmr.msra.gmra.mxu0 %vm1794_vm0, %v4491_v23  ;;  %7147 = vmatprep.subr.mxu1 %v4668_v41 }
 0xbe3   : > { %7148 = vmatpush3.msra.mxu1 %v4668_v41  ;;  %7180 = vmatprep.mubr.msk.f32.mxu0 %vm4957_vm3, %v6544_v5  ;;  %v5479_v41 = vld [vmem:[%s9481_s6 + $0x30] sm:$0xff] }
 0xbe4   : > { %7149 = vmatprep.subr.mxu1 %v4667_v62 }
 0xbe5   : > { %7150 = vmatpush3.msra.mxu1 %v4667_v62  ;;  %v5478_v62 = vld [vmem:[%s9481_s6 + $0x28] sm:$0xff] }
 0xbe6   : > { %7152 = vmatmul.mubr.msk.f32.vlgmr.msra.gmra.mxu1 %vm1794_vm0, %v4493_v56  ;;  %7165 = vmatprep.subr.mxu1 %v6531_v16 }
 0xbe7   : > { %7166 = vmatpush3.msra.mxu1 %v6531_v16  ;;  %7173 = vmatprep.mubr.msk.f32.mxu1 %vm1794_vm0, %v4492_v42  ;;  %v5480_v42 = vld [vmem:[%s9480_s7 + $0x38] sm:$0xff]  ;;  %v5477_v16 = vld [vmem:[%s9481_s6 + $0x20] sm:$0xff]  ;;  %s9482_s7 = sld [smem:[#allocation68_spill]] }
 0xbe8   : > { %7167 = vmatprep.subr.mxu1 %v6530_v61 }
 0xbe9   : > { %7168 = vmatpush3.msra.mxu1 %v6530_v61  ;;  %v5475_v61 = vld [vmem:[%s9481_s6 + $0x10] sm:$0xff] }
 0xbea   : > { %7169 = vmatprep.subr.mxu1 %v6529_v13 }
 0xbeb   : > { %7170 = vmatpush3.msra.mxu1 %v6529_v13  ;;  %v5474_v13 = vld [vmem:[%s9481_s6 + $0x8] sm:$0xff] }
 0xbec   : > { %7171 = vmatprep.subr.mxu1 %v6528_v30 }
 0xbed   : > { %7172 = vmatpush3.msra.mxu1 %v6528_v30  ;;  %v5473_v30 = vld [vmem:[%s9481_s6] sm:$0xff]  ;;  %s9483_s5 = smov %s9482_s7 }
 0xbee   : > { %7174 = vmatmul.mubr.msk.f32.vlgmr.msra.gmra.mxu1 %vm1794_vm0, %v4493_v56  ;;  %v5476_v56 = vld [vmem:[%s9481_s6 + $0x18] sm:$0xff]  ;;  %vm5703_vm0 = vcmask 518144   ;;  %s9486_s6 = sld [smem:[#allocation73_spill]] }
 0xbef   : > { %7190 = vmatprep.mubr.msk.f32.mxu1 %vm4957_vm3, %v6540_v0 }
 0xc94   : > { %v4477_v9 = vpop.f32.mrf.mxu1 }
 0xc95   : > { %v4478_v58 = vadd.f32 %v4477_v9, %v4400_v8 }
 0xc96   : > { %v7120_v29 = vpop.f32.mrf.mxu1 }
 0xc97   : > { %4482 = vst.msk [vmem:[%s9039_s28] sm:$0xf] %vm4481_vm12, %v4478_v58 }
 0xc99   : > { %v7142_v38 = vpop.f32.mrf.mxu0 }
 0xc9b   : > { %v4658_v4 = vpop.f32.mrf.mxu0 }
 0xc9d   : > { %v7131_v47 = vpop.f32.mrf.mxu1 }
 0xc9e   : > { %v4664_v52 = vadd.f32 %v7142_v38, %v7131_v47 }
 0xc9f   : > { %v4577_v24 = vpop.f32.mrf.mxu1 }
 0xca0   : > { %v4659_v22 = vadd.f32 %v4658_v4, %v4577_v24  ;;  %v6562_v4 = vld [vmem:[%s9483_s5 + $0x1] ss:$0 sm:$0xff] }
 0xca2   : > { %v7164_v54 = vpop.f32.mrf.mxu0 }
 0xca4   : > { %v4838_v44 = vpop.f32.mrf.mxu0 }
 0xca6   : > { %v7153_v25 = vpop.f32.mrf.mxu1 }
 0xca7   : > { %v4753_v21 = vadd.f32 %v7153_v25, %v4664_v52  ;;  %v6561_v52 = vld [vmem:[%s9482_s7] ss:$0 sm:$0xff]  ;;  %s9484_s7 = sld [smem:[#allocation71_spill]] }
 0xca8   : > { %v4743_v1 = vpop.f32.mrf.mxu1 }
 0xca9   : > { %v4761_v39 = vadd.f32 %v6527_v12, %v4753_v21  ;;  %v4752_v36 = vadd.f32 %v4743_v1, %v4659_v22 }
 0xcab   : > { %v4760_v17 = vadd.f32 %v6527_v12, %v4752_v36  ;;  %7186 = vmatprep.subr.mxu1 %v4761_v39 }
 0xcac   : > { %7187 = vmatpush3.msra.mxu1 %v4761_v39 }
 0xcad   : > { %7188 = vmatprep.subr.mxu1 %v4760_v17 }
 0xcae   : > { %v7175_v14 = vpop.f32.mrf.mxu1  ;;  %7189 = vmatpush3.msra.mxu1 %v4760_v17 }
 0xcaf   : > { %v4919_v43 = vadd.f32 %v7175_v14, %v7164_v54  ;;  %7191 = vmatmul.mubr.msk.f32.vlgmr.msra.gmra.mxu1 %vm4957_vm3, %v6541_v53  ;;  %7206 = vmatprep.subr.mxu1 %v5480_v42 }
 0xcb0   : > { %v4913_v33 = vpop.f32.mrf.mxu1  ;;  %7193 = vmatprep.mubr.msk.f32.mxu1 %vm4957_vm3, %v6542_v32  ;;  %7207 = vmatpush3.msra.mxu1 %v5480_v42 }
 0xcb1   : > { %v4923_v34 = vadd.f32 %v6527_v12, %v4919_v43  ;;  %v4914_v7 = vadd.f32 %v4913_v33, %v4838_v44  ;;  %7208 = vmatprep.subr.mxu1 %v5479_v41  ;;  %v9116_v43 = vld [vmem:[%s9483_s5 + $0x3] ss:$0 sm:$0xff] }
 0xcb2   : > { %7209 = vmatpush3.msra.mxu1 %v5479_v41 }
 0xcb3   : > { %v4922_v50 = vadd.f32 %v6527_v12, %v4914_v7  ;;  %7176 = vmatprep.subr.mxu0 %v4923_v34  ;;  %7194 = vmatmul.mubr.msk.f32.gmra.mxu1 %vm4957_vm3, %v6543_v11  ;;  %v6563_v12 = vld [vmem:[%s9483_s5 + $0x2] ss:$0 sm:$0xff] }
 0xcb4   : > { %7177 = vmatpush3.msra.mxu0 %v4923_v34  ;;  %7210 = vmatprep.subr.mxu1 %v5478_v62  ;;  %v9121_v34 = vld [vmem:[%s9483_s5 + $0x4] ss:$0 sm:$0xff] }
 0xcb5   : > { %7178 = vmatprep.subr.mxu0 %v4922_v50  ;;  %7211 = vmatpush3.msra.mxu1 %v5478_v62 }
 0xcb6   : > { %7179 = vmatpush3.msra.mxu0 %v4922_v50  ;;  %7212 = vmatprep.subr.mxu1 %v5477_v16 }
 0xcb7   : > { %7181 = vmatmul.mubr.msk.f32.vlgmr.msra.gmra.mxu0 %vm4957_vm3, %v6545_v15  ;;  %7196 = vmatprep.subr.mxu0 %v5153_v59 }
 0xcb8   : > { %7183 = vmatprep.mubr.msk.f32.mxu0 %vm4957_vm3, %v6546_v45  ;;  %7197 = vmatpush3.msra.mxu0 %v5153_v59 }
 0xcb9   : > { %7198 = vmatprep.subr.mxu0 %v5152_v3  ;;  %7213 = vmatpush3.msra.mxu1 %v5477_v16 }
 0xcba   : > { %7199 = vmatpush3.msra.mxu0 %v5152_v3  ;;  %7214 = vmatprep.subr.mxu1 %v5476_v56 }
 0xcbb   : > { %7184 = vmatmul.mubr.msk.f32.gmra.mxu0 %vm4957_vm3, %v6547_v57  ;;  %7215 = vmatpush3.msra.mxu1 %v5476_v56  ;;  %v9127_v57 = vld [vmem:[%s9483_s5 + $0x5] ss:$0 sm:$0xff]  ;;  %v9141_v56 = vld [vmem:[%s9483_s5 + $0x6] ss:$0 sm:$0xff] }
 0xcbc   : > { %7216 = vmatprep.subr.mxu1 %v5475_v61 }
 0xcbd   : > { %7217 = vmatpush3.msra.mxu1 %v5475_v61 }
 0xcbe   : > { %7218 = vmatprep.subr.mxu1 %v5474_v13 }
 0xcbf   : > { %7219 = vmatpush3.msra.mxu1 %v5474_v13 }
 0xcc0   : > { %7220 = vmatprep.subr.mxu1 %v5473_v30 }
 0xcc1   : > { %7221 = vmatpush3.msra.mxu1 %v5473_v30 }
 0xcc2   : > { %7260 = vmatprep.subr.mxu1 %v9042_v35 }
 0xd6f   : > { %v7192_v46 = vpop.f32.mrf.mxu1 }
 0xd71   : > { %v5133_v20 = vpop.f32.mrf.mxu1 }
 0xd73   : > { %v7195_v63 = vpop.f32.mrf.mxu1 }
 0xd75   : > { %v5143_v49 = vpop.f32.mrf.mxu1 }
 0xd77   : > { %v7182_v37 = vpop.f32.mrf.mxu0 }
 0xd78   : > { %v9073_v51 = vadd.f32 %v7192_v46, %v7182_v37 }
 0xd79   : > { %v5036_v10 = vpop.f32.mrf.mxu0 }
 0xd7a   : > { %v9071_v40 = vadd.f32 %v5133_v20, %v5036_v10 }
 0xd7b   : > { %v7185_v48 = vpop.f32.mrf.mxu0 }
 0xd7c   : > { %7200 = vmatprep.mubr.msk.f32.mxu0 %vm4957_vm3, %v9071_v40  ;;  %v9081_v19 = vadd.f32 %v7195_v63, %v7185_v48 }
 0xd7d   : > { %v5046_v23 = vpop.f32.mrf.mxu0  ;;  %7201 = vmatmul.mubr.msk.f32.vlgmr.msra.gmra.mxu0 %vm4957_vm3, %v9073_v51 }
 0xd7e   : > { %v9079_v2 = vadd.f32 %v5143_v49, %v5046_v23 }
 0xd80   : > { %7203 = vmatprep.mubr.msk.f32.mxu0 %vm4957_vm3, %v9079_v2 }
 0xd81   : > { %7204 = vmatmul.mubr.msk.f32.gmra.mxu0 %vm4957_vm3, %v9081_v19 }
 0xe3d   : > { %v7202_v55 = vpop.f32.mrf.mxu0 }
 0xe3e   : > { %v5245_v28 = vadd.f32 %v7202_v55, %v6556_v60 }
 0xe3f   : > { %v5239_v26 = vpop.f32.mrf.mxu0 }
 0xe40   : > { %v5259_v27 = vmax.f32 %v5245_v28, 0.0  ;;  %v5240_v18 = vadd.f32 %v6556_v60, %v5239_v26 }
 0xe41   : > { %v7205_v31 = vpop.f32.mrf.mxu0 }
 0xe42   : > { %v5263_v6 = vmin.f32 %v5259_v27, 6.0  ;;  %v5258_v0 = vmax.f32 %v5240_v18, 0.0  ;;  %v5255_v5 = vadd.f32 %v7205_v31, %v6556_v60  ;;  %v9149_v27 = vld [vmem:[%s9483_s5 + $0x7] ss:$0 sm:$0xff] }
 0xe43   : > { %v5249_v8 = vpop.f32.mrf.mxu0 }
 0xe44   : > { %5271 = vst.msk [vmem:[#allocation4 + $0xd] sm:$0xff] %vm5269_vm14, %v5263_v6  ;;  %v5262_v9 = vmin.f32 %v5258_v0, 6.0  ;;  %v5261_v58 = vmax.f32 %v5255_v5, 0.0  ;;  %v5250_v29 = vadd.f32 %v6556_v60, %v5249_v8 }
 0xe46   : > { %5270 = vst.msk [vmem:[#allocation4 + $0x5] sm:$0xff] %vm5269_vm14, %v5262_v9  ;;  %v5265_v47 = vmin.f32 %v5261_v58, 6.0  ;;  %v5260_v38 = vmax.f32 %v5250_v29, 0.0 }
 0xe48   : > { %5273 = vst.msk [vmem:[#allocation4 + $0x1d] sm:$0xff] %vm5269_vm14, %v5265_v47  ;;  %v5264_v24 = vmin.f32 %v5260_v38, 6.0 }
 0xe49   : > { %5275 = vst.msk [vmem:[#allocation4 + $0x24] sm:$0x1] %vm5274_vm15, %v9042_v35 }
 0xe4a   : > { %5272 = vst.msk [vmem:[#allocation4 + $0x15] sm:$0xff] %vm5269_vm14, %v5264_v24 }
 0xe4b   : > { %v5362_v45 = vld [vmem:[#allocation4 + $0xd] sm:$0xff] }
 0xe4c   : > { %v5371_v8 = vmul.f32 %v9127_v57, %v5362_v45 }
 0xe4d   : > { %v5276_v25 = vld [vmem:[#allocation4] sm:$0xff]  ;;  %v9107_v22 = vld [vmem:[#allocation4 + $0x8] sm:$0xff] }
 0xe4e   : > { %v5293_v21 = vld [vmem:[#allocation4 + $0x1] sm:$0xff]  ;;  %v5285_v1 = vmul.f32 %v6561_v52, %v5276_v25  ;;  %v5286_v39 = vmul.f32 %v6561_v52, %v9107_v22  ;;  %v9110_v36 = vld [vmem:[#allocation4 + $0x9] sm:$0xff] }
 0xe4f   : > { %v5302_v17 = vmul.f32 %v6562_v4, %v5293_v21  ;;  %v5310_v54 = vld [vmem:[#allocation4 + $0x2] sm:$0xff]  ;;  %v9112_v53 = vld [vmem:[#allocation4 + $0xa] sm:$0xff]  ;;  %v5303_v32 = vmul.f32 %v6562_v4, %v9110_v36 }
 0xe50   : > { %v5327_v14 = vld [vmem:[#allocation4 + $0x3] sm:$0xff]  ;;  %5704 = vst.msk [vmem:[#allocation4] sm:$0x7] %vm5703_vm0, %v9042_v35  ;;  %v5319_v33 = vmul.f32 %v6563_v12, %v5310_v54  ;;  %v5328_v11 = vld [vmem:[#allocation4 + $0xb] sm:$0xff]  ;;  %v5320_v15 = vmul.f32 %v6563_v12, %v9112_v53 }
 0xe51   : > { %v5306_v44 = vadd.f32 %v5302_v17, %v5285_v1  ;;  %v9123_v7 = vld [vmem:[#allocation4 + $0x10] sm:$0xff]  ;;  %v5307_v50 = vadd.f32 %v5303_v32, %v5286_v39  ;;  %v5344_v59 = vld [vmem:[#allocation4 + $0x4] sm:$0xff]  ;;  %v5336_v20 = vmul.f32 %v9116_v43, %v5327_v14  ;;  %v5337_v49 = vmul.f32 %v9116_v43, %v5328_v11  ;;  %v9135_v23 = vld [vmem:[#allocation4 + $0x18] sm:$0xff] }
 0xe52   : > { %v9129_v3 = vld [vmem:[#allocation4 + $0x11] sm:$0xff]  ;;  %v5361_v10 = vld [vmem:[#allocation4 + $0x5] sm:$0xff]  ;;  %v9137_v42 = vld [vmem:[#allocation4 + $0x19] sm:$0xff]  ;;  %v5353_v62 = vmul.f32 %v9121_v34, %v5344_v59  ;;  %v5287_v61 = vmul.f32 %v6561_v52, %v9123_v7  ;;  %v5288_v13 = vmul.f32 %v6561_v52, %v9135_v23 }
 0xe53   : > { %v5323_v46 = vadd.f32 %v5319_v33, %v5306_v44  ;;  %v5345_v37 = vld [vmem:[#allocation4 + $0xc] sm:$0xff]  ;;  %v5324_v48 = vadd.f32 %v5320_v15, %v5307_v50  ;;  %v9145_v30 = vld [vmem:[#allocation4 + $0x1a] sm:$0xff]  ;;  %v5304_v18 = vmul.f32 %v6562_v4, %v9129_v3  ;;  %v5305_v31 = vmul.f32 %v6562_v4, %v9137_v42  ;;  %v9159_v33 = vld [vmem:[#allocation4 + $0x22] sm:$0xff] }
 0xe54   : > { %v9132_v63 = vld [vmem:[#allocation4 + $0x12] sm:$0xff]  ;;  %v5378_v16 = vld [vmem:[#allocation4 + $0x6] sm:$0xff]  ;;  %v5354_v55 = vmul.f32 %v9121_v34, %v5345_v37  ;;  %v5370_v5 = vmul.f32 %v9127_v57, %v5361_v10  ;;  %v5330_v47 = vld [vmem:[#allocation4 + $0x1b] sm:$0xff]  ;;  %v5322_v21 = vmul.f32 %v6563_v12, %v9145_v30 }
 0xe55   : > { %v5340_v41 = vadd.f32 %v5336_v20, %v5323_v46  ;;  %v5341_v60 = vadd.f32 %v5337_v49, %v5324_v48  ;;  %v5379_v28 = vld [vmem:[#allocation4 + $0xe] sm:$0xff]  ;;  %v5321_v58 = vmul.f32 %v6563_v12, %v9132_v63  ;;  %v5347_v38 = vld [vmem:[#allocation4 + $0x1c] sm:$0xff]  ;;  %v5308_v52 = vadd.f32 %v5304_v18, %v5287_v61 }
 0xe56   : > { %v5395_v26 = vld [vmem:[#allocation4 + $0x7] sm:$0xff]  ;;  %v5329_v6 = vld [vmem:[#allocation4 + $0x13] sm:$0xff]  ;;  %v5309_v25 = vadd.f32 %v5305_v31, %v5288_v13  ;;  %v5364_v1 = vld [vmem:[#allocation4 + $0x1d] sm:$0xff]  ;;  %v5387_v54 = vmul.f32 %v9141_v56, %v5378_v16  ;;  %v5388_v32 = vmul.f32 %v9141_v56, %v5379_v28  ;;  %v5339_v37 = vmul.f32 %v9116_v43, %v5330_v47 }
 0xe57   : > { %v5357_v0 = vadd.f32 %v5353_v62, %v5340_v41  ;;  %v5396_v9 = vld [vmem:[#allocation4 + $0xf] sm:$0xff]  ;;  %v5358_v24 = vadd.f32 %v5354_v55, %v5341_v60  ;;  %v5381_v4 = vld [vmem:[#allocation4 + $0x1e] sm:$0xff]  ;;  %v5325_v15 = vadd.f32 %v5321_v58, %v5308_v52  ;;  %v5338_v45 = vmul.f32 %v9116_v43, %v5329_v6 }
 0xe58   : > { %v5346_v29 = vld [vmem:[#allocation4 + $0x14] sm:$0xff]  ;;  %v5398_v39 = vld [vmem:[#allocation4 + $0x1f] sm:$0xff]  ;;  %v5326_v59 = vadd.f32 %v5322_v21, %v5309_v25  ;;  %v5404_v46 = vmul.f32 %v9149_v27, %v5395_v26  ;;  %v5405_v48 = vmul.f32 %v9149_v27, %v5396_v9  ;;  %v5356_v55 = vmul.f32 %v9121_v34, %v5347_v38 }
 0xe59   : > { %v5374_v17 = vadd.f32 %v5370_v5, %v5357_v0  ;;  %v5412_v14 = vld [vmem:[#allocation4 + $0x20] sm:$0xff]  ;;  %v5375_v11 = vadd.f32 %v5371_v8, %v5358_v24  ;;  %v5363_v20 = vld [vmem:[#allocation4 + $0x15] sm:$0xff]  ;;  %v5342_v41 = vadd.f32 %v5338_v45, %v5325_v15  ;;  %v5355_v62 = vmul.f32 %v9121_v34, %v5346_v29 }
 0xe5a   : > { %v5426_v44 = vld [vmem:[#allocation4 + $0x21] sm:$0xff]  ;;  %v6569_v50 = vld [vmem:[%s9483_s5 + $0x8] ss:$0 sm:$0xff]  ;;  %v5380_v13 = vld [vmem:[#allocation4 + $0x16] sm:$0xff]  ;;  %v5343_v60 = vadd.f32 %v5339_v37, %v5326_v59  ;;  %v5372_v43 = vmul.f32 %v9127_v57, %v5363_v20  ;;  %v5373_v9 = vmul.f32 %v9127_v57, %v5364_v1  ;;  %v5390_v24 = vmul.f32 %v9141_v56, %v5381_v4 }
 0xe5b   : > { %5705 = vst.msk [vmem:[#allocation4 + $0x23] sm:$0x7] %vm5703_vm0, %v9042_v35  ;;  %v5391_v12 = vadd.f32 %v5387_v54, %v5374_v17  ;;  %v5392_v10 = vadd.f32 %v5388_v32, %v5375_v11  ;;  %v6570_v49 = vld [vmem:[%s9483_s5 + $0x9] ss:$0 sm:$0xff]  ;;  %v5418_v61 = vmul.f32 %v6569_v50, %v9107_v22  ;;  %v5419_v26 = vmul.f32 %v6569_v50, %v9123_v7  ;;  %v6571_v18 = vld [vmem:[%s9483_s5 + $0xa] ss:$0 sm:$0xff]  ;;  %s9485_s5 = smov %s9484_s7 }
 0xe5c   : > { %v5359_v31 = vadd.f32 %v5355_v62, %v5342_v41  ;;  %v5432_v0 = vmul.f32 %v6570_v49, %v9110_v36  ;;  %v5397_v5 = vld [vmem:[#allocation4 + $0x17] sm:$0xff]  ;;  %v5360_v8 = vadd.f32 %v5356_v55, %v5343_v60  ;;  %v5433_v22 = vmul.f32 %v6570_v49, %v9129_v3 }
 0xe5d   : > { %v5408_v16 = vadd.f32 %v5404_v46, %v5391_v12  ;;  %v5409_v28 = vadd.f32 %v5405_v48, %v5392_v10  ;;  %v5389_v34 = vmul.f32 %v9141_v56, %v5380_v13  ;;  %v5446_v7 = vmul.f32 %v6571_v18, %v9112_v53  ;;  %v6572_v36 = vld [vmem:[#allocation13] ss:$0 sm:$0xff] }
 0xe5e   : > { %v5376_v29 = vadd.f32 %v5372_v43, %v5359_v31  ;;  %v5377_v38 = vadd.f32 %v5373_v9, %v5360_v8  ;;  %v5447_v25 = vmul.f32 %v6571_v18, %v9132_v63  ;;  %v5406_v17 = vmul.f32 %v9149_v27, %v5397_v5  ;;  %v5855_v8 = vld [vmem:[%s9486_s6 + $0x30] sm:$0xff]  ;;  %v5854_v9 = vld [vmem:[%s9486_s6 + $0x28] sm:$0xff] }
 0xe5f   : > { %v5422_v6 = vadd.f32 %v5418_v61, %v5408_v16  ;;  %v5423_v58 = vadd.f32 %v5419_v26, %v5409_v28  ;;  %v5407_v3 = vmul.f32 %v9149_v27, %v5398_v39  ;;  %v5420_v11 = vmul.f32 %v6569_v50, %v9135_v23  ;;  %v6573_v61 = vld [vmem:[#allocation14] ss:$0 sm:$0xff] }
 0xe60   : > { %v5393_v21 = vadd.f32 %v5389_v34, %v5376_v29  ;;  %v5394_v1 = vadd.f32 %v5390_v24, %v5377_v38  ;;  %v5421_v59 = vmul.f32 %v6569_v50, %v5412_v14  ;;  %v5434_v4 = vmul.f32 %v6570_v49, %v9137_v42  ;;  %v5849_v29 = vld [vmem:[%s9486_s6] sm:$0xff] }
 0xe61   : > { %v5436_v47 = vadd.f32 %v5432_v0, %v5422_v6  ;;  %v5437_v52 = vadd.f32 %v5433_v22, %v5423_v58  ;;  %v5435_v46 = vmul.f32 %v6570_v49, %v5426_v44  ;;  %v5448_v10 = vmul.f32 %v6571_v18, %v9145_v30  ;;  %v5590_v30 = vld [vmem:[%s9484_s7 + $0x8] sm:$0xff]  ;;  %v5851_v58 = vld [vmem:[%s9486_s6 + $0x10] sm:$0xff]  ;;  %v6578_v34 = vld [vmem:[#allocation16] ss:$0 sm:$0xff]  ;;  %s9487_s7 = sld [smem:[#allocation72_spill]] }
 0xe62   : > { %v5410_v32 = vadd.f32 %v5406_v17, %v5393_v21  ;;  %v5411_v53 = vadd.f32 %v5407_v3, %v5394_v1  ;;  %v5449_v39 = vmul.f32 %v6571_v18, %v9159_v33  ;;  %7228 = vmatprep.subr.mxu0 %v5590_v30  ;;  %v5589_v33 = vld [vmem:[%s9485_s5] sm:$0xff]  ;;  %v5850_v22 = vld [vmem:[%s9486_s6 + $0x8] sm:$0xff] }
 0xe63   : > { %v5450_v57 = vadd.f32 %v5446_v7, %v5436_v47  ;;  %v5451_v54 = vadd.f32 %v5447_v25, %v5437_v52  ;;  %7229 = vmatpush3.msra.mxu0 %v5590_v30 }
 0xe64   : > { %v5424_v56 = vadd.f32 %v5420_v11, %v5410_v32  ;;  %v5425_v12 = vadd.f32 %v5421_v59, %v5411_v53  ;;  %7230 = vmatprep.subr.mxu0 %v5589_v33 }
 0xe65   : > { %v5461_v15 = vadd.f32 %v6572_v36, %v5450_v57  ;;  %v5462_v45 = vadd.f32 %v6572_v36, %v5451_v54  ;;  %7231 = vmatpush3.msra.mxu0 %v5589_v33 }
 0xe66   : > { %v5438_v37 = vadd.f32 %v5434_v4, %v5424_v56  ;;  %v5439_v27 = vadd.f32 %v5435_v46, %v5425_v12 }
 0xe67   : > { %v5465_v63 = vmax.f32 %v5461_v15, 0.0  ;;  %v5466_v20 = vmax.f32 %v5462_v45, 0.0  ;;  %s9488_s5 = smov %s9487_s7  ;;  %v6583_v53 = vld [vmem:[%s9487_s7] ss:$0 sm:$0xff]  ;;  %s6604_s7 = sshll.u32 %s8195_s0, 6 }
 0xe68   : > { %v5452_v41 = vadd.f32 %v5448_v10, %v5438_v37  ;;  %v5453_v14 = vadd.f32 %v5449_v39, %v5439_v27  ;;  %v6584_v59 = vld [vmem:[%s9488_s5 + $0x1] ss:$0 sm:$0xff]  ;;  %v9232_v45 = vld [vmem:[%s9488_s5 + $0x2] ss:$0 sm:$0xff] }
 0xe69   : > { %v5469_v48 = vmin.f32 %v5465_v63, 6.0  ;;  %v5470_v23 = vmin.f32 %v5466_v20, 6.0 }
 0xe6a   : > { %v5463_v42 = vadd.f32 %v6572_v36, %v5452_v41  ;;  %v5464_v50 = vadd.f32 %v6572_v36, %v5453_v14 }
 0xe6b   : > { %7222 = vmatprep.mubr.msk.f32.mxu1 %vm5269_vm14, %v5469_v48 }
 0xe6c   : > { %7223 = vmatmul.mubr.msk.f32.vlgmr.msra.gmra.mxu1 %vm5269_vm14, %v5470_v23  ;;  %v5467_v44 = vmax.f32 %v5463_v42, 0.0  ;;  %v5468_v49 = vmax.f32 %v5464_v50, 0.0  ;;  %v6586_v42 = vld [vmem:[%s9488_s5 + $0x3] ss:$0 sm:$0xff] }
 0xe6e   : > { %v5471_v62 = vmin.f32 %v5467_v44, 6.0  ;;  %v5472_v16 = vmin.f32 %v5468_v49, 6.0 }
 0xe70   : > { %7225 = vmatprep.mubr.msk.f32.mxu1 %vm5269_vm14, %v5471_v62  ;;  %v6587_v62 = vld [vmem:[%s9488_s5 + $0x4] ss:$0 sm:$0xff] }
 0xe71   : > { %7226 = vmatmul.mubr.msk.f32.gmra.mxu1 %vm5269_vm14, %v5472_v16 }
 0xe72   : > { %7268 = vmatprep.mubr.msk.f32.mxu1 %vm7880_vm1, %v9042_v35 }
 0xf2c   : > { %v7224_v13 = vpop.f32.mrf.mxu1 }
 0xf2d   : > { %v5572_v60 = vadd.f32 %v7224_v13, %v6573_v61 }
 0xf2e   : > { %v5566_v55 = vpop.f32.mrf.mxu1 }
 0xf2f   : > { %v5567_v28 = vadd.f32 %v6573_v61, %v5566_v55  ;;  %v9200_v18 = vadd.f32 %v5572_v60, %v9073_v51  ;;  %v5856_v51 = vld [vmem:[%s9486_s6 + $0x38] sm:$0xff]  ;;  %v6588_v60 = vld [vmem:[%s9488_s5 + $0x5] ss:$0 sm:$0xff]  ;;  %v9241_v55 = vld [vmem:[%s9488_s5 + $0x6] ss:$0 sm:$0xff]  ;;  %s6091_s5 = sshll.u32 %s9039_s28, 4  ;;  %s6092_s5 = int_to_ptr.vmem [resolvable:$true] %s6091_s5 }
 0xf30   : > { %7238 = vmatprep.subr.mxu0 %v5856_v51  ;;  %s7702_s8 = scalar_lea.vmem %s6092_s5, 64  ;;  %p7709_p4 = scmp.lt.s32.totalorder %s6092_s5, %s7707_s10 }
 0xf31   : > { %v9197_v26 = vadd.f32 %v5567_v28, %v9071_v40  ;;  %v7227_v31 = vpop.f32.mrf.mxu1  ;;  %p7703_p1 = scmp.ne.s32.totalorder %s6092_s5, %s7702_s8  ;;  %p7710_p13 = scmp.lt.s32.totalorder %s7708_s11, %s7702_s8 }
 0xf32   : > { %v5582_v43 = vadd.f32 %v7227_v31, %v6573_v61 }
 0xf33   : > { %7232 = vmatprep.mubr.msk.f32.mxu0 %vm4957_vm3, %v9197_v26  ;;  %v5576_v6 = vpop.f32.mrf.mxu1  ;;  %p7704_p3 = pnand %p7703_p1, %p9491_p2  ;;  %p7711_p5 = por %p7710_p13, %p7709_p4 }
 0xf34   : > { %7233 = vmatmul.mubr.msk.f32.vlgmr.msra.gmra.mxu0 %vm4957_vm3, %v9200_v18  ;;  %v5577_v0 = vadd.f32 %v6573_v61, %v5576_v6  ;;  %v9210_v40 = vadd.f32 %v5582_v43, %v9081_v19  ;;  %v5852_v19 = vld [vmem:[%s9486_s6 + $0x18] sm:$0xff] }
 0xf35   : > { %7239 = vmatpush3.msra.mxu0 %v5856_v51  ;;  %p7705_p9 = pneg %p7704_p3 }
 0xf36   : > { %v9207_v5 = vadd.f32 %v5577_v0, %v9079_v2  ;;  %7240 = vmatprep.subr.mxu0 %v5855_v8  ;;  %v5853_v2 = vld [vmem:[%s9486_s6 + $0x20] sm:$0xff]  ;;  %s6065_s6 = scalar_lea.sflag [#allocation22], %s9036_s2 }
 0xf37   : > { %7241 = vmatpush3.msra.mxu0 %v5855_v8  ;;  %p7712_p6 = pnand %p7711_p5, %p7705_p9 }
 0xf38   : > { %7235 = vmatprep.mubr.msk.f32.mxu0 %vm4957_vm3, %v9207_v5  ;;  %7242 = vmatprep.subr.mxu0 %v5854_v9 }
 0xf39   : > { %7236 = vmatmul.mubr.msk.f32.gmra.mxu0 %vm4957_vm3, %v9210_v40 }
 0xf3a   : > { %7243 = vmatpush3.msra.mxu0 %v5854_v9 }
 0xf3b   : > { %7244 = vmatprep.subr.mxu0 %v5853_v2 }
 0xf3c   : > { %7245 = vmatpush3.msra.mxu0 %v5853_v2 }
 0xf3d   : > { %7246 = vmatprep.subr.mxu0 %v5852_v19 }
 0xf3e   : > { %7247 = vmatpush3.msra.mxu0 %v5852_v19 }
 0xf3f   : > { %7248 = vmatprep.subr.mxu0 %v5851_v58 }
 0xf40   : > { %7249 = vmatpush3.msra.mxu0 %v5851_v58 }
 0xf41   : > { %7250 = vmatprep.subr.mxu0 %v5850_v22 }
 0xf42   : > { %7251 = vmatpush3.msra.mxu0 %v5850_v22 }
 0xf43   : > { %7252 = vmatprep.subr.mxu0 %v5849_v29 }
 0xf44   : > { %7253 = vmatpush3.msra.mxu0 %v5849_v29 }
 0xff4   : > { %v7234_v47 = vpop.f32.mrf.mxu0 }
 0xff5   : > { %v5682_v7 = vadd.f32 %v7234_v47, %v6578_v34 }
 0xff6   : > { %v5676_v38 = vpop.f32.mrf.mxu0 }
 0xff7   : > { %v5696_v24 = vmax.f32 %v5682_v7, 0.0  ;;  %v5677_v52 = vadd.f32 %v6578_v34, %v5676_v38 }
 0xff9   : > { %v5700_v25 = vmin.f32 %v5696_v24, 6.0  ;;  %v5695_v36 = vmax.f32 %v5677_v52, 0.0  ;;  %v7237_v17 = vpop.f32.mrf.mxu0 }
 0xffa   : > { %v5692_v57 = vadd.f32 %v7237_v17, %v6578_v34 }
 0xffb   : > { %5707 = vst.msk [vmem:[#allocation4 + $0xb] sm:$0xff] %vm5269_vm14, %v5700_v25  ;;  %v5699_v21 = vmin.f32 %v5695_v36, 6.0  ;;  %v5686_v1 = vpop.f32.mrf.mxu0 }
 0xffc   : > { %v5698_v3 = vmax.f32 %v5692_v57, 0.0  ;;  %v5687_v54 = vadd.f32 %v6578_v34, %v5686_v1 }
 0xffd   : > { %5706 = vst.msk [vmem:[#allocation4 + $0x3] sm:$0xff] %vm5269_vm14, %v5699_v21 }
 0xffe   : > { %v5702_v32 = vmin.f32 %v5698_v3, 6.0  ;;  %v5697_v11 = vmax.f32 %v5687_v54, 0.0 }
0x1000   : > { %5709 = vst.msk [vmem:[#allocation4 + $0x1b] sm:$0xff] %vm5269_vm14, %v5702_v32  ;;  %v5701_v15 = vmin.f32 %v5697_v11, 6.0  ;;  %v6590_v11 = vld [vmem:[#allocation17] ss:$0 sm:$0xff] }
0x1001   : > { %5710 = vst.msk [vmem:[#allocation4 + $0x22] sm:$0x1] %vm5274_vm15, %v9042_v35 }
0x1002   : > { %5708 = vst.msk [vmem:[#allocation4 + $0x13] sm:$0xff] %vm5269_vm14, %v5701_v15  ;;  %v5763_v14 = vld [vmem:[#allocation4 + $0xb] sm:$0xff] }
0x1003   : > { %v5772_v61 = vmul.f32 %v6586_v42, %v5763_v14 }
0x1004   : > { %v5711_v56 = vld [vmem:[#allocation4] sm:$0xff]  ;;  %v5712_v4 = vld [vmem:[#allocation4 + $0x8] sm:$0xff] }
0x1005   : > { %v5728_v63 = vld [vmem:[#allocation4 + $0x1] sm:$0xff]  ;;  %v5720_v12 = vmul.f32 %v6583_v53, %v5711_v56  ;;  %v5721_v46 = vmul.f32 %v6583_v53, %v5712_v4  ;;  %v5729_v20 = vld [vmem:[#allocation4 + $0x9] sm:$0xff] }
0x1006   : > { %v5737_v37 = vmul.f32 %v6584_v59, %v5728_v63  ;;  %v5745_v10 = vld [vmem:[#allocation4 + $0x2] sm:$0xff]  ;;  %v5746_v48 = vld [vmem:[#allocation4 + $0xa] sm:$0xff]  ;;  %v5738_v27 = vmul.f32 %v6584_v59, %v5729_v20 }
0x1007   : > { %v5762_v39 = vld [vmem:[#allocation4 + $0x3] sm:$0xff]  ;;  %v5754_v41 = vmul.f32 %v9232_v45, %v5745_v10  ;;  %v5755_v44 = vmul.f32 %v9232_v45, %v5746_v48 }
0x1008   : > { %v5741_v23 = vadd.f32 %v5737_v37, %v5720_v12  ;;  %v5742_v50 = vadd.f32 %v5738_v27, %v5721_v46  ;;  %v5779_v49 = vld [vmem:[#allocation4 + $0x4] sm:$0xff]  ;;  %v5771_v30 = vmul.f32 %v6586_v42, %v5762_v39  ;;  %v5765_v46 = vld [vmem:[#allocation4 + $0x1b] sm:$0xff] }
0x1009   : > { %v5796_v13 = vld [vmem:[#allocation4 + $0x5] sm:$0xff]  ;;  %v5788_v43 = vmul.f32 %v6587_v62, %v5779_v49  ;;  %v5797_v6 = vld [vmem:[#allocation4 + $0xd] sm:$0xff]  ;;  %v5714_v25 = vld [vmem:[#allocation4 + $0x18] sm:$0xff] }
0x100a   : > { %v5758_v16 = vadd.f32 %v5754_v41, %v5741_v23  ;;  %v5759_v33 = vadd.f32 %v5755_v44, %v5742_v50  ;;  %v5780_v31 = vld [vmem:[#allocation4 + $0xc] sm:$0xff]  ;;  %v5805_v22 = vmul.f32 %v6588_v60, %v5796_v13  ;;  %v5806_v38 = vmul.f32 %v6588_v60, %v5797_v6  ;;  %v5731_v36 = vld [vmem:[#allocation4 + $0x19] sm:$0xff] }
0x100b   : > { %v5813_v0 = vld [vmem:[#allocation4 + $0x6] sm:$0xff]  ;;  %v5789_v8 = vmul.f32 %v6587_v62, %v5780_v31  ;;  %v5713_v9 = vld [vmem:[#allocation4 + $0x10] sm:$0xff]  ;;  %v5723_v1 = vmul.f32 %v6583_v53, %v5714_v25  ;;  %v5748_v3 = vld [vmem:[#allocation4 + $0x1a] sm:$0xff]  ;;  %v5740_v56 = vmul.f32 %v6584_v59, %v5731_v36  ;;  %v5774_v44 = vmul.f32 %v6586_v42, %v5765_v46 }
0x100c   : > { %v5775_v28 = vadd.f32 %v5771_v30, %v5758_v16  ;;  %v5776_v51 = vadd.f32 %v5772_v61, %v5759_v33  ;;  %v5730_v2 = vld [vmem:[#allocation4 + $0x11] sm:$0xff]  ;;  %v5722_v34 = vmul.f32 %v6583_v53, %v5713_v9  ;;  %v5822_v24 = vmul.f32 %v9241_v55, %v5813_v0  ;;  %v5782_v53 = vld [vmem:[#allocation4 + $0x1c] sm:$0xff] }
0x100d   : > { %v5747_v19 = vld [vmem:[#allocation4 + $0x12] sm:$0xff]  ;;  %v5739_v47 = vmul.f32 %v6584_v59, %v5730_v2  ;;  %v5744_v10 = vadd.f32 %v5740_v56, %v5723_v1  ;;  %v5757_v48 = vmul.f32 %v9232_v45, %v5748_v3  ;;  %v5799_v30 = vld [vmem:[#allocation4 + $0x1d] sm:$0xff]  ;;  %v5791_v13 = vmul.f32 %v6587_v62, %v5782_v53 }
0x100e   : > { %v5792_v58 = vadd.f32 %v5788_v43, %v5775_v28  ;;  %v5814_v29 = vld [vmem:[#allocation4 + $0xe] sm:$0xff]  ;;  %v5793_v7 = vadd.f32 %v5789_v8, %v5776_v51  ;;  %v5756_v57 = vmul.f32 %v9232_v45, %v5747_v19  ;;  %v5815_v14 = vld [vmem:[#allocation4 + $0x16] sm:$0xff]  ;;  %v5816_v45 = vld [vmem:[#allocation4 + $0x1e] sm:$0xff]  ;;  %v5808_v51 = vmul.f32 %v6588_v60, %v5799_v30 }
0x100f   : > { %v5764_v52 = vld [vmem:[#allocation4 + $0x13] sm:$0xff]  ;;  %v5743_v17 = vadd.f32 %v5739_v47, %v5722_v34  ;;  %v5823_v32 = vmul.f32 %v9241_v55, %v5814_v29  ;;  %v5761_v50 = vadd.f32 %v5757_v48, %v5744_v10  ;;  %v5824_v43 = vmul.f32 %v9241_v55, %v5815_v14 }
0x1010   : > { %v5809_v21 = vadd.f32 %v5805_v22, %v5792_v58  ;;  %v5810_v54 = vadd.f32 %v5806_v38, %v5793_v7  ;;  %v5781_v15 = vld [vmem:[#allocation4 + $0x14] sm:$0xff]  ;;  %v5773_v12 = vmul.f32 %v6586_v42, %v5764_v52  ;;  %v5825_v9 = vmul.f32 %v9241_v55, %v5816_v45  ;;  %v6591_v38 = vld [vmem:[#allocation19] ss:$0 sm:$0xff] }
0x1011   : > { %v5760_v63 = vadd.f32 %v5756_v57, %v5743_v17  ;;  %v5798_v37 = vld [vmem:[#allocation4 + $0x15] sm:$0xff]  ;;  %v5790_v23 = vmul.f32 %v6587_v62, %v5781_v15  ;;  %v5778_v61 = vadd.f32 %v5774_v44, %v5761_v50 }
0x1012   : > { %v5826_v4 = vadd.f32 %v5822_v24, %v5809_v21  ;;  %v5827_v20 = vadd.f32 %v5823_v32, %v5810_v54  ;;  %v5807_v59 = vmul.f32 %v6588_v60, %v5798_v37  ;;  %v5966_v60 = vld [vmem:[%s9489_s3] sm:$0xff]  ;;  %s6089_s3 = scalar_lea.hbm %s8172_s21, %s6604_s7 }
0x1013   : > { %v5777_v39 = vadd.f32 %v5773_v12, %v5760_v63  ;;  %v5795_v0 = vadd.f32 %v5791_v13, %v5778_v61  ;;  %5969 = vperm.xlu0 %7465, %v5966_v60   ;;  %v5965_v3 = vld [vmem:[%s9490_s4] sm:$0xff] }
0x1014   : > { %v5837_v27 = vadd.f32 %v6590_v11, %v5826_v4  ;;  %v5838_v41 = vadd.f32 %v6590_v11, %v5827_v20 }
0x1015   : > { %v5794_v16 = vadd.f32 %v5790_v23, %v5777_v39  ;;  %v5812_v42 = vadd.f32 %v5808_v51, %v5795_v0 }
0x1016   : > { %v5841_v49 = vmax.f32 %v5837_v27, 0.0  ;;  %v5842_v33 = vmax.f32 %v5838_v41, 0.0 }
0x1017   : > { %v5811_v31 = vadd.f32 %v5807_v59, %v5794_v16  ;;  %v5829_v19 = vadd.f32 %v5825_v9, %v5812_v42 }
0x1018   : > { %v5845_v28 = vmin.f32 %v5841_v49, 6.0  ;;  %v5846_v6 = vmin.f32 %v5842_v33, 6.0 }
0x1019   : > { %v5828_v8 = vadd.f32 %v5824_v43, %v5811_v31  ;;  %v5840_v58 = vadd.f32 %v6590_v11, %v5829_v19 }
0x101a   : > { %7254 = vmatprep.mubr.msk.f32.mxu0 %vm5269_vm14, %v5845_v28 }
0x101b   : > { %7255 = vmatmul.mubr.msk.f32.vlgmr.msra.gmra.mxu0 %vm5269_vm14, %v5846_v6  ;;  %v5839_v2 = vadd.f32 %v6590_v11, %v5828_v8  ;;  %v5844_v29 = vmax.f32 %v5840_v58, 0.0 }
0x101d   : > { %v5843_v62 = vmax.f32 %v5839_v2, 0.0  ;;  %v5848_v34 = vmin.f32 %v5844_v29, 6.0 }
0x101f   : > { %v5847_v22 = vmin.f32 %v5843_v62, 6.0 }
0x1021   : > { %7257 = vmatprep.mubr.msk.f32.mxu0 %vm5269_vm14, %v5847_v22 }
0x1022   : > { %7258 = vmatmul.mubr.msk.f32.gmra.mxu0 %vm5269_vm14, %v5848_v34 }
0x10db   : > { %v7256_v47 = vpop.f32.mrf.mxu0 }
0x10dc   : > { %v5948_v21 = vadd.f32 %v7256_v47, %v6591_v38 }
0x10dd   : > { %v5942_v7 = vpop.f32.mrf.mxu0 }
0x10de   : > { %v5962_v57 = vadd.f32 %v5948_v21, %v9200_v18 }
0x10e2   : > { %v7259_v24 = vpop.f32.mrf.mxu0 }
0x10e3   : > { %v5958_v52 = vadd.f32 %v7259_v24, %v6591_v38 }
0x10e4   : > { %v5952_v55 = vpop.f32.mrf.mxu0 }
0x10e5   : > { %v5964_v25 = vadd.f32 %v5958_v52, %v9210_v40  ;;  %v5953_v36 = vadd.f32 %v6591_v38, %v5952_v55  ;;  %v5943_v40 = vadd.f32 %v6591_v38, %v5942_v7 }
0x10e7   : > { %7261 = vmatpush3.xpose.msk.msra.mxu1 %vm4957_vm3, %v5964_v25  ;;  %v5963_v17 = vadd.f32 %v5953_v36, %v9207_v5  ;;  %v5961_v1 = vadd.f32 %v5943_v40, %v9197_v26 }
0x10e8   : > { %7262 = vmatprep.subr.mxu1 %v9042_v35 }
0x10eb   : > { %7263 = vmatpush3.xpose.msk.msra.mxu1 %vm4957_vm3, %v5963_v17 }
0x10ec   : > { %7264 = vmatprep.subr.mxu1 %v9042_v35 }
0x10ef   : > { %7265 = vmatpush3.xpose.msk.msra.mxu1 %vm4957_vm3, %v5962_v57 }
0x10f0   : > { %7266 = vmatprep.subr.mxu1 %v9042_v35 }
0x10f3   : > { %7267 = vmatpush3.xpose.msk.msra.mxu1 %vm4957_vm3, %v5961_v1 }
0x10f6   : > { %7269 = vmatmul.mubr.msk.f32.vlgmr.msra.gmra.mxu1 %vm4957_vm3, %v5965_v3 }
0x10f7   : > { %7715 = shalt.err (!%p7712_p6)
}
0x10f8   : > { %s7716_s4 = scalar_lea.hbm %s6089_s3, 64  ;;  %s7720_s28 = scalar_lea.hbm %s8172_s21, 128 }
0x10f9   : > { %p7717_p12 = scmp.ne.s32.totalorder %s6089_s3, %s7716_s4  ;;  %p7721_p8 = scmp.lt.s32.totalorder %s6089_s3, %s8172_s21 }
0x10fa   : > { %p7722_p11 = scmp.lt.s32.totalorder %s7720_s28, %s7716_s4 }
0x10fb   : > { %p7718_p10 = pnand %p7717_p12, %p9491_p2 }
0x10fc   : > { %p7723_p0 = por %p7722_p11, %p7721_p8 }
0x10fd   : > { %p7719_p7 = pneg %p7718_p10 }
0x10ff   : > { %p7724_p1 = pnand %p7723_p0, %p7719_p7 }
0x1101   : > { %7727 = shalt.err (!%p7724_p1)
}
0x1102   : > { %7308 = dma.vmem_to_hbm [thread:$0]  (%p9491_p2), %s6092_s5, 64, %s6089_s3, %s6065_s6   ;;  %v5970_v35 = vpop.permute.xlu0 %5969  ;;  %vm6057_vm1 = vcmask 252928  }
0x1103   : > { %s6348_s9 = sshll.u32 %s9036_s2, 3  ;;  %s6603_s8 = sshll.u32 %s8195_s0, 7 }
0x1104   : > { %s1768_s11 = scalar_lea.vmem [#allocation20], %s6348_s9  ;;  %s9282_s4 = scalar_lea.hbm %s8167_s20, %s6603_s8 }
0x1105   : > { %s6078_s10 = sshll.u32 %s1768_s11, 4  ;;  %s6060_s7 = scalar_lea.sflag [#allocation7], %s9036_s2  ;;  %s6079_s10 = int_to_ptr.vmem [resolvable:$true] %s6078_s10 }
0x1106   : > { %s7728_s28 = scalar_lea.vmem %s6079_s10, 128  ;;  %s7883_s5 = smov [#allocation20]  }
0x1107   : > { %p7729_p3 = scmp.ne.s32.totalorder %s6079_s10, %s7728_s28  ;;  %s7732_s3 = sshll.u32 %s7883_s5, 4  ;;  %s7733_s3 = int_to_ptr.vmem [resolvable:$false] %s7732_s3 }
0x1108   : > { %s7734_s6 = scalar_lea.vmem %s7733_s3, 256  ;;  %p7735_p13 = scmp.lt.s32.totalorder %s6079_s10, %s7733_s3 }
0x1109   : > { %p7730_p9 = pnand %p7729_p3, %p9491_p2  ;;  %p7736_p5 = scmp.lt.s32.totalorder %s7734_s6, %s7728_s28 }
0x110b   : > { %p7731_p4 = pneg %p7730_p9  ;;  %p7737_p6 = por %p7736_p5, %p7735_p13 }
0x110d   : > { %p7738_p12 = pnand %p7737_p6, %p7731_p4 }
0x11b6   : > { %v6053_v26 = vpop.f32.mrf.mxu1 }
0x11b7   : > { %v6054_v18 = vadd.f32 %v6053_v26, %v5970_v35 }
0x11b8   : > { %v7270_v5 = vpop.f32.mrf.mxu1 }
0x11b9   : > { %6058 = vst.msk [vmem:[%s1768_s11] sm:$0xff] %vm6057_vm1, %v6054_v18 }
0x11ba   : > { %7741 = shalt.err (!%p7738_p12)
}
0x11bb   : > { %s7742_s0 = scalar_lea.hbm %s9282_s4, 128  ;;  %s7746_s2 = scalar_lea.hbm %s8167_s20, 256 }
0x11bc   : > { %p7743_p10 = scmp.ne.s32.totalorder %s9282_s4, %s7742_s0  ;;  %p7747_p11 = scmp.lt.s32.totalorder %s9282_s4, %s8167_s20 }
0x11bd   : > { %p7748_p0 = scmp.lt.s32.totalorder %s7746_s2, %s7742_s0 }
0x11be   : > { %p7744_p7 = pnand %p7743_p10, %p9491_p2 }
0x11bf   : > { %p7749_p1 = por %p7748_p0, %p7747_p11 }
0x11c0   : > { %p7745_p8 = pneg %p7744_p7 }
0x11c2   : > { %p7750_p3 = pnand %p7749_p1, %p7745_p8 }
0x11c4   : > { %7753 = shalt.err (!%p7750_p3)
}
0x11c5   : > { %7307 = dma.vmem_to_hbm [thread:$0]  (%p9491_p2), %s6079_s10, 128, %s9282_s4, %s6060_s7  }
0x11c6 PF: > { %s9492_s9 = sld [smem:[#allocation78_spill]] }
0x11c7   : > { %s9493_s8 = sld [smem:[#allocation76_spill]] }
0x11c8   : > { %s9494_s11 = sld [smem:[#allocation81_spill]] }
0x11cc   : > { %p7364_p9 = scmp.ge.s32.totalorder %s9492_s9, 2 }
0x11cd   : > { %s6103_s28 = sand.u32 1, %s9493_s8  }
0x11ce   : > { %p9495_p4 = scmp.ne.s32.totalorder %s9494_s11, 0  ;;  %s6104_s5 = scalar_lea.sflag [#allocation7], %s6103_s28 }
0x11d0   : > { %p7340_p13 = pnand %p7364_p9, %p9495_p4 }
0x11d2   : > { %p7341_p5 = pneg %p7340_p13 }
0x11d4   : > { %7791 = dma.done.wait (%p7341_p5), %s6104_s5, 128  }
0x11d5   : > { %7793 = vsyncadd (%p7341_p5), %s6104_s5, 4294967168  ;;  %s6113_s3 = scalar_lea.sflag [#allocation22], %s6103_s28 }
0x11d6   : > { %7795 = dma.done.wait (%p7341_p5), %s6113_s3, 64  }
0x11d7   : > { %7797 = vsyncadd (%p7341_p5), %s6113_s3, 4294967232  ;;  %s9496_s7 = sld [smem:[#allocation79_spill]]  ;;  %s9499_s28 = smov %s7804_s1 }
0x11d8   : > { %s9497_s22 = sld [smem:[#allocation77_spill]] }
0x11d9   : > { %s9498_s2 = sld [smem:[#allocation80_spill]] }
0x11dd   : > { %p132_p2 = scmp.ge.s32.totalorder %s9496_s7, 4  }
0x11de   : > { %s9500_s1 = smov %s9497_s22 }
0x11df   :  { %134 = sbr.rel (!%p132_p2) target bundleno = 119 (0x77), region = 389 }
0x11e4   :  { %6118 = vsyncpa [#allocation6], 1 }
0x11e5   :  { %6120 = vsyncpa [#allocation6 + $0x1], 1 }
0x11e6   :  { %6121 = vsyncpa [#allocation9], 1 }
0x11e7   :  { %6122 = vsyncpa [#allocation12], 1 }
0x11e8   :  { %6123 = vsyncpa [#allocation15], 1 }
0x11e9   :  { %6124 = vsyncpa [#allocation18], 1 }
0x11ea   :  { %6125 = vsyncpa [#allocation7], 1 }
0x11eb   :  { %6127 = vsyncpa [#allocation7 + $0x1], 1 }
0x11ec   :  { %6128 = vsyncpa [#allocation22], 1 }
0x11ed   :  { %6130 = vsyncpa [#allocation22 + $0x1], 1 }

</bundles_post_ra>
